<compile_context>
chip_gen: v7x
topology: tpu7x:2x2x1
jax: 0.10.0
libtpu: 0.0.40
codegen_flags: <defaults>
</compile_context>

<pallas_src>
import functools

import jax
import jax.numpy as jnp
from jax.experimental import pallas as pl
from jax.experimental.pallas import tpu as pltpu

_VMEM = pltpu.MemorySpace.VMEM


# ----------------------------------------------------------------------------
# In-kernel helpers
# ----------------------------------------------------------------------------
def _conv3x3_taps(xm_ref, xh_ref, w_ref, *, th, wc, cin):
    """3x3 conv over one H-tile, taps merged into wide-K MXU dots.

    xm_ref : (1, th, WP, cin)  main rows of the spatially padded input
    xh_ref : (1, 2,  WP, cin)  2-row bottom halo
    w_ref  : (3, 3*cin, cout)  weights, rows ordered (kx, cin)
    returns: (th*wc, cout) f32 accumulator (valid for output columns < W)
    """
    strip = jnp.concatenate([xm_ref[0], xh_ref[0]], axis=0)   # (th+2, WP, cin)
    w = w_ref[...]
    if cin % 128 == 0:
        # kx-merged im2col: only 2 shifted column windows of the strip, then
        # 3 dots with K = 3*cin (fills the 256-deep MXU on v6e/v7x) instead
        # of 9 dots with K = cin.  The lane concat is 128-aligned -> cheap.
        xcol = jnp.concatenate(
            [strip[:, kx:kx + wc, :] for kx in range(3)], axis=-1)
        acc = None
        for ky in range(3):                      # only the ky row offset moves
            lhs = xcol[ky:ky + th].reshape(th * wc, 3 * cin)
            d = jnp.dot(lhs, w[ky], preferred_element_type=jnp.float32)
            acc = d if acc is None else acc + d
    else:
        # Tiny-channel path (the 1/3-channel extractor inputs): 9 small dots.
        acc = None
        for ky in range(3):
            for kx in range(3):
                lhs = strip[ky:ky + th, kx:kx + wc, :].reshape(th * wc, cin)
                d = jnp.dot(lhs, w[ky, kx * cin:(kx + 1) * cin, :],
                            preferred_element_type=jnp.float32)
                acc = d if acc is None else acc + d
    return acc


def _stage_a_kernel(xm_ref, xh_ref, we_ref, be_ref, w1_ref, b1_ref, s1_ref,
                    t1_ref, feats_ref, x1_ref, *, th, wc, w, cin):
    # Stand-in extractors: one block-diagonal 3x3 conv + ReLU over [ir | vis].
    acc = _conv3x3_taps(xm_ref, xh_ref, we_ref, th=th, wc=wc, cin=cin)
    feats = jnp.maximum(acc + be_ref[...], 0.0)            # (th*wc, 2*base) f32
    f3 = feats.reshape(th, wc, feats.shape[-1])
    feats_ref[0] = f3[:, :w, :].astype(feats_ref.dtype)
    # fusion_convs[0]: 1x1 conv -> ReLU -> BN.  The torch.cat() never exists:
    # `feats` already holds [ir_features | fourier_features] in VMEM.
    y = jnp.dot(feats.astype(jnp.bfloat16), w1_ref[...],
                preferred_element_type=jnp.float32) + b1_ref[...]
    y = jnp.maximum(y, 0.0) * s1_ref[...] + t1_ref[...]
    y3 = y.reshape(th, wc, y.shape[-1])
    x1_ref[0] = y3[:, :w, :].astype(x1_ref.dtype)


def _stage_b_kernel(xm_ref, xh_ref, w2_ref, b2_ref, s2_ref, t2_ref, x2_ref, *,
                    th, wc, w, cin):
    # fusion_convs[3]: 3x3 conv -> ReLU -> BN.
    acc = _conv3x3_taps(xm_ref, xh_ref, w2_ref, th=th, wc=wc, cin=cin)
    y = jnp.maximum(acc + b2_ref[...], 0.0) * s2_ref[...] + t2_ref[...]
    y3 = y.reshape(th, wc, y.shape[-1])
    x2_ref[0] = y3[:, :w, :].astype(x2_ref.dtype)


def _stage_c_kernel(xm_ref, xh_ref, w3_ref, b3_ref, s3_ref, t3_ref, w4_ref,
                    b4_ref, wo_ref, bo_ref, fused_ref, out_ref, *,
                    th, wc, w, cin, c_out):
    # fusion_convs[6]: 3x3 conv -> ReLU -> BN   (Cout zero-padded to 128 lanes)
    acc = _conv3x3_taps(xm_ref, xh_ref, w3_ref, th=th, wc=wc, cin=cin)
    a = jnp.maximum(acc + b3_ref[...], 0.0) * s3_ref[...] + t3_ref[...]
    # fusion_convs[9]: 1x1 conv -> ReLU   (== `fused_features`)
    fused = jnp.dot(a.astype(jnp.bfloat16), w4_ref[...],
                    preferred_element_type=jnp.float32) + b4_ref[...]
    fused = jnp.maximum(fused, 0.0)
    f3 = fused.reshape(th, wc, fused.shape[-1])
    fused_ref[0] = f3[:, :w, :c_out].astype(fused_ref.dtype)
    # output_conv 1x1 with its BatchNorm folded in (no activation between).
    out = jnp.dot(fused.astype(jnp.bfloat16), wo_ref[...],
                  preferred_element_type=jnp.float32) + bo_ref[...]
    o3 = out.reshape(th, wc, out.shape[-1])
    out_ref[0] = o3[:, :w, :c_out].astype(out_ref.dtype)


# ----------------------------------------------------------------------------
# Spec / tiling helpers
# ----------------------------------------------------------------------------
def _round_up(x, m):
    return (x + m - 1) // m * m


def _pick_tile_h(h, wc):
    # Largest even H-tile that divides H and keeps the per-tile working set
    # comfortably inside scoped VMEM (budget must be re-derived for v7x 64MiB).
    for t in (64, 32, 16, 8, 4, 2):
        if h % t == 0 and t * wc <= 8192:
            return t
    raise ValueError(f"unsupported spatial height {h}")


def _spatial_pad(x, wp):
    b, h, w, c = x.shape
    return jnp.pad(x, ((0, 0), (1, 1), (1, wp - w - 1), (0, 0)))


def _act_specs(th, wp, c):
    # Main TH-row block plus a 2-row bottom-halo block of the same padded
    # array: the kernel sees exactly the TH+2 rows a 3x3 conv needs.
    main = pl.BlockSpec((1, th, wp, c), lambda b, h: (b, h, 0, 0),
                        memory_space=_VMEM)
    halo = pl.BlockSpec((1, 2, wp, c),
                        lambda b, h: (b, (h + 1) * (th // 2), 0, 0),
                        memory_space=_VMEM)
    return main, halo


def _param_spec(shape):
    zeros = (0,) * len(shape)
    return pl.BlockSpec(tuple(shape), lambda b, h, _z=zeros: _z,
                        memory_space=_VMEM)


def _out_spec(th, w, c):
    return pl.BlockSpec((1, th, w, c), lambda b, h: (b, h, 0, 0),
                        memory_space=_VMEM)


# ----------------------------------------------------------------------------
# Parameters (deterministic, synthetic)
# ----------------------------------------------------------------------------
def _bn_fold(key, c, eps=1e-5):
    k1, k2, k3, k4 = jax.random.split(key, 4)
    gamma = 1.0 + 0.1 * jax.random.normal(k1, (c,), jnp.float32)
    beta = 0.1 * jax.random.normal(k2, (c,), jnp.float32)
    mean = 0.1 * jax.random.normal(k3, (c,), jnp.float32)
    var = 1.0 + 0.1 * jnp.abs(jax.random.normal(k4, (c,), jnp.float32))
    scale = gamma / jnp.sqrt(var + eps)
    shift = beta - mean * scale
    return scale, shift


def init_params(key, base=16):
    c8, c4, cat = base * 8, base * 4, 2 * base
    ks = jax.random.split(key, 20)
    rnd = lambda i, shp: 0.1 * jax.random.normal(ks[i], shp, jnp.float32)
    p = {}
    # stand-in extractors: one 3x3 conv (+ReLU) each, 1->base and 3->base
    p["w_ir"], p["b_ir"] = rnd(0, (3, 3, 1, base)), rnd(1, (base,))
    p["w_vis"], p["b_vis"] = rnd(2, (3, 3, 3, base)), rnd(3, (base,))
    # fusion_convs
    p["w1"], p["b1"] = rnd(4, (cat, c8)), rnd(5, (c8,))
    p["s1"], p["t1"] = _bn_fold(ks[6], c8)
    p["w2"], p["b2"] = rnd(7, (3, 3, c8, c8)), rnd(8, (c8,))
    p["s2"], p["t2"] = _bn_fold(ks[9], c8)
    p["w3"], p["b3"] = rnd(10, (3, 3, c8, c4)), rnd(11, (c4,))
    p["s3"], p["t3"] = _bn_fold(ks[12], c4)
    p["w4"], p["b4"] = rnd(13, (c4, c4)), rnd(14, (c4,))
    # output_conv + norm
    p["wo"], p["bo"] = rnd(15, (c4, c4)), rnd(16, (c4,))
    p["so"], p["to"] = _bn_fold(ks[17], c4)
    return p


def prepare_params(p):
    """Kernel-ready parameters: block-diagonal extractor, merged 3x3 taps,
    128-lane channel padding, output-BN folding, bf16 weight storage."""
    f32, bf16 = jnp.float32, jnp.bfloat16
    base = p["b_ir"].shape[0]
    cat, c8, c4 = 2 * base, p["b1"].shape[0], p["b4"].shape[0]
    cp = c8  # pad the c4 (=64) tail layers up to c8 (=128) lanes

    # Block-diagonal combined extractor: conv([ir|vis], w_ext) ==
    # [conv(ir, w_ir) | conv(vis, w_vis)] -> the channel concat never hits HBM.
    w_ext = jnp.zeros((3, 3, 4, cat), f32)
    w_ext = w_ext.at[:, :, 0:1, 0:base].set(p["w_ir"])
    w_ext = w_ext.at[:, :, 1:4, base:cat].set(p["w_vis"])
    b_ext = jnp.concatenate([p["b_ir"], p["b_vis"]])

    # Fold the output BatchNorm straight into output_conv (no activation between).
    wo_f = p["wo"] * p["so"][None, :]
    bo_f = p["bo"] * p["so"] + p["to"]

    def padc(a, axis, to):
        pad = [(0, 0)] * a.ndim
        pad[axis] = (0, to - a.shape[axis])
        return jnp.pad(a, pad)

    w3p = padc(p["w3"], 3, cp)
    b3p = padc(p["b3"], 0, cp)
    s3p = jnp.concatenate([p["s3"], jnp.ones((cp - c4,), f32)])
    t3p = padc(p["t3"], 0, cp)
    w4p = padc(padc(p["w4"], 0, cp), 1, cp)
    b4p = padc(p["b4"], 0, cp)
    wop = padc(padc(wo_f, 0, cp), 1, cp)
    bop = padc(bo_f, 0, cp)

    # (ky, kx, Cin, Cout) -> (ky, kx*Cin, Cout): 3 wide-K tap matrices.
    merge = lambda wt: wt.astype(bf16).reshape(3, 3 * wt.shape[2], wt.shape[3])
    return dict(
        we_m=merge(w_ext), be=b_ext.reshape(1, cat),
        w1=p["w1"].astype(bf16), b1=p["b1"].reshape(1, c8),
        s1=p["s1"].reshape(1, c8), t1=p["t1"].reshape(1, c8),
        w2_m=merge(p["w2"]), b2=p["b2"].reshape(1, c8),
        s2=p["s2"].reshape(1, c8), t2=p["t2"].reshape(1, c8),
        w3_m=merge(w3p), b3=b3p.reshape(1, cp),
        s3=s3p.reshape(1, cp), t3=t3p.reshape(1, cp),
        w4=w4p.astype(bf16), b4=b4p.reshape(1, cp),
        wo=wop.astype(bf16), bo=bop.reshape(1, cp),
    )


# ----------------------------------------------------------------------------
# Forward pass (3 fused pallas_calls)
# ----------------------------------------------------------------------------
@jax.jit
def forward(ir_nchw, vis_nchw, params):
    kp = prepare_params(params)
    base = params["b_ir"].shape[0]
    cat, c8, c4 = 2 * base, params["b1"].shape[0], params["b4"].shape[0]
    B, _, H, W = ir_nchw.shape

    WC = _round_up(W, 8)        # compute width (keeps in-kernel reshapes free)
    WP = WC + 8                 # spatially padded input width (multiple of 8)
    TH = _pick_tile_h(H, WC)
    grid = (B, H // TH)

    cparams = pltpu.CompilerParams(
        dimension_semantics=("parallel", "parallel"),
        vmem_limit_bytes=48 * 1024 * 1024)

    # --- stage A: extractors (+ReLU) + fusion 1x1 -> ReLU -> BN --------------
    xin = jnp.concatenate(
        [jnp.transpose(ir_nchw, (0, 2, 3, 1)),
         jnp.transpose(vis_nchw, (0, 2, 3, 1))], axis=-1).astype(jnp.bfloat16)
    xin_p = _spatial_pad(xin, WP)                          # (B, H+2, WP, 4)
    main_a, halo_a = _act_specs(TH, WP, 4)
    feats, x1 = pl.pallas_call(
        functools.partial(_stage_a_kernel, th=TH, wc=WC, w=W, cin=4),
        grid=grid,
        in_specs=[main_a, halo_a,
                  _param_spec(kp["we_m"].shape), _param_spec(kp["be"].shape),
                  _param_spec(kp["w1"].shape), _param_spec(kp["b1"].shape),
                  _param_spec(kp["s1"].shape), _param_spec(kp["t1"].shape)],
        out_specs=(_out_spec(TH, W, cat), _out_spec(TH, W, c8)),
        out_shape=(jax.ShapeDtypeStruct((B, H, W, cat), jnp.float32),
                   jax.ShapeDtypeStruct((B, H, W, c8), jnp.bfloat16)),
        compiler_params=cparams,
    )(xin_p, xin_p, kp["we_m"], kp["be"], kp["w1"], kp["b1"], kp["s1"], kp["t1"])

    # --- stage B: 3x3 -> ReLU -> BN -------------------------------------------
    x1p = _spatial_pad(x1, WP)
    main_b, halo_b = _act_specs(TH, WP, c8)
    x2 = pl.pallas_call(
        functools.partial(_stage_b_kernel, th=TH, wc=WC, w=W, cin=c8),
        grid=grid,
        in_specs=[main_b, halo_b,
                  _param_spec(kp["w2_m"].shape), _param_spec(kp["b2"].shape),
                  _param_spec(kp["s2"].shape), _param_spec(kp["t2"].shape)],
        out_specs=_out_spec(TH, W, c8),
        out_shape=jax.ShapeDtypeStruct((B, H, W, c8), jnp.bfloat16),
        compiler_params=cparams,
    )(x1p, x1p, kp["w2_m"], kp["b2"], kp["s2"], kp["t2"])

    # --- stage C: 3x3 -> ReLU -> BN + 1x1 -> ReLU + output_conv(+BN folded) ---
    x2p = _spatial_pad(x2, WP)
    main_c, halo_c = _act_specs(TH, WP, c8)
    fused, output = pl.pallas_call(
        functools.partial(_stage_c_kernel, th=TH, wc=WC, w=W, cin=c8, c_out=c4),
        grid=grid,
        in_specs=[main_c, halo_c,
                  _param_spec(kp["w3_m"].shape), _param_spec(kp["b3"].shape),
                  _param_spec(kp["s3"].shape), _param_spec(kp["t3"].shape),
                  _param_spec(kp["w4"].shape), _param_spec(kp["b4"].shape),
                  _param_spec(kp["wo"].shape), _param_spec(kp["bo"].shape)],
        out_specs=(_out_spec(TH, W, c4), _out_spec(TH, W, c4)),
        out_shape=(jax.ShapeDtypeStruct((B, H, W, c4), jnp.float32),
                   jax.ShapeDtypeStruct((B, H, W, c4), jnp.float32)),
        compiler_params=cparams,
    )(x2p, x2p, kp["w3_m"], kp["b3"], kp["s3"], kp["t3"],
      kp["w4"], kp["b4"], kp["wo"], kp["bo"])

    to_nchw = lambda t: jnp.transpose(t, (0, 3, 1, 2))
    return {
        "ir_features": to_nchw(feats[..., :base]),
        "fourier_features": to_nchw(feats[..., base:]),
        "fused_features": to_nchw(fused),
        "output": to_nchw(output),
    }


# ----------------------------------------------------------------------------
# Pure-JAX reference (mirrors the kernels' dtype/quantization points exactly)
# ----------------------------------------------------------------------------
def _ref_conv3x3(x, w_m, b):
    bb, hh, ww, ci = x.shape
    co = w_m.shape[-1]
    wt = w_m.reshape(3, 3, ci, co).astype(jnp.float32)
    xp = jnp.pad(x.astype(jnp.float32), ((0, 0), (1, 1), (1, 1), (0, 0)))
    out = jnp.zeros((bb, hh, ww, co), jnp.float32)
    for ky in range(3):
        for kx in range(3):
            out = out + jnp.einsum("bhwc,cd->bhwd",
                                   xp[:, ky:ky + hh, kx:kx + ww, :], wt[ky, kx])
    return out + b.reshape(1, 1, 1, co)


def _ref_1x1(x, wt, b):
    return (jnp.einsum("bhwc,cd->bhwd", x.astype(jnp.float32),
                       wt.astype(jnp.float32)) + b.reshape(1, 1, 1, -1))


@jax.jit
def forward_ref(ir_nchw, vis_nchw, params):
    kp = prepare_params(params)
    base = params["b_ir"].shape[0]
    c4 = params["b4"].shape[0]
    bf16 = jnp.bfloat16
    x = jnp.concatenate([jnp.transpose(ir_nchw, (0, 2, 3, 1)),
                         jnp.transpose(vis_nchw, (0, 2, 3, 1))],
                        axis=-1).astype(bf16)
    feats = jnp.maximum(_ref_conv3x3(x, kp["we_m"], kp["be"]), 0.0)
    x1 = jnp.maximum(_ref_1x1(feats.astype(bf16), kp["w1"], kp["b1"]),
                     0.0) * kp["s1"] + kp["t1"]
    x2 = jnp.maximum(_ref_conv3x3(x1.astype(bf16), kp["w2_m"], kp["b2"]),
                     0.0) * kp["s2"] + kp["t2"]
    a3 = jnp.maximum(_ref_conv3x3(x2.astype(bf16), kp["w3_m"], kp["b3"]),
                     0.0) * kp["s3"] + kp["t3"]
    fused = jnp.maximum(_ref_1x1(a3.astype(bf16), kp["w4"], kp["b4"]), 0.0)
    out = _ref_1x1(fused.astype(bf16), kp["wo"], kp["bo"])
    to_nchw = lambda t: jnp.transpose(t, (0, 3, 1, 2))
    return {
        "ir_features": to_nchw(feats[..., :base]),
        "fourier_features": to_nchw(feats[..., base:2 * base]),
        "fused_features": to_nchw(fused[..., :c4]),
        "output": to_nchw(out[..., :c4]),
    }


# ----------------------------------------------------------------------------
if __name__ == "__main__":
    key = jax.random.PRNGKey(0)
    k_ir, k_vis, k_p = jax.random.split(key, 3)

    B, H, W, base = 2, 16, 16, 16
    ir_image = jax.random.normal(k_ir, (B, 1, H, W), jnp.float32)
    visible_image = jax.random.normal(k_vis, (B, 3, H, W), jnp.float32)
    params = init_params(k_p, base=base)

    out = forward(ir_image, visible_image, params)
    out = jax.block_until_ready(out)

    assert out["ir_features"].shape == (B, base, H, W)
    assert out["fourier_features"].shape == (B, base, H, W)
    assert out["fused_features"].shape == (B, 4 * base, H, W)
    assert out["output"].shape == (B, 4 * base, H, W)

    ref = forward_ref(ir_image, visible_image, params)
    for name in ("ir_features", "fourier_features", "fused_features", "output"):
        got, want = out[name], ref[name]
        assert bool(jnp.all(jnp.isfinite(got))), name
        assert bool(jnp.allclose(got, want, rtol=5e-2, atol=1e-2)), name

    print("KERNEL_OK")
</pallas_src>

<mosaic_0001>
module attributes {stable_mosaic.version = 11 : i64} {
  func.func @_stage_a_kernel(%arg0: i32, %arg1: i32, %arg2: memref<1x16x24x4xbf16, #tpu.memory_space<vmem>>, %arg3: memref<1x2x24x4xbf16, #tpu.memory_space<vmem>>, %arg4: memref<3x12x32xbf16, #tpu.memory_space<vmem>>, %arg5: memref<1x32xf32, #tpu.memory_space<vmem>>, %arg6: memref<32x128xbf16, #tpu.memory_space<vmem>>, %arg7: memref<1x128xf32, #tpu.memory_space<vmem>>, %arg8: memref<1x128xf32, #tpu.memory_space<vmem>>, %arg9: memref<1x128xf32, #tpu.memory_space<vmem>>, %arg10: memref<1x16x16x32xf32, #tpu.memory_space<vmem>>, %arg11: memref<1x16x16x128xbf16, #tpu.memory_space<vmem>>) attributes {dimension_semantics = [#tpu.dimension_semantics<parallel>, #tpu.dimension_semantics<parallel>], iteration_bounds = array<i64: 2, 1>, scalar_prefetch = 0 : i64, scratch_operands = 0 : i64, tpu.core_type = #tpu.core_type<tc>, window_params = [{transform_indices = @transform_0, window_bounds = array<i64: 1, 16, 24, 4>}, {transform_indices = @transform_1, window_bounds = array<i64: 1, 2, 24, 4>}, {pipeline_mode = #tpu.pipeline_mode<synchronous>, transform_indices = @transform_2, window_bounds = array<i64: 3, 12, 32>}, {pipeline_mode = #tpu.pipeline_mode<synchronous>, transform_indices = @transform_3, window_bounds = array<i64: 1, 32>}, {pipeline_mode = #tpu.pipeline_mode<synchronous>, transform_indices = @transform_4, window_bounds = array<i64: 32, 128>}, {pipeline_mode = #tpu.pipeline_mode<synchronous>, transform_indices = @transform_5, window_bounds = array<i64: 1, 128>}, {pipeline_mode = #tpu.pipeline_mode<synchronous>, transform_indices = @transform_6, window_bounds = array<i64: 1, 128>}, {pipeline_mode = #tpu.pipeline_mode<synchronous>, transform_indices = @transform_7, window_bounds = array<i64: 1, 128>}, {transform_indices = @transform_8, window_bounds = array<i64: 1, 16, 16, 32>}, {transform_indices = @transform_9, window_bounds = array<i64: 1, 16, 16, 128>}]} {
    %c0 = arith.constant 0 : index
    %c0_0 = arith.constant 0 : index
    %c0_1 = arith.constant 0 : index
    %c0_2 = arith.constant 0 : index
    %0 = vector.load %arg2[%c0, %c0_0, %c0_1, %c0_2] : memref<1x16x24x4xbf16, #tpu.memory_space<vmem>>, vector<1x16x24x4xbf16>
    %1 = vector.shape_cast %0 : vector<1x16x24x4xbf16> to vector<16x24x4xbf16>
    %c0_3 = arith.constant 0 : index
    %c0_4 = arith.constant 0 : index
    %c0_5 = arith.constant 0 : index
    %c0_6 = arith.constant 0 : index
    %2 = vector.load %arg3[%c0_3, %c0_4, %c0_5, %c0_6] : memref<1x2x24x4xbf16, #tpu.memory_space<vmem>>, vector<1x2x24x4xbf16>
    %3 = vector.shape_cast %2 : vector<1x2x24x4xbf16> to vector<2x24x4xbf16>
    %4 = tpu.concatenate %1, %3 in 0 : vector<16x24x4xbf16>, vector<2x24x4xbf16> -> vector<18x24x4xbf16>
    %c0_7 = arith.constant 0 : index
    %c0_8 = arith.constant 0 : index
    %c0_9 = arith.constant 0 : index
    %5 = vector.load %arg4[%c0_7, %c0_8, %c0_9] : memref<3x12x32xbf16, #tpu.memory_space<vmem>>, vector<3x12x32xbf16>
    %6 = vector.extract_strided_slice %4 {offsets = [0, 0, 0], sizes = [16, 16, 4], strides = [1, 1, 1]} : vector<18x24x4xbf16> to vector<16x16x4xbf16>
    %7 = vector.shape_cast %6 : vector<16x16x4xbf16> to vector<256x4xbf16>
    %8 = vector.extract_strided_slice %5 {offsets = [0, 0, 0], sizes = [1, 4, 32], strides = [1, 1, 1]} : vector<3x12x32xbf16> to vector<1x4x32xbf16>
    %9 = vector.shape_cast %8 : vector<1x4x32xbf16> to vector<4x32xbf16>
    %cst = arith.constant dense<0.000000e+00> : vector<256x32xf32>
    %10 = tpu.matmul %7, %9, %cst {dimension_numbers = #tpu.dot_dimension_numbers<[1], [0], [0], [1], [0, 0, 1, 1], [], []>} : vector<256x4xbf16>, vector<4x32xbf16>, vector<256x32xf32> -> vector<256x32xf32>
    %11 = vector.extract_strided_slice %4 {offsets = [0, 1, 0], sizes = [16, 16, 4], strides = [1, 1, 1]} : vector<18x24x4xbf16> to vector<16x16x4xbf16>
    %12 = vector.shape_cast %11 : vector<16x16x4xbf16> to vector<256x4xbf16>
    %13 = vector.extract_strided_slice %5 {offsets = [0, 4, 0], sizes = [1, 4, 32], strides = [1, 1, 1]} : vector<3x12x32xbf16> to vector<1x4x32xbf16>
    %14 = vector.shape_cast %13 : vector<1x4x32xbf16> to vector<4x32xbf16>
    %cst_10 = arith.constant dense<0.000000e+00> : vector<256x32xf32>
    %15 = tpu.matmul %12, %14, %cst_10 {dimension_numbers = #tpu.dot_dimension_numbers<[1], [0], [0], [1], [0, 0, 1, 1], [], []>} : vector<256x4xbf16>, vector<4x32xbf16>, vector<256x32xf32> -> vector<256x32xf32>
    %16 = arith.addf %10, %15 : vector<256x32xf32>
    %17 = vector.extract_strided_slice %4 {offsets = [0, 2, 0], sizes = [16, 16, 4], strides = [1, 1, 1]} : vector<18x24x4xbf16> to vector<16x16x4xbf16>
    %18 = vector.shape_cast %17 : vector<16x16x4xbf16> to vector<256x4xbf16>
    %19 = vector.extract_strided_slice %5 {offsets = [0, 8, 0], sizes = [1, 4, 32], strides = [1, 1, 1]} : vector<3x12x32xbf16> to vector<1x4x32xbf16>
    %20 = vector.shape_cast %19 : vector<1x4x32xbf16> to vector<4x32xbf16>
    %cst_11 = arith.constant dense<0.000000e+00> : vector<256x32xf32>
    %21 = tpu.matmul %18, %20, %cst_11 {dimension_numbers = #tpu.dot_dimension_numbers<[1], [0], [0], [1], [0, 0, 1, 1], [], []>} : vector<256x4xbf16>, vector<4x32xbf16>, vector<256x32xf32> -> vector<256x32xf32>
    %22 = arith.addf %16, %21 : vector<256x32xf32>
    %23 = vector.extract_strided_slice %4 {offsets = [1, 0, 0], sizes = [16, 16, 4], strides = [1, 1, 1]} : vector<18x24x4xbf16> to vector<16x16x4xbf16>
    %24 = vector.shape_cast %23 : vector<16x16x4xbf16> to vector<256x4xbf16>
    %25 = vector.extract_strided_slice %5 {offsets = [1, 0, 0], sizes = [1, 4, 32], strides = [1, 1, 1]} : vector<3x12x32xbf16> to vector<1x4x32xbf16>
    %26 = vector.shape_cast %25 : vector<1x4x32xbf16> to vector<4x32xbf16>
    %cst_12 = arith.constant dense<0.000000e+00> : vector<256x32xf32>
    %27 = tpu.matmul %24, %26, %cst_12 {dimension_numbers = #tpu.dot_dimension_numbers<[1], [0], [0], [1], [0, 0, 1, 1], [], []>} : vector<256x4xbf16>, vector<4x32xbf16>, vector<256x32xf32> -> vector<256x32xf32>
    %28 = arith.addf %22, %27 : vector<256x32xf32>
    %29 = vector.extract_strided_slice %4 {offsets = [1, 1, 0], sizes = [16, 16, 4], strides = [1, 1, 1]} : vector<18x24x4xbf16> to vector<16x16x4xbf16>
    %30 = vector.shape_cast %29 : vector<16x16x4xbf16> to vector<256x4xbf16>
    %31 = vector.extract_strided_slice %5 {offsets = [1, 4, 0], sizes = [1, 4, 32], strides = [1, 1, 1]} : vector<3x12x32xbf16> to vector<1x4x32xbf16>
    %32 = vector.shape_cast %31 : vector<1x4x32xbf16> to vector<4x32xbf16>
    %cst_13 = arith.constant dense<0.000000e+00> : vector<256x32xf32>
    %33 = tpu.matmul %30, %32, %cst_13 {dimension_numbers = #tpu.dot_dimension_numbers<[1], [0], [0], [1], [0, 0, 1, 1], [], []>} : vector<256x4xbf16>, vector<4x32xbf16>, vector<256x32xf32> -> vector<256x32xf32>
    %34 = arith.addf %28, %33 : vector<256x32xf32>
    %35 = vector.extract_strided_slice %4 {offsets = [1, 2, 0], sizes = [16, 16, 4], strides = [1, 1, 1]} : vector<18x24x4xbf16> to vector<16x16x4xbf16>
    %36 = vector.shape_cast %35 : vector<16x16x4xbf16> to vector<256x4xbf16>
    %37 = vector.extract_strided_slice %5 {offsets = [1, 8, 0], sizes = [1, 4, 32], strides = [1, 1, 1]} : vector<3x12x32xbf16> to vector<1x4x32xbf16>
    %38 = vector.shape_cast %37 : vector<1x4x32xbf16> to vector<4x32xbf16>
    %cst_14 = arith.constant dense<0.000000e+00> : vector<256x32xf32>
    %39 = tpu.matmul %36, %38, %cst_14 {dimension_numbers = #tpu.dot_dimension_numbers<[1], [0], [0], [1], [0, 0, 1, 1], [], []>} : vector<256x4xbf16>, vector<4x32xbf16>, vector<256x32xf32> -> vector<256x32xf32>
    %40 = arith.addf %34, %39 : vector<256x32xf32>
    %41 = vector.extract_strided_slice %4 {offsets = [2, 0, 0], sizes = [16, 16, 4], strides = [1, 1, 1]} : vector<18x24x4xbf16> to vector<16x16x4xbf16>
    %42 = vector.shape_cast %41 : vector<16x16x4xbf16> to vector<256x4xbf16>
    %43 = vector.extract_strided_slice %5 {offsets = [2, 0, 0], sizes = [1, 4, 32], strides = [1, 1, 1]} : vector<3x12x32xbf16> to vector<1x4x32xbf16>
    %44 = vector.shape_cast %43 : vector<1x4x32xbf16> to vector<4x32xbf16>
    %cst_15 = arith.constant dense<0.000000e+00> : vector<256x32xf32>
    %45 = tpu.matmul %42, %44, %cst_15 {dimension_numbers = #tpu.dot_dimension_numbers<[1], [0], [0], [1], [0, 0, 1, 1], [], []>} : vector<256x4xbf16>, vector<4x32xbf16>, vector<256x32xf32> -> vector<256x32xf32>
    %46 = arith.addf %40, %45 : vector<256x32xf32>
    %47 = vector.extract_strided_slice %4 {offsets = [2, 1, 0], sizes = [16, 16, 4], strides = [1, 1, 1]} : vector<18x24x4xbf16> to vector<16x16x4xbf16>
    %48 = vector.shape_cast %47 : vector<16x16x4xbf16> to vector<256x4xbf16>
    %49 = vector.extract_strided_slice %5 {offsets = [2, 4, 0], sizes = [1, 4, 32], strides = [1, 1, 1]} : vector<3x12x32xbf16> to vector<1x4x32xbf16>
    %50 = vector.shape_cast %49 : vector<1x4x32xbf16> to vector<4x32xbf16>
    %cst_16 = arith.constant dense<0.000000e+00> : vector<256x32xf32>
    %51 = tpu.matmul %48, %50, %cst_16 {dimension_numbers = #tpu.dot_dimension_numbers<[1], [0], [0], [1], [0, 0, 1, 1], [], []>} : vector<256x4xbf16>, vector<4x32xbf16>, vector<256x32xf32> -> vector<256x32xf32>
    %52 = arith.addf %46, %51 : vector<256x32xf32>
    %53 = vector.extract_strided_slice %4 {offsets = [2, 2, 0], sizes = [16, 16, 4], strides = [1, 1, 1]} : vector<18x24x4xbf16> to vector<16x16x4xbf16>
    %54 = vector.shape_cast %53 : vector<16x16x4xbf16> to vector<256x4xbf16>
    %55 = vector.extract_strided_slice %5 {offsets = [2, 8, 0], sizes = [1, 4, 32], strides = [1, 1, 1]} : vector<3x12x32xbf16> to vector<1x4x32xbf16>
    %56 = vector.shape_cast %55 : vector<1x4x32xbf16> to vector<4x32xbf16>
    %cst_17 = arith.constant dense<0.000000e+00> : vector<256x32xf32>
    %57 = tpu.matmul %54, %56, %cst_17 {dimension_numbers = #tpu.dot_dimension_numbers<[1], [0], [0], [1], [0, 0, 1, 1], [], []>} : vector<256x4xbf16>, vector<4x32xbf16>, vector<256x32xf32> -> vector<256x32xf32>
    %58 = arith.addf %52, %57 : vector<256x32xf32>
    %c0_18 = arith.constant 0 : index
    %c0_19 = arith.constant 0 : index
    %59 = vector.load %arg5[%c0_18, %c0_19] : memref<1x32xf32, #tpu.memory_space<vmem>>, vector<1x32xf32>
    %60 = vector.broadcast %59 : vector<1x32xf32> to vector<256x32xf32>
    %61 = arith.addf %58, %60 : vector<256x32xf32>
    %cst_20 = arith.constant 0.000000e+00 : f32
    %62 = vector.broadcast %cst_20 : f32 to vector<256x32xf32>
    %63 = arith.maximumf %61, %62 : vector<256x32xf32>
    %64 = vector.shape_cast %63 : vector<256x32xf32> to vector<16x16x32xf32>
    %c0_21 = arith.constant 0 : index
    %c0_22 = arith.constant 0 : index
    %c0_23 = arith.constant 0 : index
    %c0_24 = arith.constant 0 : index
    %65 = vector.load %arg10[%c0_21, %c0_22, %c0_23, %c0_24] : memref<1x16x16x32xf32, #tpu.memory_space<vmem>>, vector<1x16x16x32xf32>
    %66 = vector.shape_cast %65 : vector<1x16x16x32xf32> to vector<16x16x32xf32>
    %67 = vector.shape_cast %64 : vector<16x16x32xf32> to vector<1x16x16x32xf32>
    tpu.vector_store %arg10[%c0_21, %c0_22, %c0_23, %c0_24], %67 {strides = array<i32>} : memref<1x16x16x32xf32, #tpu.memory_space<vmem>>, vector<1x16x16x32xf32>,
    %68 = arith.truncf %63 : vector<256x32xf32> to vector<256x32xbf16>
    %c0_25 = arith.constant 0 : index
    %c0_26 = arith.constant 0 : index
    %69 = vector.load %arg6[%c0_25, %c0_26] : memref<32x128xbf16, #tpu.memory_space<vmem>>, vector<32x128xbf16>
    %cst_27 = arith.constant dense<0.000000e+00> : vector<256x128xf32>
    %70 = tpu.matmul %68, %69, %cst_27 {dimension_numbers = #tpu.dot_dimension_numbers<[1], [0], [0], [1], [0, 0, 1, 1], [], []>} : vector<256x32xbf16>, vector<32x128xbf16>, vector<256x128xf32> -> vector<256x128xf32>
    %c0_28 = arith.constant 0 : index
    %c0_29 = arith.constant 0 : index
    %71 = vector.load %arg7[%c0_28, %c0_29] : memref<1x128xf32, #tpu.memory_space<vmem>>, vector<1x128xf32>
    %72 = vector.broadcast %71 : vector<1x128xf32> to vector<256x128xf32>
    %73 = arith.addf %70, %72 : vector<256x128xf32>
    %cst_30 = arith.constant 0.000000e+00 : f32
    %74 = vector.broadcast %cst_30 : f32 to vector<256x128xf32>
    %75 = arith.maximumf %73, %74 : vector<256x128xf32>
    %c0_31 = arith.constant 0 : index
    %c0_32 = arith.constant 0 : index
    %76 = vector.load %arg8[%c0_31, %c0_32] : memref<1x128xf32, #tpu.memory_space<vmem>>, vector<1x128xf32>
    %77 = vector.broadcast %76 : vector<1x128xf32> to vector<256x128xf32>
    %78 = arith.mulf %75, %77 : vector<256x128xf32>
    %c0_33 = arith.constant 0 : index
    %c0_34 = arith.constant 0 : index
    %79 = vector.load %arg9[%c0_33, %c0_34] : memref<1x128xf32, #tpu.memory_space<vmem>>, vector<1x128xf32>
    %80 = vector.broadcast %79 : vector<1x128xf32> to vector<256x128xf32>
    %81 = arith.addf %78, %80 : vector<256x128xf32>
    %82 = vector.shape_cast %81 : vector<256x128xf32> to vector<16x16x128xf32>
    %83 = arith.truncf %82 : vector<16x16x128xf32> to vector<16x16x128xbf16>
    %c0_35 = arith.constant 0 : index
    %c0_36 = arith.constant 0 : index
    %c0_37 = arith.constant 0 : index
    %c0_38 = arith.constant 0 : index
    %84 = vector.load %arg11[%c0_35, %c0_36, %c0_37, %c0_38] : memref<1x16x16x128xbf16, #tpu.memory_space<vmem>>, vector<1x16x16x128xbf16>
    %85 = vector.shape_cast %84 : vector<1x16x16x128xbf16> to vector<16x16x128xbf16>
    %86 = vector.shape_cast %83 : vector<16x16x128xbf16> to vector<1x16x16x128xbf16>
    tpu.vector_store %arg11[%c0_35, %c0_36, %c0_37, %c0_38], %86 {strides = array<i32>} : memref<1x16x16x128xbf16, #tpu.memory_space<vmem>>, vector<1x16x16x128xbf16>,
    return
  }
  func.func @transform_0(%arg0: i32, %arg1: i32) -> (i32, i32, i32, i32) {
    %c0_i32 = arith.constant 0 : i32
    %c0_i32_0 = arith.constant 0 : i32
    %c0_i32_1 = arith.constant 0 : i32
    return %arg0, %arg1, %c0_i32, %c0_i32_0 : i32, i32, i32, i32
  }
  func.func @transform_1(%arg0: i32, %arg1: i32) -> (i32, i32, i32, i32) {
    %c1_i32 = arith.constant 1 : i32
    %0 = arith.addi %arg1, %c1_i32 : i32
    %c8_i32 = arith.constant 8 : i32
    %1 = arith.muli %0, %c8_i32 : i32
    %c0_i32 = arith.constant 0 : i32
    %c0_i32_0 = arith.constant 0 : i32
    %c0_i32_1 = arith.constant 0 : i32
    return %arg0, %1, %c0_i32, %c0_i32_0 : i32, i32, i32, i32
  }
  func.func @transform_2(%arg0: i32, %arg1: i32) -> (i32, i32, i32) {
    %c0_i32 = arith.constant 0 : i32
    %c0_i32_0 = arith.constant 0 : i32
    %c0_i32_1 = arith.constant 0 : i32
    %c0_i32_2 = arith.constant 0 : i32
    return %c0_i32, %c0_i32_0, %c0_i32_1 : i32, i32, i32
  }
  func.func @transform_3(%arg0: i32, %arg1: i32) -> (i32, i32) {
    %c0_i32 = arith.constant 0 : i32
    %c0_i32_0 = arith.constant 0 : i32
    %c0_i32_1 = arith.constant 0 : i32
    return %c0_i32, %c0_i32_0 : i32, i32
  }
  func.func @transform_4(%arg0: i32, %arg1: i32) -> (i32, i32) {
    %c0_i32 = arith.constant 0 : i32
    %c0_i32_0 = arith.constant 0 : i32
    %c0_i32_1 = arith.constant 0 : i32
    return %c0_i32, %c0_i32_0 : i32, i32
  }
  func.func @transform_5(%arg0: i32, %arg1: i32) -> (i32, i32) {
    %c0_i32 = arith.constant 0 : i32
    %c0_i32_0 = arith.constant 0 : i32
    %c0_i32_1 = arith.constant 0 : i32
    return %c0_i32, %c0_i32_0 : i32, i32
  }
  func.func @transform_6(%arg0: i32, %arg1: i32) -> (i32, i32) {
    %c0_i32 = arith.constant 0 : i32
    %c0_i32_0 = arith.constant 0 : i32
    %c0_i32_1 = arith.constant 0 : i32
    return %c0_i32, %c0_i32_0 : i32, i32
  }
  func.func @transform_7(%arg0: i32, %arg1: i32) -> (i32, i32) {
    %c0_i32 = arith.constant 0 : i32
    %c0_i32_0 = arith.constant 0 : i32
    %c0_i32_1 = arith.constant 0 : i32
    return %c0_i32, %c0_i32_0 : i32, i32
  }
  func.func @transform_8(%arg0: i32, %arg1: i32) -> (i32, i32, i32, i32) {
    %c0_i32 = arith.constant 0 : i32
    %c0_i32_0 = arith.constant 0 : i32
    %c0_i32_1 = arith.constant 0 : i32
    return %arg0, %arg1, %c0_i32, %c0_i32_0 : i32, i32, i32, i32
  }
  func.func @transform_9(%arg0: i32, %arg1: i32) -> (i32, i32, i32, i32) {
    %c0_i32 = arith.constant 0 : i32
    %c0_i32_0 = arith.constant 0 : i32
    %c0_i32_1 = arith.constant 0 : i32
    return %arg0, %arg1, %c0_i32, %c0_i32_0 : i32, i32, i32, i32
  }
}

module attributes {stable_mosaic.version = 11 : i64} {
  func.func @_stage_b_kernel(%arg0: i32, %arg1: i32, %arg2: memref<1x16x24x128xbf16, #tpu.memory_space<vmem>>, %arg3: memref<1x2x24x128xbf16, #tpu.memory_space<vmem>>, %arg4: memref<3x384x128xbf16, #tpu.memory_space<vmem>>, %arg5: memref<1x128xf32, #tpu.memory_space<vmem>>, %arg6: memref<1x128xf32, #tpu.memory_space<vmem>>, %arg7: memref<1x128xf32, #tpu.memory_space<vmem>>, %arg8: memref<1x16x16x128xbf16, #tpu.memory_space<vmem>>) attributes {dimension_semantics = [#tpu.dimension_semantics<parallel>, #tpu.dimension_semantics<parallel>], iteration_bounds = array<i64: 2, 1>, scalar_prefetch = 0 : i64, scratch_operands = 0 : i64, tpu.core_type = #tpu.core_type<tc>, window_params = [{transform_indices = @transform_0, window_bounds = array<i64: 1, 16, 24, 128>}, {transform_indices = @transform_1, window_bounds = array<i64: 1, 2, 24, 128>}, {pipeline_mode = #tpu.pipeline_mode<synchronous>, transform_indices = @transform_2, window_bounds = array<i64: 3, 384, 128>}, {pipeline_mode = #tpu.pipeline_mode<synchronous>, transform_indices = @transform_3, window_bounds = array<i64: 1, 128>}, {pipeline_mode = #tpu.pipeline_mode<synchronous>, transform_indices = @transform_4, window_bounds = array<i64: 1, 128>}, {pipeline_mode = #tpu.pipeline_mode<synchronous>, transform_indices = @transform_5, window_bounds = array<i64: 1, 128>}, {transform_indices = @transform_6, window_bounds = array<i64: 1, 16, 16, 128>}]} {
    %c0 = arith.constant 0 : index
    %c0_0 = arith.constant 0 : index
    %c0_1 = arith.constant 0 : index
    %c0_2 = arith.constant 0 : index
    %0 = vector.load %arg2[%c0, %c0_0, %c0_1, %c0_2] : memref<1x16x24x128xbf16, #tpu.memory_space<vmem>>, vector<1x16x24x128xbf16>
    %1 = vector.shape_cast %0 : vector<1x16x24x128xbf16> to vector<16x24x128xbf16>
    %c0_3 = arith.constant 0 : index
    %c0_4 = arith.constant 0 : index
    %c0_5 = arith.constant 0 : index
    %c0_6 = arith.constant 0 : index
    %2 = vector.load %arg3[%c0_3, %c0_4, %c0_5, %c0_6] : memref<1x2x24x128xbf16, #tpu.memory_space<vmem>>, vector<1x2x24x128xbf16>
    %3 = vector.shape_cast %2 : vector<1x2x24x128xbf16> to vector<2x24x128xbf16>
    %4 = tpu.concatenate %1, %3 in 0 : vector<16x24x128xbf16>, vector<2x24x128xbf16> -> vector<18x24x128xbf16>
    %c0_7 = arith.constant 0 : index
    %c0_8 = arith.constant 0 : index
    %c0_9 = arith.constant 0 : index
    %5 = vector.load %arg4[%c0_7, %c0_8, %c0_9] : memref<3x384x128xbf16, #tpu.memory_space<vmem>>, vector<3x384x128xbf16>
    %6 = vector.extract_strided_slice %4 {offsets = [0, 0, 0], sizes = [18, 16, 128], strides = [1, 1, 1]} : vector<18x24x128xbf16> to vector<18x16x128xbf16>
    %7 = vector.extract_strided_slice %4 {offsets = [0, 1, 0], sizes = [18, 16, 128], strides = [1, 1, 1]} : vector<18x24x128xbf16> to vector<18x16x128xbf16>
    %8 = vector.extract_strided_slice %4 {offsets = [0, 2, 0], sizes = [18, 16, 128], strides = [1, 1, 1]} : vector<18x24x128xbf16> to vector<18x16x128xbf16>
    %9 = tpu.concatenate %6, %7, %8 in 2 : vector<18x16x128xbf16>, vector<18x16x128xbf16>, vector<18x16x128xbf16> -> vector<18x16x384xbf16>
    %10 = vector.extract_strided_slice %9 {offsets = [0, 0, 0], sizes = [16, 16, 384], strides = [1, 1, 1]} : vector<18x16x384xbf16> to vector<16x16x384xbf16>
    %11 = vector.shape_cast %10 : vector<16x16x384xbf16> to vector<256x384xbf16>
    %12 = vector.extract_strided_slice %5 {offsets = [0, 0, 0], sizes = [1, 384, 128], strides = [1, 1, 1]} : vector<3x384x128xbf16> to vector<1x384x128xbf16>
    %13 = vector.shape_cast %12 : vector<1x384x128xbf16> to vector<384x128xbf16>
    %cst = arith.constant dense<0.000000e+00> : vector<256x128xf32>
    %14 = tpu.matmul %11, %13, %cst {dimension_numbers = #tpu.dot_dimension_numbers<[1], [0], [0], [1], [0, 0, 1, 1], [], []>} : vector<256x384xbf16>, vector<384x128xbf16>, vector<256x128xf32> -> vector<256x128xf32>
    %15 = vector.extract_strided_slice %9 {offsets = [1, 0, 0], sizes = [16, 16, 384], strides = [1, 1, 1]} : vector<18x16x384xbf16> to vector<16x16x384xbf16>
    %16 = vector.shape_cast %15 : vector<16x16x384xbf16> to vector<256x384xbf16>
    %17 = vector.extract_strided_slice %5 {offsets = [1, 0, 0], sizes = [1, 384, 128], strides = [1, 1, 1]} : vector<3x384x128xbf16> to vector<1x384x128xbf16>
    %18 = vector.shape_cast %17 : vector<1x384x128xbf16> to vector<384x128xbf16>
    %cst_10 = arith.constant dense<0.000000e+00> : vector<256x128xf32>
    %19 = tpu.matmul %16, %18, %cst_10 {dimension_numbers = #tpu.dot_dimension_numbers<[1], [0], [0], [1], [0, 0, 1, 1], [], []>} : vector<256x384xbf16>, vector<384x128xbf16>, vector<256x128xf32> -> vector<256x128xf32>
    %20 = arith.addf %14, %19 : vector<256x128xf32>
    %21 = vector.extract_strided_slice %9 {offsets = [2, 0, 0], sizes = [16, 16, 384], strides = [1, 1, 1]} : vector<18x16x384xbf16> to vector<16x16x384xbf16>
    %22 = vector.shape_cast %21 : vector<16x16x384xbf16> to vector<256x384xbf16>
    %23 = vector.extract_strided_slice %5 {offsets = [2, 0, 0], sizes = [1, 384, 128], strides = [1, 1, 1]} : vector<3x384x128xbf16> to vector<1x384x128xbf16>
    %24 = vector.shape_cast %23 : vector<1x384x128xbf16> to vector<384x128xbf16>
    %cst_11 = arith.constant dense<0.000000e+00> : vector<256x128xf32>
    %25 = tpu.matmul %22, %24, %cst_11 {dimension_numbers = #tpu.dot_dimension_numbers<[1], [0], [0], [1], [0, 0, 1, 1], [], []>} : vector<256x384xbf16>, vector<384x128xbf16>, vector<256x128xf32> -> vector<256x128xf32>
    %26 = arith.addf %20, %25 : vector<256x128xf32>
    %c0_12 = arith.constant 0 : index
    %c0_13 = arith.constant 0 : index
    %27 = vector.load %arg5[%c0_12, %c0_13] : memref<1x128xf32, #tpu.memory_space<vmem>>, vector<1x128xf32>
    %28 = vector.broadcast %27 : vector<1x128xf32> to vector<256x128xf32>
    %29 = arith.addf %26, %28 : vector<256x128xf32>
    %cst_14 = arith.constant 0.000000e+00 : f32
    %30 = vector.broadcast %cst_14 : f32 to vector<256x128xf32>
    %31 = arith.maximumf %29, %30 : vector<256x128xf32>
    %c0_15 = arith.constant 0 : index
    %c0_16 = arith.constant 0 : index
    %32 = vector.load %arg6[%c0_15, %c0_16] : memref<1x128xf32, #tpu.memory_space<vmem>>, vector<1x128xf32>
    %33 = vector.broadcast %32 : vector<1x128xf32> to vector<256x128xf32>
    %34 = arith.mulf %31, %33 : vector<256x128xf32>
    %c0_17 = arith.constant 0 : index
    %c0_18 = arith.constant 0 : index
    %35 = vector.load %arg7[%c0_17, %c0_18] : memref<1x128xf32, #tpu.memory_space<vmem>>, vector<1x128xf32>
    %36 = vector.broadcast %35 : vector<1x128xf32> to vector<256x128xf32>
    %37 = arith.addf %34, %36 : vector<256x128xf32>
    %38 = vector.shape_cast %37 : vector<256x128xf32> to vector<16x16x128xf32>
    %39 = arith.truncf %38 : vector<16x16x128xf32> to vector<16x16x128xbf16>
    %c0_19 = arith.constant 0 : index
    %c0_20 = arith.constant 0 : index
    %c0_21 = arith.constant 0 : index
    %c0_22 = arith.constant 0 : index
    %40 = vector.load %arg8[%c0_19, %c0_20, %c0_21, %c0_22] : memref<1x16x16x128xbf16, #tpu.memory_space<vmem>>, vector<1x16x16x128xbf16>
    %41 = vector.shape_cast %40 : vector<1x16x16x128xbf16> to vector<16x16x128xbf16>
    %42 = vector.shape_cast %39 : vector<16x16x128xbf16> to vector<1x16x16x128xbf16>
    tpu.vector_store %arg8[%c0_19, %c0_20, %c0_21, %c0_22], %42 {strides = array<i32>} : memref<1x16x16x128xbf16, #tpu.memory_space<vmem>>, vector<1x16x16x128xbf16>,
    return
  }
  func.func @transform_0(%arg0: i32, %arg1: i32) -> (i32, i32, i32, i32) {
    %c0_i32 = arith.constant 0 : i32
    %c0_i32_0 = arith.constant 0 : i32
    %c0_i32_1 = arith.constant 0 : i32
    return %arg0, %arg1, %c0_i32, %c0_i32_0 : i32, i32, i32, i32
  }
  func.func @transform_1(%arg0: i32, %arg1: i32) -> (i32, i32, i32, i32) {
    %c1_i32 = arith.constant 1 : i32
    %0 = arith.addi %arg1, %c1_i32 : i32
    %c8_i32 = arith.constant 8 : i32
    %1 = arith.muli %0, %c8_i32 : i32
    %c0_i32 = arith.constant 0 : i32
    %c0_i32_0 = arith.constant 0 : i32
    %c0_i32_1 = arith.constant 0 : i32
    return %arg0, %1, %c0_i32, %c0_i32_0 : i32, i32, i32, i32
  }
  func.func @transform_2(%arg0: i32, %arg1: i32) -> (i32, i32, i32) {
    %c0_i32 = arith.constant 0 : i32
    %c0_i32_0 = arith.constant 0 : i32
    %c0_i32_1 = arith.constant 0 : i32
    %c0_i32_2 = arith.constant 0 : i32
    return %c0_i32, %c0_i32_0, %c0_i32_1 : i32, i32, i32
  }
  func.func @transform_3(%arg0: i32, %arg1: i32) -> (i32, i32) {
    %c0_i32 = arith.constant 0 : i32
    %c0_i32_0 = arith.constant 0 : i32
    %c0_i32_1 = arith.constant 0 : i32
    return %c0_i32, %c0_i32_0 : i32, i32
  }
  func.func @transform_4(%arg0: i32, %arg1: i32) -> (i32, i32) {
    %c0_i32 = arith.constant 0 : i32
    %c0_i32_0 = arith.constant 0 : i32
    %c0_i32_1 = arith.constant 0 : i32
    return %c0_i32, %c0_i32_0 : i32, i32
  }
  func.func @transform_5(%arg0: i32, %arg1: i32) -> (i32, i32) {
    %c0_i32 = arith.constant 0 : i32
    %c0_i32_0 = arith.constant 0 : i32
    %c0_i32_1 = arith.constant 0 : i32
    return %c0_i32, %c0_i32_0 : i32, i32
  }
  func.func @transform_6(%arg0: i32, %arg1: i32) -> (i32, i32, i32, i32) {
    %c0_i32 = arith.constant 0 : i32
    %c0_i32_0 = arith.constant 0 : i32
    %c0_i32_1 = arith.constant 0 : i32
    return %arg0, %arg1, %c0_i32, %c0_i32_0 : i32, i32, i32, i32
  }
}

module attributes {stable_mosaic.version = 11 : i64} {
  func.func @_stage_c_kernel(%arg0: i32, %arg1: i32, %arg2: memref<1x16x24x128xbf16, #tpu.memory_space<vmem>>, %arg3: memref<1x2x24x128xbf16, #tpu.memory_space<vmem>>, %arg4: memref<3x384x128xbf16, #tpu.memory_space<vmem>>, %arg5: memref<1x128xf32, #tpu.memory_space<vmem>>, %arg6: memref<1x128xf32, #tpu.memory_space<vmem>>, %arg7: memref<1x128xf32, #tpu.memory_space<vmem>>, %arg8: memref<128x128xbf16, #tpu.memory_space<vmem>>, %arg9: memref<1x128xf32, #tpu.memory_space<vmem>>, %arg10: memref<128x128xbf16, #tpu.memory_space<vmem>>, %arg11: memref<1x128xf32, #tpu.memory_space<vmem>>, %arg12: memref<1x16x16x64xf32, #tpu.memory_space<vmem>>, %arg13: memref<1x16x16x64xf32, #tpu.memory_space<vmem>>) attributes {dimension_semantics = [#tpu.dimension_semantics<parallel>, #tpu.dimension_semantics<parallel>], iteration_bounds = array<i64: 2, 1>, scalar_prefetch = 0 : i64, scratch_operands = 0 : i64, tpu.core_type = #tpu.core_type<tc>, window_params = [{transform_indices = @transform_0, window_bounds = array<i64: 1, 16, 24, 128>}, {transform_indices = @transform_1, window_bounds = array<i64: 1, 2, 24, 128>}, {pipeline_mode = #tpu.pipeline_mode<synchronous>, transform_indices = @transform_2, window_bounds = array<i64: 3, 384, 128>}, {pipeline_mode = #tpu.pipeline_mode<synchronous>, transform_indices = @transform_3, window_bounds = array<i64: 1, 128>}, {pipeline_mode = #tpu.pipeline_mode<synchronous>, transform_indices = @transform_4, window_bounds = array<i64: 1, 128>}, {pipeline_mode = #tpu.pipeline_mode<synchronous>, transform_indices = @transform_5, window_bounds = array<i64: 1, 128>}, {pipeline_mode = #tpu.pipeline_mode<synchronous>, transform_indices = @transform_6, window_bounds = array<i64: 128, 128>}, {pipeline_mode = #tpu.pipeline_mode<synchronous>, transform_indices = @transform_7, window_bounds = array<i64: 1, 128>}, {pipeline_mode = #tpu.pipeline_mode<synchronous>, transform_indices = @transform_8, window_bounds = array<i64: 128, 128>}, {pipeline_mode = #tpu.pipeline_mode<synchronous>, transform_indices = @transform_9, window_bounds = array<i64: 1, 128>}, {transform_indices = @transform_10, window_bounds = array<i64: 1, 16, 16, 64>}, {transform_indices = @transform_11, window_bounds = array<i64: 1, 16, 16, 64>}]} {
    %c0 = arith.constant 0 : index
    %c0_0 = arith.constant 0 : index
    %c0_1 = arith.constant 0 : index
    %c0_2 = arith.constant 0 : index
    %0 = vector.load %arg2[%c0, %c0_0, %c0_1, %c0_2] : memref<1x16x24x128xbf16, #tpu.memory_space<vmem>>, vector<1x16x24x128xbf16>
    %1 = vector.shape_cast %0 : vector<1x16x24x128xbf16> to vector<16x24x128xbf16>
    %c0_3 = arith.constant 0 : index
    %c0_4 = arith.constant 0 : index
    %c0_5 = arith.constant 0 : index
    %c0_6 = arith.constant 0 : index
    %2 = vector.load %arg3[%c0_3, %c0_4, %c0_5, %c0_6] : memref<1x2x24x128xbf16, #tpu.memory_space<vmem>>, vector<1x2x24x128xbf16>
    %3 = vector.shape_cast %2 : vector<1x2x24x128xbf16> to vector<2x24x128xbf16>
    %4 = tpu.concatenate %1, %3 in 0 : vector<16x24x128xbf16>, vector<2x24x128xbf16> -> vector<18x24x128xbf16>
    %c0_7 = arith.constant 0 : index
    %c0_8 = arith.constant 0 : index
    %c0_9 = arith.constant 0 : index
    %5 = vector.load %arg4[%c0_7, %c0_8, %c0_9] : memref<3x384x128xbf16, #tpu.memory_space<vmem>>, vector<3x384x128xbf16>
    %6 = vector.extract_strided_slice %4 {offsets = [0, 0, 0], sizes = [18, 16, 128], strides = [1, 1, 1]} : vector<18x24x128xbf16> to vector<18x16x128xbf16>
    %7 = vector.extract_strided_slice %4 {offsets = [0, 1, 0], sizes = [18, 16, 128], strides = [1, 1, 1]} : vector<18x24x128xbf16> to vector<18x16x128xbf16>
    %8 = vector.extract_strided_slice %4 {offsets = [0, 2, 0], sizes = [18, 16, 128], strides = [1, 1, 1]} : vector<18x24x128xbf16> to vector<18x16x128xbf16>
    %9 = tpu.concatenate %6, %7, %8 in 2 : vector<18x16x128xbf16>, vector<18x16x128xbf16>, vector<18x16x128xbf16> -> vector<18x16x384xbf16>
    %10 = vector.extract_strided_slice %9 {offsets = [0, 0, 0], sizes = [16, 16, 384], strides = [1, 1, 1]} : vector<18x16x384xbf16> to vector<16x16x384xbf16>
    %11 = vector.shape_cast %10 : vector<16x16x384xbf16> to vector<256x384xbf16>
    %12 = vector.extract_strided_slice %5 {offsets = [0, 0, 0], sizes = [1, 384, 128], strides = [1, 1, 1]} : vector<3x384x128xbf16> to vector<1x384x128xbf16>
    %13 = vector.shape_cast %12 : vector<1x384x128xbf16> to vector<384x128xbf16>
    %cst = arith.constant dense<0.000000e+00> : vector<256x128xf32>
    %14 = tpu.matmul %11, %13, %cst {dimension_numbers = #tpu.dot_dimension_numbers<[1], [0], [0], [1], [0, 0, 1, 1], [], []>} : vector<256x384xbf16>, vector<384x128xbf16>, vector<256x128xf32> -> vector<256x128xf32>
    %15 = vector.extract_strided_slice %9 {offsets = [1, 0, 0], sizes = [16, 16, 384], strides = [1, 1, 1]} : vector<18x16x384xbf16> to vector<16x16x384xbf16>
    %16 = vector.shape_cast %15 : vector<16x16x384xbf16> to vector<256x384xbf16>
    %17 = vector.extract_strided_slice %5 {offsets = [1, 0, 0], sizes = [1, 384, 128], strides = [1, 1, 1]} : vector<3x384x128xbf16> to vector<1x384x128xbf16>
    %18 = vector.shape_cast %17 : vector<1x384x128xbf16> to vector<384x128xbf16>
    %cst_10 = arith.constant dense<0.000000e+00> : vector<256x128xf32>
    %19 = tpu.matmul %16, %18, %cst_10 {dimension_numbers = #tpu.dot_dimension_numbers<[1], [0], [0], [1], [0, 0, 1, 1], [], []>} : vector<256x384xbf16>, vector<384x128xbf16>, vector<256x128xf32> -> vector<256x128xf32>
    %20 = arith.addf %14, %19 : vector<256x128xf32>
    %21 = vector.extract_strided_slice %9 {offsets = [2, 0, 0], sizes = [16, 16, 384], strides = [1, 1, 1]} : vector<18x16x384xbf16> to vector<16x16x384xbf16>
    %22 = vector.shape_cast %21 : vector<16x16x384xbf16> to vector<256x384xbf16>
    %23 = vector.extract_strided_slice %5 {offsets = [2, 0, 0], sizes = [1, 384, 128], strides = [1, 1, 1]} : vector<3x384x128xbf16> to vector<1x384x128xbf16>
    %24 = vector.shape_cast %23 : vector<1x384x128xbf16> to vector<384x128xbf16>
    %cst_11 = arith.constant dense<0.000000e+00> : vector<256x128xf32>
    %25 = tpu.matmul %22, %24, %cst_11 {dimension_numbers = #tpu.dot_dimension_numbers<[1], [0], [0], [1], [0, 0, 1, 1], [], []>} : vector<256x384xbf16>, vector<384x128xbf16>, vector<256x128xf32> -> vector<256x128xf32>
    %26 = arith.addf %20, %25 : vector<256x128xf32>
    %c0_12 = arith.constant 0 : index
    %c0_13 = arith.constant 0 : index
    %27 = vector.load %arg5[%c0_12, %c0_13] : memref<1x128xf32, #tpu.memory_space<vmem>>, vector<1x128xf32>
    %28 = vector.broadcast %27 : vector<1x128xf32> to vector<256x128xf32>
    %29 = arith.addf %26, %28 : vector<256x128xf32>
    %cst_14 = arith.constant 0.000000e+00 : f32
    %30 = vector.broadcast %cst_14 : f32 to vector<256x128xf32>
    %31 = arith.maximumf %29, %30 : vector<256x128xf32>
    %c0_15 = arith.constant 0 : index
    %c0_16 = arith.constant 0 : index
    %32 = vector.load %arg6[%c0_15, %c0_16] : memref<1x128xf32, #tpu.memory_space<vmem>>, vector<1x128xf32>
    %33 = vector.broadcast %32 : vector<1x128xf32> to vector<256x128xf32>
    %34 = arith.mulf %31, %33 : vector<256x128xf32>
    %c0_17 = arith.constant 0 : index
    %c0_18 = arith.constant 0 : index
    %35 = vector.load %arg7[%c0_17, %c0_18] : memref<1x128xf32, #tpu.memory_space<vmem>>, vector<1x128xf32>
    %36 = vector.broadcast %35 : vector<1x128xf32> to vector<256x128xf32>
    %37 = arith.addf %34, %36 : vector<256x128xf32>
    %38 = arith.truncf %37 : vector<256x128xf32> to vector<256x128xbf16>
    %c0_19 = arith.constant 0 : index
    %c0_20 = arith.constant 0 : index
    %39 = vector.load %arg8[%c0_19, %c0_20] : memref<128x128xbf16, #tpu.memory_space<vmem>>, vector<128x128xbf16>
    %cst_21 = arith.constant dense<0.000000e+00> : vector<256x128xf32>
    %40 = tpu.matmul %38, %39, %cst_21 {dimension_numbers = #tpu.dot_dimension_numbers<[1], [0], [0], [1], [0, 0, 1, 1], [], []>} : vector<256x128xbf16>, vector<128x128xbf16>, vector<256x128xf32> -> vector<256x128xf32>
    %c0_22 = arith.constant 0 : index
    %c0_23 = arith.constant 0 : index
    %41 = vector.load %arg9[%c0_22, %c0_23] : memref<1x128xf32, #tpu.memory_space<vmem>>, vector<1x128xf32>
    %42 = vector.broadcast %41 : vector<1x128xf32> to vector<256x128xf32>
    %43 = arith.addf %40, %42 : vector<256x128xf32>
    %cst_24 = arith.constant 0.000000e+00 : f32
    %44 = vector.broadcast %cst_24 : f32 to vector<256x128xf32>
    %45 = arith.maximumf %43, %44 : vector<256x128xf32>
    %46 = vector.shape_cast %45 : vector<256x128xf32> to vector<16x16x128xf32>
    %47 = vector.extract_strided_slice %46 {offsets = [0, 0, 0], sizes = [16, 16, 64], strides = [1, 1, 1]} : vector<16x16x128xf32> to vector<16x16x64xf32>
    %c0_25 = arith.constant 0 : index
    %c0_26 = arith.constant 0 : index
    %c0_27 = arith.constant 0 : index
    %c0_28 = arith.constant 0 : index
    %48 = vector.load %arg12[%c0_25, %c0_26, %c0_27, %c0_28] : memref<1x16x16x64xf32, #tpu.memory_space<vmem>>, vector<1x16x16x64xf32>
    %49 = vector.shape_cast %48 : vector<1x16x16x64xf32> to vector<16x16x64xf32>
    %50 = vector.shape_cast %47 : vector<16x16x64xf32> to vector<1x16x16x64xf32>
    tpu.vector_store %arg12[%c0_25, %c0_26, %c0_27, %c0_28], %50 {strides = array<i32>} : memref<1x16x16x64xf32, #tpu.memory_space<vmem>>, vector<1x16x16x64xf32>,
    %51 = arith.truncf %45 : vector<256x128xf32> to vector<256x128xbf16>
    %c0_29 = arith.constant 0 : index
    %c0_30 = arith.constant 0 : index
    %52 = vector.load %arg10[%c0_29, %c0_30] : memref<128x128xbf16, #tpu.memory_space<vmem>>, vector<128x128xbf16>
    %cst_31 = arith.constant dense<0.000000e+00> : vector<256x128xf32>
    %53 = tpu.matmul %51, %52, %cst_31 {dimension_numbers = #tpu.dot_dimension_numbers<[1], [0], [0], [1], [0, 0, 1, 1], [], []>} : vector<256x128xbf16>, vector<128x128xbf16>, vector<256x128xf32> -> vector<256x128xf32>
    %c0_32 = arith.constant 0 : index
    %c0_33 = arith.constant 0 : index
    %54 = vector.load %arg11[%c0_32, %c0_33] : memref<1x128xf32, #tpu.memory_space<vmem>>, vector<1x128xf32>
    %55 = vector.broadcast %54 : vector<1x128xf32> to vector<256x128xf32>
    %56 = arith.addf %53, %55 : vector<256x128xf32>
    %57 = vector.shape_cast %56 : vector<256x128xf32> to vector<16x16x128xf32>
    %58 = vector.extract_strided_slice %57 {offsets = [0, 0, 0], sizes = [16, 16, 64], strides = [1, 1, 1]} : vector<16x16x128xf32> to vector<16x16x64xf32>
    %c0_34 = arith.constant 0 : index
    %c0_35 = arith.constant 0 : index
    %c0_36 = arith.constant 0 : index
    %c0_37 = arith.constant 0 : index
    %59 = vector.load %arg13[%c0_34, %c0_35, %c0_36, %c0_37] : memref<1x16x16x64xf32, #tpu.memory_space<vmem>>, vector<1x16x16x64xf32>
    %60 = vector.shape_cast %59 : vector<1x16x16x64xf32> to vector<16x16x64xf32>
    %61 = vector.shape_cast %58 : vector<16x16x64xf32> to vector<1x16x16x64xf32>
    tpu.vector_store %arg13[%c0_34, %c0_35, %c0_36, %c0_37], %61 {strides = array<i32>} : memref<1x16x16x64xf32, #tpu.memory_space<vmem>>, vector<1x16x16x64xf32>,
    return
  }
  func.func @transform_0(%arg0: i32, %arg1: i32) -> (i32, i32, i32, i32) {
    %c0_i32 = arith.constant 0 : i32
    %c0_i32_0 = arith.constant 0 : i32
    %c0_i32_1 = arith.constant 0 : i32
    return %arg0, %arg1, %c0_i32, %c0_i32_0 : i32, i32, i32, i32
  }
  func.func @transform_1(%arg0: i32, %arg1: i32) -> (i32, i32, i32, i32) {
    %c1_i32 = arith.constant 1 : i32
    %0 = arith.addi %arg1, %c1_i32 : i32
    %c8_i32 = arith.constant 8 : i32
    %1 = arith.muli %0, %c8_i32 : i32
    %c0_i32 = arith.constant 0 : i32
    %c0_i32_0 = arith.constant 0 : i32
    %c0_i32_1 = arith.constant 0 : i32
    return %arg0, %1, %c0_i32, %c0_i32_0 : i32, i32, i32, i32
  }
  func.func @transform_2(%arg0: i32, %arg1: i32) -> (i32, i32, i32) {
    %c0_i32 = arith.constant 0 : i32
    %c0_i32_0 = arith.constant 0 : i32
    %c0_i32_1 = arith.constant 0 : i32
    %c0_i32_2 = arith.constant 0 : i32
    return %c0_i32, %c0_i32_0, %c0_i32_1 : i32, i32, i32
  }
  func.func @transform_3(%arg0: i32, %arg1: i32) -> (i32, i32) {
    %c0_i32 = arith.constant 0 : i32
    %c0_i32_0 = arith.constant 0 : i32
    %c0_i32_1 = arith.constant 0 : i32
    return %c0_i32, %c0_i32_0 : i32, i32
  }
  func.func @transform_4(%arg0: i32, %arg1: i32) -> (i32, i32) {
    %c0_i32 = arith.constant 0 : i32
    %c0_i32_0 = arith.constant 0 : i32
    %c0_i32_1 = arith.constant 0 : i32
    return %c0_i32, %c0_i32_0 : i32, i32
  }
  func.func @transform_5(%arg0: i32, %arg1: i32) -> (i32, i32) {
    %c0_i32 = arith.constant 0 : i32
    %c0_i32_0 = arith.constant 0 : i32
    %c0_i32_1 = arith.constant 0 : i32
    return %c0_i32, %c0_i32_0 : i32, i32
  }
  func.func @transform_6(%arg0: i32, %arg1: i32) -> (i32, i32) {
    %c0_i32 = arith.constant 0 : i32
    %c0_i32_0 = arith.constant 0 : i32
    %c0_i32_1 = arith.constant 0 : i32
    return %c0_i32, %c0_i32_0 : i32, i32
  }
  func.func @transform_7(%arg0: i32, %arg1: i32) -> (i32, i32) {
    %c0_i32 = arith.constant 0 : i32
    %c0_i32_0 = arith.constant 0 : i32
    %c0_i32_1 = arith.constant 0 : i32
    return %c0_i32, %c0_i32_0 : i32, i32
  }
  func.func @transform_8(%arg0: i32, %arg1: i32) -> (i32, i32) {
    %c0_i32 = arith.constant 0 : i32
    %c0_i32_0 = arith.constant 0 : i32
    %c0_i32_1 = arith.constant 0 : i32
    return %c0_i32, %c0_i32_0 : i32, i32
  }
  func.func @transform_9(%arg0: i32, %arg1: i32) -> (i32, i32) {
    %c0_i32 = arith.constant 0 : i32
    %c0_i32_0 = arith.constant 0 : i32
    %c0_i32_1 = arith.constant 0 : i32
    return %c0_i32, %c0_i32_0 : i32, i32
  }
  func.func @transform_10(%arg0: i32, %arg1: i32) -> (i32, i32, i32, i32) {
    %c0_i32 = arith.constant 0 : i32
    %c0_i32_0 = arith.constant 0 : i32
    %c0_i32_1 = arith.constant 0 : i32
    return %arg0, %arg1, %c0_i32, %c0_i32_0 : i32, i32, i32, i32
  }
  func.func @transform_11(%arg0: i32, %arg1: i32) -> (i32, i32, i32, i32) {
    %c0_i32 = arith.constant 0 : i32
    %c0_i32_0 = arith.constant 0 : i32
    %c0_i32_1 = arith.constant 0 : i32
    return %arg0, %arg1, %c0_i32, %c0_i32_0 : i32, i32, i32, i32
  }
}

</mosaic_0001>

<bundles_post_ra>
// kernel: forward.3
= control target key start
LH: loop header
LB: loop body
LE: loop exit
PB: predicated region body
PF: predicated region fallthrough
CT: control target
= control target key end

     0   :  { %s5316_s30 = smov 0   ;;  %s5318_s10 = smov 0   ;;  %s6632_s0 = inlined_call_operand.vmem [shape: bf16[2,18,24,4], index: 0, kind: input, shape index: {}, may-alias: {0,1}]   ;;  %s6633_s1 = inlined_call_operand.vmem [shape: bf16[2,18,24,4], index: 1, kind: input, shape index: {}, may-alias: {0,1}]   ;;  %s6634_s2 = inlined_call_operand.vmem [shape: bf16[3,12,32], index: 2, kind: input, shape index: {}]   ;;  %s6635_s3 = inlined_call_operand.vmem [shape: f32[1,32], index: 3, kind: input, shape index: {}]   ;;  %s6636_s4 = inlined_call_operand.vmem [shape: bf16[32,128], index: 4, kind: input, shape index: {}]   ;;  %s6637_s5 = inlined_call_operand.vmem [shape: f32[1,128], index: 5, kind: input, shape index: {}]   ;;  %s6638_s6 = inlined_call_operand.vmem [shape: f32[1,128], index: 6, kind: input, shape index: {}]   ;;  %s6639_s7 = inlined_call_operand.vmem [shape: f32[1,128], index: 7, kind: input, shape index: {}]   ;;  %s6640_s8 = inlined_call_operand.vmem [shape: f32[2,16,16,32], index: 8, kind: output, shape index: {0}]   ;;  %s6641_s9 = inlined_call_operand.vmem [shape: bf16[2,16,16,128], index: 9, kind: output, shape index: {1}]  }
   0x1   :  { %s5320_s11 = smov 0  }
   0x2 LB: > { %s32_s12 = sadd.s32 1, %s5260_s10  ;;  %p3997_p0 = scmp.ge.s32.totalorder %s5264_s11, 1  ;;  %s5264_s11 = sphi %s5320_s11, %s20_s11   ;;  %s5260_s10 = sphi %s5318_s10, %s6735_s10   ;;  %s5256_s30 = sphi %s5316_s30, %s6734_s30  }
   0x3   : > { %p34_p1 = scmp.ge.s32.totalorder %s32_s12, 2  ;;  %p350_p2 = scmp.lt.s32.totalorder %s5264_s11, 3 }
   0x5   : > { %s6737_s12 = smov (%p34_p1, %s32_s12), 0  ;;  %p351_p3 = pnand %p3997_p0, %p350_p2 }
   0x7   : > { %354 = sbr.rel (%p351_p3) target bundleno = 808 (0x328), region = 52 }
   0xe   : > { %v538_v0 = vld [vmem:[%s6634_s2 + $0x8] sm:$0xf]  ;;  %v536_v1 = vld [vmem:[%s6634_s2] sm:$0xf]  ;;  %p429_p4 = scmp.lt.s32.totalorder %s5256_s30, 1  ;;  %vm1030_vm0 = vcmask 1041408  }
   0xf   : > { %v4135_v2 = vcombine.low %v538_v0, %v538_v0  ;;  %v4020_v3 = vcombine.low %v536_v1, %v536_v1  ;;  %vm542_vm1 = vsmask.f32 3328  ;;  %vm543_vm2 = vsmask.f32 7440  ;;  %v539_v6 = vld [vmem:[%s6634_s2 + $0xc] sm:$0x3] }
  0x10   : > { %s6739_s30 = smov (!%p429_p4, %s5256_s30), 1  ;;  %v5348_v7 = vld [vmem:[%s6634_s2 + $0x10] sm:$0xf]  ;;  %v5365_v11 = vsel %vm1030_vm0, %v539_v6, 0  ;;  %v5368_v12 = vsel %vm1030_vm0, %v536_v1, 0  ;;  %vm981_vm3 = vcmask 31744   ;;  %vm5410_vm4 = vmor %vm542_vm1, %vm543_vm2 }
  0x11   : > { %v2144_v4 = vrot.slane %v4135_v2, 2  ;;  %v980_v5 = vrot.slane %v4020_v3, 2  ;;  %s5188_s21 = smul.u32 216, %s6739_s30  ;;  %v4188_v10 = vcombine.low %v5348_v7, %v5348_v7  ;;  %v5372_v13 = vsel %vm1030_vm0, %v5348_v7, 0  ;;  %v5236_v40 = vld [vmem:[%s6636_s4] sm:$0xff]   ;;  %s4282_s17 = sshll.u32 %s6739_s30, 7 }
  0x12   : > { %vm1503_vm5 = vcmask 1042432   ;;  %vm1504_vm6 = vcmask 1046532   ;;  %vm3269_vm8 = vcmask 261120   ;;  %s6521_s20 = scalar_lea.vmem %s6641_s9, %s4282_s17 }
  0x13   : > { %5183 = vmatprep.subr.msk.bf16.mxu0 %vm1030_vm0, %v2144_v4  ;;  %5179 = vmatprep.subr.msk.bf16.mxu1 %vm1030_vm0, %v980_v5  ;;  %v2149_v8 = vsel %vm1030_vm0, %v2144_v4, 0  ;;  %v1032_v9 = vsel %vm1030_vm0, %v980_v5, 0  ;;  %s5362_s24 = scalar_lea.vmem %s6632_s0, %s5188_s21  ;;  %v5398_v26 = vrot.slane %v4188_v10, 2  ;;  %s4280_s27 = sadd.s32 192, %s5188_s21  ;;  %vm5785_vm7 = vmor %vm1503_vm5, %vm1504_vm6 }
  0x14   : > { %4718 = vmatpush3.bf16.msra.mxu0 %v2149_v8  ;;  %4582 = vmatpush3.bf16.msra.mxu1 %v1032_v9  ;;  %v5375_v14 = vld [vmem:[%s5362_s24] sm:$0xf]  ;;  %v5378_v15 = vld [vmem:[%s5362_s24 + $0x4] sm:$0xf]  ;;  %v484_v16 = vld [vmem:[%s5362_s24 + $0x8] sm:$0xf]  ;;  %s5737_s13 = scalar_lea.vmem %s6633_s1, %s4280_s27 }
  0x15   : > { %5184 = vmatprep.subr.msk.bf16.mxu0 %vm1030_vm0, %v539_v6  ;;  %5180 = vmatprep.subr.msk.bf16.mxu1 %vm1030_vm0, %v536_v1  ;;  %v546_v17 = vshrl.u32 %v5375_v14, 16  ;;  %v549_v18 = vshll.u32 %v5375_v14, 16  ;;  %v555_v19 = vshll.u32 %v5378_v15, 16  ;;  %v559_v20 = vshrl.u32 %v5378_v15, 16  ;;  %v5388_v21 = vld [vmem:[%s5362_s24 + $0xc] sm:$0xf] }
  0x16   : > { %v565_v22 = vshll.u32 %v484_v16, 16  ;;  %v5391_v23 = vld [vmem:[%s5362_s24 + $0x10] sm:$0xf]  ;;  %v5394_v24 = vld [vmem:[%s5362_s24 + $0x14] sm:$0xf]  ;;  %v570_v32 = vshrl.u32 %v5388_v21, 16 }
  0x17   : > { %v548_v27 = vrot.slane %v546_v17, 4  ;;  %v551_v28 = vrot.slane %v549_v18, 5  ;;  %v557_v29 = vrot.slane %v555_v19, 5  ;;  %v561_v30 = vrot.slane %v559_v20, 4  ;;  %v5406_v39 = vld [vmem:[%s5362_s24 + $0x18] sm:$0xf] }
  0x18   : > { %v567_v31 = vrot.slane %v565_v22, 5  ;;  %v573_v33 = vshll.u32 %v5388_v21, 16  ;;  %v579_v34 = vshll.u32 %v5391_v23, 16  ;;  %v583_v37 = vshrl.u32 %v5391_v23, 16  ;;  %v5419_v45 = vld [vmem:[%s5362_s24 + $0x1c] sm:$0xf] }
  0x19   : > { %v552_v35 = vor.u32 %v551_v28, %v548_v27  ;;  %v562_v36 = vor.u32 %v561_v30, %v557_v29  ;;  %v589_v38 = vshll.u32 %v5394_v24, 16  ;;  %v572_v41 = vrot.slane %v570_v32, 4  ;;  %v5423_v52 = vld [vmem:[%s5362_s24 + $0x20] sm:$0xf]  ;;  %v5433_v63 = vld [vmem:[%s5362_s24 + $0x24] sm:$0xf] }
  0x1a   : > { %v575_v42 = vrot.slane %v573_v33, 5  ;;  %v581_v43 = vrot.slane %v579_v34, 5  ;;  %v5416_v44 = vcombine.low %v5388_v21, %v5391_v23  ;;  %v585_v48 = vrot.slane %v583_v37, 4  ;;  %v5438_v4 = vld [vmem:[%s5362_s24 + $0x28] sm:$0xf] }
  0x1b   : > { %v553_v46 = vrot.slane %v552_v35, 4  ;;  %v563_v47 = vrot.slane %v562_v36, 4  ;;  %v591_v49 = vrot.slane %v589_v38, 5  ;;  %v594_v53 = vshrl.u32 %v5406_v39, 16  ;;  %v5446_v10 = vld [vmem:[%s5362_s24 + $0x2c] sm:$0xf] }
  0x1c   : > { %v576_v50 = vor.u32 %v575_v42, %v572_v41  ;;  %v597_v54 = vshll.u32 %v5406_v39, 16  ;;  %v586_v57 = vor.u32 %v585_v48, %v581_v43  ;;  %v603_v58 = vshll.u32 %v5419_v45, 16  ;;  %v5452_v20 = vld [vmem:[%s5362_s24 + $0x30] sm:$0xf]  ;;  %v5459_v34 = vld [vmem:[%s5362_s24 + $0x34] sm:$0xf] }
  0x1d   : > { %v558_v55 = vsel %vm5410_vm4, %v553_v46, %v557_v29  ;;  %v568_v56 = vsel %vm5410_vm4, %v563_v47, %v567_v31  ;;  %v596_v61 = vrot.slane %v594_v53, 4  ;;  %v607_v2 = vshrl.u32 %v5419_v45, 16  ;;  %v5466_v38 = vld [vmem:[%s5362_s24 + $0x38] sm:$0xf]  ;;  %v5617_v51 = vld [vmem:[%s5362_s24 + $0x80] sm:$0xf] }
  0x1e   : > { %v4004_v59 = vcombine.low %v558_v55, %v568_v56  ;;  %v577_v60 = vrot.slane %v576_v50, 4  ;;  %v599_v62 = vrot.slane %v597_v54, 5  ;;  %v587_v0 = vrot.slane %v586_v57, 4  ;;  %v5474_v54 = vld [vmem:[%s5362_s24 + $0x3c] sm:$0xf] }
  0x1f   : > { %v605_v1 = vrot.slane %v603_v58, 5  ;;  %v613_v3 = vshll.u32 %v5423_v52, 16  ;;  %v609_v17 = vrot.slane %v607_v2, 4  ;;  %v618_v19 = vshrl.u32 %v5433_v63, 16 }
  0x20   : > { %4583 = vmatprep.mubr.msk.bf16.mxu1 %vm981_vm3, %v4004_v59  ;;  %v582_v5 = vsel %vm5410_vm4, %v577_v60, %v581_v43  ;;  %v600_v6 = vor.u32 %v599_v62, %v596_v61  ;;  %v592_v16 = vsel %vm5410_vm4, %v587_v0, %v591_v49  ;;  %v621_v28 = vshll.u32 %v5433_v63, 16  ;;  %v5480_v59 = vld [vmem:[%s5362_s24 + $0x40] sm:$0xf] }
  0x21   : > { %v615_v18 = vrot.slane %v613_v3, 5  ;;  %v4005_v22 = vcombine.low %v582_v5, %v592_v16  ;;  %v627_v29 = vshll.u32 %v5438_v4, 16  ;;  %v610_v30 = vor.u32 %v609_v17, %v605_v1  ;;  %v5492_v16 = vld [vmem:[%s5362_s24 + $0x44] sm:$0xf] }
  0x22   : > { %v601_v27 = vrot.slane %v600_v6, 4  ;;  %v620_v31 = vrot.slane %v618_v19, 4  ;;  %v631_v32 = vshrl.u32 %v5438_v4, 16  ;;  %v637_v33 = vshll.u32 %v5446_v10, 16  ;;  %v5497_v19 = vld [vmem:[%s5362_s24 + $0x48] sm:$0xf] }
  0x23   : > { %4719 = vmatprep.mubr.msk.bf16.mxu0 %vm981_vm3, %v4005_v22  ;;  %4584 = vmatmul.mubr.msk.bf16.vlgmr.msra.gmra.mrb[0].mxu1 %vm981_vm3, %v4005_v22  ;;  %v623_v36 = vrot.slane %v621_v28, 5  ;;  %v629_v37 = vrot.slane %v627_v29, 5  ;;  %v642_v41 = vshrl.u32 %v5452_v20, 16  ;;  %v611_v42 = vrot.slane %v610_v30, 4  ;;  %v5504_v30 = vld [vmem:[%s5362_s24 + $0x4c] sm:$0xf] }
  0x24   : > { %v606_v35 = vsel %vm5410_vm4, %v601_v27, %v605_v1  ;;  %v633_v43 = vrot.slane %v631_v32, 4  ;;  %v639_v46 = vrot.slane %v637_v33, 5  ;;  %v645_v47 = vshll.u32 %v5452_v20, 16  ;;  %4616 = vmatpush3.bf16.msra.mxu1 %v5368_v12 }
  0x25   : > { %v624_v48 = vor.u32 %v623_v36, %v620_v31  ;;  %v644_v49 = vrot.slane %v642_v41, 4  ;;  %v651_v50 = vshll.u32 %v5459_v34, 16  ;;  %v655_v53 = vshrl.u32 %v5459_v34, 16 }
  0x26   : > { %v616_v55 = vsel %vm5410_vm4, %v611_v42, %v615_v18  ;;  %v634_v56 = vor.u32 %v633_v43, %v629_v37  ;;  %v647_v57 = vrot.slane %v645_v47, 5  ;;  %v661_v58 = vshll.u32 %v5466_v38, 16 }
  0x27   : > { %v5482_v12 = vcombine.low %v606_v35, %v616_v55  ;;  %v625_v60 = vrot.slane %v624_v48, 4  ;;  %v653_v61 = vrot.slane %v651_v50, 5  ;;  %v657_v62 = vrot.slane %v655_v53, 4  ;;  %v5526_v48 = vld [vmem:[%s5362_s24 + $0x54] sm:$0xf] }
  0x28   : > { %v635_v0 = vrot.slane %v634_v56, 4  ;;  %v648_v1 = vor.u32 %v647_v57, %v644_v49  ;;  %v663_v2 = vrot.slane %v661_v58, 5  ;;  %v666_v3 = vshrl.u32 %v5474_v54, 16  ;;  %v5531_v56 = vld [vmem:[%s5362_s24 + $0x58] sm:$0xf] }
  0x29   : > { %6677 = vst [vmem:[#allocation2_spill] sm:$0xff] %v5482_v12  ;;  %4720 = vmatmul.mubr.msk.bf16.vlgmr.msra.gmra.mrb[0].mxu0 %vm981_vm3, %v5482_v12  ;;  %4587 = vmatprep.mubr.msk.bf16.mxu1 %vm981_vm3, %v5482_v12  ;;  %v630_v5 = vsel %vm5410_vm4, %v625_v60, %v629_v37  ;;  %v658_v6 = vor.u32 %v657_v62, %v653_v61  ;;  %v669_v17 = vshll.u32 %v5474_v54, 16  ;;  %v675_v18 = vshll.u32 %v5480_v59, 16 }
  0x2a   : > { %4752 = vmatpush3.bf16.msra.mxu0 %v5365_v11  ;;  %v640_v22 = vsel %vm5410_vm4, %v635_v0, %v639_v46  ;;  %v649_v27 = vrot.slane %v648_v1, 4  ;;  %v668_v28 = vrot.slane %v666_v3, 4  ;;  %v679_v29 = vshrl.u32 %v5480_v59, 16 }
  0x2b   : > { %v5506_v31 = vcombine.low %v630_v5, %v640_v22  ;;  %v659_v32 = vrot.slane %v658_v6, 4  ;;  %v671_v33 = vrot.slane %v669_v17, 5  ;;  %v677_v35 = vrot.slane %v675_v18, 5  ;;  %5185 = vmatprep.subr.msk.bf16.mxu0 %vm1030_vm0, %v5348_v7  ;;  %v5521_v7 = vld [vmem:[%s5362_s24 + $0x50] sm:$0xf] }
  0x2c   : > { %v654_v11 = vsel %vm5410_vm4, %v649_v27, %v653_v61  ;;  %v681_v36 = vrot.slane %v679_v29, 4  ;;  %v685_v37 = vshll.u32 %v5492_v16, 16  ;;  %v690_v41 = vshrl.u32 %v5497_v19, 16  ;;  %v5544_v17 = vld [vmem:[%s5362_s24 + $0x5c] sm:$0xf] }
  0x2d   : > { %6678 = vst [vmem:[#allocation3_spill] sm:$0xff] %v5506_v31  ;;  %4723 = vmatprep.mubr.msk.bf16.mxu0 %vm981_vm3, %v5506_v31  ;;  %4588 = vmatmul.mubr.msk.bf16.gmra.mrb[4].mxu1 %vm981_vm3, %v5506_v31  ;;  %v664_v42 = vsel %vm5410_vm4, %v659_v32, %v663_v2  ;;  %v672_v43 = vor.u32 %v671_v33, %v668_v28  ;;  %v693_v46 = vshll.u32 %v5497_v19, 16  ;;  %v699_v47 = vshll.u32 %v5504_v30, 16  ;;  %v5548_v22 = vld [vmem:[%s5362_s24 + $0x60] sm:$0xf] }
  0x2e   : > { %v5528_v49 = vcombine.low %v654_v11, %v664_v42  ;;  %v682_v50 = vor.u32 %v681_v36, %v677_v35  ;;  %v687_v53 = vrot.slane %v685_v37, 5  ;;  %v692_v55 = vrot.slane %v690_v41, 4  ;;  %v5553_v33 = vld [vmem:[%s5362_s24 + $0x64] sm:$0xf] }
  0x2f   : > { %v673_v57 = vrot.slane %v672_v43, 4  ;;  %v695_v58 = vrot.slane %v693_v46, 5  ;;  %v701_v60 = vrot.slane %v699_v47, 5  ;;  %v703_v61 = vshrl.u32 %v5504_v30, 16 }
  0x30   : > { %6679 = vst [vmem:[#allocation4_spill] sm:$0xff] %v5528_v49  ;;  %4591 = vmatprep.mubr.msk.bf16.mxu1 %vm981_vm3, %v5528_v49  ;;  %v683_v62 = vrot.slane %v682_v50, 4  ;;  %v709_v0 = vshll.u32 %v5521_v7, 16  ;;  %v714_v1 = vshrl.u32 %v5526_v48, 16  ;;  %v717_v2 = vshll.u32 %v5526_v48, 16 }
  0x31   : > { %4724 = vmatmul.mubr.msk.bf16.gmra.mrb[4].mxu0 %vm981_vm3, %v5528_v49  ;;  %v678_v3 = vsel %vm5410_vm4, %v673_v57, %v677_v35  ;;  %v696_v5 = vor.u32 %v695_v58, %v692_v55  ;;  %v705_v6 = vrot.slane %v703_v61, 4  ;;  %v723_v18 = vshll.u32 %v5531_v56, 16 }
  0x32   : > { %v688_v27 = vsel %vm5410_vm4, %v683_v62, %v687_v53  ;;  %v711_v28 = vrot.slane %v709_v0, 5  ;;  %v716_v29 = vrot.slane %v714_v1, 4  ;;  %v719_v32 = vrot.slane %v717_v2, 5  ;;  %v5567_v53 = vld [vmem:[%s5362_s24 + $0x68] sm:$0xf] }
  0x33   : > { %v5555_v11 = vcombine.low %v678_v3, %v688_v27  ;;  %v697_v35 = vrot.slane %v696_v5, 4  ;;  %v706_v36 = vor.u32 %v705_v6, %v701_v60  ;;  %v725_v37 = vrot.slane %v723_v18, 5  ;;  %v5572_v1 = vld [vmem:[%s5362_s24 + $0x6c] sm:$0xf]  ;;  %v5578_v6 = vld [vmem:[%s5362_s24 + $0x70] sm:$0xf] }
  0x34   : > { %v720_v41 = vor.u32 %v719_v32, %v716_v29  ;;  %v727_v42 = vshrl.u32 %v5531_v56, 16  ;;  %v733_v43 = vshll.u32 %v5544_v17, 16  ;;  %v738_v46 = vshrl.u32 %v5548_v22, 16 }
  0x35   : > { %6680 = vst [vmem:[#allocation5_spill] sm:$0xff] %v5555_v11  ;;  %4727 = vmatprep.mubr.msk.bf16.mxu0 %vm981_vm3, %v5555_v11  ;;  %4592 = vmatmul.mubr.msk.bf16.gmra.mrb[8].mxu1 %vm981_vm3, %v5555_v11  ;;  %v702_v47 = vsel %vm5410_vm4, %v697_v35, %v701_v60  ;;  %v707_v50 = vrot.slane %v706_v36, 4  ;;  %v741_v55 = vshll.u32 %v5548_v22, 16  ;;  %v747_v57 = vshll.u32 %v5553_v33, 16  ;;  %v5586_v35 = vld [vmem:[%s5362_s24 + $0x74] sm:$0xf] }
  0x36   : > { %v721_v58 = vrot.slane %v720_v41, 4  ;;  %v729_v61 = vrot.slane %v727_v42, 4  ;;  %v735_v62 = vrot.slane %v733_v43, 5  ;;  %v740_v0 = vrot.slane %v738_v46, 4  ;;  %v5593_v43 = vld [vmem:[%s6634_s2 + $0x4] sm:$0x3] }
  0x37   : > { %v712_v2 = vsel %vm5410_vm4, %v707_v50, %v711_v28  ;;  %v743_v3 = vrot.slane %v741_v55, 5  ;;  %v749_v5 = vrot.slane %v747_v57, 5  ;;  %v751_v60 = vshrl.u32 %v5553_v33, 16  ;;  %6682 = vst [vmem:[#allocation7_spill] sm:$0xff] %v5593_v43  ;;  %5181 = vmatprep.subr.msk.bf16.mxu1 %vm1030_vm0, %v5593_v43  ;;  %v5672_v11 = vld [vmem:[%s5362_s24 + $0x9c] sm:$0xf] }
  0x38   : > { %v5580_v18 = vcombine.low %v702_v47, %v712_v2  ;;  %v726_v27 = vsel %vm5410_vm4, %v721_v58, %v725_v37  ;;  %v730_v29 = vor.u32 %v729_v61, %v725_v37  ;;  %v757_v32 = vshll.u32 %v5567_v53, 16  ;;  %6690 = vst [vmem:[#allocation15_spill] sm:$0xff] %v5672_v11 }
  0x39   : > { %v744_v36 = vor.u32 %v743_v3, %v740_v0  ;;  %v753_v41 = vrot.slane %v751_v60, 4  ;;  %v762_v28 = vshrl.u32 %v5572_v1, 16  ;;  %v765_v42 = vshll.u32 %v5572_v1, 16  ;;  %v5602_v0 = vld [vmem:[%s5362_s24 + $0x78] sm:$0xf] }
  0x3a   : > { %6681 = vst [vmem:[#allocation6_spill] sm:$0xff] %v5580_v18  ;;  %4728 = vmatmul.mubr.msk.bf16.gmra.mrb[8].mxu0 %vm981_vm3, %v5580_v18  ;;  %4595 = vmatprep.mubr.msk.bf16.mxu1 %vm981_vm3, %v5580_v18  ;;  %v731_v37 = vrot.slane %v730_v29, 4  ;;  %v759_v46 = vrot.slane %v757_v32, 5  ;;  %v771_v47 = vshll.u32 %v5578_v6, 16  ;;  %v775_v50 = vshrl.u32 %v5578_v6, 16 }
  0x3b   : > { %v745_v55 = vrot.slane %v744_v36, 4  ;;  %v754_v57 = vor.u32 %v753_v41, %v749_v5  ;;  %v764_v58 = vrot.slane %v762_v28, 4  ;;  %v767_v61 = vrot.slane %v765_v42, 5  ;;  %v5610_v32 = vld [vmem:[%s5362_s24 + $0x7c] sm:$0xf] }
  0x3c   : > { %v736_v2 = vsel %vm5410_vm4, %v731_v37, %v735_v62  ;;  %v773_v3 = vrot.slane %v771_v47, 5  ;;  %v777_v60 = vrot.slane %v775_v50, 4  ;;  %v781_v29 = vshll.u32 %v5586_v35, 16 }
  0x3d   : > { %v5612_v36 = vcombine.low %v726_v27, %v736_v2  ;;  %v750_v41 = vsel %vm5410_vm4, %v745_v55, %v749_v5  ;;  %v755_v28 = vrot.slane %v754_v57, 4  ;;  %v768_v42 = vor.u32 %v767_v61, %v764_v58  ;;  %v5630_v55 = vld [vmem:[%s5362_s24 + $0x84] sm:$0xf] }
  0x3e   : > { %v778_v9 = vor.u32 %v777_v60, %v773_v3  ;;  %v783_v25 = vrot.slane %v781_v29, 5  ;;  %v786_v62 = vshrl.u32 %v5602_v0, 16  ;;  %v789_v37 = vshll.u32 %v5602_v0, 16  ;;  %v5635_v60 = vld [vmem:[%s5362_s24 + $0x88] sm:$0xf] }
  0x3f   : > { %6683 = vst [vmem:[#allocation8_spill] sm:$0xff] %v5612_v36  ;;  %4731 = vmatprep.mubr.msk.bf16.mxu0 %vm981_vm3, %v5612_v36  ;;  %4596 = vmatmul.mubr.msk.bf16.gmra.mrb[12].mxu1 %vm981_vm3, %v5612_v36  ;;  %v760_v5 = vsel %vm5410_vm4, %v755_v28, %v759_v46  ;;  %v769_v27 = vrot.slane %v768_v42, 4  ;;  %v795_v47 = vshll.u32 %v5610_v32, 16  ;;  %v799_v50 = vshrl.u32 %v5610_v32, 16 }
  0x40   : > { %v5632_v57 = vcombine.low %v750_v41, %v760_v5  ;;  %v779_v58 = vrot.slane %v778_v9, 4  ;;  %v788_v61 = vrot.slane %v786_v62, 4  ;;  %v791_v2 = vrot.slane %v789_v37, 5  ;;  %v5647_v62 = vld [vmem:[%s5362_s24 + $0x8c] sm:$0xf] }
  0x41   : > { %v774_v29 = vsel %vm5410_vm4, %v769_v27, %v773_v3  ;;  %v797_v46 = vrot.slane %v795_v47, 5  ;;  %v801_v28 = vrot.slane %v799_v50, 4  ;;  %v805_v42 = vshll.u32 %v5617_v51, 16  ;;  %6685 = vst [vmem:[#allocation10_spill] sm:$0xff] %v5647_v62  ;;  %v5652_v5 = vld [vmem:[%s5362_s24 + $0x90] sm:$0xf] }
  0x42   : > { %6684 = vst [vmem:[#allocation9_spill] sm:$0xff] %v5632_v57  ;;  %4732 = vmatmul.mubr.msk.bf16.gmra.mrb[12].mxu0 %vm981_vm3, %v5632_v57  ;;  %4599 = vmatprep.mubr.msk.bf16.mxu1 %vm981_vm3, %v5632_v57  ;;  %v784_v9 = vsel %vm5410_vm4, %v779_v58, %v783_v25  ;;  %v792_v41 = vor.u32 %v791_v2, %v788_v61  ;;  %v810_v37 = vshrl.u32 %v5630_v55, 16  ;;  %v813_v3 = vshll.u32 %v5630_v55, 16  ;;  %v5659_v61 = vld [vmem:[%s5362_s24 + $0x94] sm:$0xf] }
  0x43   : > { %6686 = vst [vmem:[#allocation11_spill] sm:$0xff] %v5652_v5  ;;  %v5654_v27 = vcombine.low %v774_v29, %v784_v9  ;;  %v802_v47 = vor.u32 %v801_v28, %v797_v46  ;;  %v807_v50 = vrot.slane %v805_v42, 5  ;;  %v819_v8 = vshll.u32 %v5635_v60, 16  ;;  %6688 = vst [vmem:[#allocation13_spill] sm:$0xff] %v5659_v61 }
  0x44   : > { %v793_v57 = vrot.slane %v792_v41, 4  ;;  %v812_v36 = vrot.slane %v810_v37, 4  ;;  %v815_v25 = vrot.slane %v813_v3, 5  ;;  %v823_v58 = vshrl.u32 %v5635_v60, 16  ;;  %v5668_v37 = vld [vmem:[%s5362_s24 + $0x98] sm:$0xf] }
  0x45   : > { %6687 = vst [vmem:[#allocation12_spill] sm:$0xff] %v5654_v27  ;;  %4735 = vmatprep.mubr.msk.bf16.mxu0 %vm981_vm3, %v5654_v27  ;;  %v803_v2 = vrot.slane %v802_v47, 4  ;;  %v821_v18 = vrot.slane %v819_v8, 5  ;;  %v829_v29 = vshll.u32 %v5647_v62, 16  ;;  %v834_v28 = vshrl.u32 %v5652_v5, 16  ;;  %6689 = vst [vmem:[#allocation14_spill] sm:$0xff] %v5668_v37 }
  0x46   : > { %v798_v42 = vsel %vm5410_vm4, %v793_v57, %v797_v46  ;;  %v816_v9 = vor.u32 %v815_v25, %v812_v36  ;;  %v825_v41 = vrot.slane %v823_v58, 4  ;;  %v837_v3 = vshll.u32 %v5652_v5, 16  ;;  %v5682_v58 = vld [vmem:[%s5362_s24 + $0xa0] sm:$0xf]  ;;  %v5713_v62 = vld [vmem:[%s5362_s24 + $0xb0] sm:$0xf] }
  0x47   : > { %4600 = vmatmul.mubr.msk.bf16.gmra.mrb[16].mxu1 %vm981_vm3, %v5654_v27  ;;  %v808_v8 = vsel %vm5410_vm4, %v803_v2, %v807_v50  ;;  %v831_v47 = vrot.slane %v829_v29, 5  ;;  %v836_v49 = vrot.slane %v834_v28, 4  ;;  %v843_v31 = vshll.u32 %v5659_v61, 16  ;;  %6695 = vst [vmem:[#allocation20_spill] sm:$0xff] %v5713_v62 }
  0x48   : > { %v5679_v57 = vcombine.low %v798_v42, %v808_v8  ;;  %v817_v36 = vrot.slane %v816_v9, 4  ;;  %v826_v46 = vor.u32 %v825_v41, %v821_v18  ;;  %v839_v25 = vrot.slane %v837_v3, 5  ;;  %v5694_v42 = vld [vmem:[%s5362_s24 + $0xa4] sm:$0xf] }
  0x49   : > { %v845_v12 = vrot.slane %v843_v31, 5  ;;  %v847_v43 = vshrl.u32 %v5659_v61, 16  ;;  %v853_v27 = vshll.u32 %v5668_v37, 16  ;;  %v858_v50 = vshrl.u32 %v5672_v11, 16  ;;  %v5699_v37 = vld [vmem:[%s5362_s24 + $0xa8] sm:$0xf] }
  0x4a   : > { %6691 = vst [vmem:[#allocation16_spill] sm:$0xff] %v5679_v57  ;;  %4736 = vmatmul.mubr.msk.bf16.gmra.mrb[16].mxu0 %vm981_vm3, %v5679_v57  ;;  %4603 = vmatprep.mubr.msk.bf16.mxu1 %vm981_vm3, %v5679_v57  ;;  %v822_v2 = vsel %vm5410_vm4, %v817_v36, %v821_v18  ;;  %v827_v29 = vrot.slane %v826_v46, 4  ;;  %v840_v28 = vor.u32 %v839_v25, %v836_v49  ;;  %v861_v31 = vshll.u32 %v5672_v11, 16  ;;  %v5705_v36 = vld [vmem:[%s5362_s24 + $0xac] sm:$0xf] }
  0x4b   : > { %v849_v9 = vrot.slane %v847_v43, 4  ;;  %v855_v41 = vrot.slane %v853_v27, 5  ;;  %v860_v3 = vrot.slane %v858_v50, 4  ;;  %v867_v8 = vshll.u32 %v5682_v58, 16  ;;  %6692 = vst [vmem:[#allocation17_spill] sm:$0xff] %v5699_v37  ;;  %6693 = vst [vmem:[#allocation18_spill] sm:$0xff] %v5705_v36 }
  0x4c   : > { %v832_v57 = vsel %vm5410_vm4, %v827_v29, %v831_v47  ;;  %v841_v61 = vrot.slane %v840_v28, 4  ;;  %v863_v18 = vrot.slane %v861_v31, 5  ;;  %v871_v49 = vshrl.u32 %v5682_v58, 16 }
  0x4d   : > { %v5707_v46 = vcombine.low %v822_v2, %v832_v57  ;;  %v850_v43 = vor.u32 %v849_v9, %v845_v12  ;;  %v869_v27 = vrot.slane %v867_v8, 5  ;;  %v877_v25 = vshll.u32 %v5694_v42, 16 }
  0x4e   : > { %v846_v50 = vsel %vm5410_vm4, %v841_v61, %v845_v12  ;;  %v864_v11 = vor.u32 %v863_v18, %v860_v3  ;;  %v873_v5 = vrot.slane %v871_v49, 4  ;;  %v882_v47 = vshrl.u32 %v5699_v37, 16  ;;  %v5726_v3 = vld [vmem:[%s5362_s24 + $0xb4] sm:$0xf] }
  0x4f   : > { %6694 = vst [vmem:[#allocation19_spill] sm:$0xff] %v5707_v46  ;;  %4739 = vmatprep.mubr.msk.bf16.mxu0 %vm981_vm3, %v5707_v46  ;;  %4604 = vmatmul.mubr.msk.bf16.gmra.mrb[20].mxu1 %vm981_vm3, %v5707_v46  ;;  %v851_v57 = vrot.slane %v850_v43, 4  ;;  %v879_v2 = vrot.slane %v877_v25, 5  ;;  %v885_v12 = vshll.u32 %v5699_v37, 16  ;;  %v891_v61 = vshll.u32 %v5705_v36, 16  ;;  %6696 = vst [vmem:[#allocation21_spill] sm:$0xff] %v5726_v3 }
  0x50   : > { %v865_v29 = vrot.slane %v864_v11, 4  ;;  %v874_v28 = vor.u32 %v873_v5, %v869_v27  ;;  %v884_v31 = vrot.slane %v882_v47, 4  ;;  %v895_v9 = vshrl.u32 %v5705_v36, 16  ;;  %v5732_v25 = vld [vmem:[%s5362_s24 + $0xb8] sm:$0xf] }
  0x51   : > { %v856_v8 = vsel %vm5410_vm4, %v851_v57, %v855_v41  ;;  %v887_v18 = vrot.slane %v885_v12, 5  ;;  %v893_v49 = vrot.slane %v891_v61, 5  ;;  %v901_v43 = vshll.u32 %v5713_v62, 16  ;;  %6697 = vst [vmem:[#allocation22_spill] sm:$0xff] %v5732_v25  ;;  %v5744_v12 = vld [vmem:[%s5362_s24 + $0xbc] sm:$0xf] }
  0x52   : > { %v5739_v11 = vcombine.low %v846_v50, %v856_v8  ;;  %v870_v5 = vsel %vm5410_vm4, %v865_v29, %v869_v27  ;;  %v875_v47 = vrot.slane %v874_v28, 4  ;;  %v897_v46 = vrot.slane %v895_v9, 4  ;;  %6699 = vst [vmem:[#allocation24_spill] sm:$0xff] %v5744_v12 }
  0x53   : > { %v888_v41 = vor.u32 %v887_v18, %v884_v31  ;;  %v903_v57 = vrot.slane %v901_v43, 5  ;;  %v906_v61 = vshrl.u32 %v5726_v3, 16  ;;  %v909_v62 = vshll.u32 %v5726_v3, 16  ;;  %v5757_v31 = vld [vmem:[%s5737_s13] sm:$0xf] }
  0x54   : > { %6698 = vst [vmem:[#allocation23_spill] sm:$0xff] %v5739_v11  ;;  %4740 = vmatmul.mubr.msk.bf16.gmra.mrb[20].mxu0 %vm981_vm3, %v5739_v11  ;;  %4607 = vmatprep.mubr.msk.bf16.mxu1 %vm981_vm3, %v5739_v11  ;;  %v880_v27 = vsel %vm5410_vm4, %v875_v47, %v879_v2  ;;  %v898_v50 = vor.u32 %v897_v46, %v893_v49  ;;  %v915_v29 = vshll.u32 %v5732_v25, 16  ;;  %v919_v28 = vshrl.u32 %v5732_v25, 16  ;;  %v5762_v3 = vld [vmem:[%s5737_s13 + $0x4] sm:$0xf] }
  0x55   : > { %6700 = vst [vmem:[#allocation25_spill] sm:$0xff] %v5757_v31  ;;  %v5759_v9 = vcombine.low %v870_v5, %v880_v27  ;;  %v889_v8 = vrot.slane %v888_v41, 4  ;;  %v908_v18 = vrot.slane %v906_v61, 4  ;;  %v911_v43 = vrot.slane %v909_v62, 5  ;;  %v5772_v47 = vld [vmem:[%s5737_s13 + $0x8] sm:$0xf] }
  0x56   : > { %v899_v36 = vrot.slane %v898_v50, 4  ;;  %v917_v11 = vrot.slane %v915_v29, 5  ;;  %v921_v37 = vrot.slane %v919_v28, 4  ;;  %v925_v2 = vshll.u32 %v5744_v12, 16 }
  0x57   : > { %6701 = vst [vmem:[#allocation26_spill] sm:$0xff] %v5759_v9  ;;  %4743 = vmatprep.mubr.msk.bf16.mxu0 %vm981_vm3, %v5759_v9  ;;  %4608 = vmatmul.mubr.msk.bf16.gmra.mrb[24].mxu1 %vm981_vm3, %v5759_v9  ;;  %v894_v46 = vsel %vm5410_vm4, %v889_v8, %v893_v49  ;;  %v912_v5 = vor.u32 %v911_v43, %v908_v18  ;;  %v2115_v62 = vshrl.u32 %v5757_v31, 16  ;;  %v2118_v41 = vshll.u32 %v5757_v31, 16 }
  0x58   : > { %v904_v61 = vsel %vm5410_vm4, %v899_v36, %v903_v57  ;;  %v922_v27 = vor.u32 %v921_v37, %v917_v11  ;;  %v927_v50 = vrot.slane %v925_v2, 5  ;;  %v2124_v29 = vshll.u32 %v5762_v3, 16 }
  0x59   : > { %v5779_v28 = vcombine.low %v894_v46, %v904_v61  ;;  %v913_v9 = vrot.slane %v912_v5, 4  ;;  %v2117_v12 = vrot.slane %v2115_v62, 4  ;;  %v2120_v25 = vrot.slane %v2118_v41, 5 }
  0x5a   : > { %v923_v49 = vrot.slane %v922_v27, 4  ;;  %v2126_v8 = vrot.slane %v2124_v29, 5  ;;  %v2128_v18 = vshrl.u32 %v5762_v3, 16  ;;  %v2134_v43 = vshll.u32 %v5772_v47, 16 }
  0x5b   : > { %4611 = vmatprep.mubr.msk.bf16.mxu1 %vm981_vm3, %v5779_v28  ;;  %v918_v37 = vsel %vm5410_vm4, %v913_v9, %v917_v11  ;;  %v2121_v36 = vor.u32 %v2120_v25, %v2117_v12  ;;  %v4070_v57 = vrot.slane %v5388_v21, 9  ;;  %v1515_v2 = vrot.slane %v5391_v23, 5 }
  0x5c   : > { %4744 = vmatmul.mubr.msk.bf16.gmra.mrb[24].mxu0 %vm981_vm3, %v5779_v28  ;;  %v928_v46 = vsel %vm5410_vm4, %v923_v49, %v927_v50  ;;  %v2130_v5 = vrot.slane %v2128_v18, 4  ;;  %v2136_v62 = vrot.slane %v2134_v43, 5  ;;  %v4071_v41 = vrot.slane %v5406_v39, 9 }
  0x5d   : > { %v5800_v61 = vcombine.low %v918_v37, %v928_v46  ;;  %v2122_v27 = vrot.slane %v2121_v36, 4  ;;  %v1516_v25 = vsel %vm5785_vm7, %v4070_v57, %v1515_v2  ;;  %v1517_v11 = vrot.slane %v1515_v2, 4 }
  0x5e   : > { %v2131_v21 = vor.u32 %v2130_v5, %v2126_v8  ;;  %v6704_v23 = vrot.slane %v5419_v45, 5  ;;  %v5812_v29 = vcombine.low %v5406_v39, %v5419_v45  ;;  %v6706_v18 = vrot.slane %v5394_v24, 5 }
  0x5f   : > { %4747 = vmatprep.mubr.msk.bf16.mxu0 %vm981_vm3, %v5800_v61  ;;  %4612 = vmatmul.mubr.msk.bf16.gmra.mrb[28].mxu1 %vm981_vm3, %v5800_v61  ;;  %v2127_v49 = vsel %vm5410_vm4, %v2122_v27, %v2126_v8  ;;  %v4072_v37 = vrot.slane %v5433_v63, 9  ;;  %v1529_v36 = vrot.slane %v5438_v4, 5  ;;  %v6707_v45 = vcombine.low %v5375_v14, %v5378_v15 }
  0x60   : > { %v1523_v12 = vsel %vm5785_vm7, %v4071_v41, %v6704_v23  ;;  %v6705_v9 = vmov %v6704_v23  ;;  %v1519_v43 = vsel %vm5785_vm7, %v1517_v11, %v6706_v18  ;;  %v2132_v39 = vrot.slane %v2131_v21, 4 }
  0x61   : > { %v1524_v50 = vrot.slane %v6705_v9, 4  ;;  %4617 = vmatprep.mubr.msk.bf16.mxu1 %vm981_vm3, %v6707_v45  ;;  %v5830_v57 = vcombine.low %v1516_v25, %v1519_v43  ;;  %v6708_v2 = vrot.slane %v5423_v52, 5  ;;  %v1532_v8 = vrot.slane %v5446_v10, 5 }
  0x62   : > { %v1530_v5 = vsel %vm5785_vm7, %v4072_v37, %v1529_v36  ;;  %v1531_v41 = vrot.slane %v1529_v36, 4  ;;  %v5843_v14 = vcombine.low %v5433_v63, %v5438_v4  ;;  %v2137_v15 = vsel %vm5410_vm4, %v2132_v39, %v2136_v62 }
  0x63   : > { %v1526_v24 = vsel %vm5785_vm7, %v1524_v50, %v6708_v2  ;;  %v4073_v52 = vrot.slane %v5452_v20, 9  ;;  %v1536_v27 = vrot.slane %v5459_v34, 5  ;;  %v1539_v25 = vrot.slane %v5466_v38, 5 }
  0x64   : > { %v5837_v46 = vcombine.low %v1523_v12, %v1526_v24  ;;  %v5850_v10 = vcombine.low %v2127_v49, %v2137_v15  ;;  %v1533_v11 = vsel %vm5785_vm7, %v1531_v41, %v1532_v8  ;;  %v5856_v21 = vcombine.low %v5452_v20, %v5459_v34 }
  0x65   : > { %v4074_v63 = vrot.slane %v5474_v54, 9  ;;  %v5859_v4 = vcombine.low %v1530_v5, %v1533_v11  ;;  %v1537_v62 = vsel %vm5785_vm7, %v4073_v52, %v1536_v27  ;;  %v1538_v23 = vrot.slane %v1536_v27, 4 }
  0x66   : > { %v1543_v12 = vrot.slane %v5480_v59, 5  ;;  %4748 = vmatmul.mubr.msk.bf16.gmra.mrb[28].mxu0 %vm981_vm3, %v5850_v10  ;;  %v1546_v38 = vrot.slane %v5492_v16, 5  ;;  %v5869_v9 = vcombine.low %v5474_v54, %v5480_v59  ;;  %v4075_v20 = vrot.slane %v5497_v19, 9 }
  0x67   : > { %v1550_v34 = vrot.slane %v5504_v30, 5  ;;  %4753 = vmatprep.mubr.msk.bf16.mxu0 %vm981_vm3, %v5830_v57  ;;  %v1540_v50 = vsel %vm5785_vm7, %v1538_v23, %v1539_v25  ;;  %v1553_v16 = vrot.slane %v5521_v7, 5  ;;  %4618 = vmatmul.mubr.msk.bf16.vlgmr.msra.gmra.mrb[0].mxu1 %vm981_vm3, %v5416_v44  ;;  %v5888_v37 = vcombine.low %v5497_v19, %v5504_v30 }
  0x68   : > { %v1544_v49 = vsel %vm5785_vm7, %v4074_v63, %v1543_v12  ;;  %v1545_v18 = vrot.slane %v1543_v12, 4  ;;  %v5882_v54 = vcombine.low %v1537_v62, %v1540_v50  ;;  %4621 = vmatprep.mubr.msk.bf16.mxu1 %vm981_vm3, %v5812_v29  ;;  %v4076_v7 = vrot.slane %v5526_v48, 9 }
  0x69   : > { %v1551_v59 = vsel %vm5785_vm7, %v4075_v20, %v1550_v34  ;;  %v1552_v43 = vrot.slane %v1550_v34, 4  ;;  %v1557_v39 = vrot.slane %v5531_v56, 5  ;;  %v1560_v45 = vrot.slane %v5544_v17, 5 }
  0x6a   : > { %v1547_v36 = vsel %vm5785_vm7, %v1545_v18, %v1546_v38  ;;  %v5903_v19 = vcombine.low %v5526_v48, %v5531_v56  ;;  %v4077_v30 = vrot.slane %v5548_v22, 9  ;;  %v1564_v15 = vrot.slane %v5553_v33, 5  ;;  %v6709_v18 = vld [vmem:[#allocation10_spill] sm:$0xff] }
  0x6b   : > { %v5897_v2 = vcombine.low %v1544_v49, %v1547_v36  ;;  %v1554_v24 = vsel %vm5785_vm7, %v1552_v43, %v1553_v16  ;;  %v1558_v5 = vsel %vm5785_vm7, %v4076_v7, %v1557_v39  ;;  %v1559_v41 = vrot.slane %v1557_v39, 4  ;;  %v6711_v43 = vld [vmem:[#allocation13_spill] sm:$0xff] }
  0x6c   : > { %v5906_v8 = vcombine.low %v1551_v59, %v1554_v24  ;;  %v1567_v17 = vrot.slane %v5567_v53, 5  ;;  %v5914_v52 = vcombine.low %v5548_v22, %v5553_v33  ;;  %v4078_v27 = vrot.slane %v5572_v1, 9  ;;  %v6712_v24 = vld [vmem:[#allocation14_spill] sm:$0xff] }
  0x6d   : > { %v1571_v48 = vrot.slane %v5578_v6, 5  ;;  %v1561_v56 = vsel %vm5785_vm7, %v1559_v41, %v1560_v45  ;;  %v1565_v25 = vsel %vm5785_vm7, %v4077_v30, %v1564_v15  ;;  %v1566_v11 = vrot.slane %v1564_v15, 4 }
  0x6e   : > { %v1574_v63 = vrot.slane %v5586_v35, 5  ;;  %4754 = vmatmul.mubr.msk.bf16.vlgmr.msra.gmra.mrb[0].mxu0 %vm981_vm3, %v5837_v46  ;;  %v5925_v53 = vcombine.low %v1558_v5, %v1561_v56  ;;  %v5931_v62 = vcombine.low %v5572_v1, %v5578_v6  ;;  %v4079_v23 = vrot.slane %v5602_v0, 9 }
  0x6f   : > { %v1572_v22 = vsel %vm5785_vm7, %v4078_v27, %v1571_v48  ;;  %v1573_v33 = vrot.slane %v1571_v48, 4  ;;  %4786 = vmatpush3.bf16.msra.mxu0 %v5372_v13  ;;  %4757 = vmatprep.mubr.msk.bf16.mxu0 %vm981_vm3, %v5859_v4  ;;  %v1568_v35 = vsel %vm5785_vm7, %v1566_v11, %v1567_v17  ;;  %v1578_v12 = vrot.slane %v5610_v32, 5  ;;  %v6713_v17 = vld [vmem:[#allocation15_spill] sm:$0xff] }
  0x70   : > { %v1581_v38 = vrot.slane %v5617_v51, 5  ;;  %4622 = vmatmul.mubr.msk.bf16.gmra.mrb[4].mxu1 %vm981_vm3, %v5843_v14  ;;  %v5943_v20 = vcombine.low %v1565_v25, %v1568_v35  ;;  %v5949_v1 = vcombine.low %v5602_v0, %v5610_v32  ;;  %v4080_v6 = vrot.slane %v5630_v55, 9  ;;  %5186 = vmatprep.subr.msk.bf16.mxu0 %vm1030_vm0, %v5398_v26  ;;  %v6710_v32 = vld [vmem:[#allocation11_spill] sm:$0xff] }
  0x71   : > { %v1575_v13 = vsel %vm5785_vm7, %v1573_v33, %v1574_v63  ;;  %4625 = vmatprep.mubr.msk.bf16.mxu1 %vm981_vm3, %v5856_v21  ;;  %v1579_v34 = vsel %vm5785_vm7, %v4079_v23, %v1578_v12  ;;  %v1580_v50 = vrot.slane %v1578_v12, 4  ;;  %v1585_v49 = vrot.slane %v5635_v60, 5  ;;  %v6715_v12 = vld [vmem:[#allocation18_spill] sm:$0xff] }
  0x72   : > { %v5956_v51 = vcombine.low %v1572_v22, %v1575_v13  ;;  %v1588_v16 = vrot.slane %v6709_v18, 5  ;;  %v5964_v0 = vcombine.low %v5630_v55, %v5635_v60  ;;  %v4081_v59 = vrot.slane %v6710_v32, 9  ;;  %v6714_v22 = vld [vmem:[#allocation17_spill] sm:$0xff]  ;;  %v6716_v13 = vld [vmem:[#allocation20_spill] sm:$0xff] }
  0x73   : > { %v1592_v36 = vrot.slane %v6711_v43, 5  ;;  %v1582_v7 = vsel %vm5785_vm7, %v1580_v50, %v1581_v38  ;;  %v1586_v39 = vsel %vm5785_vm7, %v4080_v6, %v1585_v49  ;;  %v1587_v45 = vrot.slane %v1585_v49, 4  ;;  %v6718_v49 = vld [vmem:[#allocation22_spill] sm:$0xff] }
  0x74   : > { %v1595_v30 = vrot.slane %v6712_v24, 5  ;;  %v5973_v5 = vcombine.low %v1579_v34, %v1582_v7  ;;  %v5979_v60 = vcombine.low %v6710_v32, %v6711_v43  ;;  %v4082_v27 = vrot.slane %v6713_v17, 9  ;;  %v6717_v34 = vld [vmem:[#allocation21_spill] sm:$0xff]  ;;  %v6719_v43 = vld [vmem:[#allocation24_spill] sm:$0xff] }
  0x75   : > { %v1593_v41 = vsel %vm5785_vm7, %v4081_v59, %v1592_v36  ;;  %v1594_v55 = vrot.slane %v1592_v36, 4  ;;  %v1589_v15 = vsel %vm5785_vm7, %v1587_v45, %v1588_v16  ;;  %v1599_v48 = vrot.slane %v5682_v58, 5 }
  0x76   : > { %v1602_v56 = vrot.slane %v5694_v42, 5  ;;  %4758 = vmatmul.mubr.msk.bf16.gmra.mrb[4].mxu0 %vm981_vm3, %v5882_v54  ;;  %v5988_v25 = vcombine.low %v1586_v39, %v1589_v15  ;;  %v5994_v63 = vcombine.low %v6713_v17, %v5682_v58  ;;  %v4083_v33 = vrot.slane %v6714_v22, 9 }
  0x77   : > { %v1596_v11 = vsel %vm5785_vm7, %v1594_v55, %v1595_v30  ;;  %4761 = vmatprep.mubr.msk.bf16.mxu0 %vm981_vm3, %v5897_v2  ;;  %v1600_v42 = vsel %vm5785_vm7, %v4082_v27, %v1599_v48  ;;  %v1601_v23 = vrot.slane %v1599_v48, 4  ;;  %v1606_v38 = vrot.slane %v6715_v12, 5 }
  0x78   : > { %v5999_v35 = vcombine.low %v1593_v41, %v1596_v11  ;;  %4626 = vmatmul.mubr.msk.bf16.gmra.mrb[8].mxu1 %vm981_vm3, %v5869_v9  ;;  %v1609_v6 = vrot.slane %v6716_v13, 5  ;;  %v6009_v58 = vcombine.low %v6714_v22, %v6715_v12  ;;  %v4084_v50 = vrot.slane %v6717_v34, 9  ;;  %v6720_v41 = vld [vmem:[#allocation25_spill] sm:$0xff] }
  0x79   : > { %v1613_v18 = vrot.slane %v6718_v49, 5  ;;  %4629 = vmatprep.mubr.msk.bf16.mxu1 %vm981_vm3, %v5888_v37  ;;  %v1603_v16 = vsel %vm5785_vm7, %v1601_v23, %v1602_v56  ;;  %v1607_v32 = vsel %vm5785_vm7, %v4083_v33, %v1606_v38  ;;  %v1608_v59 = vrot.slane %v1606_v38, 4  ;;  %v6721_v56 = vld [vmem:[#allocation7_spill] sm:$0xff]  ;;  %v5239_v38 = vld [vmem:[%s5362_s24 + $0x4] sm:$0xf] }
  0x7a   : > { %v1616_v36 = vrot.slane %v6719_v43, 5  ;;  %v6020_v7 = vcombine.low %v1600_v42, %v1603_v16  ;;  %v6026_v24 = vcombine.low %v6717_v34, %v6718_v49  ;;  %v4152_v55 = vrot.slane %v6720_v41, 9  ;;  %v5238_v23 = vld [vmem:[%s6634_s2 + $0x8] sm:$0xf] }
  0x7b   : > { %v1614_v39 = vsel %vm5785_vm7, %v4084_v50, %v1613_v18  ;;  %v1615_v45 = vrot.slane %v1613_v18, 4  ;;  %v1610_v30 = vsel %vm5785_vm7, %v1608_v59, %v1609_v6  ;;  %v2347_v15 = vrot.slane %v5762_v3, 5  ;;  %v5240_v6 = vld [vmem:[%s5362_s24 + $0x8] sm:$0xf]  ;;  %v5241_v50 = vld [vmem:[%s5362_s24] sm:$0xf] }
  0x7c   : > { %v2350_v17 = vrot.slane %v5772_v47, 5  ;;  %v6033_v27 = vcombine.low %v1607_v32, %v1610_v30  ;;  %v1715_v11 = vsel %vm1030_vm0, %v6721_v56, 0  ;;  %v6047_v47 = vcombine.low %v6720_v41, %v5762_v3  ;;  %v6722_v30 = vld [vmem:[#allocation2_spill] sm:$0xff]  ;;  %s4281_s24 = sshll.u32 %s6739_s30, 8 }
  0x7d   : > { %v1617_v48 = vsel %vm5785_vm7, %v1615_v45, %v1616_v36  ;;  %v2348_v33 = vsel %vm5785_vm7, %v4152_v55, %v2347_v15  ;;  %v2349_v42 = vrot.slane %v2347_v15, 4  ;;  %4650 = vmatpush3.bf16.msra.mxu1 %v1715_v11  ;;  %v1508_v13 = vrot.slane %v5239_v38, 5  ;;  %v6723_v55 = vld [vmem:[#allocation3_spill] sm:$0xff]  ;;  %v6725_v15 = vld [vmem:[#allocation5_spill] sm:$0xff]  ;;  %s6353_s27 = scalar_lea.vmem %s6640_s8, %s4281_s24 }
  0x7e   : > { %v6039_v22 = vcombine.low %v1614_v39, %v1617_v48  ;;  %4762 = vmatmul.mubr.msk.bf16.gmra.mrb[8].mxu0 %vm981_vm3, %v5906_v8  ;;  %5182 = vmatprep.subr.msk.bf16.mxu1 %vm1030_vm0, %v5238_v23  ;;  %v1511_v34 = vrot.slane %v5240_v6, 5  ;;  %v4069_v49 = vrot.slane %v5241_v50, 9  ;;  %v1919_v43 = vsel %vm1030_vm0, %v5238_v23, 0  ;;  %v541_v39 = vld [vmem:[%s6634_s2 + $0x14] sm:$0x3]  ;;  %v6732_v48 = vld [vmem:[#allocation23_spill] sm:$0xff] }
  0x7f   : > { %4765 = vmatprep.mubr.msk.bf16.mxu0 %vm981_vm3, %v5925_v53  ;;  %v2351_v12 = vsel %vm5785_vm7, %v2349_v42, %v2350_v17  ;;  %v1510_v18 = vrot.slane %v1508_v13, 4  ;;  %v2793_v36 = vsel %vm1030_vm0, %v5398_v26, 0  ;;  %v6169_v26 = vld [vmem:[%s5737_s13 + $0xc] sm:$0xf]  ;;  %v3003_v41 = vsel %vm1030_vm0, %v541_v39, 0  ;;  %v6728_v17 = vld [vmem:[#allocation9_spill] sm:$0xff] }
  0x80   : > { %4630 = vmatmul.mubr.msk.bf16.gmra.mrb[12].mxu1 %vm981_vm3, %v5903_v19  ;;  %v6059_v3 = vcombine.low %v2348_v33, %v2351_v12  ;;  %v1509_v16 = vsel %vm5785_vm7, %v4069_v49, %v1508_v13  ;;  %v535_v42 = vld [vmem:[%s5737_s13 + $0x14] sm:$0xf]  ;;  %v6733_v23 = vld [vmem:[#allocation26_spill] sm:$0xff] }
  0x81   : > { %4633 = vmatprep.mubr.msk.bf16.mxu1 %vm981_vm3, %v5914_v52  ;;  %v1512_v32 = vsel %vm5785_vm7, %v1510_v18, %v1511_v34  ;;  %v2778_v13 = vshll.u32 %v535_v42, 16 }
  0x82   : > { %v4085_v59 = vcombine.low %v1509_v16, %v1512_v32 }
  0x83   : > { %v2780_v6 = vrot.slane %v2778_v13, 5 }
  0x86   : > { %4766 = vmatmul.mubr.msk.bf16.gmra.mrb[12].mxu0 %vm981_vm3, %v5943_v20 }
  0x87   : > { %4769 = vmatprep.mubr.msk.bf16.mxu0 %vm981_vm3, %v5956_v51 }
  0x88   : > { %4634 = vmatmul.mubr.msk.bf16.gmra.mrb[16].mxu1 %vm981_vm3, %v5931_v62 }
  0x89   : > { %4637 = vmatprep.mubr.msk.bf16.mxu1 %vm981_vm3, %v5949_v1 }
  0x8e   : > { %4770 = vmatmul.mubr.msk.bf16.gmra.mrb[16].mxu0 %vm981_vm3, %v5973_v5 }
  0x8f   : > { %4773 = vmatprep.mubr.msk.bf16.mxu0 %vm981_vm3, %v5988_v25 }
  0x90   : > { %4638 = vmatmul.mubr.msk.bf16.gmra.mrb[20].mxu1 %vm981_vm3, %v5964_v0 }
  0x91   : > { %4641 = vmatprep.mubr.msk.bf16.mxu1 %vm981_vm3, %v5979_v60 }
  0x96   : > { %4774 = vmatmul.mubr.msk.bf16.gmra.mrb[20].mxu0 %vm981_vm3, %v5999_v35 }
  0x97   : > { %4777 = vmatprep.mubr.msk.bf16.mxu0 %vm981_vm3, %v6020_v7 }
  0x98   : > { %4642 = vmatmul.mubr.msk.bf16.gmra.mrb[24].mxu1 %vm981_vm3, %v5994_v63 }
  0x99   : > { %4645 = vmatprep.mubr.msk.bf16.mxu1 %vm981_vm3, %v6009_v58 }
  0x9e   : > { %4778 = vmatmul.mubr.msk.bf16.gmra.mrb[24].mxu0 %vm981_vm3, %v6033_v27 }
  0x9f   : > { %4781 = vmatprep.mubr.msk.bf16.mxu0 %vm981_vm3, %v6039_v22 }
  0xa0   : > { %4646 = vmatmul.mubr.msk.bf16.gmra.mrb[28].mxu1 %vm981_vm3, %v6026_v24 }
  0xa1   : > { %4651 = vmatprep.mubr.msk.bf16.mxu1 %vm981_vm3, %v4085_v59 }
  0xa6   : > { %4782 = vmatmul.mubr.msk.bf16.gmra.mrb[28].mxu0 %vm981_vm3, %v6059_v3 }
  0xa7   : > { %4787 = vmatprep.mubr.msk.bf16.mxu0 %vm981_vm3, %v5812_v29 }
  0xa8   : > { %4652 = vmatmul.mubr.msk.bf16.vlgmr.msra.gmra.mrb[0].mxu1 %vm981_vm3, %v5830_v57  ;;  %v6172_v57 = vld [vmem:[%s5737_s13 + $0x10] sm:$0xf] }
  0xa9   : > { %4655 = vmatprep.mubr.msk.bf16.mxu1 %vm981_vm3, %v5837_v46  ;;  %4684 = vmatpush3.bf16.msra.mxu1 %v1919_v43  ;;  %v4170_v45 = vcombine.low %v6169_v26, %v6172_v57  ;;  %v2768_v56 = vshll.u32 %v6172_v57, 16 }
  0xaa   : > { %4887 = vmatprep.subr.bf16.mxu1 %v5236_v40 }
  0xab   : > { %v2770_v11 = vrot.slane %v2768_v56, 5 }
  0xae   : > { %4788 = vmatmul.mubr.msk.bf16.vlgmr.msra.gmra.mrb[0].mxu0 %vm981_vm3, %v5843_v14 }
  0xaf   : > { %4820 = vmatpush3.bf16.msra.mxu0 %v2793_v36  ;;  %4791 = vmatprep.mubr.msk.bf16.mxu0 %vm981_vm3, %v5856_v21 }
  0xb0   : > { %4656 = vmatmul.mubr.msk.bf16.gmra.mrb[4].mxu1 %vm981_vm3, %v5859_v4  ;;  %5187 = vmatprep.subr.msk.bf16.mxu0 %vm1030_vm0, %v541_v39 }
  0xb1   : > { %4659 = vmatprep.mubr.msk.bf16.mxu1 %vm981_vm3, %v5882_v54 }
  0xb6   : > { %4792 = vmatmul.mubr.msk.bf16.gmra.mrb[4].mxu0 %vm981_vm3, %v5869_v9 }
  0xb7   : > { %4795 = vmatprep.mubr.msk.bf16.mxu0 %vm981_vm3, %v5888_v37 }
  0xb8   : > { %4660 = vmatmul.mubr.msk.bf16.gmra.mrb[8].mxu1 %vm981_vm3, %v5897_v2 }
  0xb9   : > { %4663 = vmatprep.mubr.msk.bf16.mxu1 %vm981_vm3, %v5906_v8 }
  0xbe   : > { %4796 = vmatmul.mubr.msk.bf16.gmra.mrb[8].mxu0 %vm981_vm3, %v5903_v19 }
  0xbf   : > { %4799 = vmatprep.mubr.msk.bf16.mxu0 %vm981_vm3, %v5914_v52 }
  0xc0   : > { %4664 = vmatmul.mubr.msk.bf16.gmra.mrb[12].mxu1 %vm981_vm3, %v5925_v53 }
  0xc1   : > { %4667 = vmatprep.mubr.msk.bf16.mxu1 %vm981_vm3, %v5943_v20 }
  0xc6   : > { %4800 = vmatmul.mubr.msk.bf16.gmra.mrb[12].mxu0 %vm981_vm3, %v5931_v62 }
  0xc7   : > { %4803 = vmatprep.mubr.msk.bf16.mxu0 %vm981_vm3, %v5949_v1 }
  0xc8   : > { %4668 = vmatmul.mubr.msk.bf16.gmra.mrb[16].mxu1 %vm981_vm3, %v5956_v51 }
  0xc9   : > { %4671 = vmatprep.mubr.msk.bf16.mxu1 %vm981_vm3, %v5973_v5 }
  0xce   : > { %4804 = vmatmul.mubr.msk.bf16.gmra.mrb[16].mxu0 %vm981_vm3, %v5964_v0 }
  0xcf   : > { %4807 = vmatprep.mubr.msk.bf16.mxu0 %vm981_vm3, %v5979_v60 }
  0xd0   : > { %4672 = vmatmul.mubr.msk.bf16.gmra.mrb[20].mxu1 %vm981_vm3, %v5988_v25 }
  0xd1   : > { %4675 = vmatprep.mubr.msk.bf16.mxu1 %vm981_vm3, %v5999_v35 }
  0xd6   : > { %4808 = vmatmul.mubr.msk.bf16.gmra.mrb[20].mxu0 %vm981_vm3, %v5994_v63 }
  0xd7   : > { %4811 = vmatprep.mubr.msk.bf16.mxu0 %vm981_vm3, %v6009_v58 }
  0xd8   : > { %4676 = vmatmul.mubr.msk.bf16.gmra.mrb[24].mxu1 %vm981_vm3, %v6020_v7 }
  0xd9   : > { %4679 = vmatprep.mubr.msk.bf16.mxu1 %vm981_vm3, %v6033_v27 }
  0xde   : > { %4812 = vmatmul.mubr.msk.bf16.gmra.mrb[24].mxu0 %vm981_vm3, %v6026_v24 }
  0xdf   : > { %4815 = vmatprep.mubr.msk.bf16.mxu0 %vm981_vm3, %v6047_v47 }
  0xe0   : > { %4680 = vmatmul.mubr.msk.bf16.gmra.mrb[28].mxu1 %vm981_vm3, %v6039_v22 }
  0xe1   : > { %4685 = vmatprep.mubr.msk.bf16.mxu1 %vm981_vm3, %v5416_v44  ;;  %v6724_v44 = vld [vmem:[#allocation4_spill] sm:$0xff] }
  0xe6   : > { %4816 = vmatmul.mubr.msk.bf16.gmra.mrb[28].mxu0 %vm981_vm3, %v4170_v45 }
  0xe7   : > { %4821 = vmatprep.mubr.msk.bf16.mxu0 %vm981_vm3, %v6722_v30 }
  0xe8   : > { %4686 = vmatmul.mubr.msk.bf16.vlgmr.msra.gmra.mrb[0].mxu1 %vm981_vm3, %v5812_v29  ;;  %v6726_v29 = vld [vmem:[#allocation6_spill] sm:$0xff] }
  0xe9   : > { %4689 = vmatprep.mubr.msk.bf16.mxu1 %vm981_vm3, %v5843_v14  ;;  %v6727_v14 = vld [vmem:[#allocation8_spill] sm:$0xff]  ;;  %4888 = vmatpush3.bf16.msra.mxu1 %v5236_v40 }
  0xee   : > { %4822 = vmatmul.mubr.msk.bf16.vlgmr.msra.gmra.mrb[0].mxu0 %vm981_vm3, %v6723_v55 }
  0xef   : > { %4854 = vmatpush3.bf16.msra.mxu0 %v3003_v41  ;;  %4825 = vmatprep.mubr.msk.bf16.mxu0 %vm981_vm3, %v6724_v44 }
  0xf0   : > { %4690 = vmatmul.mubr.msk.bf16.gmra.mrb[4].mxu1 %vm981_vm3, %v5856_v21  ;;  %v6729_v21 = vld [vmem:[#allocation12_spill] sm:$0xff] }
  0xf1   : > { %4693 = vmatprep.mubr.msk.bf16.mxu1 %vm981_vm3, %v5869_v9  ;;  %v6730_v9 = vld [vmem:[#allocation16_spill] sm:$0xff] }
  0xf6   : > { %4826 = vmatmul.mubr.msk.bf16.gmra.mrb[4].mxu0 %vm981_vm3, %v6725_v15 }
  0xf7   : > { %4829 = vmatprep.mubr.msk.bf16.mxu0 %vm981_vm3, %v6726_v29 }
  0xf8   : > { %4694 = vmatmul.mubr.msk.bf16.gmra.mrb[8].mxu1 %vm981_vm3, %v5888_v37  ;;  %v6731_v37 = vld [vmem:[#allocation19_spill] sm:$0xff] }
  0xf9   : > { %4697 = vmatprep.mubr.msk.bf16.mxu1 %vm981_vm3, %v5903_v19  ;;  %v2759_v19 = vshrl.u32 %v6169_v26, 16 }
  0xfe   : > { %4830 = vmatmul.mubr.msk.bf16.gmra.mrb[8].mxu0 %vm981_vm3, %v6727_v14 }
  0xff   : > { %4833 = vmatprep.mubr.msk.bf16.mxu0 %vm981_vm3, %v6728_v17 }
 0x100   : > { %4698 = vmatmul.mubr.msk.bf16.gmra.mrb[12].mxu1 %vm981_vm3, %v5914_v52  ;;  %v2762_v52 = vshll.u32 %v6169_v26, 16 }
 0x101   : > { %4701 = vmatprep.mubr.msk.bf16.mxu1 %vm981_vm3, %v5931_v62  ;;  %v2772_v62 = vshrl.u32 %v6172_v57, 16 }
 0x103   : > { %v2774_v33 = vrot.slane %v2772_v62, 4 }
 0x105   : > { %v2775_v38 = vor.u32 %v2774_v33, %v2770_v11 }
 0x106   : > { %4834 = vmatmul.mubr.msk.bf16.gmra.mrb[12].mxu0 %vm981_vm3, %v6729_v21 }
 0x107   : > { %4837 = vmatprep.mubr.msk.bf16.mxu0 %vm981_vm3, %v6730_v9  ;;  %v6346_v9 = vld [vmem:[%s6635_s3] ss:$0 sm:$0xff] }
 0x108   : > { %4702 = vmatmul.mubr.msk.bf16.gmra.mrb[16].mxu1 %vm981_vm3, %v5949_v1  ;;  %v2761_v1 = vrot.slane %v2759_v19, 4 }
 0x109   : > { %4705 = vmatprep.mubr.msk.bf16.mxu1 %vm981_vm3, %v5964_v0  ;;  %v2764_v0 = vrot.slane %v2762_v52, 5 }
 0x10b   : > { %v2765_v12 = vor.u32 %v2764_v0, %v2761_v1 }
 0x10e   : > { %4838 = vmatmul.mubr.msk.bf16.gmra.mrb[16].mxu0 %vm981_vm3, %v6731_v37 }
 0x10f   : > { %4841 = vmatprep.mubr.msk.bf16.mxu0 %vm981_vm3, %v6732_v48 }
 0x110   : > { %4706 = vmatmul.mubr.msk.bf16.gmra.mrb[20].mxu1 %vm981_vm3, %v5979_v60  ;;  %v2766_v60 = vrot.slane %v2765_v12, 4 }
 0x111   : > { %4709 = vmatprep.mubr.msk.bf16.mxu1 %vm981_vm3, %v5994_v63  ;;  %v2776_v63 = vrot.slane %v2775_v38, 4 }
 0x113   : > { %v2781_v34 = vsel %vm5410_vm4, %v2776_v63, %v2780_v6 }
 0x116   : > { %4842 = vmatmul.mubr.msk.bf16.gmra.mrb[20].mxu0 %vm981_vm3, %v6733_v23 }
 0x117   : > { %4845 = vmatprep.mubr.msk.bf16.mxu0 %vm981_vm3, %v5779_v28  ;;  %v2771_v28 = vsel %vm5410_vm4, %v2766_v60, %v2770_v11 }
 0x118   : > { %4710 = vmatmul.mubr.msk.bf16.gmra.mrb[24].mxu1 %vm981_vm3, %v6009_v58  ;;  %v4187_v58 = vcombine.low %v2771_v28, %v2781_v34 }
 0x119   : > { %4713 = vmatprep.mubr.msk.bf16.mxu1 %vm981_vm3, %v6026_v24 }
 0x11e   : > { %4846 = vmatmul.mubr.msk.bf16.gmra.mrb[24].mxu0 %vm981_vm3, %v5800_v61  ;;  %v2991_v61 = vrot.slane %v6172_v57, 5 }
 0x11f   : > { %4849 = vmatprep.mubr.msk.bf16.mxu0 %vm981_vm3, %v5850_v10 }
 0x120   : > { %4714 = vmatmul.mubr.msk.bf16.gmra.mrb[28].mxu1 %vm981_vm3, %v6047_v47  ;;  %v2993_v10 = vrot.slane %v2991_v61, 4 }
 0x126   : > { %4850 = vmatmul.mubr.msk.bf16.gmra.mrb[28].mxu0 %vm981_vm3, %v4187_v58 }
 0x127   : > { %4855 = vmatprep.mubr.msk.bf16.mxu0 %vm981_vm3, %v5837_v46  ;;  %v4205_v46 = vrot.slane %v6169_v26, 9 }
 0x12e   : > { %4856 = vmatmul.mubr.msk.bf16.vlgmr.msra.gmra.mrb[0].mxu0 %vm981_vm3, %v5859_v4  ;;  %v2994_v4 = vrot.slane %v535_v42, 5 }
 0x12f   : > { %4859 = vmatprep.mubr.msk.bf16.mxu0 %vm981_vm3, %v5882_v54  ;;  %v2992_v54 = vsel %vm5785_vm7, %v4205_v46, %v2991_v61 }
 0x136   : > { %4860 = vmatmul.mubr.msk.bf16.gmra.mrb[4].mxu0 %vm981_vm3, %v5897_v2  ;;  %v2995_v2 = vsel %vm5785_vm7, %v2993_v10, %v2994_v4 }
 0x137   : > { %4863 = vmatprep.mubr.msk.bf16.mxu0 %vm981_vm3, %v5906_v8  ;;  %v4206_v8 = vcombine.low %v2992_v54, %v2995_v2 }
 0x13e   : > { %4864 = vmatmul.mubr.msk.bf16.gmra.mrb[8].mxu0 %vm981_vm3, %v5925_v53  ;;  %v5237_v53 = vld [vmem:[%s6636_s4 + $0x8] sm:$0xff]  }
 0x13f   : > { %4867 = vmatprep.mubr.msk.bf16.mxu0 %vm981_vm3, %v5943_v20  ;;  %4889 = vmatprep.subr.bf16.mxu1 %v5237_v53 }
 0x140   : > { %4890 = vmatpush3.bf16.msra.mxu1 %v5237_v53 }
 0x146   : > { %4868 = vmatmul.mubr.msk.bf16.gmra.mrb[12].mxu0 %vm981_vm3, %v5956_v51 }
 0x147   : > { %4871 = vmatprep.mubr.msk.bf16.mxu0 %vm981_vm3, %v5973_v5 }
 0x14e   : > { %4872 = vmatmul.mubr.msk.bf16.gmra.mrb[16].mxu0 %vm981_vm3, %v5988_v25 }
 0x14f   : > { %4875 = vmatprep.mubr.msk.bf16.mxu0 %vm981_vm3, %v5999_v35 }
 0x156   : > { %4876 = vmatmul.mubr.msk.bf16.gmra.mrb[20].mxu0 %vm981_vm3, %v6020_v7 }
 0x157   : > { %4879 = vmatprep.mubr.msk.bf16.mxu0 %vm981_vm3, %v6033_v27 }
 0x15e   : > { %4880 = vmatmul.mubr.msk.bf16.gmra.mrb[24].mxu0 %vm981_vm3, %v6039_v22 }
 0x15f   : > { %4883 = vmatprep.mubr.msk.bf16.mxu0 %vm981_vm3, %v6059_v3 }
 0x166   : > { %4884 = vmatmul.mubr.msk.bf16.gmra.mrb[28].mxu0 %vm981_vm3, %v4206_v8 }
 0x1bb   : > { %v4687_v20 = vpop.f32.mrb[0].mxu1 }
 0x1bc   : > { %v1955_v51 = vpop.f32.mrb[1].mxu1 }
 0x1bd   : > { %v4688_v5 = vpop.f32.mrb[2].mxu1 }
 0x1be   : > { %v1958_v25 = vpop.f32.mrb[3].mxu1 }
 0x1c3   : > { %v4691_v35 = vpop.f32.mrb[4].mxu1 }
 0x1c4   : > { %v1971_v7 = vpop.f32.mrb[5].mxu1 }
 0x1c5   : > { %v4692_v24 = vpop.f32.mrb[6].mxu1 }
 0x1c6   : > { %v1974_v27 = vpop.f32.mrb[7].mxu1 }
 0x1cb   : > { %v6295_v22 = vpop.f32.mrb[8].mxu1 }
 0x1cc   : > { %v6297_v31 = vpop.f32.mrb[9].mxu1 }
 0x1cd   : > { %v6299_v47 = vpop.f32.mrb[10].mxu1 }
 0x1ce   : > { %v6301_v3 = vpop.f32.mrb[11].mxu1 }
 0x1d3   : > { %v6303_v50 = vpop.f32.mrb[12].mxu1 }
 0x1d4   : > { %v6305_v49 = vpop.f32.mrb[13].mxu1 }
 0x1d5   : > { %v6307_v18 = vpop.f32.mrb[14].mxu1 }
 0x1d6   : > { %v6309_v16 = vpop.f32.mrb[15].mxu1 }
 0x1db   : > { %v6311_v32 = vpop.f32.mrb[16].mxu1 }
 0x1dc   : > { %v6313_v59 = vpop.f32.mrb[17].mxu1 }
 0x1dd   : > { %v6315_v43 = vpop.f32.mrb[18].mxu1 }
 0x1de   : > { %v6317_v36 = vpop.f32.mrb[19].mxu1 }
 0x1e3   : > { %v6319_v39 = vpop.f32.mrb[20].mxu1 }
 0x1e4   : > { %v6321_v26 = vpop.f32.mrb[21].mxu1 }
 0x1e5   : > { %v6323_v57 = vpop.f32.mrb[22].mxu1 }
 0x1e6   : > { %v6325_v45 = vpop.f32.mrb[23].mxu1 }
 0x1eb   : > { %v6327_v30 = vpop.f32.mrb[24].mxu1 }
 0x1ec   : > { %v6329_v41 = vpop.f32.mrb[25].mxu1 }
 0x1ed   : > { %v6331_v55 = vpop.f32.mrb[26].mxu1 }
 0x1ee   : > { %v6333_v44 = vpop.f32.mrb[27].mxu1 }
 0x1f3   : > { %v6335_v15 = vpop.f32.mrb[28].mxu1 }
 0x1f4   : > { %v6337_v29 = vpop.f32.mrb[29].mxu1 }
 0x1f5   : > { %v6339_v14 = vpop.f32.mrb[30].mxu1 }
 0x1f6   : > { %v6341_v17 = vpop.f32.mrb[31].mxu1 }
 0x201   : > { %v4857_v21 = vpop.f32.mrb[0].mxu0 }
 0x202   : > { %v4923_v37 = vadd.f32 %v4857_v21, %v4687_v20  ;;  %v3039_v19 = vpop.f32.mrb[1].mxu0 }
 0x203   : > { %v4924_v52 = vadd.f32 %v3039_v19, %v1955_v51  ;;  %v4858_v62 = vpop.f32.mrb[2].mxu0 }
 0x204   : > { %v3207_v48 = vadd.f32 %v4923_v37, %v6346_v9  ;;  %v4925_v56 = vadd.f32 %v4858_v62, %v4688_v5  ;;  %v3042_v1 = vpop.f32.mrb[3].mxu0 }
 0x205   : > { %v3205_v0 = vadd.f32 %v4924_v52, %v6346_v9  ;;  %v4926_v11 = vadd.f32 %v3042_v1, %v1958_v25 }
 0x206   : > { %v3239_v33 = vmax.f32 %v3207_v48, 0.0  ;;  %v3208_v42 = vadd.f32 %v4925_v56, %v6346_v9 }
 0x207   : > { %v3237_v23 = vmax.f32 %v3205_v0, 0.0  ;;  %v3206_v12 = vadd.f32 %v4926_v11, %v6346_v9 }
 0x208   : > { %3272 = vst.msk [vmem:[%s6353_s27 + $0x10] sm:$0xff] %vm3269_vm8, %v3239_v33  ;;  %v3240_v38 = vmax.f32 %v3208_v42, 0.0 }
 0x209   : > { %3270 = vst.msk [vmem:[%s6353_s27] sm:$0xff] %vm3269_vm8, %v3237_v23  ;;  %v3238_v13 = vmax.f32 %v3206_v12, 0.0  ;;  %v4861_v60 = vpop.f32.mrb[4].mxu0 }
 0x20a   : > { %3273 = vst.msk [vmem:[%s6353_s27 + $0x18] sm:$0xff] %vm3269_vm8, %v3240_v38  ;;  %v3303_v63 = vpack.c.bf16 %v3240_v38, %v3239_v33  ;;  %v4927_v6 = vadd.f32 %v4861_v60, %v4691_v35  ;;  %v3055_v28 = vpop.f32.mrb[5].mxu0 }
 0x20b   : > { %3271 = vst.msk [vmem:[%s6353_s27 + $0x8] sm:$0xff] %vm3269_vm8, %v3238_v13  ;;  %v3302_v34 = vpack.c.bf16 %v3238_v13, %v3237_v23  ;;  %v4928_v58 = vadd.f32 %v3055_v28, %v1971_v7  ;;  %v4862_v40 = vpop.f32.mrb[6].mxu0 }
 0x20c   : > { %v3211_v61 = vadd.f32 %v4927_v6, %v6346_v9  ;;  %v4929_v46 = vadd.f32 %v4862_v40, %v4692_v24  ;;  %v3058_v10 = vpop.f32.mrb[7].mxu0 }
 0x20d   : > { %v3209_v4 = vadd.f32 %v4928_v58, %v6346_v9  ;;  %v4930_v54 = vadd.f32 %v3058_v10, %v1974_v27  ;;  %4891 = vmatprep.mubr.msk.bf16.mxu1 %vm3269_vm8, %v3302_v34 }
 0x20e   : > { %v3243_v2 = vmax.f32 %v3211_v61, 0.0  ;;  %v3212_v8 = vadd.f32 %v4929_v46, %v6346_v9  ;;  %4892 = vmatmul.mubr.msk.bf16.vlgmr.msra.gmra.mrb[32].mxu1 %vm3269_vm8, %v3303_v63 }
 0x20f   : > { %v3241_v53 = vmax.f32 %v3209_v4, 0.0  ;;  %v3210_v20 = vadd.f32 %v4930_v54, %v6346_v9 }
 0x210   : > { %3276 = vst.msk [vmem:[%s6353_s27 + $0x30] sm:$0xff] %vm3269_vm8, %v3243_v2  ;;  %v3244_v51 = vmax.f32 %v3212_v8, 0.0 }
 0x211   : > { %3274 = vst.msk [vmem:[%s6353_s27 + $0x20] sm:$0xff] %vm3269_vm8, %v3241_v53  ;;  %v3242_v5 = vmax.f32 %v3210_v20, 0.0  ;;  %v4865_v25 = vpop.f32.mrb[8].mxu0 }
 0x212   : > { %3277 = vst.msk [vmem:[%s6353_s27 + $0x38] sm:$0xff] %vm3269_vm8, %v3244_v51  ;;  %v3305_v35 = vpack.c.bf16 %v3244_v51, %v3243_v2  ;;  %v4931_v7 = vadd.f32 %v4865_v25, %v6295_v22  ;;  %v3071_v24 = vpop.f32.mrb[9].mxu0 }
 0x213   : > { %3275 = vst.msk [vmem:[%s6353_s27 + $0x28] sm:$0xff] %vm3269_vm8, %v3242_v5  ;;  %v3304_v27 = vpack.c.bf16 %v3242_v5, %v3241_v53  ;;  %v4932_v21 = vadd.f32 %v3071_v24, %v6297_v31  ;;  %v4866_v37 = vpop.f32.mrb[10].mxu0 }
 0x214   : > { %v3215_v19 = vadd.f32 %v4931_v7, %v6346_v9  ;;  %v4933_v52 = vadd.f32 %v4866_v37, %v6299_v47  ;;  %v3074_v62 = vpop.f32.mrb[11].mxu0 }
 0x215   : > { %v3213_v48 = vadd.f32 %v4932_v21, %v6346_v9  ;;  %v4934_v56 = vadd.f32 %v3074_v62, %v6301_v3  ;;  %4895 = vmatprep.mubr.msk.bf16.mxu1 %vm3269_vm8, %v3304_v27 }
 0x216   : > { %v3247_v22 = vmax.f32 %v3215_v19, 0.0  ;;  %v3216_v1 = vadd.f32 %v4933_v52, %v6346_v9  ;;  %4896 = vmatmul.mubr.msk.bf16.gmra.mrb[36].mxu1 %vm3269_vm8, %v3305_v35 }
 0x217   : > { %v3245_v31 = vmax.f32 %v3213_v48, 0.0  ;;  %v3214_v0 = vadd.f32 %v4934_v56, %v6346_v9 }
 0x218   : > { %3280 = vst.msk [vmem:[%s6353_s27 + $0x50] sm:$0xff] %vm3269_vm8, %v3247_v22  ;;  %v3248_v11 = vmax.f32 %v3216_v1, 0.0 }
 0x219   : > { %3278 = vst.msk [vmem:[%s6353_s27 + $0x40] sm:$0xff] %vm3269_vm8, %v3245_v31  ;;  %v3246_v47 = vmax.f32 %v3214_v0, 0.0  ;;  %v4869_v33 = vpop.f32.mrb[12].mxu0 }
 0x21a   : > { %3281 = vst.msk [vmem:[%s6353_s27 + $0x58] sm:$0xff] %vm3269_vm8, %v3248_v11  ;;  %v3307_v3 = vpack.c.bf16 %v3248_v11, %v3247_v22  ;;  %v4935_v42 = vadd.f32 %v4869_v33, %v6303_v50  ;;  %v3087_v23 = vpop.f32.mrb[13].mxu0 }
 0x21b   : > { %3279 = vst.msk [vmem:[%s6353_s27 + $0x48] sm:$0xff] %vm3269_vm8, %v3246_v47  ;;  %v3306_v12 = vpack.c.bf16 %v3246_v47, %v3245_v31  ;;  %v4936_v38 = vadd.f32 %v3087_v23, %v6305_v49  ;;  %v4870_v13 = vpop.f32.mrb[14].mxu0 }
 0x21c   : > { %v3219_v60 = vadd.f32 %v4935_v42, %v6346_v9  ;;  %v4937_v63 = vadd.f32 %v4870_v13, %v6307_v18  ;;  %v3090_v6 = vpop.f32.mrb[15].mxu0 }
 0x21d   : > { %v3217_v28 = vadd.f32 %v4936_v38, %v6346_v9  ;;  %v4938_v34 = vadd.f32 %v3090_v6, %v6309_v16  ;;  %4899 = vmatprep.mubr.msk.bf16.mxu1 %vm3269_vm8, %v3306_v12 }
 0x21e   : > { %v3251_v50 = vmax.f32 %v3219_v60, 0.0  ;;  %v3220_v58 = vadd.f32 %v4937_v63, %v6346_v9  ;;  %4900 = vmatmul.mubr.msk.bf16.gmra.mrb[40].mxu1 %vm3269_vm8, %v3307_v3 }
 0x21f   : > { %v3249_v49 = vmax.f32 %v3217_v28, 0.0  ;;  %v3218_v40 = vadd.f32 %v4938_v34, %v6346_v9 }
 0x220   : > { %3284 = vst.msk [vmem:[%s6353_s27 + $0x70] sm:$0xff] %vm3269_vm8, %v3251_v50  ;;  %v3252_v61 = vmax.f32 %v3220_v58, 0.0 }
 0x221   : > { %3282 = vst.msk [vmem:[%s6353_s27 + $0x60] sm:$0xff] %vm3269_vm8, %v3249_v49  ;;  %v3250_v18 = vmax.f32 %v3218_v40, 0.0  ;;  %v4873_v46 = vpop.f32.mrb[16].mxu0 }
 0x222   : > { %3285 = vst.msk [vmem:[%s6353_s27 + $0x78] sm:$0xff] %vm3269_vm8, %v3252_v61  ;;  %v3309_v16 = vpack.c.bf16 %v3252_v61, %v3251_v50  ;;  %v4939_v10 = vadd.f32 %v4873_v46, %v6311_v32  ;;  %v3103_v4 = vpop.f32.mrb[17].mxu0 }
 0x223   : > { %3283 = vst.msk [vmem:[%s6353_s27 + $0x68] sm:$0xff] %vm3269_vm8, %v3250_v18  ;;  %v3308_v54 = vpack.c.bf16 %v3250_v18, %v3249_v49  ;;  %v4940_v2 = vadd.f32 %v3103_v4, %v6313_v59  ;;  %v4874_v8 = vpop.f32.mrb[18].mxu0 }
 0x224   : > { %v3223_v53 = vadd.f32 %v4939_v10, %v6346_v9  ;;  %v4941_v20 = vadd.f32 %v4874_v8, %v6315_v43  ;;  %v3106_v51 = vpop.f32.mrb[19].mxu0 }
 0x225   : > { %v3221_v5 = vadd.f32 %v4940_v2, %v6346_v9  ;;  %v4942_v25 = vadd.f32 %v3106_v51, %v6317_v36  ;;  %4903 = vmatprep.mubr.msk.bf16.mxu1 %vm3269_vm8, %v3308_v54 }
 0x226   : > { %v3255_v32 = vmax.f32 %v3223_v53, 0.0  ;;  %v3224_v35 = vadd.f32 %v4941_v20, %v6346_v9  ;;  %4904 = vmatmul.mubr.msk.bf16.gmra.mrb[44].mxu1 %vm3269_vm8, %v3309_v16 }
 0x227   : > { %v3253_v59 = vmax.f32 %v3221_v5, 0.0  ;;  %v3222_v7 = vadd.f32 %v4942_v25, %v6346_v9 }
 0x228   : > { %3288 = vst.msk [vmem:[%s6353_s27 + $0x90] sm:$0xff] %vm3269_vm8, %v3255_v32  ;;  %v3256_v24 = vmax.f32 %v3224_v35, 0.0 }
 0x229   : > { %3286 = vst.msk [vmem:[%s6353_s27 + $0x80] sm:$0xff] %vm3269_vm8, %v3253_v59  ;;  %v3254_v43 = vmax.f32 %v3222_v7, 0.0  ;;  %v4877_v27 = vpop.f32.mrb[20].mxu0 }
 0x22a   : > { %3289 = vst.msk [vmem:[%s6353_s27 + $0x98] sm:$0xff] %vm3269_vm8, %v3256_v24  ;;  %v3311_v36 = vpack.c.bf16 %v3256_v24, %v3255_v32  ;;  %v4943_v21 = vadd.f32 %v4877_v27, %v6319_v39  ;;  %v3119_v37 = vpop.f32.mrb[21].mxu0 }
 0x22b   : > { %3287 = vst.msk [vmem:[%s6353_s27 + $0x88] sm:$0xff] %vm3269_vm8, %v3254_v43  ;;  %v3310_v19 = vpack.c.bf16 %v3254_v43, %v3253_v59  ;;  %v4944_v52 = vadd.f32 %v3119_v37, %v6321_v26  ;;  %v4878_v62 = vpop.f32.mrb[22].mxu0  ;;  %v6499_v59 = vld [vmem:[%s6638_s6] ss:$0 sm:$0xff] }
 0x22c   : > { %v3227_v48 = vadd.f32 %v4943_v21, %v6346_v9  ;;  %v4945_v56 = vadd.f32 %v4878_v62, %v6323_v57  ;;  %v3122_v22 = vpop.f32.mrb[23].mxu0  ;;  %v6508_v62 = vld [vmem:[%s6639_s7] ss:$0 sm:$0xff] }
 0x22d   : > { %v3225_v1 = vadd.f32 %v4944_v52, %v6346_v9  ;;  %v4946_v31 = vadd.f32 %v3122_v22, %v6325_v45  ;;  %4907 = vmatprep.mubr.msk.bf16.mxu1 %vm3269_vm8, %v3310_v19 }
 0x22e   : > { %v3259_v39 = vmax.f32 %v3227_v48, 0.0  ;;  %v3228_v0 = vadd.f32 %v4945_v56, %v6346_v9  ;;  %4908 = vmatmul.mubr.msk.bf16.gmra.mrb[48].mxu1 %vm3269_vm8, %v3311_v36 }
 0x22f   : > { %v3257_v26 = vmax.f32 %v3225_v1, 0.0  ;;  %v3226_v11 = vadd.f32 %v4946_v31, %v6346_v9 }
 0x230   : > { %3292 = vst.msk [vmem:[%s6353_s27 + $0xb0] sm:$0xff] %vm3269_vm8, %v3259_v39  ;;  %v3260_v47 = vmax.f32 %v3228_v0, 0.0 }
 0x231   : > { %3290 = vst.msk [vmem:[%s6353_s27 + $0xa0] sm:$0xff] %vm3269_vm8, %v3257_v26  ;;  %v3258_v57 = vmax.f32 %v3226_v11, 0.0  ;;  %v4881_v33 = vpop.f32.mrb[24].mxu0 }
 0x232   : > { %3293 = vst.msk [vmem:[%s6353_s27 + $0xb8] sm:$0xff] %vm3269_vm8, %v3260_v47  ;;  %v3313_v45 = vpack.c.bf16 %v3260_v47, %v3259_v39  ;;  %v4947_v3 = vadd.f32 %v4881_v33, %v6327_v30  ;;  %v3135_v42 = vpop.f32.mrb[25].mxu0 }
 0x233   : > { %3291 = vst.msk [vmem:[%s6353_s27 + $0xa8] sm:$0xff] %vm3269_vm8, %v3258_v57  ;;  %v3312_v23 = vpack.c.bf16 %v3258_v57, %v3257_v26  ;;  %v4948_v12 = vadd.f32 %v3135_v42, %v6329_v41  ;;  %v4882_v38 = vpop.f32.mrb[26].mxu0 }
 0x234   : > { %v3231_v13 = vadd.f32 %v4947_v3, %v6346_v9  ;;  %v4949_v60 = vadd.f32 %v4882_v38, %v6331_v55  ;;  %v3138_v63 = vpop.f32.mrb[27].mxu0 }
 0x235   : > { %v3229_v6 = vadd.f32 %v4948_v12, %v6346_v9  ;;  %v4950_v28 = vadd.f32 %v3138_v63, %v6333_v44  ;;  %4911 = vmatprep.mubr.msk.bf16.mxu1 %vm3269_vm8, %v3312_v23 }
 0x236   : > { %v3263_v30 = vmax.f32 %v3231_v13, 0.0  ;;  %v3232_v34 = vadd.f32 %v4949_v60, %v6346_v9  ;;  %4912 = vmatmul.mubr.msk.bf16.gmra.mrb[52].mxu1 %vm3269_vm8, %v3313_v45 }
 0x237   : > { %v3261_v41 = vmax.f32 %v3229_v6, 0.0  ;;  %v3230_v50 = vadd.f32 %v4950_v28, %v6346_v9 }
 0x238   : > { %3296 = vst.msk [vmem:[%s6353_s27 + $0xd0] sm:$0xff] %vm3269_vm8, %v3263_v30  ;;  %v3264_v58 = vmax.f32 %v3232_v34, 0.0 }
 0x239   : > { %3294 = vst.msk [vmem:[%s6353_s27 + $0xc0] sm:$0xff] %vm3269_vm8, %v3261_v41  ;;  %v3262_v55 = vmax.f32 %v3230_v50, 0.0  ;;  %v4885_v49 = vpop.f32.mrb[28].mxu0 }
 0x23a   : > { %3297 = vst.msk [vmem:[%s6353_s27 + $0xd8] sm:$0xff] %vm3269_vm8, %v3264_v58  ;;  %v3315_v44 = vpack.c.bf16 %v3264_v58, %v3263_v30  ;;  %v4951_v40 = vadd.f32 %v4885_v49, %v6335_v15  ;;  %v3151_v61 = vpop.f32.mrb[29].mxu0 }
 0x23b   : > { %3295 = vst.msk [vmem:[%s6353_s27 + $0xc8] sm:$0xff] %vm3269_vm8, %v3262_v55  ;;  %v3314_v18 = vpack.c.bf16 %v3262_v55, %v3261_v41  ;;  %v4952_v46 = vadd.f32 %v3151_v61, %v6337_v29  ;;  %v4886_v16 = vpop.f32.mrb[30].mxu0 }
 0x23c   : > { %v3235_v10 = vadd.f32 %v4951_v40, %v6346_v9  ;;  %v4953_v4 = vadd.f32 %v4886_v16, %v6339_v14  ;;  %v3154_v54 = vpop.f32.mrb[31].mxu0 }
 0x23d   : > { %v3233_v2 = vadd.f32 %v4952_v46, %v6346_v9  ;;  %v4954_v15 = vadd.f32 %v3154_v54, %v6341_v17  ;;  %4915 = vmatprep.mubr.msk.bf16.mxu1 %vm3269_vm8, %v3314_v18 }
 0x23e   : > { %v3267_v8 = vmax.f32 %v3235_v10, 0.0  ;;  %v3236_v53 = vadd.f32 %v4953_v4, %v6346_v9  ;;  %4916 = vmatmul.mubr.msk.bf16.gmra.mrb[56].mxu1 %vm3269_vm8, %v3315_v44 }
 0x23f   : > { %v3265_v29 = vmax.f32 %v3233_v2, 0.0  ;;  %v3234_v20 = vadd.f32 %v4954_v15, %v6346_v9  ;;  %v6493_v9 = vld [vmem:[%s6637_s5] ss:$0 sm:$0xff] }
 0x240   : > { %3300 = vst.msk [vmem:[%s6353_s27 + $0xf0] sm:$0xff] %vm3269_vm8, %v3267_v8  ;;  %v3268_v51 = vmax.f32 %v3236_v53, 0.0 }
 0x241   : > { %3298 = vst.msk [vmem:[%s6353_s27 + $0xe0] sm:$0xff] %vm3269_vm8, %v3265_v29  ;;  %v3266_v14 = vmax.f32 %v3234_v20, 0.0 }
 0x242   : > { %3301 = vst.msk [vmem:[%s6353_s27 + $0xf8] sm:$0xff] %vm3269_vm8, %v3268_v51  ;;  %v3317_v5 = vpack.c.bf16 %v3268_v51, %v3267_v8 }
 0x243   : > { %3299 = vst.msk [vmem:[%s6353_s27 + $0xe8] sm:$0xff] %vm3269_vm8, %v3266_v14  ;;  %v3316_v17 = vpack.c.bf16 %v3266_v14, %v3265_v29 }
 0x245   : > { %4919 = vmatprep.mubr.msk.bf16.mxu1 %vm3269_vm8, %v3316_v17 }
 0x246   : > { %4920 = vmatmul.mubr.msk.bf16.gmra.mrb[60].mxu1 %vm3269_vm8, %v3317_v5 }
 0x2e1   : > { %v4893_v25 = vpop.f32.mrb[32].mxu1 }
 0x2e2   : > { %v3432_v32 = vadd.f32 %v4893_v25, %v6493_v9  ;;  %v3423_v35 = vpop.f32.mrb[33].mxu1 }
 0x2e3   : > { %v3424_v7 = vadd.f32 %v6493_v9, %v3423_v35  ;;  %v4894_v24 = vpop.f32.mrb[34].mxu1 }
 0x2e4   : > { %v3552_v43 = vmax.f32 %v3432_v32, 0.0  ;;  %v3435_v27 = vadd.f32 %v4894_v24, %v6493_v9  ;;  %v3426_v36 = vpop.f32.mrb[35].mxu1 }
 0x2e5   : > { %v3550_v21 = vmax.f32 %v3424_v7, 0.0  ;;  %v3427_v37 = vadd.f32 %v6493_v9, %v3426_v36 }
 0x2e6   : > { %v3591_v19 = vmul.f32 %v6499_v59, %v3552_v43  ;;  %v3553_v52 = vmax.f32 %v3435_v27, 0.0 }
 0x2e7   : > { %v3589_v48 = vmul.f32 %v6499_v59, %v3550_v21  ;;  %v3551_v56 = vmax.f32 %v3427_v37, 0.0 }
 0x2e8   : > { %v3592_v22 = vmul.f32 %v6499_v59, %v3553_v52  ;;  %v3630_v39 = vadd.f32 %v6508_v62, %v3591_v19 }
 0x2e9   : > { %v3590_v1 = vmul.f32 %v6499_v59, %v3551_v56  ;;  %v4897_v31 = vpop.f32.mrb[36].mxu1  ;;  %v3628_v47 = vadd.f32 %v6508_v62, %v3589_v48 }
 0x2ea   : > { %v3631_v0 = vadd.f32 %v6508_v62, %v3592_v22  ;;  %v3448_v26 = vadd.f32 %v4897_v31, %v6493_v9  ;;  %v3439_v11 = vpop.f32.mrb[37].mxu1 }
 0x2eb   : > { %v3629_v57 = vadd.f32 %v6508_v62, %v3590_v1  ;;  %v3440_v33 = vadd.f32 %v6493_v9, %v3439_v11  ;;  %v4898_v45 = vpop.f32.mrb[38].mxu1 }
 0x2ec   : > { %v4323_v3 = vpack.c.bf16 %v3631_v0, %v3630_v39  ;;  %v3556_v42 = vmax.f32 %v3448_v26, 0.0  ;;  %v3451_v23 = vadd.f32 %v4898_v45, %v6493_v9  ;;  %v3442_v12 = vpop.f32.mrb[39].mxu1 }
 0x2ed   : > { %v4318_v38 = vpack.c.bf16 %v3629_v57, %v3628_v47  ;;  %v3554_v13 = vmax.f32 %v3440_v33, 0.0  ;;  %v3443_v60 = vadd.f32 %v6493_v9, %v3442_v12 }
 0x2ee   : > { %4395 = vst [vmem:[%s6521_s20 + $0x8] sm:$0xff] %v4323_v3   ;;  %v3595_v63 = vmul.f32 %v6499_v59, %v3556_v42  ;;  %v3557_v6 = vmax.f32 %v3451_v23, 0.0 }
 0x2ef   : > { %4319 = vst [vmem:[%s6521_s20] sm:$0xff] %v4318_v38   ;;  %v3593_v28 = vmul.f32 %v6499_v59, %v3554_v13  ;;  %v3555_v30 = vmax.f32 %v3443_v60, 0.0 }
 0x2f0   : > { %v3596_v34 = vmul.f32 %v6499_v59, %v3557_v6  ;;  %v3634_v58 = vadd.f32 %v6508_v62, %v3595_v63 }
 0x2f1   : > { %v3594_v41 = vmul.f32 %v6499_v59, %v3555_v30  ;;  %v4901_v50 = vpop.f32.mrb[40].mxu1  ;;  %v3632_v40 = vadd.f32 %v6508_v62, %v3593_v28 }
 0x2f2   : > { %v3635_v55 = vadd.f32 %v6508_v62, %v3596_v34  ;;  %v3464_v49 = vadd.f32 %v4901_v50, %v6493_v9  ;;  %v3455_v44 = vpop.f32.mrb[41].mxu1 }
 0x2f3   : > { %v3633_v61 = vadd.f32 %v6508_v62, %v3594_v41  ;;  %v3456_v18 = vadd.f32 %v6493_v9, %v3455_v44  ;;  %v4902_v46 = vpop.f32.mrb[42].mxu1 }
 0x2f4   : > { %v4333_v16 = vpack.c.bf16 %v3635_v55, %v3634_v58  ;;  %v3560_v10 = vmax.f32 %v3464_v49, 0.0  ;;  %v3467_v4 = vadd.f32 %v4902_v46, %v6493_v9  ;;  %v3458_v54 = vpop.f32.mrb[43].mxu1 }
 0x2f5   : > { %v4328_v2 = vpack.c.bf16 %v3633_v61, %v3632_v40  ;;  %v3558_v15 = vmax.f32 %v3456_v18, 0.0  ;;  %v3459_v8 = vadd.f32 %v6493_v9, %v3458_v54 }
 0x2f6   : > { %4397 = vst [vmem:[%s6521_s20 + $0x18] sm:$0xff] %v4333_v16   ;;  %v3599_v53 = vmul.f32 %v6499_v59, %v3560_v10  ;;  %v3561_v29 = vmax.f32 %v3467_v4, 0.0 }
 0x2f7   : > { %4396 = vst [vmem:[%s6521_s20 + $0x10] sm:$0xff] %v4328_v2   ;;  %v3597_v20 = vmul.f32 %v6499_v59, %v3558_v15  ;;  %v3559_v51 = vmax.f32 %v3459_v8, 0.0 }
 0x2f8   : > { %v3600_v14 = vmul.f32 %v6499_v59, %v3561_v29  ;;  %v3638_v25 = vadd.f32 %v6508_v62, %v3599_v53 }
 0x2f9   : > { %v3598_v5 = vmul.f32 %v6499_v59, %v3559_v51  ;;  %v4905_v17 = vpop.f32.mrb[44].mxu1  ;;  %v3636_v24 = vadd.f32 %v6508_v62, %v3597_v20 }
 0x2fa   : > { %v3639_v32 = vadd.f32 %v6508_v62, %v3600_v14  ;;  %v3480_v35 = vadd.f32 %v4905_v17, %v6493_v9  ;;  %v3471_v7 = vpop.f32.mrb[45].mxu1 }
 0x2fb   : > { %v3637_v43 = vadd.f32 %v6508_v62, %v3598_v5  ;;  %v3472_v27 = vadd.f32 %v6493_v9, %v3471_v7  ;;  %v4906_v36 = vpop.f32.mrb[46].mxu1 }
 0x2fc   : > { %v4343_v21 = vpack.c.bf16 %v3639_v32, %v3638_v25  ;;  %v3564_v37 = vmax.f32 %v3480_v35, 0.0  ;;  %v3483_v19 = vadd.f32 %v4906_v36, %v6493_v9  ;;  %v3474_v52 = vpop.f32.mrb[47].mxu1 }
 0x2fd   : > { %v4338_v48 = vpack.c.bf16 %v3637_v43, %v3636_v24  ;;  %v3562_v56 = vmax.f32 %v3472_v27, 0.0  ;;  %v3475_v22 = vadd.f32 %v6493_v9, %v3474_v52 }
 0x2fe   : > { %4399 = vst [vmem:[%s6521_s20 + $0x28] sm:$0xff] %v4343_v21   ;;  %v3603_v1 = vmul.f32 %v6499_v59, %v3564_v37  ;;  %v3565_v31 = vmax.f32 %v3483_v19, 0.0 }
 0x2ff   : > { %4398 = vst [vmem:[%s6521_s20 + $0x20] sm:$0xff] %v4338_v48   ;;  %v3601_v39 = vmul.f32 %v6499_v59, %v3562_v56  ;;  %v3563_v0 = vmax.f32 %v3475_v22, 0.0 }
 0x300   : > { %v3604_v26 = vmul.f32 %v6499_v59, %v3565_v31  ;;  %v3642_v57 = vadd.f32 %v6508_v62, %v3603_v1 }
 0x301   : > { %v3602_v11 = vmul.f32 %v6499_v59, %v3563_v0  ;;  %v4909_v47 = vpop.f32.mrb[48].mxu1  ;;  %v3640_v42 = vadd.f32 %v6508_v62, %v3601_v39 }
 0x302   : > { %v3643_v33 = vadd.f32 %v6508_v62, %v3604_v26  ;;  %v3496_v45 = vadd.f32 %v4909_v47, %v6493_v9  ;;  %v3487_v3 = vpop.f32.mrb[49].mxu1 }
 0x303   : > { %v3641_v23 = vadd.f32 %v6508_v62, %v3602_v11  ;;  %v3488_v12 = vadd.f32 %v6493_v9, %v3487_v3  ;;  %v4910_v38 = vpop.f32.mrb[50].mxu1 }
 0x304   : > { %v4353_v13 = vpack.c.bf16 %v3643_v33, %v3642_v57  ;;  %v3568_v60 = vmax.f32 %v3496_v45, 0.0  ;;  %v3499_v63 = vadd.f32 %v4910_v38, %v6493_v9  ;;  %v3490_v6 = vpop.f32.mrb[51].mxu1 }
 0x305   : > { %v4348_v28 = vpack.c.bf16 %v3641_v23, %v3640_v42  ;;  %v3566_v30 = vmax.f32 %v3488_v12, 0.0  ;;  %v3491_v34 = vadd.f32 %v6493_v9, %v3490_v6 }
 0x306   : > { %4401 = vst [vmem:[%s6521_s20 + $0x38] sm:$0xff] %v4353_v13   ;;  %v3607_v41 = vmul.f32 %v6499_v59, %v3568_v60  ;;  %v3569_v50 = vmax.f32 %v3499_v63, 0.0 }
 0x307   : > { %4400 = vst [vmem:[%s6521_s20 + $0x30] sm:$0xff] %v4348_v28   ;;  %v3605_v58 = vmul.f32 %v6499_v59, %v3566_v30  ;;  %v3567_v55 = vmax.f32 %v3491_v34, 0.0 }
 0x308   : > { %v3608_v49 = vmul.f32 %v6499_v59, %v3569_v50  ;;  %v3646_v61 = vadd.f32 %v6508_v62, %v3607_v41 }
 0x309   : > { %v3606_v44 = vmul.f32 %v6499_v59, %v3567_v55  ;;  %v4913_v40 = vpop.f32.mrb[52].mxu1  ;;  %v3644_v10 = vadd.f32 %v6508_v62, %v3605_v58 }
 0x30a   : > { %v3647_v18 = vadd.f32 %v6508_v62, %v3608_v49  ;;  %v3512_v46 = vadd.f32 %v4913_v40, %v6493_v9  ;;  %v3503_v16 = vpop.f32.mrb[53].mxu1 }
 0x30b   : > { %v3645_v4 = vadd.f32 %v6508_v62, %v3606_v44  ;;  %v3504_v54 = vadd.f32 %v6493_v9, %v3503_v16  ;;  %v4914_v2 = vpop.f32.mrb[54].mxu1 }
 0x30c   : > { %v4363_v15 = vpack.c.bf16 %v3647_v18, %v3646_v61  ;;  %v3572_v8 = vmax.f32 %v3512_v46, 0.0  ;;  %v3515_v53 = vadd.f32 %v4914_v2, %v6493_v9  ;;  %v3506_v29 = vpop.f32.mrb[55].mxu1 }
 0x30d   : > { %v4358_v20 = vpack.c.bf16 %v3645_v4, %v3644_v10  ;;  %v3570_v51 = vmax.f32 %v3504_v54, 0.0  ;;  %v3507_v14 = vadd.f32 %v6493_v9, %v3506_v29 }
 0x30e   : > { %4403 = vst [vmem:[%s6521_s20 + $0x48] sm:$0xff] %v4363_v15   ;;  %v3611_v5 = vmul.f32 %v6499_v59, %v3572_v8  ;;  %v3573_v17 = vmax.f32 %v3515_v53, 0.0 }
 0x30f   : > { %4402 = vst [vmem:[%s6521_s20 + $0x40] sm:$0xff] %v4358_v20   ;;  %v3609_v25 = vmul.f32 %v6499_v59, %v3570_v51  ;;  %v3571_v32 = vmax.f32 %v3507_v14, 0.0 }
 0x310   : > { %v3612_v35 = vmul.f32 %v6499_v59, %v3573_v17  ;;  %v3650_v43 = vadd.f32 %v6508_v62, %v3611_v5 }
 0x311   : > { %v3610_v7 = vmul.f32 %v6499_v59, %v3571_v32  ;;  %v4917_v24 = vpop.f32.mrb[56].mxu1  ;;  %v3648_v37 = vadd.f32 %v6508_v62, %v3609_v25 }
 0x312   : > { %v3651_v27 = vadd.f32 %v6508_v62, %v3612_v35  ;;  %v3528_v36 = vadd.f32 %v4917_v24, %v6493_v9  ;;  %v3519_v21 = vpop.f32.mrb[57].mxu1 }
 0x313   : > { %v3649_v19 = vadd.f32 %v6508_v62, %v3610_v7  ;;  %v3520_v52 = vadd.f32 %v6493_v9, %v3519_v21  ;;  %v4918_v48 = vpop.f32.mrb[58].mxu1 }
 0x314   : > { %v4373_v56 = vpack.c.bf16 %v3651_v27, %v3650_v43  ;;  %v3576_v22 = vmax.f32 %v3528_v36, 0.0  ;;  %v3531_v1 = vadd.f32 %v4918_v48, %v6493_v9  ;;  %v3522_v31 = vpop.f32.mrb[59].mxu1 }
 0x315   : > { %v4368_v39 = vpack.c.bf16 %v3649_v19, %v3648_v37  ;;  %v3574_v0 = vmax.f32 %v3520_v52, 0.0  ;;  %v3523_v26 = vadd.f32 %v6493_v9, %v3522_v31 }
 0x316   : > { %4405 = vst [vmem:[%s6521_s20 + $0x58] sm:$0xff] %v4373_v56   ;;  %v3615_v11 = vmul.f32 %v6499_v59, %v3576_v22  ;;  %v3577_v47 = vmax.f32 %v3531_v1, 0.0 }
 0x317   : > { %4404 = vst [vmem:[%s6521_s20 + $0x50] sm:$0xff] %v4368_v39   ;;  %v3613_v57 = vmul.f32 %v6499_v59, %v3574_v0  ;;  %v3575_v33 = vmax.f32 %v3523_v26, 0.0 }
 0x318   : > { %v3616_v45 = vmul.f32 %v6499_v59, %v3577_v47  ;;  %v3654_v23 = vadd.f32 %v6508_v62, %v3615_v11 }
 0x319   : > { %v3614_v3 = vmul.f32 %v6499_v59, %v3575_v33  ;;  %v4921_v42 = vpop.f32.mrb[60].mxu1  ;;  %v3652_v60 = vadd.f32 %v6508_v62, %v3613_v57 }
 0x31a   : > { %v3655_v12 = vadd.f32 %v6508_v62, %v3616_v45  ;;  %v3544_v38 = vadd.f32 %v4921_v42, %v6493_v9  ;;  %v3535_v13 = vpop.f32.mrb[61].mxu1 }
 0x31b   : > { %v3653_v63 = vadd.f32 %v6508_v62, %v3614_v3  ;;  %v3536_v6 = vadd.f32 %v6493_v9, %v3535_v13  ;;  %v4922_v28 = vpop.f32.mrb[62].mxu1 }
 0x31c   : > { %v4383_v30 = vpack.c.bf16 %v3655_v12, %v3654_v23  ;;  %v3580_v34 = vmax.f32 %v3544_v38, 0.0  ;;  %v3547_v41 = vadd.f32 %v4922_v28, %v6493_v9  ;;  %v3538_v50 = vpop.f32.mrb[63].mxu1 }
 0x31d   : > { %v4378_v58 = vpack.c.bf16 %v3653_v63, %v3652_v60  ;;  %v3578_v55 = vmax.f32 %v3536_v6, 0.0  ;;  %v3539_v49 = vadd.f32 %v6493_v9, %v3538_v50 }
 0x31e   : > { %4407 = vst [vmem:[%s6521_s20 + $0x68] sm:$0xff] %v4383_v30   ;;  %v3619_v44 = vmul.f32 %v6499_v59, %v3580_v34  ;;  %v3581_v40 = vmax.f32 %v3547_v41, 0.0 }
 0x31f   : > { %4406 = vst [vmem:[%s6521_s20 + $0x60] sm:$0xff] %v4378_v58   ;;  %v3617_v61 = vmul.f32 %v6499_v59, %v3578_v55  ;;  %v3579_v18 = vmax.f32 %v3539_v49, 0.0 }
 0x320   : > { %v3620_v46 = vmul.f32 %v6499_v59, %v3581_v40  ;;  %v3658_v10 = vadd.f32 %v6508_v62, %v3619_v44 }
 0x321   : > { %v3618_v16 = vmul.f32 %v6499_v59, %v3579_v18  ;;  %v3656_v54 = vadd.f32 %v6508_v62, %v3617_v61 }
 0x322   : > { %v3659_v4 = vadd.f32 %v6508_v62, %v3620_v46 }
 0x323   : > { %v3657_v9 = vadd.f32 %v6508_v62, %v3618_v16 }
 0x324   : > { %v4393_v2 = vpack.c.bf16 %v3659_v4, %v3658_v10 }
 0x325   : > { %v4388_v15 = vpack.c.bf16 %v3657_v9, %v3656_v54 }
 0x326   : > { %4409 = vst [vmem:[%s6521_s20 + $0x78] sm:$0xff] %v4393_v2  }
 0x327   : > { %4408 = vst [vmem:[%s6521_s20 + $0x70] sm:$0xff] %v4388_v15  }
 0x328 PF: > { %s20_s11 = sadd.s32 1, %s5264_s11   ;;  %s6734_s30 = smov %s5260_s10 }
 0x329   : > { %p17_p5 = scmp.ge.s32.totalorder %s20_s11, 4   ;;  %s6735_s10 = smov %s6737_s12 }
 0x32b   :  { %19 = sbr.rel (!%p17_p5) target bundleno = 2 (0x2), region = 97 }

// kernel: forward.4
= control target key start
LH: loop header
LB: loop body
LE: loop exit
PB: predicated region body
PF: predicated region fallthrough
CT: control target
= control target key end

     0   :  { %s4113_s21 = smov 0   ;;  %s4115_s22 = smov 0   ;;  %s5265_s0 = inlined_call_operand.vmem [shape: bf16[2,18,24,128], index: 0, kind: input, shape index: {}, may-alias: {0,1}]   ;;  %s5266_s1 = inlined_call_operand.vmem [shape: bf16[2,18,24,128], index: 1, kind: input, shape index: {}, may-alias: {0,1}]   ;;  %s5267_s2 = inlined_call_operand.vmem [shape: bf16[3,384,128], index: 2, kind: input, shape index: {}]   ;;  %s5268_s3 = inlined_call_operand.vmem [shape: f32[1,128], index: 3, kind: input, shape index: {}]   ;;  %s5269_s4 = inlined_call_operand.vmem [shape: f32[1,128], index: 4, kind: input, shape index: {}]   ;;  %s5270_s5 = inlined_call_operand.vmem [shape: f32[1,128], index: 5, kind: input, shape index: {}]   ;;  %s5271_s6 = inlined_call_operand.vmem [shape: bf16[2,16,16,128], index: 6, kind: output, shape index: {}]  }
   0x1   :  { %s4117_s23 = smov 0  }
   0x2 LB: > { %s28_s24 = sadd.s32 1, %s4072_s22  ;;  %p2903_p0 = scmp.ge.s32.totalorder %s4076_s23, 1  ;;  %s4076_s23 = sphi %s4117_s23, %s16_s23   ;;  %s4072_s22 = sphi %s4115_s22, %s5275_s22   ;;  %s4068_s21 = sphi %s4113_s21, %s5274_s21  }
   0x3   : > { %p30_p1 = scmp.ge.s32.totalorder %s28_s24, 2  ;;  %p270_p2 = scmp.lt.s32.totalorder %s4076_s23, 3 }
   0x5   : > { %s5277_s24 = smov (%p30_p1, %s28_s24), 0  ;;  %p271_p3 = pnand %p2903_p0, %p270_p2 }
   0x7   : > { %274 = sbr.rel (%p271_p3) target bundleno = 560 (0x230), region = 44 }
   0xe   : > { %v3938_v0 = vld [vmem:[%s5267_s2 + $0x100] sm:$0xff]   ;;  %p333_p4 = scmp.lt.s32.totalorder %s4068_s21, 1  ;;  %v3941_v3 = vld [vmem:[%s5267_s2 + $0x108] sm:$0xff]   ;;  %v3944_v6 = vld [vmem:[%s5267_s2 + $0x110] sm:$0xff]   ;;  %vm970_vm0 = vcmask 1046528  }
   0xf   : > { %v4137_v1 = vld [vmem:[%s5267_s2 + $0x140] sm:$0xff]   ;;  %3183 = vmatprep.subr.bf16.mxu0 %v3938_v0  ;;  %v4152_v4 = vld [vmem:[%s5267_s2 + $0x148] sm:$0xff]   ;;  %v4164_v7 = vld [vmem:[%s5267_s2 + $0x150] sm:$0xff]   ;;  %vm735_vm1 = vsmask.f32 7424 }
  0x10   : > { %v3940_v2 = vld [vmem:[%s5267_s2 + $0xc0] sm:$0xff]   ;;  %3735 = vmatprep.subr.bf16.mxu1 %v4137_v1  ;;  %s5279_s21 = smov (!%p333_p4, %s4068_s21), 1  ;;  %v3943_v5 = vld [vmem:[%s5267_s2 + $0xc8] sm:$0xff]   ;;  %v3946_v8 = vld [vmem:[%s5267_s2 + $0xd0] sm:$0xff]  }
  0x11   : > { %3184 = vmatpush3.bf16.msra.mxu0 %v3940_v2  ;;  %3743 = vmatpush3.bf16.msra.mxu1 %v4137_v1  ;;  %v3947_v9 = vld [vmem:[%s5267_s2 + $0x118] sm:$0xff]   ;;  %v3950_v12 = vld [vmem:[%s5267_s2 + $0x120] sm:$0xff]   ;;  %v3953_v15 = vld [vmem:[%s5267_s2 + $0x128] sm:$0xff]   ;;  %s3911_s15 = smul.u32 216, %s5279_s21  ;;  %s3055_s8 = sshll.u32 %s5279_s21, 7 }
  0x12   : > { %3185 = vmatprep.subr.bf16.mxu0 %v3941_v3  ;;  %3736 = vmatprep.subr.bf16.mxu1 %v4152_v4  ;;  %v4177_v10 = vld [vmem:[%s5267_s2 + $0x158] sm:$0xff]   ;;  %v4190_v13 = vld [vmem:[%s5267_s2 + $0x160] sm:$0xff]   ;;  %v4203_v16 = vld [vmem:[%s5267_s2 + $0x168] sm:$0xff]   ;;  %s5114_s10 = scalar_lea.vmem %s5271_s6, %s3055_s8 }
  0x13   : > { %v3949_v11 = vld [vmem:[%s5267_s2 + $0xd8] sm:$0xff]   ;;  %v3952_v14 = vld [vmem:[%s5267_s2 + $0xe0] sm:$0xff]   ;;  %v3955_v17 = vld [vmem:[%s5267_s2 + $0xe8] sm:$0xff]   ;;  %s4227_s30 = scalar_lea.vmem %s5265_s0, %s3911_s15  ;;  %s3054_s16 = sadd.s32 192, %s3911_s15 }
  0x14   : > { %v3956_v18 = vld [vmem:[%s5267_s2 + $0x130] sm:$0xff]   ;;  %v3959_v21 = vld [vmem:[%s5267_s2 + $0x138] sm:$0xff]   ;;  %v4265_v36 = vld [vmem:[%s4227_s30 + $0x80] ss:$0 sps:$4 sm:$0xff]   ;;  %s4407_s26 = scalar_lea.vmem %s5266_s1, %s3054_s16 }
  0x15   : > { %3186 = vmatpush3.bf16.msra.mxu0 %v3943_v5  ;;  %3744 = vmatpush3.bf16.msra.mxu1 %v4152_v4  ;;  %v4217_v19 = vld [vmem:[%s5267_s2 + $0x170] sm:$0xff]   ;;  %v4235_v22 = vld [vmem:[%s5267_s2 + $0x178] sm:$0xff]   ;;  %v3968_v37 = vld [vmem:[%s5267_s2 + $0x40] sm:$0xff]   ;;  %v1002_v41 = vrot.slane %v4265_v36, 1 }
  0x16   : > { %3187 = vmatprep.subr.bf16.mxu0 %v3944_v6  ;;  %3737 = vmatprep.subr.bf16.mxu1 %v4164_v7  ;;  %v3958_v20 = vld [vmem:[%s5267_s2 + $0xf0] sm:$0xff]   ;;  %v3961_v26 = vld [vmem:[%s5267_s2 + $0xf8] sm:$0xff]   ;;  %v3969_v42 = vld [vmem:[%s5267_s2] sm:$0xff]  }
  0x17   : > { %v4240_v23 = vld [vmem:[%s4227_s30 + $0xc] sm:$0xff]   ;;  %v4243_v24 = vld [vmem:[%s4227_s30 + $0x14] ss:$0 sps:$4 sm:$0xff]   ;;  %v4262_v35 = vld [vmem:[%s4227_s30 + $0x78] sm:$0xff]  }
  0x18   : > { %v4246_v25 = vld [vmem:[%s4227_s30 + $0x6c] sm:$0xff]   ;;  %v749_v27 = vshrl.u32 %v4240_v23, 16  ;;  %v751_v28 = vshll.u32 %v4240_v23, 16  ;;  %v756_v29 = vshll.u32 %v4243_v24, 16  ;;  %v4255_v30 = vld [vmem:[%s4227_s30 + $0x74] ss:$0 sps:$4 sm:$0xff]  }
  0x19   : > { %3188 = vmatpush3.bf16.msra.mxu0 %v3946_v8  ;;  %3745 = vmatpush3.bf16.msra.mxu1 %v4164_v7  ;;  %v998_v31 = vrot.slane %v4246_v25, 1  ;;  %v999_v34 = vrot.slane %v4255_v30, 1  ;;  %v1001_v40 = vrot.slane %v4262_v35, 1  ;;  %v3970_v45 = vld [vmem:[%s5267_s2 + $0x48] sm:$0xff]   ;;  %v4297_v47 = vld [vmem:[%s4227_s30 + $0x18] sm:$0xff]   ;;  %v4316_v58 = vld [vmem:[%s4227_s30 + $0x90] sm:$0xff]  }
  0x1a   : > { %3189 = vmatprep.subr.bf16.mxu0 %v3947_v9  ;;  %3738 = vmatprep.subr.bf16.mxu1 %v4177_v10  ;;  %v753_v32 = vrot.slane %v751_v28, 1  ;;  %v758_v33 = vrot.slane %v756_v29, 1  ;;  %v3971_v46 = vld [vmem:[%s5267_s2 + $0x8] sm:$0xff]   ;;  %v4300_v48 = vld [vmem:[%s4227_s30 + $0x20] ss:$0 sps:$4 sm:$0xff]   ;;  %v761_v49 = vshrl.u32 %v4297_v47, 16 }
  0x1b   : > { %v4271_v39 = vsel %vm970_vm0, %v998_v31, %v999_v34  ;;  %v4285_v44 = vsel %vm970_vm0, %v1001_v40, %v1002_v41  ;;  %v763_v50 = vshll.u32 %v4297_v47, 16  ;;  %v768_v51 = vshll.u32 %v4300_v48, 16  ;;  %v4307_v52 = vld [vmem:[%s4227_s30 + $0x84] sm:$0xff]   ;;  %v4310_v53 = vld [vmem:[%s4227_s30 + $0x8c] ss:$0 sps:$4 sm:$0xff]   ;;  %v3978_v59 = vld [vmem:[%s5267_s2 + $0x50] sm:$0xff]  }
  0x1c   : > { %v754_v38 = vor.u32 %v753_v32, %v749_v27  ;;  %3623 = vmatprep.mubr.bf16.mxu1 %v4271_v39  ;;  %v1004_v56 = vrot.slane %v4307_v52, 1  ;;  %v1005_v57 = vrot.slane %v4310_v53, 1  ;;  %v4322_v60 = vld [vmem:[%s4227_s30 + $0x98] ss:$0 sps:$4 sm:$0xff]   ;;  %v1007_v63 = vrot.slane %v4316_v58, 1  ;;  %v3979_v0 = vld [vmem:[%s5267_s2 + $0x10] sm:$0xff]  }
  0x1d   : > { %3190 = vmatpush3.bf16.msra.mxu0 %v3949_v11  ;;  %3746 = vmatpush3.bf16.msra.mxu1 %v4177_v10  ;;  %v765_v54 = vrot.slane %v763_v50, 1  ;;  %v770_v55 = vrot.slane %v768_v51, 1  ;;  %v3980_v2 = vld [vmem:[%s5267_s2 + $0x58] sm:$0xff]   ;;  %v4351_v6 = vld [vmem:[%s4227_s30 + $0x24] sm:$0xff]   ;;  %v4354_v8 = vld [vmem:[%s4227_s30 + $0x2c] ss:$0 sps:$4 sm:$0xff]  }
  0x1e   : > { %3191 = vmatprep.subr.bf16.mxu0 %v3950_v12  ;;  %3739 = vmatprep.subr.bf16.mxu1 %v4190_v13  ;;  %v4280_v43 = vsel %vm735_vm1, %v754_v38, %v758_v33  ;;  %v4326_v62 = vsel %vm970_vm0, %v1004_v56, %v1005_v57  ;;  %v4357_v9 = vld [vmem:[%s4227_s30 + $0x9c] sm:$0xff]   ;;  %v773_v11 = vshrl.u32 %v4351_v6, 16  ;;  %v775_v12 = vshll.u32 %v4351_v6, 16  ;;  %v4377_v28 = vld [vmem:[%s4227_s30 + $0xb0] ss:$0 sps:$4 sm:$0xff]  }
  0x1f   : > { %1219 = vmatprep.mubr.bf16.mxu0 %v4280_v43  ;;  %v766_v61 = vor.u32 %v765_v54, %v761_v49  ;;  %v3989_v32 = vld [vmem:[%s5267_s2 + $0x20] sm:$0xff]   ;;  %v1014_v33 = vrot.slane %v4377_v28, 1  ;;  %v4412_v40 = vld [vmem:[%s4227_s30 + $0x30] sm:$0xff]   ;;  %v4415_v41 = vld [vmem:[%s4227_s30 + $0x38] ss:$0 sps:$4 sm:$0xff]  }
  0x20   : > { %v792_v49 = vshll.u32 %v4415_v41, 16  ;;  %v4425_v50 = vld [vmem:[%s4227_s30 + $0xbc] ss:$0 sps:$4 sm:$0xff]   ;;  %v4428_v51 = vld [vmem:[%s4407_s26] sm:$0xff]  }
  0x21   : > { %3192 = vmatpush3.bf16.msra.mxu0 %v3952_v14  ;;  %3747 = vmatpush3.bf16.msra.mxu1 %v4190_v13  ;;  %v4339_v3 = vsel %vm735_vm1, %v766_v61, %v770_v55  ;;  %v780_v14 = vshll.u32 %v4354_v8, 16  ;;  %v3998_v55 = vld [vmem:[%s5267_s2 + $0x70] sm:$0xff]   ;;  %v1017_v57 = vrot.slane %v4425_v50, 1  ;;  %v4438_v61 = vld [vmem:[%s4407_s26 + $0x8] ss:$0 sps:$4 sm:$0xff]  }
  0x22   : > { %3193 = vmatprep.subr.bf16.mxu0 %v3953_v15  ;;  %3740 = vmatprep.subr.bf16.mxu1 %v4203_v16  ;;  %v4364_v15 = vld [vmem:[%s4227_s30 + $0xa4] ss:$0 sps:$4 sm:$0xff]   ;;  %v794_v56 = vrot.slane %v792_v49, 1  ;;  %v4492_v49 = vld [vmem:[%s4227_s30 + $0x54] sm:$0xff]  }
  0x25   : > { %3194 = vmatpush3.bf16.msra.mxu0 %v3955_v17  ;;  %3748 = vmatpush3.bf16.msra.mxu1 %v4203_v16  ;;  %v4367_v17 = vld [vmem:[%s4227_s30 + $0xa8] sm:$0xff]  }
  0x26   : > { %3195 = vmatprep.subr.bf16.mxu0 %v3956_v18  ;;  %3741 = vmatprep.subr.bf16.mxu1 %v4217_v19  ;;  %v1010_v18 = vrot.slane %v4357_v9, 1  ;;  %v1013_v27 = vrot.slane %v4367_v17, 1 }
  0x28   : > { %v4402_v38 = vsel %vm970_vm0, %v1013_v27, %v1014_v33  ;;  %v4479_v27 = vld [vmem:[%s4227_s30 + $0x8] ss:$0 sps:$4 sm:$0xff]  }
  0x29   : > { %3196 = vmatpush3.bf16.msra.mxu0 %v3958_v20  ;;  %3749 = vmatpush3.bf16.msra.mxu1 %v4217_v19  ;;  %v777_v20 = vrot.slane %v775_v12, 1 }
  0x2a   : > { %3197 = vmatprep.subr.bf16.mxu0 %v3959_v21  ;;  %3742 = vmatprep.subr.bf16.mxu1 %v4235_v22  ;;  %v782_v21 = vrot.slane %v780_v14, 1  ;;  %v4466_v14 = vld [vmem:[%s4227_s30 + $0x3c] sm:$0xff]  }
  0x2b   : > { %v778_v29 = vor.u32 %v777_v20, %v773_v11  ;;  %v4001_v11 = vld [vmem:[%s5267_s2 + $0x38] sm:$0xff]   ;;  %v797_v20 = vshrl.u32 %v4466_v14, 16 }
  0x2d   : > { %3198 = vmatpush3.bf16.msra.mxu0 %v3961_v26  ;;  %3750 = vmatpush3.bf16.msra.mxu1 %v4235_v22  ;;  %v1011_v26 = vrot.slane %v4364_v15, 1  ;;  %v4395_v34 = vsel %vm735_vm1, %v778_v29, %v782_v21  ;;  %v799_v21 = vshll.u32 %v4466_v14, 16  ;;  %v4006_v29 = vld [vmem:[%s5267_s2 + $0x80] sm:$0xff]  }
  0x2e   : > { %3591 = vmatprep.subr.bf16.mxu0 %v4137_v1  ;;  %3319 = vmatprep.subr.bf16.mxu1 %v3968_v37  ;;  %v3991_v37 = vld [vmem:[%s5267_s2 + $0x28] sm:$0xff]  }
  0x2f   : > { %v4381_v31 = vsel %vm970_vm0, %v1010_v18, %v1011_v26  ;;  %v4469_v18 = vld [vmem:[%s4227_s30 + $0x44] ss:$0 sps:$4 sm:$0xff]   ;;  %v801_v33 = vrot.slane %v799_v21, 1  ;;  %v821_v21 = vshrl.u32 %v4492_v49, 16 }
  0x30   : > { %1220 = vmatmul.mubr.bf16.vlgmr.msra.gmra.mrb[0].mxu0 %v4240_v23  ;;  %3624 = vmatmul.mubr.bf16.vlgmr.msra.gmra.mrb[0].mxu1 %v4285_v44  ;;  %v804_v26 = vshll.u32 %v4469_v18, 16 }
  0x31   : > { %3592 = vmatpush3.bf16.msra.mxu0 %v4137_v1  ;;  %3320 = vmatpush3.bf16.msra.mxu1 %v3969_v42  ;;  %v1008_v1 = vrot.slane %v4322_v60, 1  ;;  %v4418_v42 = vld [vmem:[%s4227_s30 + $0xb4] sm:$0xff]  }
  0x32   : > { %3321 = vmatprep.subr.bf16.mxu1 %v3970_v45  ;;  %3593 = vmatprep.subr.bf16.mxu0 %v4152_v4  ;;  %v785_v45 = vshrl.u32 %v4412_v40, 16  ;;  %v1016_v54 = vrot.slane %v4418_v42, 1 }
  0x33   : > { %3627 = vmatprep.mubr.bf16.mxu1 %v4326_v62  ;;  %1227 = vmatprep.mubr.bf16.mxu0 %v4339_v3  ;;  %v4346_v5 = vsel %vm970_vm0, %v1007_v63, %v1008_v1  ;;  %v3999_v1 = vld [vmem:[%s5267_s2 + $0x30] sm:$0xff]  }
  0x35   : > { %3322 = vmatpush3.bf16.msra.mxu1 %v3971_v46  ;;  %3594 = vmatpush3.bf16.msra.mxu0 %v4152_v4  ;;  %v3981_v4 = vld [vmem:[%s5267_s2 + $0x18] sm:$0xff]   ;;  %v787_v46 = vshll.u32 %v4412_v40, 16 }
  0x36   : > { %3323 = vmatprep.subr.bf16.mxu1 %v3978_v59  ;;  %3595 = vmatprep.subr.bf16.mxu0 %v4164_v7  ;;  %v1019_v59 = vrot.slane %v4428_v51, 1 }
  0x38   : > { %1228 = vmatmul.mubr.bf16.gmra.mrb[4].mxu0 %v4297_v47  ;;  %3628 = vmatmul.mubr.bf16.gmra.mrb[4].mxu1 %v4346_v5 }
  0x39   : > { %3324 = vmatpush3.bf16.msra.mxu1 %v3979_v0  ;;  %3596 = vmatpush3.bf16.msra.mxu0 %v4164_v7  ;;  %v3988_v7 = vld [vmem:[%s5267_s2 + $0x60] sm:$0xff]   ;;  %v4442_v0 = vsel %vm970_vm0, %v1016_v54, %v1017_v57  ;;  %v802_v54 = vor.u32 %v801_v33, %v797_v20 }
  0x3a   : > { %3325 = vmatprep.subr.bf16.mxu1 %v3980_v2  ;;  %3597 = vmatprep.subr.bf16.mxu0 %v4177_v10  ;;  %v1020_v2 = vrot.slane %v4438_v61, 1 }
  0x3b   : > { %3631 = vmatprep.mubr.bf16.mxu1 %v4381_v31  ;;  %1235 = vmatprep.mubr.bf16.mxu0 %v4395_v34 }
  0x3c   : > { %v4461_v12 = vsel %vm970_vm0, %v1019_v59, %v1020_v2 }
  0x3d   : > { %3326 = vmatpush3.bf16.msra.mxu1 %v3981_v4  ;;  %3598 = vmatpush3.bf16.msra.mxu0 %v4177_v10  ;;  %v3990_v10 = vld [vmem:[%s5267_s2 + $0x68] sm:$0xff]  }
  0x3e   : > { %3327 = vmatprep.subr.bf16.mxu1 %v3988_v7  ;;  %3599 = vmatprep.subr.bf16.mxu0 %v4190_v13  ;;  %v4472_v7 = vld [vmem:[%s4227_s30] sm:$0xff]  }
  0x40   : > { %1236 = vmatmul.mubr.bf16.gmra.mrb[8].mxu0 %v4351_v6  ;;  %3632 = vmatmul.mubr.bf16.gmra.mrb[8].mxu1 %v4402_v38 }
  0x41   : > { %3328 = vmatpush3.bf16.msra.mxu1 %v3989_v32  ;;  %3600 = vmatpush3.bf16.msra.mxu0 %v4190_v13  ;;  %v789_v13 = vrot.slane %v787_v46, 1  ;;  %v737_v32 = vshrl.u32 %v4472_v7, 16 }
  0x42   : > { %3329 = vmatprep.subr.bf16.mxu1 %v3990_v10  ;;  %3601 = vmatprep.subr.bf16.mxu0 %v4203_v16  ;;  %v806_v10 = vrot.slane %v804_v26, 1  ;;  %v823_v26 = vshll.u32 %v4492_v49, 16 }
  0x43   : > { %v790_v63 = vor.u32 %v789_v13, %v785_v45  ;;  %3635 = vmatprep.mubr.bf16.mxu1 %v4442_v0  ;;  %v4489_v45 = vld [vmem:[%s4227_s30 + $0x48] sm:$0xff]   ;;  %v4496_v13 = vld [vmem:[%s4227_s30 + $0x50] ss:$0 sps:$4 sm:$0xff]  }
  0x44   : > { %v811_v57 = vshll.u32 %v4489_v45, 16  ;;  %v816_v2 = vshll.u32 %v4496_v13, 16 }
  0x45   : > { %3330 = vmatpush3.bf16.msra.mxu1 %v3991_v37  ;;  %3602 = vmatpush3.bf16.msra.mxu0 %v4203_v16  ;;  %v4000_v16 = vld [vmem:[%s5267_s2 + $0x78] sm:$0xff]   ;;  %v4454_v4 = vsel %vm735_vm1, %v790_v63, %v794_v56  ;;  %v744_v37 = vshll.u32 %v4479_v27, 16  ;;  %v809_v56 = vshrl.u32 %v4489_v45, 16  ;;  %v4501_v63 = vsel %vm735_vm1, %v802_v54, %v806_v10 }
  0x46   : > { %3331 = vmatprep.subr.bf16.mxu1 %v3998_v55  ;;  %3603 = vmatprep.subr.bf16.mxu0 %v4217_v19  ;;  %v825_v10 = vrot.slane %v823_v26, 1  ;;  %v847_v26 = vshll.u32 %v4246_v25, 16 }
  0x47   : > { %1243 = vmatprep.mubr.bf16.mxu0 %v4454_v4  ;;  %v746_v55 = vrot.slane %v744_v37, 1  ;;  %v4521_v37 = vld [vmem:[%s4227_s30 + $0x68] ss:$0 sps:$4 sm:$0xff]  }
  0x48   : > { %1244 = vmatmul.mubr.bf16.gmra.mrb[12].mxu0 %v4412_v40  ;;  %3636 = vmatmul.mubr.bf16.gmra.mrb[12].mxu1 %v4461_v12 }
  0x49   : > { %3332 = vmatpush3.bf16.msra.mxu1 %v3999_v1  ;;  %3604 = vmatpush3.bf16.msra.mxu0 %v4217_v19  ;;  %v739_v19 = vshll.u32 %v4472_v7, 16  ;;  %v813_v1 = vrot.slane %v811_v57, 1  ;;  %v4014_v57 = vld [vmem:[%s5267_s2 + $0x90] sm:$0xff]  }
  0x4a   : > { %3333 = vmatprep.subr.bf16.mxu1 %v4000_v16  ;;  %3605 = vmatprep.subr.bf16.mxu0 %v4235_v22  ;;  %v4505_v16 = vld [vmem:[%s4227_s30 + $0x5c] ss:$0 sps:$4 sm:$0xff]  }
  0x4b   : > { %v741_v46 = vrot.slane %v739_v19, 1  ;;  %1251 = vmatprep.mubr.bf16.mxu0 %v4501_v63  ;;  %v818_v19 = vrot.slane %v816_v2, 1  ;;  %v828_v33 = vshll.u32 %v4505_v16, 16  ;;  %v4015_v2 = vld [vmem:[%s5267_s2 + $0x98] sm:$0xff]  }
  0x4d   : > { %3334 = vmatpush3.bf16.msra.mxu1 %v4001_v11  ;;  %3606 = vmatpush3.bf16.msra.mxu0 %v4235_v22  ;;  %v742_v59 = vor.u32 %v741_v46, %v737_v32  ;;  %v4011_v22 = vld [vmem:[%s5267_s2 + $0x88] sm:$0xff]   ;;  %v4511_v11 = vld [vmem:[%s4227_s30 + $0x60] sm:$0xff]   ;;  %v814_v32 = vor.u32 %v813_v1, %v809_v56  ;;  %v830_v54 = vrot.slane %v828_v33, 1  ;;  %v826_v56 = vor.u32 %v825_v10, %v821_v21 }
  0x4e   : > { %3639 = vmatprep.subr.bf16.mxu1 %v4006_v29  ;;  %v975_v33 = vrot.slane %v4243_v24, 1  ;;  %v845_v10 = vshrl.u32 %v4246_v25, 16 }
  0x4f   : > { %v747_v20 = vsel %vm735_vm1, %v742_v59, %v746_v55  ;;  %v4524_v46 = vsel %vm735_vm1, %v814_v32, %v818_v19  ;;  %v835_v55 = vshll.u32 %v4511_v11, 16  ;;  %v4533_v59 = vsel %vm735_vm1, %v826_v56, %v830_v54  ;;  %v4016_v32 = vld [vmem:[%s5267_s2 + $0xa0] sm:$0xff]  }
  0x50   : > { %1685 = vmatprep.mubr.bf16.mxu1 %v747_v20  ;;  %1252 = vmatmul.mubr.bf16.gmra.mrb[16].mxu0 %v4466_v14  ;;  %v974_v19 = vrot.slane %v4240_v23, 1  ;;  %v852_v56 = vshll.u32 %v4255_v30, 16  ;;  %v859_v30 = vshll.u32 %v4262_v35, 16 }
  0x51   : > { %1686 = vmatmul.mubr.bf16.vlgmr.msra.gmra.mrb[16].mxu1 %v4472_v7  ;;  %1259 = vmatprep.mubr.bf16.mxu0 %v4524_v46  ;;  %v837_v1 = vrot.slane %v835_v55, 1  ;;  %v849_v55 = vrot.slane %v847_v26, 1 }
  0x52   : > { %3640 = vmatpush3.bf16.msra.mxu1 %v4006_v29  ;;  %1693 = vmatprep.mubr.bf16.mxu1 %v4280_v43  ;;  %v833_v29 = vshrl.u32 %v4511_v11, 16  ;;  %v840_v43 = vshll.u32 %v4521_v37, 16  ;;  %v854_v24 = vrot.slane %v852_v56, 1  ;;  %v4594_v56 = vld [vmem:[%s5267_s2 + $0x200] sm:$0xff]  }
  0x53   : > { %3641 = vmatprep.subr.bf16.mxu1 %v4011_v22 }
  0x54   : > { %v838_v20 = vor.u32 %v837_v1, %v833_v29  ;;  %v842_v21 = vrot.slane %v840_v43, 1  ;;  %v4017_v29 = vld [vmem:[%s5267_s2 + $0xa8] sm:$0xff]   ;;  %v4020_v1 = vld [vmem:[%s5267_s2 + $0xb0] sm:$0xff]   ;;  %v864_v43 = vshll.u32 %v4265_v36, 16  ;;  %v971_v36 = vrot.slane %v4472_v7, 1 }
  0x56   : > { %3642 = vmatpush3.bf16.msra.mxu1 %v4011_v22  ;;  %v4018_v22 = vld [vmem:[%s5267_s2 + $0x1c0] sm:$0xff]   ;;  %v4555_v54 = vsel %vm735_vm1, %v838_v20, %v842_v21  ;;  %v861_v20 = vrot.slane %v859_v30, 1  ;;  %v4029_v21 = vld [vmem:[%s5267_s2 + $0xb8] sm:$0xff]   ;;  %v866_v26 = vrot.slane %v864_v43, 1 }
  0x57   : > { %3643 = vmatprep.subr.bf16.mxu1 %v4014_v57  ;;  %3455 = vmatprep.subr.bf16.mxu0 %v4018_v22  ;;  %v857_v22 = vshrl.u32 %v4262_v35, 16 }
  0x58   : > { %1260 = vmatmul.mubr.bf16.gmra.mrb[20].mxu0 %v4489_v45 }
  0x59   : > { %1694 = vmatmul.mubr.bf16.gmra.mrb[20].mxu1 %v4240_v23  ;;  %1267 = vmatprep.mubr.bf16.mxu0 %v4533_v59  ;;  %v850_v23 = vor.u32 %v849_v55, %v845_v10  ;;  %v876_v55 = vshll.u32 %v4310_v53, 16 }
  0x5a   : > { %1701 = vmatprep.mubr.bf16.mxu1 %v4339_v3  ;;  %3644 = vmatpush3.bf16.msra.mxu1 %v4014_v57  ;;  %v4559_v57 = vsel %vm970_vm0, %v974_v19, %v975_v33  ;;  %v871_v19 = vshll.u32 %v4307_v52, 16  ;;  %v972_v33 = vrot.slane %v4479_v27, 1  ;;  %v883_v27 = vshll.u32 %v4316_v58, 16 }
  0x5b   : > { %3645 = vmatprep.subr.bf16.mxu1 %v4015_v2  ;;  %v878_v53 = vrot.slane %v876_v55, 1 }
  0x5c   : > { %v4588_v10 = vsel %vm970_vm0, %v971_v36, %v972_v33  ;;  %v885_v43 = vrot.slane %v883_v27, 1 }
  0x5e   : > { %3646 = vmatpush3.bf16.msra.mxu1 %v4015_v2  ;;  %v4574_v2 = vsel %vm735_vm1, %v850_v23, %v854_v24  ;;  %v873_v23 = vrot.slane %v871_v19, 1 }
  0x5f   : > { %3647 = vmatprep.subr.bf16.mxu1 %v4016_v32 }
  0x60   : > { %1268 = vmatmul.mubr.bf16.gmra.mrb[24].mxu0 %v4492_v49 }
  0x61   : > { %1702 = vmatmul.mubr.bf16.gmra.mrb[24].mxu1 %v4297_v47  ;;  %1275 = vmatprep.mubr.bf16.mxu0 %v4555_v54 }
  0x62   : > { %1709 = vmatprep.mubr.bf16.mxu1 %v4395_v34  ;;  %3648 = vmatpush3.bf16.msra.mxu1 %v4016_v32  ;;  %v862_v32 = vor.u32 %v861_v20, %v857_v22  ;;  %v888_v22 = vshll.u32 %v4322_v60, 16  ;;  %v900_v60 = vshll.u32 %v4364_v15, 16  ;;  %v912_v15 = vshll.u32 %v4377_v28, 16 }
  0x63   : > { %3649 = vmatprep.subr.bf16.mxu1 %v4017_v29  ;;  %v924_v28 = vshll.u32 %v4425_v50, 16  ;;  %v936_v50 = vshll.u32 %v4438_v61, 16  ;;  %v978_v61 = vrot.slane %v4300_v48, 1  ;;  %v4022_v48 = vld [vmem:[%s5267_s2 + $0x188] sm:$0xff]  }
  0x64   : > { %v4597_v7 = vsel %vm735_vm1, %v862_v32, %v866_v26  ;;  %v895_v26 = vshll.u32 %v4357_v9, 16  ;;  %v893_v32 = vshrl.u32 %v4357_v9, 16  ;;  %v902_v55 = vrot.slane %v900_v60, 1 }
  0x66   : > { %3650 = vmatpush3.bf16.msra.mxu1 %v4017_v29  ;;  %v869_v29 = vshrl.u32 %v4307_v52, 16  ;;  %v897_v19 = vrot.slane %v895_v26, 1 }
  0x67   : > { %3651 = vmatprep.subr.bf16.mxu1 %v4020_v1 }
  0x68   : > { %1276 = vmatmul.mubr.bf16.gmra.mrb[28].mxu0 %v4511_v11  ;;  %v874_v24 = vor.u32 %v873_v23, %v869_v29  ;;  %v898_v33 = vor.u32 %v897_v19, %v893_v32  ;;  %v907_v29 = vshll.u32 %v4367_v17, 16  ;;  %v926_v32 = vrot.slane %v924_v28, 1 }
  0x69   : > { %1710 = vmatmul.mubr.bf16.gmra.mrb[28].mxu1 %v4351_v6  ;;  %1283 = vmatprep.mubr.bf16.mxu0 %v4574_v2  ;;  %v931_v19 = vshll.u32 %v4428_v51, 16 }
  0x6a   : > { %1717 = vmatprep.mubr.bf16.mxu1 %v4454_v4  ;;  %3652 = vmatpush3.bf16.msra.mxu1 %v4020_v1  ;;  %v4607_v30 = vsel %vm735_vm1, %v874_v24, %v878_v53  ;;  %v881_v1 = vshrl.u32 %v4316_v58, 16  ;;  %v4627_v23 = vsel %vm735_vm1, %v898_v33, %v902_v55  ;;  %v905_v53 = vshrl.u32 %v4367_v17, 16 }
  0x6b   : > { %3653 = vmatprep.subr.bf16.mxu1 %v4029_v21  ;;  %v909_v27 = vrot.slane %v907_v29, 1  ;;  %v929_v33 = vshrl.u32 %v4428_v51, 16  ;;  %v933_v55 = vrot.slane %v931_v19, 1  ;;  %v989_v19 = vrot.slane %v4489_v45, 1 }
  0x6c   : > { %v886_v20 = vor.u32 %v885_v43, %v881_v1  ;;  %v914_v1 = vrot.slane %v912_v15, 1  ;;  %v919_v43 = vshll.u32 %v4418_v42, 16  ;;  %v980_v15 = vrot.slane %v4351_v6, 1 }
  0x6d   : > { %v910_v24 = vor.u32 %v909_v27, %v905_v53  ;;  %v934_v29 = vor.u32 %v933_v55, %v929_v33  ;;  %v938_v53 = vrot.slane %v936_v50, 1  ;;  %v990_v33 = vrot.slane %v4496_v13, 1  ;;  %v4027_v55 = vld [vmem:[%s5267_s2 + $0x1e0] sm:$0xff]  }
  0x6e   : > { %3654 = vmatpush3.bf16.msra.mxu1 %v4029_v21  ;;  %v890_v21 = vrot.slane %v888_v22, 1  ;;  %v993_v50 = vrot.slane %v4505_v16, 1  ;;  %v4028_v13 = vld [vmem:[%s5267_s2 + $0x1a0] sm:$0xff]   ;;  %v4031_v16 = vld [vmem:[%s5267_s2 + $0x1a8] sm:$0xff]  }
  0x6f   : > { %3687 = vmatprep.subr.bf16.mxu1 %v4594_v56  ;;  %v4637_v22 = vsel %vm735_vm1, %v910_v24, %v914_v1  ;;  %v4656_v27 = vsel %vm735_vm1, %v934_v29, %v938_v53  ;;  %v4723_v29 = vsel %vm970_vm0, %v989_v19, %v990_v33  ;;  %v4030_v53 = vld [vmem:[%s5267_s2 + $0x1e8] sm:$0xff]  }
  0x70   : > { %1284 = vmatmul.mubr.bf16.gmra.mrb[32].mxu0 %v4246_v25  ;;  %v4617_v36 = vsel %vm735_vm1, %v886_v20, %v890_v21  ;;  %v917_v20 = vshrl.u32 %v4418_v42, 16  ;;  %v921_v21 = vrot.slane %v919_v43, 1  ;;  %v984_v43 = vrot.slane %v4415_v41, 1  ;;  %v4024_v41 = vld [vmem:[%s5267_s2 + $0x190] sm:$0xff]  }
  0x71   : > { %1718 = vmatmul.mubr.bf16.gmra.mrb[32].mxu1 %v4412_v40  ;;  %1291 = vmatprep.mubr.bf16.mxu0 %v4597_v7 }
  0x72   : > { %1725 = vmatprep.mubr.bf16.mxu1 %v4501_v63  ;;  %v922_v26 = vor.u32 %v921_v21, %v917_v20  ;;  %v4023_v20 = vld [vmem:[%s5267_s2 + $0x1d0] sm:$0xff]   ;;  %v987_v21 = vrot.slane %v4469_v18, 1  ;;  %v4026_v18 = vld [vmem:[%s5267_s2 + $0x198] sm:$0xff]  }
  0x74   : > { %v4647_v60 = vsel %vm735_vm1, %v922_v26, %v926_v32  ;;  %v4025_v26 = vld [vmem:[%s5267_s2 + $0x1d8] sm:$0xff]  }
  0x78   : > { %1292 = vmatmul.mubr.bf16.gmra.mrb[36].mxu0 %v4262_v35 }
  0x79   : > { %1726 = vmatmul.mubr.bf16.gmra.mrb[36].mxu1 %v4466_v14  ;;  %1299 = vmatprep.mubr.bf16.mxu0 %v4607_v30 }
  0x7a   : > { %1733 = vmatprep.mubr.bf16.mxu1 %v4524_v46 }
  0x80   : > { %1300 = vmatmul.mubr.bf16.gmra.mrb[40].mxu0 %v4307_v52 }
  0x81   : > { %1734 = vmatmul.mubr.bf16.gmra.mrb[40].mxu1 %v4489_v45  ;;  %1307 = vmatprep.mubr.bf16.mxu0 %v4617_v36 }
  0x82   : > { %1741 = vmatprep.mubr.bf16.mxu1 %v4533_v59 }
  0x88   : > { %1308 = vmatmul.mubr.bf16.gmra.mrb[44].mxu0 %v4316_v58 }
  0x89   : > { %1742 = vmatmul.mubr.bf16.gmra.mrb[44].mxu1 %v4492_v49  ;;  %1315 = vmatprep.mubr.bf16.mxu0 %v4627_v23 }
  0x8a   : > { %1749 = vmatprep.mubr.bf16.mxu1 %v4555_v54 }
  0x90   : > { %1316 = vmatmul.mubr.bf16.gmra.mrb[48].mxu0 %v4357_v9 }
  0x91   : > { %1750 = vmatmul.mubr.bf16.gmra.mrb[48].mxu1 %v4511_v11  ;;  %1323 = vmatprep.mubr.bf16.mxu0 %v4637_v22 }
  0x92   : > { %1757 = vmatprep.mubr.bf16.mxu1 %v4574_v2 }
  0x98   : > { %1324 = vmatmul.mubr.bf16.gmra.mrb[52].mxu0 %v4367_v17 }
  0x99   : > { %1758 = vmatmul.mubr.bf16.gmra.mrb[52].mxu1 %v4246_v25  ;;  %1331 = vmatprep.mubr.bf16.mxu0 %v4647_v60  ;;  %v977_v25 = vrot.slane %v4297_v47, 1 }
  0x9a   : > { %1765 = vmatprep.mubr.bf16.mxu1 %v4597_v7 }
  0x9b   : > { %v4671_v24 = vsel %vm970_vm0, %v977_v25, %v978_v61  ;;  %v995_v61 = vrot.slane %v4511_v11, 1 }
  0xa0   : > { %1332 = vmatmul.mubr.bf16.gmra.mrb[56].mxu0 %v4418_v42 }
  0xa1   : > { %1766 = vmatmul.mubr.bf16.gmra.mrb[56].mxu1 %v4262_v35  ;;  %1339 = vmatprep.mubr.bf16.mxu0 %v4656_v27  ;;  %v981_v35 = vrot.slane %v4354_v8, 1  ;;  %v983_v8 = vrot.slane %v4412_v40, 1 }
  0xa2   : > { %1773 = vmatprep.mubr.bf16.mxu1 %v4607_v30 }
  0xa3   : > { %v4680_v1 = vsel %vm970_vm0, %v980_v15, %v981_v35  ;;  %v4697_v28 = vsel %vm970_vm0, %v983_v8, %v984_v43  ;;  %v996_v15 = vrot.slane %v4521_v37, 1  ;;  %v4032_v35 = vld [vmem:[%s5267_s2 + $0x1f0] sm:$0xff]   ;;  %v4034_v37 = vld [vmem:[%s5267_s2 + $0x1f8] sm:$0xff]  }
  0xa8   : > { %1340 = vmatmul.mubr.bf16.gmra.mrb[60].mxu0 %v4428_v51  ;;  %v4019_v51 = vld [vmem:[%s5267_s2 + $0x180] sm:$0xff]  }
  0xa9   : > { %1774 = vmatmul.mubr.bf16.gmra.mrb[60].mxu1 %v4307_v52  ;;  %3607 = vmatprep.mubr.bf16.mxu0 %v4559_v57  ;;  %v4021_v52 = vld [vmem:[%s5267_s2 + $0x1c8] sm:$0xff]  }
  0xaa   : > { %1781 = vmatprep.mubr.bf16.mxu1 %v4617_v36 }
  0xb0   : > { %3608 = vmatmul.mubr.bf16.vlgmr.msra.gmra.mrb[64].mxu0 %v4671_v24 }
  0xb1   : > { %1782 = vmatmul.mubr.bf16.gmra.mrb[64].mxu1 %v4316_v58  ;;  %3456 = vmatpush3.bf16.msra.mxu0 %v4019_v51  ;;  %v986_v58 = vrot.slane %v4466_v14, 1  ;;  %v4033_v51 = vld [vmem:[%s5267_s2 + $0x1b0] sm:$0xff]  }
  0xb2   : > { %3457 = vmatprep.subr.bf16.mxu0 %v4021_v52  ;;  %3611 = vmatprep.mubr.bf16.mxu0 %v4680_v1  ;;  %v4035_v52 = vld [vmem:[%s5267_s2 + $0x1b8] sm:$0xff]  }
  0xb3   : > { %1789 = vmatprep.mubr.bf16.mxu1 %v4627_v23  ;;  %v4706_v32 = vsel %vm970_vm0, %v986_v58, %v987_v21 }
  0xb5   : > { %3458 = vmatpush3.bf16.msra.mxu0 %v4022_v48  ;;  %v4037_v48 = vld [vmem:[%s5267_s2 + $0x208] sm:$0xff]  }
  0xb6   : > { %3459 = vmatprep.subr.bf16.mxu0 %v4023_v20 }
  0xb8   : > { %3612 = vmatmul.mubr.bf16.gmra.mrb[68].mxu0 %v4697_v28 }
  0xb9   : > { %1790 = vmatmul.mubr.bf16.gmra.mrb[68].mxu1 %v4357_v9  ;;  %3460 = vmatpush3.bf16.msra.mxu0 %v4024_v41  ;;  %v992_v9 = vrot.slane %v4492_v49, 1 }
  0xba   : > { %3461 = vmatprep.subr.bf16.mxu0 %v4025_v26  ;;  %3615 = vmatprep.mubr.bf16.mxu0 %v4706_v32 }
  0xbb   : > { %1797 = vmatprep.mubr.bf16.mxu1 %v4637_v22  ;;  %v4732_v25 = vsel %vm970_vm0, %v992_v9, %v993_v50 }
  0xbd   : > { %3462 = vmatpush3.bf16.msra.mxu0 %v4026_v18 }
  0xbe   : > { %3463 = vmatprep.subr.bf16.mxu0 %v4027_v55  ;;  %v4049_v55 = vld [vmem:[%s4227_s30 + $0x90] sm:$0xff]  }
  0xc0   : > { %3616 = vmatmul.mubr.bf16.gmra.mrb[72].mxu0 %v4723_v29 }
  0xc1   : > { %1798 = vmatmul.mubr.bf16.gmra.mrb[72].mxu1 %v4367_v17  ;;  %3464 = vmatpush3.bf16.msra.mxu0 %v4028_v13  ;;  %v4747_v17 = vsel %vm970_vm0, %v995_v61, %v996_v15 }
  0xc2   : > { %3465 = vmatprep.subr.bf16.mxu0 %v4030_v53  ;;  %3619 = vmatprep.mubr.bf16.mxu0 %v4732_v25 }
  0xc3   : > { %1805 = vmatprep.mubr.bf16.mxu1 %v4647_v60 }
  0xc5   : > { %3466 = vmatpush3.bf16.msra.mxu0 %v4031_v16 }
  0xc6   : > { %3467 = vmatprep.subr.bf16.mxu0 %v4032_v35 }
  0xc8   : > { %3620 = vmatmul.mubr.bf16.gmra.mrb[76].mxu0 %v4747_v17 }
  0xc9   : > { %1806 = vmatmul.mubr.bf16.gmra.mrb[76].mxu1 %v4418_v42  ;;  %3468 = vmatpush3.bf16.msra.mxu0 %v4033_v51  ;;  %v4039_v42 = vld [vmem:[%s5267_s2 + $0x218] sm:$0xff]  }
  0xca   : > { %3469 = vmatprep.subr.bf16.mxu0 %v4034_v37  ;;  %3655 = vmatprep.mubr.bf16.mxu1 %v4588_v10 }
  0xcb   : > { %2151 = vmatprep.mubr.bf16.mxu0 %v4339_v3  ;;  %v4038_v3 = vld [vmem:[%s5267_s2 + $0x210] sm:$0xff]  }
  0xcd   : > { %3470 = vmatpush3.bf16.msra.mxu0 %v4035_v52 }
  0xd0   : > { %2152 = vmatmul.mubr.bf16.vlgmr.msra.gmra.mrb[80].mxu0 %v4297_v47  ;;  %v4040_v47 = vld [vmem:[%s5267_s2 + $0x220] sm:$0xff]  }
  0xd1   : > { %3656 = vmatmul.mubr.bf16.vlgmr.msra.gmra.mrb[80].mxu1 %v4559_v57  ;;  %2159 = vmatprep.mubr.bf16.mxu0 %v4395_v34  ;;  %v4041_v34 = vld [vmem:[%s5267_s2 + $0x228] sm:$0xff]  }
  0xd2   : > { %3688 = vmatpush3.bf16.msra.mxu1 %v4594_v56  ;;  %3659 = vmatprep.mubr.bf16.mxu1 %v4671_v24  ;;  %v4046_v56 = vld [vmem:[%s4227_s30 + $0x6c] sm:$0xff]  }
  0xd3   : > { %3689 = vmatprep.subr.bf16.mxu1 %v4037_v48 }
  0xd6   : > { %3690 = vmatpush3.bf16.msra.mxu1 %v4037_v48 }
  0xd7   : > { %3691 = vmatprep.subr.bf16.mxu1 %v4038_v3 }
  0xd8   : > { %2160 = vmatmul.mubr.bf16.gmra.mrb[84].mxu0 %v4351_v6  ;;  %v4042_v6 = vld [vmem:[%s5267_s2 + $0x230] sm:$0xff]  }
  0xd9   : > { %3660 = vmatmul.mubr.bf16.gmra.mrb[84].mxu1 %v4680_v1  ;;  %2167 = vmatprep.mubr.bf16.mxu0 %v4454_v4  ;;  %v4043_v4 = vld [vmem:[%s5267_s2 + $0x238] sm:$0xff]  }
  0xda   : > { %3663 = vmatprep.mubr.bf16.mxu1 %v4697_v28  ;;  %3692 = vmatpush3.bf16.msra.mxu1 %v4038_v3 }
  0xdb   : > { %3693 = vmatprep.subr.bf16.mxu1 %v4039_v42 }
  0xde   : > { %3694 = vmatpush3.bf16.msra.mxu1 %v4039_v42 }
  0xdf   : > { %3695 = vmatprep.subr.bf16.mxu1 %v4040_v47 }
  0xe0   : > { %2168 = vmatmul.mubr.bf16.gmra.mrb[88].mxu0 %v4412_v40 }
  0xe1   : > { %3664 = vmatmul.mubr.bf16.gmra.mrb[88].mxu1 %v4706_v32  ;;  %2175 = vmatprep.mubr.bf16.mxu0 %v4501_v63 }
  0xe2   : > { %3667 = vmatprep.mubr.bf16.mxu1 %v4723_v29  ;;  %3696 = vmatpush3.bf16.msra.mxu1 %v4040_v47 }
  0xe3   : > { %3697 = vmatprep.subr.bf16.mxu1 %v4041_v34 }
  0xe6   : > { %3698 = vmatpush3.bf16.msra.mxu1 %v4041_v34  ;;  %v4861_v34 = vld [vmem:[%s4407_s26 + $0xc] sm:$0xff]  }
  0xe7   : > { %3699 = vmatprep.subr.bf16.mxu1 %v4042_v6 }
  0xe8   : > { %2176 = vmatmul.mubr.bf16.gmra.mrb[92].mxu0 %v4466_v14 }
  0xe9   : > { %3668 = vmatmul.mubr.bf16.gmra.mrb[92].mxu1 %v4732_v25  ;;  %2183 = vmatprep.mubr.bf16.mxu0 %v4524_v46 }
  0xea   : > { %3671 = vmatprep.mubr.bf16.mxu1 %v4747_v17  ;;  %3700 = vmatpush3.bf16.msra.mxu1 %v4042_v6 }
  0xeb   : > { %3701 = vmatprep.subr.bf16.mxu1 %v4043_v4 }
  0xee   : > { %3702 = vmatpush3.bf16.msra.mxu1 %v4043_v4  ;;  %v4045_v4 = vld [vmem:[%s4407_s26 + $0x14] ss:$0 sps:$4 sm:$0xff]  }
  0xf0   : > { %2184 = vmatmul.mubr.bf16.gmra.mrb[96].mxu0 %v4489_v45 }
  0xf1   : > { %3672 = vmatmul.mubr.bf16.gmra.mrb[0].mxu1 %v4271_v39  ;;  %2191 = vmatprep.mubr.bf16.mxu0 %v4533_v59 }
  0xf2   : > { %3675 = vmatprep.mubr.bf16.mxu1 %v4285_v44 }
  0xf8   : > { %2192 = vmatmul.mubr.bf16.gmra.mrb[100].mxu0 %v4492_v49 }
  0xf9   : > { %3676 = vmatmul.mubr.bf16.gmra.mrb[4].mxu1 %v4326_v62  ;;  %2199 = vmatprep.mubr.bf16.mxu0 %v4555_v54 }
  0xfa   : > { %3679 = vmatprep.mubr.bf16.mxu1 %v4346_v5 }
 0x100   : > { %2200 = vmatmul.mubr.bf16.gmra.mrb[104].mxu0 %v4511_v11 }
 0x101   : > { %3680 = vmatmul.mubr.bf16.gmra.mrb[8].mxu1 %v4381_v31  ;;  %2207 = vmatprep.mubr.bf16.mxu0 %v4574_v2  ;;  %v4047_v2 = vld [vmem:[%s4227_s30 + $0x78] sm:$0xff]  }
 0x102   : > { %3683 = vmatprep.mubr.bf16.mxu1 %v4402_v38 }
 0x103   : > { %v3199_v40 = vpop.f32.mrb[0].mxu0 }
 0x104   : > { %v3200_v14 = vpop.f32.mrb[1].mxu0 }
 0x105   : > { %v4808_v63 = vadd.f32 %v3200_v14, %v3199_v40  ;;  %v3202_v45 = vpop.f32.mrb[2].mxu0  ;;  %v943_v40 = vshll.u32 %v4861_v34, 16 }
 0x106   : > { %v3203_v46 = vpop.f32.mrb[3].mxu0 }
 0x107   : > { %v4810_v57 = vadd.f32 %v3203_v46, %v3202_v45 }
 0x108   : > { %2208 = vmatmul.mubr.bf16.gmra.mrb[108].mxu0 %v4046_v56 }
 0x109   : > { %3684 = vmatmul.mubr.bf16.gmra.mrb[12].mxu1 %v4442_v0  ;;  %2215 = vmatprep.mubr.bf16.mxu0 %v4597_v7  ;;  %v4048_v7 = vld [vmem:[%s4227_s30 + $0x84] sm:$0xff]  }
 0x10a   : > { %3703 = vmatprep.mubr.bf16.mxu1 %v4671_v24 }
 0x10b   : > { %v3205_v49 = vpop.f32.mrb[4].mxu0 }
 0x10c   : > { %v3206_v59 = vpop.f32.mrb[5].mxu0 }
 0x10d   : > { %v4816_v54 = vadd.f32 %v3206_v59, %v3205_v49  ;;  %v3208_v10 = vpop.f32.mrb[6].mxu0 }
 0x10e   : > { %v3209_v8 = vpop.f32.mrb[7].mxu0 }
 0x10f   : > { %v4820_v43 = vadd.f32 %v3209_v8, %v3208_v10 }
 0x110   : > { %2216 = vmatmul.mubr.bf16.gmra.mrb[112].mxu0 %v4047_v2  ;;  %v948_v2 = vshll.u32 %v4045_v4, 16 }
 0x111   : > { %3704 = vmatmul.mubr.bf16.vlgmr.msra.gmra.mrb[80].mxu1 %v4680_v1  ;;  %2223 = vmatprep.mubr.bf16.mxu0 %v4607_v30 }
 0x112   : > { %3707 = vmatprep.mubr.bf16.mxu1 %v4697_v28 }
 0x113   : > { %v3211_v11 = vpop.f32.mrb[8].mxu0 }
 0x114   : > { %v3212_v20 = vpop.f32.mrb[9].mxu0 }
 0x115   : > { %v4826_v58 = vadd.f32 %v3212_v20, %v3211_v11  ;;  %v3214_v21 = vpop.f32.mrb[10].mxu0 }
 0x116   : > { %v3215_v41 = vpop.f32.mrb[11].mxu0 }
 0x117   : > { %v4830_v26 = vadd.f32 %v3215_v41, %v3214_v21  ;;  %v4052_v41 = vld [vmem:[%s4227_s30 + $0xb4] sm:$0xff]  }
 0x118   : > { %2224 = vmatmul.mubr.bf16.gmra.mrb[116].mxu0 %v4048_v7 }
 0x119   : > { %3708 = vmatmul.mubr.bf16.gmra.mrb[84].mxu1 %v4706_v32  ;;  %2231 = vmatprep.mubr.bf16.mxu0 %v4617_v36 }
 0x11a   : > { %3711 = vmatprep.mubr.bf16.mxu1 %v4723_v29 }
 0x11b   : > { %v3217_v24 = vpop.f32.mrb[12].mxu0 }
 0x11c   : > { %v3218_v18 = vpop.f32.mrb[13].mxu0 }
 0x11d   : > { %v4836_v1 = vadd.f32 %v3218_v18, %v3217_v24  ;;  %v3220_v19 = vpop.f32.mrb[14].mxu0  ;;  %v950_v24 = vrot.slane %v948_v2, 1 }
 0x11e   : > { %v3221_v33 = vpop.f32.mrb[15].mxu0 }
 0x11f   : > { %v4838_v30 = vadd.f32 %v3221_v33, %v3220_v19 }
 0x120   : > { %2232 = vmatmul.mubr.bf16.gmra.mrb[120].mxu0 %v4049_v55 }
 0x121   : > { %3712 = vmatmul.mubr.bf16.gmra.mrb[88].mxu1 %v4732_v25  ;;  %2239 = vmatprep.mubr.bf16.mxu0 %v4627_v23  ;;  %v4050_v23 = vld [vmem:[%s4227_s30 + $0x9c] sm:$0xff]  }
 0x122   : > { %3715 = vmatprep.mubr.bf16.mxu1 %v4747_v17 }
 0x123   : > { %v3223_v28 = vpop.f32.mrb[16].mxu0 }
 0x124   : > { %v3224_v36 = vpop.f32.mrb[17].mxu0  ;;  %v3335_v32 = vpop.f32.mrb[16].mxu1 }
 0x125   : > { %v4844_v9 = vadd.f32 %v3224_v36, %v3223_v28  ;;  %v3226_v50 = vpop.f32.mrb[18].mxu0  ;;  %v3336_v29 = vpop.f32.mrb[17].mxu1 }
 0x126   : > { %v3227_v13 = vpop.f32.mrb[19].mxu0  ;;  %v4846_v53 = vadd.f32 %v3336_v29, %v3335_v32  ;;  %v3338_v16 = vpop.f32.mrb[18].mxu1 }
 0x127   : > { %v4848_v61 = vadd.f32 %v3227_v13, %v3226_v50  ;;  %v3339_v15 = vpop.f32.mrb[19].mxu1 }
 0x128   : > { %v4850_v25 = vadd.f32 %v3339_v15, %v3338_v16  ;;  %2240 = vmatmul.mubr.bf16.gmra.mrb[124].mxu0 %v4050_v23  ;;  %v4053_v16 = vld [vmem:[%s4407_s26] sm:$0xff]   ;;  %v1022_v15 = vrot.slane %v4861_v34, 1  ;;  %v1023_v23 = vrot.slane %v4045_v4, 1 }
 0x129   : > { %3716 = vmatmul.mubr.bf16.gmra.mrb[92].mxu1 %v4271_v39  ;;  %2247 = vmatprep.mubr.bf16.mxu0 %v4637_v22 }
 0x12a   : > { %3719 = vmatprep.mubr.bf16.mxu1 %v4285_v44  ;;  %v4051_v44 = vld [vmem:[%s4227_s30 + $0xa8] sm:$0xff]  }
 0x12b   : > { %v3229_v35 = vpop.f32.mrb[20].mxu0 }
 0x12c   : > { %v3230_v17 = vpop.f32.mrb[21].mxu0  ;;  %v3341_v51 = vpop.f32.mrb[20].mxu1 }
 0x12d   : > { %v4856_v37 = vadd.f32 %v3230_v17, %v3229_v35  ;;  %v3232_v52 = vpop.f32.mrb[22].mxu0  ;;  %v3342_v48 = vpop.f32.mrb[21].mxu1 }
 0x12e   : > { %v3233_v3 = vpop.f32.mrb[23].mxu0  ;;  %v4858_v42 = vadd.f32 %v3342_v48, %v3341_v51  ;;  %v3344_v47 = vpop.f32.mrb[22].mxu1 }
 0x12f   : > { %v4863_v39 = vadd.f32 %v3233_v3, %v3232_v52  ;;  %v3345_v6 = vpop.f32.mrb[23].mxu1 }
 0x130   : > { %v4865_v22 = vadd.f32 %v3345_v6, %v3344_v47  ;;  %2248 = vmatmul.mubr.bf16.gmra.mrb[128].mxu0 %v4051_v44 }
 0x131   : > { %3720 = vmatmul.mubr.bf16.gmra.mrb[0].mxu1 %v4326_v62  ;;  %2255 = vmatprep.mubr.bf16.mxu0 %v4647_v60  ;;  %v941_v62 = vshrl.u32 %v4861_v34, 16  ;;  %v945_v60 = vrot.slane %v943_v40, 1  ;;  %v1024_v40 = vsel %vm970_vm0, %v1022_v15, %v1023_v23 }
 0x132   : > { %3723 = vmatprep.mubr.bf16.mxu1 %v4346_v5 }
 0x133   : > { %v3235_v14 = vpop.f32.mrb[24].mxu0  ;;  %v946_v7 = vor.u32 %v945_v60, %v941_v62 }
 0x134   : > { %v3236_v45 = vpop.f32.mrb[25].mxu0  ;;  %v3347_v46 = vpop.f32.mrb[24].mxu1 }
 0x135   : > { %v4873_v49 = vadd.f32 %v3236_v45, %v3235_v14  ;;  %v3238_v59 = vpop.f32.mrb[26].mxu0  ;;  %v3348_v10 = vpop.f32.mrb[25].mxu1 }
 0x136   : > { %v3239_v56 = vpop.f32.mrb[27].mxu0  ;;  %v4875_v8 = vadd.f32 %v3348_v10, %v3347_v46  ;;  %v3350_v11 = vpop.f32.mrb[26].mxu1 }
 0x137   : > { %v4878_v5 = vadd.f32 %v3239_v56, %v3238_v59  ;;  %v3351_v20 = vpop.f32.mrb[27].mxu1 }
 0x138   : > { %v4880_v21 = vadd.f32 %v3351_v20, %v3350_v11  ;;  %2256 = vmatmul.mubr.bf16.gmra.mrb[132].mxu0 %v4052_v41 }
 0x139   : > { %3724 = vmatmul.mubr.bf16.gmra.mrb[4].mxu1 %v4381_v31  ;;  %2263 = vmatprep.mubr.bf16.mxu0 %v4656_v27  ;;  %v951_v31 = vsel %vm735_vm1, %v946_v7, %v950_v24 }
 0x13a   : > { %3727 = vmatprep.mubr.bf16.mxu1 %v4402_v38 }
 0x13b   : > { %v3241_v18 = vpop.f32.mrb[28].mxu0 }
 0x13c   : > { %v3242_v19 = vpop.f32.mrb[29].mxu0  ;;  %v3353_v33 = vpop.f32.mrb[28].mxu1 }
 0x13d   : > { %v4886_v55 = vadd.f32 %v3242_v19, %v3241_v18  ;;  %v3244_v28 = vpop.f32.mrb[30].mxu0  ;;  %v3354_v36 = vpop.f32.mrb[29].mxu1 }
 0x13e   : > { %v3245_v32 = vpop.f32.mrb[31].mxu0  ;;  %v4888_v50 = vadd.f32 %v3354_v36, %v3353_v33  ;;  %v3356_v29 = vpop.f32.mrb[30].mxu1 }
 0x13f   : > { %v4891_v13 = vadd.f32 %v3245_v32, %v3244_v28  ;;  %v3357_v27 = vpop.f32.mrb[31].mxu1 }
 0x140   : > { %v4893_v38 = vadd.f32 %v3357_v27, %v3356_v29  ;;  %2264 = vmatmul.mubr.bf16.gmra.mrb[136].mxu0 %v4053_v16 }
 0x141   : > { %3728 = vmatmul.mubr.bf16.gmra.mrb[8].mxu1 %v4442_v0  ;;  %2271 = vmatprep.mubr.bf16.mxu0 %v951_v31 }
 0x142   : > { %3731 = vmatprep.mubr.bf16.mxu1 %v4461_v12 }
 0x143   : > { %v3247_v35 = vpop.f32.mrb[32].mxu0 }
 0x144   : > { %v3248_v17 = vpop.f32.mrb[33].mxu0  ;;  %v3359_v51 = vpop.f32.mrb[32].mxu1 }
 0x145   : > { %v3249_v52 = vadd.f32 %v3248_v17, %v3247_v35  ;;  %v3250_v48 = vpop.f32.mrb[34].mxu0  ;;  %v3360_v3 = vpop.f32.mrb[33].mxu1 }
 0x146   : > { %v3251_v47 = vpop.f32.mrb[35].mxu0  ;;  %v4899_v6 = vadd.f32 %v3360_v3, %v3359_v51  ;;  %v3362_v44 = vpop.f32.mrb[34].mxu1 }
 0x147   : > { %v3252_v14 = vadd.f32 %v3251_v47, %v3250_v48  ;;  %v3363_v0 = vpop.f32.mrb[35].mxu1 }
 0x148   : > { %v4902_v45 = vadd.f32 %v3363_v0, %v3362_v44  ;;  %2272 = vmatmul.mubr.bf16.gmra.mrb[140].mxu0 %v4861_v34 }
 0x149   : > { %3732 = vmatmul.mubr.bf16.gmra.mrb[12].mxu1 %v1024_v40 }
 0x14b   : > { %v3253_v12 = vpop.f32.mrb[36].mxu0 }
 0x14c   : > { %v3254_v4 = vpop.f32.mrb[37].mxu0  ;;  %v3365_v46 = vpop.f32.mrb[36].mxu1 }
 0x14d   : > { %v3255_v59 = vadd.f32 %v3254_v4, %v3253_v12  ;;  %v3256_v10 = vpop.f32.mrb[38].mxu0  ;;  %v3366_v56 = vpop.f32.mrb[37].mxu1 }
 0x14e   : > { %v3257_v11 = vpop.f32.mrb[39].mxu0  ;;  %v4905_v62 = vadd.f32 %v3366_v56, %v3365_v46  ;;  %v3368_v60 = vpop.f32.mrb[38].mxu1 }
 0x14f   : > { %v3258_v2 = vadd.f32 %v3257_v11, %v3256_v10  ;;  %v3369_v20 = vpop.f32.mrb[39].mxu1 }
 0x150   : > { %v4907_v41 = vadd.f32 %v3369_v20, %v3368_v60 }
 0x153   : > { %v3259_v7 = vpop.f32.mrb[40].mxu0 }
 0x154   : > { %v3260_v24 = vpop.f32.mrb[41].mxu0  ;;  %v3371_v18 = vpop.f32.mrb[40].mxu1 }
 0x155   : > { %v3261_v19 = vadd.f32 %v3260_v24, %v3259_v7  ;;  %v3262_v34 = vpop.f32.mrb[42].mxu0  ;;  %v3372_v33 = vpop.f32.mrb[41].mxu1 }
 0x156   : > { %v3263_v28 = vpop.f32.mrb[43].mxu0  ;;  %v4909_v36 = vadd.f32 %v3372_v33, %v3371_v18  ;;  %v3374_v32 = vpop.f32.mrb[42].mxu1 }
 0x157   : > { %v3264_v29 = vadd.f32 %v3263_v28, %v3262_v34  ;;  %v3375_v31 = vpop.f32.mrb[43].mxu1 }
 0x158   : > { %v4911_v27 = vadd.f32 %v3375_v31, %v3374_v32 }
 0x15b   : > { %v3265_v16 = vpop.f32.mrb[44].mxu0 }
 0x15c   : > { %v3266_v15 = vpop.f32.mrb[45].mxu0  ;;  %v3377_v23 = vpop.f32.mrb[44].mxu1 }
 0x15d   : > { %v3267_v35 = vadd.f32 %v3266_v15, %v3265_v16  ;;  %v3268_v17 = vpop.f32.mrb[46].mxu0  ;;  %v3378_v51 = vpop.f32.mrb[45].mxu1 }
 0x15e   : > { %v3269_v48 = vpop.f32.mrb[47].mxu0  ;;  %v4913_v3 = vadd.f32 %v3378_v51, %v3377_v23  ;;  %v3380_v47 = vpop.f32.mrb[46].mxu1 }
 0x15f   : > { %v3270_v44 = vadd.f32 %v3269_v48, %v3268_v17  ;;  %v3381_v40 = vpop.f32.mrb[47].mxu1 }
 0x160   : > { %v4915_v0 = vadd.f32 %v3381_v40, %v3380_v47 }
 0x163   : > { %v3271_v12 = vpop.f32.mrb[48].mxu0 }
 0x164   : > { %v3383_v4 = vpop.f32.mrb[48].mxu1  ;;  %v3272_v46 = vpop.f32.mrb[49].mxu0 }
 0x165   : > { %v4917_v10 = vadd.f32 %v3272_v46, %v3271_v12  ;;  %v3384_v56 = vpop.f32.mrb[49].mxu1  ;;  %v3274_v11 = vpop.f32.mrb[50].mxu0 }
 0x166   : > { %v3385_v60 = vadd.f32 %v3384_v56, %v3383_v4  ;;  %v3386_v20 = vpop.f32.mrb[50].mxu1  ;;  %v3275_v7 = vpop.f32.mrb[51].mxu0 }
 0x167   : > { %v4919_v24 = vadd.f32 %v3275_v7, %v3274_v11  ;;  %v3387_v18 = vpop.f32.mrb[51].mxu1 }
 0x168   : > { %v4921_v34 = vadd.f32 %v3385_v60, %v3249_v52  ;;  %v3388_v33 = vadd.f32 %v3387_v18, %v3386_v20 }
 0x16a   : > { %v4923_v28 = vadd.f32 %v3388_v33, %v3252_v14 }
 0x16b   : > { %v3277_v32 = vpop.f32.mrb[52].mxu0 }
 0x16c   : > { %v3389_v31 = vpop.f32.mrb[52].mxu1  ;;  %v3278_v16 = vpop.f32.mrb[53].mxu0 }
 0x16d   : > { %v4925_v15 = vadd.f32 %v3278_v16, %v3277_v32  ;;  %v3390_v23 = vpop.f32.mrb[53].mxu1  ;;  %v3280_v17 = vpop.f32.mrb[54].mxu0 }
 0x16e   : > { %v3391_v51 = vadd.f32 %v3390_v23, %v3389_v31  ;;  %v3392_v48 = vpop.f32.mrb[54].mxu1  ;;  %v3281_v47 = vpop.f32.mrb[55].mxu0 }
 0x16f   : > { %v4927_v40 = vadd.f32 %v3281_v47, %v3280_v17  ;;  %v3393_v12 = vpop.f32.mrb[55].mxu1 }
 0x170   : > { %v4929_v4 = vadd.f32 %v3391_v51, %v3255_v59  ;;  %v3394_v52 = vadd.f32 %v3393_v12, %v3392_v48 }
 0x172   : > { %v4931_v46 = vadd.f32 %v3394_v52, %v3258_v2 }
 0x173   : > { %v3283_v14 = vpop.f32.mrb[56].mxu0 }
 0x174   : > { %v3395_v56 = vpop.f32.mrb[56].mxu1  ;;  %v3284_v11 = vpop.f32.mrb[57].mxu0 }
 0x175   : > { %v4933_v60 = vadd.f32 %v3284_v11, %v3283_v14  ;;  %v3396_v20 = vpop.f32.mrb[57].mxu1  ;;  %v3286_v7 = vpop.f32.mrb[58].mxu0 }
 0x176   : > { %v3397_v18 = vadd.f32 %v3396_v20, %v3395_v56  ;;  %v3398_v33 = vpop.f32.mrb[58].mxu1  ;;  %v3287_v32 = vpop.f32.mrb[59].mxu0 }
 0x177   : > { %v4935_v31 = vadd.f32 %v3287_v32, %v3286_v7  ;;  %v3399_v16 = vpop.f32.mrb[59].mxu1 }
 0x178   : > { %v4937_v23 = vadd.f32 %v3397_v18, %v3261_v19  ;;  %v3400_v59 = vadd.f32 %v3399_v16, %v3398_v33 }
 0x17a   : > { %v4939_v17 = vadd.f32 %v3400_v59, %v3264_v29 }
 0x17b   : > { %v3289_v2 = vpop.f32.mrb[60].mxu0 }
 0x17c   : > { %5272 = vst [vmem:[#allocation2_spill] sm:$0xff] %v4939_v17  ;;  %v3401_v51 = vpop.f32.mrb[60].mxu1  ;;  %v3290_v48 = vpop.f32.mrb[61].mxu0 }
 0x17d   : > { %v4941_v47 = vadd.f32 %v3290_v48, %v3289_v2  ;;  %v3402_v12 = vpop.f32.mrb[61].mxu1  ;;  %v3292_v52 = vpop.f32.mrb[62].mxu0 }
 0x17e   : > { %v3403_v14 = vadd.f32 %v3402_v12, %v3401_v51  ;;  %v3404_v11 = vpop.f32.mrb[62].mxu1  ;;  %v3293_v56 = vpop.f32.mrb[63].mxu0 }
 0x17f   : > { %v4943_v20 = vadd.f32 %v3293_v56, %v3292_v52  ;;  %v3405_v7 = vpop.f32.mrb[63].mxu1 }
 0x180   : > { %v4945_v32 = vadd.f32 %v3403_v14, %v3267_v35  ;;  %v3406_v19 = vadd.f32 %v3405_v7, %v3404_v11 }
 0x182   : > { %v4947_v18 = vadd.f32 %v3406_v19, %v3270_v44 }
 0x183   : > { %v3609_v29 = vpop.f32.mrb[64].mxu0 }
 0x184   : > { %v1391_v33 = vadd.f32 %v3609_v29, %v4816_v54  ;;  %v3407_v16 = vpop.f32.mrb[64].mxu1  ;;  %v1382_v59 = vpop.f32.mrb[65].mxu0 }
 0x185   : > { %v1383_v2 = vadd.f32 %v4808_v63, %v1382_v59  ;;  %v3408_v48 = vpop.f32.mrb[65].mxu1  ;;  %v3610_v17 = vpop.f32.mrb[66].mxu0 }
 0x186   : > { %v4952_v51 = vadd.f32 %v4858_v42, %v1391_v33  ;;  %v3409_v12 = vadd.f32 %v3408_v48, %v3407_v16  ;;  %v1394_v52 = vadd.f32 %v3610_v17, %v4820_v43  ;;  %v3410_v35 = vpop.f32.mrb[66].mxu1  ;;  %v1385_v14 = vpop.f32.mrb[67].mxu0 }
 0x187   : > { %v4956_v44 = vadd.f32 %v4846_v53, %v1383_v2  ;;  %v1386_v11 = vadd.f32 %v4810_v57, %v1385_v14  ;;  %v3411_v54 = vpop.f32.mrb[67].mxu1 }
 0x188   : > { %v4960_v56 = vadd.f32 %v3409_v12, %v4917_v10  ;;  %v4963_v63 = vadd.f32 %v4865_v22, %v1394_v52  ;;  %v3412_v7 = vadd.f32 %v3411_v54, %v3410_v35 }
 0x189   : > { %v4966_v42 = vadd.f32 %v4850_v25, %v1386_v11 }
 0x18a   : > { %v4969_v43 = vadd.f32 %v3412_v7, %v4919_v24 }
 0x18b   : > { %v3613_v17 = vpop.f32.mrb[68].mxu0 }
 0x18c   : > { %v1407_v53 = vadd.f32 %v3613_v17, %v4836_v1  ;;  %v3413_v19 = vpop.f32.mrb[68].mxu1  ;;  %v1398_v29 = vpop.f32.mrb[69].mxu0 }
 0x18d   : > { %v1399_v57 = vadd.f32 %v4826_v58, %v1398_v29  ;;  %v3414_v33 = vpop.f32.mrb[69].mxu1  ;;  %v3614_v10 = vpop.f32.mrb[70].mxu0 }
 0x18e   : > { %v4974_v16 = vadd.f32 %v4888_v50, %v1407_v53  ;;  %v3415_v22 = vadd.f32 %v3414_v33, %v3413_v19  ;;  %v1410_v59 = vadd.f32 %v3614_v10, %v4838_v30  ;;  %v3416_v25 = vpop.f32.mrb[70].mxu1  ;;  %v1401_v2 = vpop.f32.mrb[71].mxu0 }
 0x18f   : > { %v4978_v24 = vadd.f32 %v4875_v8, %v1399_v57  ;;  %v1402_v48 = vadd.f32 %v4830_v26, %v1401_v2  ;;  %v3417_v1 = vpop.f32.mrb[71].mxu1 }
 0x190   : > { %v4982_v12 = vadd.f32 %v3415_v22, %v4925_v15  ;;  %v4985_v58 = vadd.f32 %v4893_v38, %v1410_v59  ;;  %v3418_v52 = vadd.f32 %v3417_v1, %v3416_v25 }
 0x191   : > { %v4988_v50 = vadd.f32 %v4880_v21, %v1402_v48 }
 0x192   : > { %v4991_v30 = vadd.f32 %v3418_v52, %v4927_v40 }
 0x193   : > { %v3617_v35 = vpop.f32.mrb[72].mxu0 }
 0x194   : > { %v1423_v8 = vadd.f32 %v3617_v35, %v4856_v37  ;;  %v3419_v14 = vpop.f32.mrb[72].mxu1  ;;  %v1414_v11 = vpop.f32.mrb[73].mxu0 }
 0x195   : > { %v1415_v26 = vadd.f32 %v4844_v9, %v1414_v11  ;;  %v3420_v54 = vpop.f32.mrb[73].mxu1  ;;  %v3618_v15 = vpop.f32.mrb[74].mxu0 }
 0x196   : > { %v4996_v7 = vadd.f32 %v4905_v62, %v1423_v8  ;;  %v3421_v38 = vadd.f32 %v3420_v54, %v3419_v14  ;;  %v1426_v17 = vadd.f32 %v3618_v15, %v4863_v39  ;;  %v3422_v21 = vpop.f32.mrb[74].mxu1  ;;  %v1417_v53 = vpop.f32.mrb[75].mxu0 }
 0x197   : > { %v5000_v40 = vadd.f32 %v4899_v6, %v1415_v26  ;;  %v1418_v19 = vadd.f32 %v4848_v61, %v1417_v53  ;;  %v3423_v37 = vpop.f32.mrb[75].mxu1 }
 0x198   : > { %v5004_v29 = vadd.f32 %v3421_v38, %v4933_v60  ;;  %v5007_v9 = vadd.f32 %v4907_v41, %v1426_v17  ;;  %v3424_v57 = vadd.f32 %v3423_v37, %v3422_v21 }
 0x199   : > { %v1723_v62 = vadd.f32 %v4902_v45, %v1418_v19 }
 0x19a   : > { %v5011_v33 = vadd.f32 %v3424_v57, %v4935_v31 }
 0x19b   : > { %v3621_v39 = vpop.f32.mrb[76].mxu0 }
 0x19c   : > { %v1439_v10 = vadd.f32 %v3621_v39, %v4886_v55  ;;  %v3425_v6 = vpop.f32.mrb[76].mxu1  ;;  %v1430_v22 = vpop.f32.mrb[77].mxu0 }
 0x19d   : > { %v1431_v61 = vadd.f32 %v4873_v49, %v1430_v22  ;;  %v3426_v59 = vpop.f32.mrb[77].mxu1  ;;  %v3622_v25 = vpop.f32.mrb[78].mxu0 }
 0x19e   : > { %v5016_v60 = vadd.f32 %v4913_v3, %v1439_v10  ;;  %v3427_v41 = vadd.f32 %v3426_v59, %v3425_v6  ;;  %v1442_v2 = vadd.f32 %v3622_v25, %v4891_v13  ;;  %v3428_v48 = vpop.f32.mrb[78].mxu1  ;;  %v1433_v45 = vpop.f32.mrb[79].mxu0 }
 0x19f   : > { %v1736_v31 = vadd.f32 %v4909_v36, %v1431_v61  ;;  %v1434_v1 = vadd.f32 %v4878_v5, %v1433_v45  ;;  %v3429_v52 = vpop.f32.mrb[79].mxu1 }
 0x1a0   : > { %v5022_v55 = vadd.f32 %v3427_v41, %v4941_v47  ;;  %v5025_v49 = vadd.f32 %v4915_v0, %v1442_v2  ;;  %v3430_v35 = vadd.f32 %v3429_v52, %v3428_v48 }
 0x1a1   : > { %v1739_v3 = vadd.f32 %v4911_v27, %v1434_v1 }
 0x1a2   : > { %v5029_v8 = vadd.f32 %v3430_v35, %v4943_v20 }
 0x1a3   : > { %v3471_v13 = vpop.f32.mrb[80].mxu0 }
 0x1a4   : > { %v3472_v14 = vpop.f32.mrb[81].mxu0 }
 0x1a5   : > { %v3473_v11 = vadd.f32 %v3472_v14, %v3471_v13  ;;  %v3474_v26 = vpop.f32.mrb[82].mxu0 }
 0x1a6   : > { %v3475_v36 = vpop.f32.mrb[83].mxu0 }
 0x1a7   : > { %v3476_v54 = vadd.f32 %v3475_v36, %v3474_v26  ;;  %v5032_v5 = vadd.f32 %v3473_v11, %v4956_v44 }
 0x1a9   : > { %v5035_v47 = vadd.f32 %v3476_v54, %v4966_v42 }
 0x1ab   : > { %v3477_v0 = vpop.f32.mrb[84].mxu0 }
 0x1ac   : > { %v3478_v15 = vpop.f32.mrb[85].mxu0 }
 0x1ad   : > { %v3479_v38 = vadd.f32 %v3478_v15, %v3477_v0  ;;  %v3480_v17 = vpop.f32.mrb[86].mxu0 }
 0x1ae   : > { %v3481_v27 = vpop.f32.mrb[87].mxu0 }
 0x1af   : > { %v3482_v21 = vadd.f32 %v3481_v27, %v3480_v17  ;;  %v3753_v20 = vadd.f32 %v3479_v38, %v4952_v51 }
 0x1b1   : > { %v3761_v53 = vadd.f32 %v3482_v21, %v4963_v63 }
 0x1b3   : > { %v3483_v19 = vpop.f32.mrb[88].mxu0 }
 0x1b4   : > { %v3484_v37 = vpop.f32.mrb[89].mxu0 }
 0x1b5   : > { %v3485_v57 = vadd.f32 %v3484_v37, %v3483_v19  ;;  %v3486_v39 = vpop.f32.mrb[90].mxu0 }
 0x1b6   : > { %v3487_v10 = vpop.f32.mrb[91].mxu0 }
 0x1b7   : > { %v3488_v44 = vadd.f32 %v3487_v10, %v3486_v39  ;;  %v5040_v6 = vadd.f32 %v3485_v57, %v4978_v24 }
 0x1b9   : > { %v5043_v42 = vadd.f32 %v3488_v44, %v4988_v50 }
 0x1bb   : > { %v3489_v22 = vpop.f32.mrb[92].mxu0 }
 0x1bc   : > { %v3490_v61 = vpop.f32.mrb[93].mxu0 }
 0x1bd   : > { %v3491_v59 = vadd.f32 %v3490_v61, %v3489_v22  ;;  %v3492_v25 = vpop.f32.mrb[94].mxu0 }
 0x1be   : > { %v3493_v41 = vpop.f32.mrb[95].mxu0 }
 0x1bf   : > { %v3494_v51 = vadd.f32 %v3493_v41, %v3492_v25  ;;  %v5046_v63 = vadd.f32 %v3491_v59, %v4974_v16 }
 0x1c1   : > { %v5049_v2 = vadd.f32 %v3494_v51, %v4985_v58 }
 0x1c3   : > { %v3495_v48 = vpop.f32.mrb[96].mxu0 }
 0x1c4   : > { %v3496_v45 = vpop.f32.mrb[97].mxu0 }
 0x1c5   : > { %v3497_v1 = vadd.f32 %v3496_v45, %v3495_v48  ;;  %v3498_v24 = vpop.f32.mrb[98].mxu0 }
 0x1c6   : > { %v3499_v52 = vpop.f32.mrb[99].mxu0 }
 0x1c7   : > { %v3500_v35 = vadd.f32 %v3499_v52, %v3498_v24  ;;  %v5052_v50 = vadd.f32 %v3497_v1, %v5000_v40 }
 0x1c9   : > { %v5054_v13 = vadd.f32 %v3500_v35, %v1723_v62 }
 0x1cb   : > { %v3501_v14 = vpop.f32.mrb[100].mxu0 }
 0x1cc   : > { %v3502_v11 = vpop.f32.mrb[101].mxu0 }
 0x1cd   : > { %v3503_v26 = vadd.f32 %v3502_v11, %v3501_v14  ;;  %v3504_v36 = vpop.f32.mrb[102].mxu0  ;;  %v5085_v11 = vld [vmem:[%s5269_s4] ss:$0 sm:$0xff] }
 0x1ce   : > { %v3505_v16 = vpop.f32.mrb[103].mxu0 }
 0x1cf   : > { %v3506_v54 = vadd.f32 %v3505_v16, %v3504_v36  ;;  %v5057_v58 = vadd.f32 %v3503_v26, %v4996_v7 }
 0x1d1   : > { %v5060_v0 = vadd.f32 %v3506_v54, %v5007_v9 }
 0x1d3   : > { %v3507_v15 = vpop.f32.mrb[104].mxu0 }
 0x1d4   : > { %v3508_v38 = vpop.f32.mrb[105].mxu0 }
 0x1d5   : > { %v3509_v17 = vadd.f32 %v3508_v38, %v3507_v15  ;;  %v3510_v27 = vpop.f32.mrb[106].mxu0  ;;  %v5098_v15 = vld [vmem:[%s5270_s5] ss:$0 sm:$0xff] }
 0x1d6   : > { %v3511_v40 = vpop.f32.mrb[107].mxu0 }
 0x1d7   : > { %v3512_v21 = vadd.f32 %v3511_v40, %v3510_v27  ;;  %v5062_v62 = vadd.f32 %v3509_v17, %v1736_v31  ;;  %v5075_v31 = vld [vmem:[%s5268_s3] ss:$0 sm:$0xff] }
 0x1d9   : > { %v5064_v19 = vadd.f32 %v3512_v21, %v1739_v3 }
 0x1db   : > { %v3513_v37 = vpop.f32.mrb[108].mxu0 }
 0x1dc   : > { %v3514_v57 = vpop.f32.mrb[109].mxu0 }
 0x1dd   : > { %v3515_v39 = vadd.f32 %v3514_v57, %v3513_v37  ;;  %v3516_v10 = vpop.f32.mrb[110].mxu0 }
 0x1de   : > { %v3517_v44 = vpop.f32.mrb[111].mxu0 }
 0x1df   : > { %v3518_v7 = vadd.f32 %v3517_v44, %v3516_v10  ;;  %v5067_v22 = vadd.f32 %v3515_v39, %v5016_v60 }
 0x1e1   : > { %v5070_v9 = vadd.f32 %v3518_v7, %v5025_v49 }
 0x1e3   : > { %v3519_v61 = vpop.f32.mrb[112].mxu0 }
 0x1e4   : > { %v3705_v59 = vpop.f32.mrb[80].mxu1  ;;  %v3520_v3 = vpop.f32.mrb[113].mxu0 }
 0x1e5   : > { %v3754_v25 = vadd.f32 %v3753_v20, %v3705_v59  ;;  %v3521_v41 = vadd.f32 %v3520_v3, %v3519_v61  ;;  %v2314_v51 = vpop.f32.mrb[81].mxu1  ;;  %v3522_v48 = vpop.f32.mrb[114].mxu0 }
 0x1e6   : > { %v3758_v45 = vadd.f32 %v5032_v5, %v2314_v51  ;;  %v3706_v1 = vpop.f32.mrb[82].mxu1  ;;  %v3523_v60 = vpop.f32.mrb[115].mxu0 }
 0x1e7   : > { %v2482_v24 = vadd.f32 %v3754_v25, %v5075_v31  ;;  %v3762_v49 = vadd.f32 %v3761_v53, %v3706_v1  ;;  %v3524_v52 = vadd.f32 %v3523_v60, %v3522_v48  ;;  %v2317_v35 = vpop.f32.mrb[83].mxu1  ;;  %v5080_v14 = vadd.f32 %v4921_v34, %v3521_v41 }
 0x1e8   : > { %v2480_v20 = vadd.f32 %v3758_v45, %v5075_v31  ;;  %v3766_v5 = vadd.f32 %v5035_v47, %v2317_v35 }
 0x1e9   : > { %v2514_v26 = vmax.f32 %v2482_v24, 0.0  ;;  %v2483_v36 = vadd.f32 %v3762_v49, %v5075_v31  ;;  %v5091_v53 = vadd.f32 %v4923_v28, %v3524_v52 }
 0x1ea   : > { %v2512_v16 = vmax.f32 %v2480_v20, 0.0  ;;  %v2481_v34 = vadd.f32 %v3766_v5, %v5075_v31 }
 0x1eb   : > { %v2553_v54 = vmul.f32 %v5085_v11, %v2514_v26  ;;  %v2515_v38 = vmax.f32 %v2483_v36, 0.0  ;;  %v3525_v17 = vpop.f32.mrb[116].mxu0 }
 0x1ec   : > { %v2551_v47 = vmul.f32 %v5085_v11, %v2512_v16  ;;  %v2513_v27 = vmax.f32 %v2481_v34, 0.0  ;;  %v3709_v40 = vpop.f32.mrb[84].mxu1  ;;  %v3526_v21 = vpop.f32.mrb[117].mxu0 }
 0x1ed   : > { %v2554_v28 = vmul.f32 %v5085_v11, %v2515_v38  ;;  %v3770_v37 = vadd.f32 %v5046_v63, %v3709_v40  ;;  %v3527_v57 = vadd.f32 %v3526_v21, %v3525_v17  ;;  %v2330_v39 = vpop.f32.mrb[85].mxu1  ;;  %v3528_v10 = vpop.f32.mrb[118].mxu0  ;;  %v2592_v44 = vadd.f32 %v5098_v15, %v2553_v54 }
 0x1ee   : > { %v2590_v7 = vadd.f32 %v5098_v15, %v2551_v47  ;;  %v2552_v61 = vmul.f32 %v5085_v11, %v2513_v27  ;;  %v3774_v59 = vadd.f32 %v5040_v6, %v2330_v39  ;;  %v3710_v3 = vpop.f32.mrb[86].mxu1  ;;  %v3529_v25 = vpop.f32.mrb[119].mxu0 }
 0x1ef   : > { %v2593_v41 = vadd.f32 %v5098_v15, %v2554_v28  ;;  %v2486_v51 = vadd.f32 %v3770_v37, %v5075_v31  ;;  %v3778_v48 = vadd.f32 %v5049_v2, %v3710_v3  ;;  %v3530_v63 = vadd.f32 %v3529_v25, %v3528_v10  ;;  %v2333_v45 = vpop.f32.mrb[87].mxu1 }
 0x1f0   : > { %v2591_v1 = vadd.f32 %v5098_v15, %v2552_v61  ;;  %v2484_v6 = vadd.f32 %v3774_v59, %v5075_v31  ;;  %v3782_v60 = vadd.f32 %v5043_v42, %v2333_v45  ;;  %v5120_v24 = vadd.f32 %v4929_v4, %v3527_v57  ;;  %v5273_v45 = vld [vmem:[#allocation2_spill] sm:$0xff] }
 0x1f1   : > { %v3096_v49 = vpack.c.bf16 %v2593_v41, %v2592_v44  ;;  %v2518_v2 = vmax.f32 %v2486_v51, 0.0  ;;  %v2487_v52 = vadd.f32 %v3778_v48, %v5075_v31  ;;  %v5124_v35 = vadd.f32 %v4931_v46, %v3530_v63 }
 0x1f2   : > { %v3091_v20 = vpack.c.bf16 %v2591_v1, %v2590_v7  ;;  %v2516_v5 = vmax.f32 %v2484_v6, 0.0  ;;  %v2485_v26 = vadd.f32 %v3782_v60, %v5075_v31 }
 0x1f3   : > { %3168 = vst [vmem:[%s5114_s10 + $0x8] sm:$0xff] %v3096_v49   ;;  %v2557_v36 = vmul.f32 %v5085_v11, %v2518_v2  ;;  %v2519_v16 = vmax.f32 %v2487_v52, 0.0  ;;  %v3531_v34 = vpop.f32.mrb[120].mxu0 }
 0x1f4   : > { %3092 = vst [vmem:[%s5114_s10] sm:$0xff] %v3091_v20   ;;  %v2555_v4 = vmul.f32 %v5085_v11, %v2516_v5  ;;  %v2517_v42 = vmax.f32 %v2485_v26, 0.0  ;;  %v3713_v54 = vpop.f32.mrb[88].mxu1  ;;  %v3532_v38 = vpop.f32.mrb[121].mxu0 }
 0x1f5   : > { %v2558_v17 = vmul.f32 %v5085_v11, %v2519_v16  ;;  %v3786_v46 = vadd.f32 %v5057_v58, %v3713_v54  ;;  %v3533_v47 = vadd.f32 %v3532_v38, %v3531_v34  ;;  %v2346_v27 = vpop.f32.mrb[89].mxu1  ;;  %v3534_v40 = vpop.f32.mrb[122].mxu0  ;;  %v2596_v21 = vadd.f32 %v5098_v15, %v2557_v36 }
 0x1f6   : > { %v2594_v28 = vadd.f32 %v5098_v15, %v2555_v4  ;;  %v2556_v37 = vmul.f32 %v5085_v11, %v2517_v42  ;;  %v3790_v57 = vadd.f32 %v5052_v50, %v2346_v27  ;;  %v3714_v39 = vpop.f32.mrb[90].mxu1  ;;  %v3535_v10 = vpop.f32.mrb[123].mxu0 }
 0x1f7   : > { %v2597_v44 = vadd.f32 %v5098_v15, %v2558_v17  ;;  %v2490_v7 = vadd.f32 %v3786_v46, %v5075_v31  ;;  %v3794_v58 = vadd.f32 %v5060_v0, %v3714_v39  ;;  %v3536_v61 = vadd.f32 %v3535_v10, %v3534_v40  ;;  %v2349_v59 = vpop.f32.mrb[91].mxu1 }
 0x1f8   : > { %v2595_v3 = vadd.f32 %v5098_v15, %v2556_v37  ;;  %v2488_v25 = vadd.f32 %v3790_v57, %v5075_v31  ;;  %v3798_v41 = vadd.f32 %v5054_v13, %v2349_v59  ;;  %v5144_v50 = vadd.f32 %v4937_v23, %v3533_v47 }
 0x1f9   : > { %v3106_v51 = vpack.c.bf16 %v2597_v44, %v2596_v21  ;;  %v2522_v48 = vmax.f32 %v2490_v7, 0.0  ;;  %v2491_v63 = vadd.f32 %v3794_v58, %v5075_v31  ;;  %v5148_v1 = vadd.f32 %v5273_v45, %v3536_v61 }
 0x1fa   : > { %v3101_v0 = vpack.c.bf16 %v2595_v3, %v2594_v28  ;;  %v2520_v6 = vmax.f32 %v2488_v25, 0.0  ;;  %v2489_v60 = vadd.f32 %v3798_v41, %v5075_v31 }
 0x1fb   : > { %3170 = vst [vmem:[%s5114_s10 + $0x18] sm:$0xff] %v3106_v51   ;;  %v2561_v49 = vmul.f32 %v5085_v11, %v2522_v48  ;;  %v2523_v2 = vmax.f32 %v2491_v63, 0.0  ;;  %v3537_v52 = vpop.f32.mrb[124].mxu0 }
 0x1fc   : > { %3169 = vst [vmem:[%s5114_s10 + $0x10] sm:$0xff] %v3101_v0   ;;  %v2559_v23 = vmul.f32 %v5085_v11, %v2520_v6  ;;  %v2521_v13 = vmax.f32 %v2489_v60, 0.0  ;;  %v3717_v20 = vpop.f32.mrb[92].mxu1  ;;  %v3538_v5 = vpop.f32.mrb[125].mxu0 }
 0x1fd   : > { %v2562_v26 = vmul.f32 %v5085_v11, %v2523_v2  ;;  %v3802_v36 = vadd.f32 %v5067_v22, %v3717_v20  ;;  %v3539_v16 = vadd.f32 %v3538_v5, %v3537_v52  ;;  %v2362_v34 = vpop.f32.mrb[93].mxu1  ;;  %v3540_v4 = vpop.f32.mrb[126].mxu0  ;;  %v2600_v42 = vadd.f32 %v5098_v15, %v2561_v49 }
 0x1fe   : > { %v2598_v54 = vadd.f32 %v5098_v15, %v2559_v23  ;;  %v2560_v38 = vmul.f32 %v5085_v11, %v2521_v13  ;;  %v3806_v17 = vadd.f32 %v5062_v62, %v2362_v34  ;;  %v3718_v46 = vpop.f32.mrb[94].mxu1  ;;  %v3541_v47 = vpop.f32.mrb[127].mxu0 }
 0x1ff   : > { %v2601_v27 = vadd.f32 %v5098_v15, %v2562_v26  ;;  %v2494_v40 = vadd.f32 %v3802_v36, %v5075_v31  ;;  %v3810_v22 = vadd.f32 %v5070_v9, %v3718_v46  ;;  %v3542_v21 = vadd.f32 %v3541_v47, %v3540_v4  ;;  %v2365_v28 = vpop.f32.mrb[95].mxu1 }
 0x200   : > { %v2599_v37 = vadd.f32 %v5098_v15, %v2560_v38  ;;  %v2492_v57 = vadd.f32 %v3806_v17, %v5075_v31  ;;  %v3814_v39 = vadd.f32 %v5064_v19, %v2365_v28  ;;  %v3828_v62 = vadd.f32 %v4945_v32, %v3539_v16 }
 0x201   : > { %v3116_v10 = vpack.c.bf16 %v2601_v27, %v2600_v42  ;;  %v2526_v44 = vmax.f32 %v2494_v40, 0.0  ;;  %v2495_v7 = vadd.f32 %v3810_v22, %v5075_v31  ;;  %v3834_v58 = vadd.f32 %v4947_v18, %v3542_v21 }
 0x202   : > { %v3111_v61 = vpack.c.bf16 %v2599_v37, %v2598_v54  ;;  %v2524_v59 = vmax.f32 %v2492_v57, 0.0  ;;  %v2493_v9 = vadd.f32 %v3814_v39, %v5075_v31 }
 0x203   : > { %3172 = vst [vmem:[%s5114_s10 + $0x28] sm:$0xff] %v3116_v10   ;;  %v2565_v3 = vmul.f32 %v5085_v11, %v2526_v44  ;;  %v2527_v25 = vmax.f32 %v2495_v7, 0.0  ;;  %v3543_v41 = vpop.f32.mrb[128].mxu0 }
 0x204   : > { %3171 = vst [vmem:[%s5114_s10 + $0x20] sm:$0xff] %v3111_v61   ;;  %v2563_v19 = vmul.f32 %v5085_v11, %v2524_v59  ;;  %v2525_v51 = vmax.f32 %v2493_v9, 0.0  ;;  %v3721_v32 = vpop.f32.mrb[0].mxu1  ;;  %v3544_v48 = vpop.f32.mrb[129].mxu0 }
 0x205   : > { %v2566_v63 = vmul.f32 %v5085_v11, %v2527_v25  ;;  %v3817_v45 = vadd.f32 %v5120_v24, %v3721_v32  ;;  %v3545_v18 = vadd.f32 %v3544_v48, %v3543_v41  ;;  %v2378_v0 = vpop.f32.mrb[1].mxu1  ;;  %v3546_v6 = vpop.f32.mrb[130].mxu0  ;;  %v2604_v60 = vadd.f32 %v5098_v15, %v2565_v3 }
 0x206   : > { %v2602_v49 = vadd.f32 %v5098_v15, %v2563_v19  ;;  %v2564_v2 = vmul.f32 %v5085_v11, %v2525_v51  ;;  %v3820_v52 = vadd.f32 %v5080_v14, %v2378_v0  ;;  %v3722_v23 = vpop.f32.mrb[2].mxu1  ;;  %v3547_v13 = vpop.f32.mrb[131].mxu0 }
 0x207   : > { %v2605_v20 = vadd.f32 %v5098_v15, %v2566_v63  ;;  %v2498_v5 = vadd.f32 %v3817_v45, %v5075_v31  ;;  %v3823_v24 = vadd.f32 %v5124_v35, %v3722_v23  ;;  %v3548_v26 = vadd.f32 %v3547_v13, %v3546_v6  ;;  %v2381_v36 = vpop.f32.mrb[3].mxu1 }
 0x208   : > { %v2603_v16 = vadd.f32 %v5098_v15, %v2564_v2  ;;  %v2496_v34 = vadd.f32 %v3820_v52, %v5075_v31  ;;  %v3826_v4 = vadd.f32 %v5091_v53, %v2381_v36  ;;  %v3843_v14 = vadd.f32 %v4960_v56, %v3545_v18 }
 0x209   : > { %v3126_v42 = vpack.c.bf16 %v2605_v20, %v2604_v60  ;;  %v2530_v54 = vmax.f32 %v2498_v5, 0.0  ;;  %v2499_v38 = vadd.f32 %v3823_v24, %v5075_v31  ;;  %v5190_v17 = vadd.f32 %v4969_v43, %v3548_v26 }
 0x20a   : > { %v3121_v46 = vpack.c.bf16 %v2603_v16, %v2602_v49  ;;  %v2528_v35 = vmax.f32 %v2496_v34, 0.0  ;;  %v2497_v47 = vadd.f32 %v3826_v4, %v5075_v31 }
 0x20b   : > { %3174 = vst [vmem:[%s5114_s10 + $0x38] sm:$0xff] %v3126_v42   ;;  %v2569_v27 = vmul.f32 %v5085_v11, %v2530_v54  ;;  %v2531_v40 = vmax.f32 %v2499_v38, 0.0  ;;  %v3549_v22 = vpop.f32.mrb[132].mxu0 }
 0x20c   : > { %3173 = vst [vmem:[%s5114_s10 + $0x30] sm:$0xff] %v3121_v46   ;;  %v2567_v53 = vmul.f32 %v5085_v11, %v2528_v35  ;;  %v2529_v56 = vmax.f32 %v2497_v47, 0.0  ;;  %v3725_v21 = vpop.f32.mrb[4].mxu1  ;;  %v3550_v28 = vpop.f32.mrb[133].mxu0 }
 0x20d   : > { %v2570_v37 = vmul.f32 %v5085_v11, %v2531_v40  ;;  %v3829_v57 = vadd.f32 %v3828_v62, %v3725_v21  ;;  %v3551_v43 = vadd.f32 %v3550_v28, %v3549_v22  ;;  %v2394_v39 = vpop.f32.mrb[5].mxu1  ;;  %v3552_v10 = vpop.f32.mrb[134].mxu0  ;;  %v2608_v44 = vadd.f32 %v5098_v15, %v2569_v27 }
 0x20e   : > { %v2606_v7 = vadd.f32 %v5098_v15, %v2567_v53  ;;  %v2568_v61 = vmul.f32 %v5085_v11, %v2529_v56  ;;  %v3832_v59 = vadd.f32 %v5144_v50, %v2394_v39  ;;  %v3726_v9 = vpop.f32.mrb[6].mxu1  ;;  %v3553_v3 = vpop.f32.mrb[135].mxu0 }
 0x20f   : > { %v2609_v25 = vadd.f32 %v5098_v15, %v2570_v37  ;;  %v2502_v41 = vadd.f32 %v3829_v57, %v5075_v31  ;;  %v3835_v19 = vadd.f32 %v3834_v58, %v3726_v9  ;;  %v3554_v62 = vadd.f32 %v3553_v3, %v3552_v10  ;;  %v2397_v51 = vpop.f32.mrb[7].mxu1 }
 0x210   : > { %v2607_v32 = vadd.f32 %v5098_v15, %v2568_v61  ;;  %v2500_v48 = vadd.f32 %v3832_v59, %v5075_v31  ;;  %v3838_v63 = vadd.f32 %v5148_v1, %v2397_v51  ;;  %v3840_v45 = vadd.f32 %v4982_v12, %v3551_v43 }
 0x211   : > { %v3136_v50 = vpack.c.bf16 %v2609_v25, %v2608_v44  ;;  %v2534_v18 = vmax.f32 %v2502_v41, 0.0  ;;  %v2503_v0 = vadd.f32 %v3835_v19, %v5075_v31  ;;  %v3846_v6 = vadd.f32 %v4991_v30, %v3554_v62 }
 0x212   : > { %v3131_v60 = vpack.c.bf16 %v2607_v32, %v2606_v7  ;;  %v2532_v49 = vmax.f32 %v2500_v48, 0.0  ;;  %v2501_v58 = vadd.f32 %v3838_v63, %v5075_v31 }
 0x213   : > { %3176 = vst [vmem:[%s5114_s10 + $0x48] sm:$0xff] %v3136_v50   ;;  %v2573_v2 = vmul.f32 %v5085_v11, %v2534_v18  ;;  %v2535_v52 = vmax.f32 %v2503_v0, 0.0  ;;  %v3555_v23 = vpop.f32.mrb[136].mxu0 }
 0x214   : > { %3175 = vst [vmem:[%s5114_s10 + $0x40] sm:$0xff] %v3131_v60   ;;  %v2571_v1 = vmul.f32 %v5085_v11, %v2532_v49  ;;  %v2533_v13 = vmax.f32 %v2501_v58, 0.0  ;;  %v3729_v12 = vpop.f32.mrb[8].mxu1  ;;  %v3556_v20 = vpop.f32.mrb[137].mxu0 }
 0x215   : > { %v2574_v5 = vmul.f32 %v5085_v11, %v2535_v52  ;;  %v3841_v24 = vadd.f32 %v3840_v45, %v3729_v12  ;;  %v3557_v26 = vadd.f32 %v3556_v20, %v3555_v23  ;;  %v2410_v30 = vpop.f32.mrb[9].mxu1  ;;  %v3558_v36 = vpop.f32.mrb[138].mxu0  ;;  %v2612_v16 = vadd.f32 %v5098_v15, %v2573_v2 }
 0x216   : > { %v2610_v34 = vadd.f32 %v5098_v15, %v2571_v1  ;;  %v2572_v4 = vmul.f32 %v5085_v11, %v2533_v13  ;;  %v3844_v42 = vadd.f32 %v3843_v14, %v2410_v30  ;;  %v3730_v54 = vpop.f32.mrb[10].mxu1  ;;  %v3559_v38 = vpop.f32.mrb[139].mxu0 }
 0x217   : > { %v2613_v46 = vadd.f32 %v5098_v15, %v2574_v5  ;;  %v2506_v35 = vadd.f32 %v3841_v24, %v5075_v31  ;;  %v3847_v47 = vadd.f32 %v3846_v6, %v3730_v54  ;;  %v3560_v27 = vadd.f32 %v3559_v38, %v3558_v36  ;;  %v2413_v40 = vpop.f32.mrb[11].mxu1 }
 0x218   : > { %v2611_v22 = vadd.f32 %v5098_v15, %v2572_v4  ;;  %v2504_v53 = vadd.f32 %v3844_v42, %v5075_v31  ;;  %v3850_v56 = vadd.f32 %v5190_v17, %v2413_v40  ;;  %v3855_v21 = vadd.f32 %v5004_v29, %v3557_v26 }
 0x219   : > { %v3146_v14 = vpack.c.bf16 %v2613_v46, %v2612_v16  ;;  %v2538_v28 = vmax.f32 %v2506_v35, 0.0  ;;  %v2507_v37 = vadd.f32 %v3847_v47, %v5075_v31  ;;  %v3861_v57 = vadd.f32 %v5011_v33, %v3560_v27 }
 0x21a   : > { %v3141_v43 = vpack.c.bf16 %v2611_v22, %v2610_v34  ;;  %v2536_v39 = vmax.f32 %v2504_v53, 0.0  ;;  %v2505_v10 = vadd.f32 %v3850_v56, %v5075_v31 }
 0x21b   : > { %3178 = vst [vmem:[%s5114_s10 + $0x58] sm:$0xff] %v3146_v14   ;;  %v2577_v44 = vmul.f32 %v5085_v11, %v2538_v28  ;;  %v2539_v7 = vmax.f32 %v2507_v37, 0.0  ;;  %v3561_v61 = vpop.f32.mrb[140].mxu0 }
 0x21c   : > { %3177 = vst [vmem:[%s5114_s10 + $0x50] sm:$0xff] %v3141_v43   ;;  %v2575_v17 = vmul.f32 %v5085_v11, %v2536_v39  ;;  %v2537_v59 = vmax.f32 %v2505_v10, 0.0  ;;  %v3733_v29 = vpop.f32.mrb[12].mxu1  ;;  %v3562_v9 = vpop.f32.mrb[141].mxu0 }
 0x21d   : > { %v2578_v3 = vmul.f32 %v5085_v11, %v2539_v7  ;;  %v3563_v25 = vadd.f32 %v3562_v9, %v3561_v61  ;;  %v2426_v41 = vpop.f32.mrb[13].mxu1  ;;  %v3564_v33 = vpop.f32.mrb[142].mxu0  ;;  %v2616_v48 = vadd.f32 %v5098_v15, %v2577_v44 }
 0x21e   : > { %v2576_v19 = vmul.f32 %v5085_v11, %v2537_v59  ;;  %v3856_v62 = vadd.f32 %v3855_v21, %v2426_v41  ;;  %v3734_v51 = vpop.f32.mrb[14].mxu1  ;;  %v3565_v32 = vpop.f32.mrb[143].mxu0  ;;  %v2614_v0 = vadd.f32 %v5098_v15, %v2575_v17 }
 0x21f   : > { %v2617_v63 = vadd.f32 %v5098_v15, %v2578_v3  ;;  %v3852_v45 = vadd.f32 %v5022_v55, %v3563_v25  ;;  %v3566_v50 = vadd.f32 %v3565_v32, %v3564_v33  ;;  %v2429_v18 = vpop.f32.mrb[15].mxu1 }
 0x220   : > { %v2615_v6 = vadd.f32 %v5098_v15, %v2576_v19  ;;  %v2508_v60 = vadd.f32 %v3856_v62, %v5075_v31  ;;  %v3862_v49 = vadd.f32 %v3861_v57, %v2429_v18 }
 0x221   : > { %v3156_v58 = vpack.c.bf16 %v2617_v63, %v2616_v48  ;;  %v3853_v2 = vadd.f32 %v3852_v45, %v3733_v29  ;;  %v3858_v52 = vadd.f32 %v5029_v8, %v3566_v50 }
 0x222   : > { %v3151_v23 = vpack.c.bf16 %v2615_v6, %v2614_v0  ;;  %v2540_v1 = vmax.f32 %v2508_v60, 0.0  ;;  %v2509_v13 = vadd.f32 %v3862_v49, %v5075_v31 }
 0x223   : > { %3180 = vst [vmem:[%s5114_s10 + $0x68] sm:$0xff] %v3156_v58   ;;  %v2510_v55 = vadd.f32 %v3853_v2, %v5075_v31  ;;  %v3859_v12 = vadd.f32 %v3858_v52, %v3734_v51 }
 0x224   : > { %3179 = vst [vmem:[%s5114_s10 + $0x60] sm:$0xff] %v3151_v23   ;;  %v2579_v20 = vmul.f32 %v5085_v11, %v2540_v1  ;;  %v2541_v5 = vmax.f32 %v2509_v13, 0.0 }
 0x225   : > { %v2542_v24 = vmax.f32 %v2510_v55, 0.0  ;;  %v2511_v26 = vadd.f32 %v3859_v12, %v5075_v31 }
 0x226   : > { %v2580_v30 = vmul.f32 %v5085_v11, %v2541_v5  ;;  %v2618_v16 = vadd.f32 %v5098_v15, %v2579_v20 }
 0x227   : > { %v2581_v8 = vmul.f32 %v5085_v11, %v2542_v24  ;;  %v2543_v36 = vmax.f32 %v2511_v26, 0.0 }
 0x228   : > { %v2619_v34 = vadd.f32 %v5098_v15, %v2580_v30 }
 0x229   : > { %v2582_v4 = vmul.f32 %v5085_v11, %v2543_v36  ;;  %v2620_v54 = vadd.f32 %v5098_v15, %v2581_v8 }
 0x22a   : > { %v3161_v42 = vpack.c.bf16 %v2619_v34, %v2618_v16 }
 0x22b   : > { %v2621_v38 = vadd.f32 %v5098_v15, %v2582_v4 }
 0x22c   : > { %3181 = vst [vmem:[%s5114_s10 + $0x70] sm:$0xff] %v3161_v42  }
 0x22d   : > { %v3166_v46 = vpack.c.bf16 %v2621_v38, %v2620_v54 }
 0x22f   : > { %3182 = vst [vmem:[%s5114_s10 + $0x78] sm:$0xff] %v3166_v46  }
 0x230 PF: > { %s16_s23 = sadd.s32 1, %s4076_s23   ;;  %s5274_s21 = smov %s4072_s22 }
 0x231   : > { %p13_p5 = scmp.ge.s32.totalorder %s16_s23, 4   ;;  %s5275_s22 = smov %s5277_s24 }
 0x233   :  { %15 = sbr.rel (!%p13_p5) target bundleno = 2 (0x2), region = 77 }

// kernel: forward.5
= control target key start
LH: loop header
LB: loop body
LE: loop exit
PB: predicated region body
PF: predicated region fallthrough
CT: control target
= control target key end

     0   :  { %17 = vsyncpa [#allocation3], 0  ;;  %s6329_s0 = inlined_call_operand.vmem [shape: bf16[2,18,24,128], index: 0, kind: input, shape index: {}, may-alias: {0,1}]   ;;  %s6330_s1 = inlined_call_operand.vmem [shape: bf16[2,18,24,128], index: 1, kind: input, shape index: {}, may-alias: {0,1}]   ;;  %s6331_s2 = inlined_call_operand.vmem [shape: bf16[3,384,128], index: 2, kind: input, shape index: {}]   ;;  %s6332_s3 = inlined_call_operand.vmem [shape: f32[1,128], index: 3, kind: input, shape index: {}]   ;;  %s6333_s4 = inlined_call_operand.vmem [shape: f32[1,128], index: 4, kind: input, shape index: {}]   ;;  %s6334_s5 = inlined_call_operand.vmem [shape: f32[1,128], index: 5, kind: input, shape index: {}]   ;;  %s6335_s6 = inlined_call_operand.vmem [shape: bf16[128,128], index: 6, kind: input, shape index: {}]   ;;  %s6336_s7 = inlined_call_operand.vmem [shape: f32[1,128], index: 7, kind: input, shape index: {}]   ;;  %s6337_s8 = inlined_call_operand.vmem [shape: bf16[128,128], index: 8, kind: input, shape index: {}]   ;;  %s6338_s9 = inlined_call_operand.vmem [shape: f32[1,128], index: 9, kind: input, shape index: {}]   ;;  %s6339_s10 = inlined_call_operand.hbm [shape: f32[2,16,16,64], index: 10, kind: output, shape index: {0}]   ;;  %s6340_s11 = inlined_call_operand.hbm [shape: f32[2,16,16,64], index: 11, kind: output, shape index: {1}]  }
   0x1   :  { %19 = vsyncpa [#allocation3 + $0x1], 0 }
   0x2   :  { %20 = vsyncpa [#allocation5], 0 }
   0x3   :  { %22 = vsyncpa [#allocation5 + $0x1], 0  ;;  %s4924_s17 = smov 0   ;;  %s4926_s18 = smov 0  }
   0x4   :  { %s4928_s19 = smov 0   ;;  %s4930_s20 = smov 0  }
   0x5   :  { %s4932_s21 = smov 0   ;;  %s4934_s22 = smov 0  }
   0x6 LB: > { %6350 = sst [smem:[#allocation8_spill]] %s4854_s21  ;;  %s3531_s23 = sadd.s32 4294967295, %s4858_s22   ;;  %s4858_s22 = sphi %s4934_s22, %s28_s22   ;;  %s4854_s21 = sphi %s4932_s21, %s6370_s21   ;;  %s4850_s20 = sphi %s4930_s20, %s6369_s20   ;;  %s4846_s19 = sphi %s4928_s19, %s6373_s19   ;;  %s4842_s18 = sphi %s4926_s18, %s6372_s18   ;;  %s4838_s17 = sphi %s4924_s17, %s6371_s17  }
   0x7   : > { %s3532_s24 = sadd.s32 4294967294, %s4858_s22   ;;  %s40_s25 = sadd.s32 1, %s4854_s21 }
   0x8   : > { %s277_s26 = sadd.s32 1, %s4846_s19  ;;  %p42_p0 = scmp.ge.s32.totalorder %s40_s25, 2 }
   0x9   : > { %p287_p1 = scmp.ne.s32.totalorder %s4846_s19, %s4842_s18  ;;  %p288_p2 = scmp.eq.s32.totalorder %s3531_s23, 1 }
   0xa   : > { %p293_p3 = scmp.ne.s32.totalorder %s4842_s18, %s4838_s17  ;;  %s6375_s25 = smov (%p42_p0, %s40_s25), 0 }
   0xb   : > { %6351 = sst [smem:[#allocation9_spill]] %s6375_s25  ;;  %p4964_p4 = por %p288_p2, %p287_p1 }
   0xc   : > { %p294_p5 = scmp.eq.s32.totalorder %s3532_s24, 1  ;;  %s272_s28 = ssub.s32 %s4854_s21, %s6375_s25 }
   0xd   : > { %p3535_p6 = scmp.ge.s32.totalorder %s4858_s22, 1  ;;  %p275_p7 = scmp.eq.s32.totalorder %s272_s28, 0 }
   0xe   : > { %p4971_p8 = por %p294_p5, %p293_p3  ;;  %p406_p9 = scmp.lt.s32.totalorder %s4858_s22, 3 }
   0xf   : > { %s4977_s30 = scalar_select %p275_p7, %s4846_s19, %s277_s26  }
  0x10   : > { %p407_p10 = pnand %p3535_p6, %p406_p9 }
  0x12   : > { %410 = sbr.rel (%p407_p10) target bundleno = 1084 (0x43c), region = 60 }
  0x19   : > { %v4618_v0 = vld [vmem:[%s6331_s2 + $0x100] sm:$0xff]   ;;  %p479_p11 = scmp.lt.s32.totalorder %s4850_s20, 1  ;;  %v4620_v2 = vld [vmem:[%s6331_s2 + $0x108] sm:$0xff]   ;;  %v4622_v4 = vld [vmem:[%s6331_s2 + $0x110] sm:$0xff]   ;;  %vm872_vm0 = vsmask.f32 7424 }
  0x1a   : > { %v4619_v1 = vld [vmem:[%s6331_s2 + $0xc0] sm:$0xff]   ;;  %4377 = vmatprep.subr.bf16.mxu1 %v4618_v0  ;;  %3681 = vmatprep.subr.bf16.mxu0 %v4618_v0  ;;  %v4621_v3 = vld [vmem:[%s6331_s2 + $0xc8] sm:$0xff]   ;;  %v4623_v5 = vld [vmem:[%s6331_s2 + $0xd0] sm:$0xff]   ;;  %vm1107_vm1 = vcmask 1046528   ;;  %s6019_s13 = sand.u32 1, %s4842_s18   ;;  %vm3039_vm2 = vcmask 523264  }
  0x1b   : > { %4385 = vmatpush3.bf16.msra.mxu1 %v4619_v1  ;;  %3682 = vmatpush3.bf16.msra.mxu0 %v4619_v1  ;;  %s4993_s28 = scalar_select %p479_p11, %s4850_s20, 1  ;;  %v4624_v6 = vld [vmem:[%s6331_s2 + $0x118] sm:$0xff]   ;;  %v4626_v8 = vld [vmem:[%s6331_s2 + $0x120] sm:$0xff]   ;;  %v4628_v10 = vld [vmem:[%s6331_s2 + $0x128] sm:$0xff]  }
  0x1c   : > { %4378 = vmatprep.subr.bf16.mxu1 %v4620_v2  ;;  %3683 = vmatprep.subr.bf16.mxu0 %v4620_v2  ;;  %v4625_v7 = vld [vmem:[%s6331_s2 + $0xd8] sm:$0xff]   ;;  %v4627_v9 = vld [vmem:[%s6331_s2 + $0xe0] sm:$0xff]   ;;  %v4629_v11 = vld [vmem:[%s6331_s2 + $0xe8] sm:$0xff]   ;;  %s4860_s15 = smov [#allocation2]  }
  0x1d   : > { %s4553_s24 = smul.u32 216, %s4993_s28  ;;  %v4630_v14 = vld [vmem:[%s6331_s2 + $0x130] sm:$0xff]   ;;  %v4632_v30 = vld [vmem:[%s6331_s2 + $0x138] sm:$0xff]   ;;  %v4636_v40 = vld [vmem:[%s6331_s2 + $0x140] sm:$0xff]  }
  0x1e   : > { %v4631_v24 = vld [vmem:[%s6331_s2 + $0xf0] sm:$0xff]   ;;  %v4633_v32 = vld [vmem:[%s6331_s2 + $0xf8] sm:$0xff]   ;;  %v4639_v52 = vld [vmem:[%s6331_s2 + $0x148] sm:$0xff]  }
  0x1f   : > { %4386 = vmatpush3.bf16.msra.mxu1 %v4621_v3  ;;  %3684 = vmatpush3.bf16.msra.mxu0 %v4621_v3  ;;  %s5019_s21 = scalar_lea.vmem %s6329_s0, %s4553_s24  ;;  %s3678_s16 = sadd.s32 192, %s4553_s24  ;;  %v4642_v61 = vld [vmem:[%s6331_s2 + $0x150] sm:$0xff]  }
  0x20   : > { %4379 = vmatprep.subr.bf16.mxu1 %v4622_v4  ;;  %3685 = vmatprep.subr.bf16.mxu0 %v4622_v4  ;;  %v5028_v12 = vld [vmem:[%s5019_s21 + $0x9c] sm:$0xff]   ;;  %v5031_v13 = vld [vmem:[%s5019_s21 + $0xa4] ss:$0 sps:$4 sm:$0xff]   ;;  %v5040_v18 = vld [vmem:[%s5019_s21 + $0xc] sm:$0xff]   ;;  %s5109_s26 = scalar_lea.vmem %s6330_s1, %s3678_s16  ;;  %s6348_s16 = sshll.u32 %s4850_s20, 12 }
  0x21   : > { %v1030_v15 = vshrl.u32 %v5028_v12, 16  ;;  %v1032_v16 = vshll.u32 %v5028_v12, 16  ;;  %v1037_v17 = vshll.u32 %v5031_v13, 16  ;;  %v5043_v19 = vld [vmem:[%s5019_s21 + $0x14] ss:$0 sps:$4 sm:$0xff]   ;;  %v886_v22 = vshrl.u32 %v5040_v18, 16  ;;  %s6134_s24 = scalar_lea.hbm %s6339_s10, %s6348_s16 }
  0x22   : > { %v888_v23 = vshll.u32 %v5040_v18, 16  ;;  %v893_v25 = vshll.u32 %v5043_v19, 16  ;;  %v5052_v28 = vld [vmem:[%s5019_s21 + $0xa8] sm:$0xff]   ;;  %v5055_v29 = vld [vmem:[%s5019_s21 + $0xb0] ss:$0 sps:$4 sm:$0xff]   ;;  %v5071_v38 = vld [vmem:[%s5019_s21 + $0x18] sm:$0xff]  }
  0x23   : > { %4387 = vmatpush3.bf16.msra.mxu1 %v4623_v5  ;;  %3686 = vmatpush3.bf16.msra.mxu0 %v4623_v5  ;;  %v1034_v20 = vrot.slane %v1032_v16, 1  ;;  %v1039_v21 = vrot.slane %v1037_v17, 1  ;;  %v1042_v35 = vshrl.u32 %v5052_v28, 16  ;;  %v1044_v36 = vshll.u32 %v5052_v28, 16  ;;  %v5074_v39 = vld [vmem:[%s5019_s21 + $0x20] ss:$0 sps:$4 sm:$0xff]  }
  0x24   : > { %4380 = vmatprep.subr.bf16.mxu1 %v4624_v6  ;;  %3687 = vmatprep.subr.bf16.mxu0 %v4624_v6  ;;  %v890_v27 = vrot.slane %v888_v23, 1  ;;  %v895_v31 = vrot.slane %v893_v25, 1  ;;  %v1049_v37 = vshll.u32 %v5055_v29, 16  ;;  %v898_v44 = vshrl.u32 %v5071_v38, 16  ;;  %v5087_v48 = vld [vmem:[%s5019_s21 + $0xb4] sm:$0xff]   ;;  %v5099_v54 = vld [vmem:[%s5019_s21 + $0x24] sm:$0xff]  }
  0x25   : > { %v1035_v26 = vor.u32 %v1034_v20, %v1030_v15  ;;  %v1046_v42 = vrot.slane %v1044_v36, 1  ;;  %v900_v45 = vshll.u32 %v5071_v38, 16  ;;  %v905_v46 = vshll.u32 %v5074_v39, 16  ;;  %v5092_v51 = vld [vmem:[%s5019_s21 + $0xbc] ss:$0 sps:$4 sm:$0xff]   ;;  %v5127_v2 = vld [vmem:[%s5109_s26] sm:$0xff]  }
  0x26   : > { %v891_v34 = vor.u32 %v890_v27, %v886_v22  ;;  %v1051_v43 = vrot.slane %v1049_v37, 1  ;;  %v1056_v53 = vshll.u32 %v5087_v48, 16  ;;  %v1054_v57 = vshrl.u32 %v5087_v48, 16  ;;  %v5112_v60 = vld [vmem:[%s5019_s21 + $0x2c] ss:$0 sps:$4 sm:$0xff]  }
  0x27   : > { %4388 = vmatpush3.bf16.msra.mxu1 %v4625_v7  ;;  %3688 = vmatpush3.bf16.msra.mxu0 %v4625_v7  ;;  %v5064_v33 = vsel %vm872_vm0, %v1035_v26, %v1039_v21  ;;  %v1047_v47 = vor.u32 %v1046_v42, %v1042_v35  ;;  %v902_v49 = vrot.slane %v900_v45, 1  ;;  %v907_v50 = vrot.slane %v905_v46, 1  ;;  %v5131_v6 = vld [vmem:[%s5109_s26 + $0x8] ss:$0 sps:$4 sm:$0xff]   ;;  %v5146_v20 = vld [vmem:[%s5019_s21 + $0x38] ss:$0 sps:$4 sm:$0xff]  }
  0x28   : > { %4381 = vmatprep.subr.bf16.mxu1 %v4626_v8  ;;  %3689 = vmatprep.subr.bf16.mxu0 %v4626_v8  ;;  %v5080_v41 = vsel %vm872_vm0, %v891_v34, %v895_v31  ;;  %v1061_v58 = vshll.u32 %v5092_v51, 16  ;;  %v1058_v59 = vrot.slane %v1056_v53, 1  ;;  %v910_v63 = vshrl.u32 %v5099_v54, 16  ;;  %v4648_v26 = vld [vmem:[%s6331_s2 + $0x160] sm:$0xff]   ;;  %v4651_v37 = vld [vmem:[%s6331_s2 + $0x168] sm:$0xff]  }
  0x29   : > { %1452 = vmatprep.mubr.bf16.mxu1 %v5064_v33  ;;  %1356 = vmatprep.mubr.bf16.mxu0 %v5080_v41  ;;  %v5102_v55 = vsel %vm872_vm0, %v1047_v47, %v1051_v43  ;;  %v903_v56 = vor.u32 %v902_v49, %v898_v44  ;;  %v912_v0 = vshll.u32 %v5099_v54, 16  ;;  %v917_v1 = vshll.u32 %v5112_v60, 16  ;;  %v5162_v31 = vld [vmem:[%s5019_s21 + $0x3c] sm:$0xff]   ;;  %v5165_v35 = vld [vmem:[%s5019_s21 + $0x44] ss:$0 sps:$4 sm:$0xff]   ;;  %v5180_v46 = vld [vmem:[%s5019_s21 + $0x48] sm:$0xff]  }
  0x2a   : > { %v1059_v3 = vor.u32 %v1058_v59, %v1054_v57  ;;  %v1063_v4 = vrot.slane %v1061_v58, 1  ;;  %v1068_v8 = vshll.u32 %v5127_v2, 16  ;;  %v1073_v15 = vshll.u32 %v5131_v6, 16  ;;  %v4654_v47 = vld [vmem:[%s6331_s2 + $0x170] sm:$0xff]   ;;  %v4657_v58 = vld [vmem:[%s6331_s2 + $0x178] sm:$0xff]  }
  0x2b   : > { %4389 = vmatpush3.bf16.msra.mxu1 %v4627_v9  ;;  %3690 = vmatpush3.bf16.msra.mxu0 %v4627_v9  ;;  %v5120_v62 = vsel %vm872_vm0, %v903_v56, %v907_v50  ;;  %v914_v5 = vrot.slane %v912_v0, 1  ;;  %v919_v7 = vrot.slane %v917_v1, 1  ;;  %v5135_v9 = vld [vmem:[%s5019_s21 + $0x30] sm:$0xff]   ;;  %v929_v25 = vshll.u32 %v5146_v20, 16  ;;  %v5210_v1 = vld [vmem:[%s5019_s21 + $0x5c] ss:$0 sps:$4 sm:$0xff]  }
  0x2c   : > { %4382 = vmatprep.subr.bf16.mxu1 %v4628_v10  ;;  %3691 = vmatprep.subr.bf16.mxu0 %v4628_v10  ;;  %v4645_v10 = vld [vmem:[%s6331_s2 + $0x158] sm:$0xff]   ;;  %v5143_v16 = vsel %vm872_vm0, %v1059_v3, %v1063_v4  ;;  %v1070_v17 = vrot.slane %v1068_v8, 1  ;;  %v924_v21 = vshll.u32 %v5135_v9, 16  ;;  %v922_v23 = vshrl.u32 %v5135_v9, 16  ;;  %v5192_v56 = vld [vmem:[%s5019_s21 + $0x50] ss:$0 sps:$4 sm:$0xff]  }
  0x2d   : > { %v931_v34 = vrot.slane %v929_v25, 1  ;;  %v936_v36 = vshll.u32 %v5162_v31, 16  ;;  %v934_v43 = vshrl.u32 %v5162_v31, 16  ;;  %v941_v45 = vshll.u32 %v5165_v35, 16 }
  0x2e   : > { %v1111_v49 = vrot.slane %v5040_v18, 1  ;;  %v1112_v50 = vrot.slane %v5043_v19, 1  ;;  %v948_v57 = vshll.u32 %v5180_v46, 16  ;;  %v5202_v19 = vld [vmem:[%s5019_s21 + $0x54] sm:$0xff]   ;;  %v953_v0 = vshll.u32 %v5192_v56, 16 }
  0x2f   : > { %4390 = vmatpush3.bf16.msra.mxu1 %v4629_v11  ;;  %3692 = vmatpush3.bf16.msra.mxu0 %v4629_v11  ;;  %v915_v11 = vor.u32 %v914_v5, %v910_v63  ;;  %v938_v44 = vrot.slane %v936_v36, 1  ;;  %v943_v53 = vrot.slane %v941_v45, 1  ;;  %v1114_v3 = vrot.slane %v5071_v38, 1  ;;  %v4658_v5 = vld [vmem:[%s6331_s2 + $0x40] sm:$0xff]   ;;  %v5254_v36 = vld [vmem:[%s5019_s21 + $0x68] ss:$0 sps:$4 sm:$0xff]  }
  0x30   : > { %4383 = vmatprep.subr.bf16.mxu1 %v4630_v14  ;;  %3693 = vmatprep.subr.bf16.mxu0 %v4630_v14  ;;  %v1066_v14 = vshrl.u32 %v5127_v2, 16  ;;  %v950_v63 = vrot.slane %v948_v57, 1  ;;  %v1115_v4 = vrot.slane %v5074_v39, 1  ;;  %v1118_v8 = vrot.slane %v5112_v60, 1  ;;  %v4662_v60 = vld [vmem:[%s6331_s2 + $0x48] sm:$0xff]   ;;  %v4680_v45 = vld [vmem:[%s6331_s2 + $0x1c0] sm:$0xff]  }
  0x31   : > { %v5150_v22 = vsel %vm872_vm0, %v915_v11, %v919_v7  ;;  %v1117_v7 = vrot.slane %v5099_v54, 1  ;;  %v1120_v39 = vrot.slane %v5135_v9, 1  ;;  %v1126_v25 = vrot.slane %v5180_v46, 1  ;;  %v4669_v57 = vld [vmem:[%s6331_s2 + $0x10] sm:$0xff]  }
  0x32   : > { %v1071_v27 = vor.u32 %v1070_v17, %v1066_v14  ;;  %v955_v14 = vrot.slane %v953_v0, 1  ;;  %v5230_v17 = vsel %vm1107_vm1, %v1114_v3, %v1115_v4  ;;  %v1133_v4 = vrot.slane %v5254_v36, 1 }
  0x33   : > { %4391 = vmatpush3.bf16.msra.mxu1 %v4631_v24  ;;  %3694 = vmatpush3.bf16.msra.mxu0 %v4631_v24  ;;  %v926_v24 = vrot.slane %v924_v21, 1  ;;  %v1121_v21 = vrot.slane %v5146_v20, 1 }
  0x34   : > { %4384 = vmatprep.subr.bf16.mxu1 %v4632_v30  ;;  %3695 = vmatprep.subr.bf16.mxu0 %v4632_v30  ;;  %v1075_v30 = vrot.slane %v1073_v15, 1  ;;  %v965_v15 = vshll.u32 %v5210_v1, 16 }
  0x35   : > { %v5286_v3 = vsel %vm1107_vm1, %v1120_v39, %v1121_v21  ;;  %v4673_v21 = vld [vmem:[%s6331_s2 + $0x18] sm:$0xff]  }
  0x37   : > { %4392 = vmatpush3.bf16.msra.mxu1 %v4633_v32  ;;  %3696 = vmatpush3.bf16.msra.mxu0 %v4633_v32  ;;  %v927_v32 = vor.u32 %v926_v24, %v922_v23  ;;  %v1123_v23 = vrot.slane %v5162_v31, 1  ;;  %v1124_v24 = vrot.slane %v5165_v35, 1  ;;  %v1127_v35 = vrot.slane %v5192_v56, 1  ;;  %v4682_v56 = vld [vmem:[%s6331_s2 + $0x1c8] sm:$0xff]  }
  0x38   : > { %4137 = vmatprep.subr.bf16.mxu1 %v4636_v40  ;;  %3953 = vmatprep.subr.bf16.mxu0 %v4680_v45 }
  0x39   : > { %v5175_v42 = vsel %vm872_vm0, %v927_v32, %v931_v34  ;;  %v4665_v34 = vld [vmem:[%s6331_s2 + $0x8] sm:$0xff]  }
  0x3a   : > { %1453 = vmatmul.mubr.bf16.vlgmr.msra.gmra.mrb[0].mxu1 %v5028_v12  ;;  %1357 = vmatmul.mubr.bf16.vlgmr.msra.gmra.mrb[0].mxu0 %v5040_v18  ;;  %v5199_v18 = vsel %vm1107_vm1, %v1111_v49, %v1112_v50  ;;  %v5268_v49 = vld [vmem:[%s5019_s21 + $0x74] ss:$0 sps:$4 sm:$0xff]   ;;  %v4681_v50 = vld [vmem:[%s6331_s2 + $0x180] sm:$0xff]  }
  0x3b   : > { %4138 = vmatpush3.bf16.msra.mxu1 %v4636_v40  ;;  %1460 = vmatprep.mubr.bf16.mxu1 %v5102_v55  ;;  %v5172_v40 = vsel %vm872_vm0, %v1071_v27, %v1075_v30  ;;  %v5243_v27 = vsel %vm1107_vm1, %v1117_v7, %v1118_v8  ;;  %v958_v30 = vshrl.u32 %v5202_v19, 16  ;;  %v5293_v7 = vld [vmem:[%s5019_s21 + $0x6c] sm:$0xff]  }
  0x3c   : > { %4139 = vmatprep.subr.bf16.mxu1 %v4639_v52  ;;  %1364 = vmatprep.mubr.bf16.mxu0 %v5120_v62 }
  0x3d   : > { %3954 = vmatpush3.bf16.msra.mxu0 %v4681_v50  ;;  %v5334_v50 = vld [vmem:[%s5019_s21 + $0x84] sm:$0xff]  }
  0x3e   : > { %3955 = vmatprep.subr.bf16.mxu0 %v4682_v56 }
  0x3f   : > { %4140 = vmatpush3.bf16.msra.mxu1 %v4639_v52  ;;  %v939_v52 = vor.u32 %v938_v44, %v934_v43  ;;  %v4666_v43 = vld [vmem:[%s6331_s2 + $0x50] sm:$0xff]   ;;  %v967_v44 = vrot.slane %v965_v15, 1  ;;  %v5307_v15 = vld [vmem:[%s5019_s21 + $0x78] sm:$0xff]  }
  0x40   : > { %4141 = vmatprep.subr.bf16.mxu1 %v4642_v61 }
  0x41   : > { %v5205_v59 = vsel %vm872_vm0, %v939_v52, %v943_v53  ;;  %v977_v53 = vshll.u32 %v5254_v36, 16  ;;  %v6354_v36 = vrot.slane %v5293_v7, 1 }
  0x42   : > { %1461 = vmatmul.mubr.bf16.gmra.mrb[4].mxu1 %v5052_v28  ;;  %1365 = vmatmul.mubr.bf16.gmra.mrb[4].mxu0 %v5071_v38  ;;  %v4661_v38 = vld [vmem:[%s6331_s2] sm:$0xff]  }
  0x43   : > { %4142 = vmatpush3.bf16.msra.mxu1 %v4642_v61  ;;  %1468 = vmatprep.mubr.bf16.mxu1 %v5143_v16  ;;  %v946_v61 = vshrl.u32 %v5180_v46, 16  ;;  %v979_v39 = vrot.slane %v977_v53, 1  ;;  %v5342_v53 = vsel %vm1107_vm1, %v1126_v25, %v1127_v35  ;;  %v5360_v25 = vld [vmem:[%s5019_s21 + $0x98] ss:$0 sps:$4 sm:$0xff]  }
  0x44   : > { %4143 = vmatprep.subr.bf16.mxu1 %v4645_v10  ;;  %1372 = vmatprep.mubr.bf16.mxu0 %v5150_v22  ;;  %v4693_v35 = vld [vmem:[%s6331_s2 + $0x198] sm:$0xff]  }
  0x45   : > { %v951_v11 = vor.u32 %v950_v63, %v946_v61  ;;  %v1130_v61 = vrot.slane %v5210_v1, 1  ;;  %v5296_v1 = vsel %vm1107_vm1, %v1123_v23, %v1124_v24  ;;  %v4678_v23 = vld [vmem:[%s6331_s2 + $0x60] sm:$0xff]   ;;  %v984_v24 = vshll.u32 %v5293_v7, 16 }
  0x47   : > { %4144 = vmatpush3.bf16.msra.mxu1 %v4645_v10  ;;  %v960_v10 = vshll.u32 %v5202_v19, 16  ;;  %v5247_v32 = vsel %vm872_vm0, %v951_v11, %v955_v14  ;;  %v1136_v14 = vrot.slane %v5268_v49, 1  ;;  %v986_v56 = vrot.slane %v984_v24, 1  ;;  %v4694_v24 = vld [vmem:[%s6331_s2 + $0x70] sm:$0xff]  }
  0x48   : > { %4145 = vmatprep.subr.bf16.mxu1 %v4648_v26  ;;  %v4695_v11 = vld [vmem:[%s6331_s2 + $0x30] sm:$0xff]  }
  0x49   : > { %v962_v20 = vrot.slane %v960_v10, 1 }
  0x4a   : > { %1469 = vmatmul.mubr.bf16.gmra.mrb[8].mxu1 %v5087_v48  ;;  %1373 = vmatmul.mubr.bf16.gmra.mrb[8].mxu0 %v5099_v54 }
  0x4b   : > { %4146 = vmatpush3.bf16.msra.mxu1 %v4648_v26  ;;  %1476 = vmatprep.mubr.bf16.mxu1 %v5172_v40  ;;  %v5240_v26 = vld [vmem:[%s5019_s21 + $0x60] sm:$0xff]   ;;  %v963_v52 = vor.u32 %v962_v20, %v958_v30  ;;  %v982_v20 = vshrl.u32 %v5293_v7, 16 }
  0x4c   : > { %4147 = vmatprep.subr.bf16.mxu1 %v4651_v37  ;;  %1380 = vmatprep.mubr.bf16.mxu0 %v5175_v42  ;;  %v1132_v63 = vrot.slane %v5240_v26, 1  ;;  %v970_v0 = vshrl.u32 %v5240_v26, 16 }
  0x4d   : > { %v5299_v8 = vsel %vm872_vm0, %v963_v52, %v967_v44  ;;  %v4690_v44 = vld [vmem:[%s6331_s2 + $0x1d0] sm:$0xff]  }
  0x4e   : > { %v4691_v52 = vld [vmem:[%s6331_s2 + $0x190] sm:$0xff]  }
  0x4f   : > { %4148 = vmatpush3.bf16.msra.mxu1 %v4651_v37  ;;  %v5357_v37 = vld [vmem:[%s5019_s21 + $0x90] sm:$0xff]  }
  0x50   : > { %4149 = vmatprep.subr.bf16.mxu1 %v4654_v47  ;;  %v1020_v45 = vshll.u32 %v5357_v37, 16 }
  0x52   : > { %1477 = vmatmul.mubr.bf16.gmra.mrb[12].mxu1 %v5127_v2  ;;  %1381 = vmatmul.mubr.bf16.gmra.mrb[12].mxu0 %v5135_v9 }
  0x53   : > { %4150 = vmatpush3.bf16.msra.mxu1 %v4654_v47  ;;  %4153 = vmatprep.mubr.bf16.mxu1 %v5199_v18  ;;  %v972_v47 = vshll.u32 %v5240_v26, 16 }
  0x54   : > { %4151 = vmatprep.subr.bf16.mxu1 %v4657_v58  ;;  %1388 = vmatprep.mubr.bf16.mxu0 %v5205_v59 }
  0x55   : > { %v974_v10 = vrot.slane %v972_v47, 1  ;;  %v4679_v47 = vld [vmem:[%s6331_s2 + $0x20] sm:$0xff]  }
  0x57   : > { %4152 = vmatpush3.bf16.msra.mxu1 %v4657_v58  ;;  %v1129_v58 = vrot.slane %v5202_v19, 1  ;;  %v975_v30 = vor.u32 %v974_v10, %v970_v0  ;;  %v4692_v0 = vld [vmem:[%s6331_s2 + $0x1d8] sm:$0xff]  }
  0x58   : > { %3817 = vmatprep.subr.bf16.mxu1 %v4658_v5  ;;  %v4672_v5 = vld [vmem:[%s6331_s2 + $0x58] sm:$0xff]  }
  0x59   : > { %v5354_v10 = vsel %vm872_vm0, %v975_v30, %v979_v39  ;;  %v4696_v30 = vld [vmem:[%s6331_s2 + $0x1e0] sm:$0xff]  }
  0x5a   : > { %4154 = vmatmul.mubr.bf16.vlgmr.msra.gmra.mrb[16].mxu1 %v5230_v17  ;;  %1389 = vmatmul.mubr.bf16.gmra.mrb[16].mxu0 %v5162_v31 }
  0x5b   : > { %3818 = vmatpush3.bf16.msra.mxu1 %v4661_v38  ;;  %4157 = vmatprep.mubr.bf16.mxu1 %v5243_v27  ;;  %v4685_v38 = vld [vmem:[%s6331_s2 + $0x188] sm:$0xff]  }
  0x5c   : > { %3819 = vmatprep.subr.bf16.mxu1 %v4662_v60  ;;  %1396 = vmatprep.mubr.bf16.mxu0 %v5247_v32  ;;  %v5315_v60 = vld [vmem:[%s5019_s21 + $0x80] ss:$0 sps:$4 sm:$0xff]  }
  0x5d   : > { %3956 = vmatpush3.bf16.msra.mxu0 %v4685_v38  ;;  %v1001_v39 = vshll.u32 %v5315_v60, 16 }
  0x5e   : > { %3957 = vmatprep.subr.bf16.mxu0 %v4690_v44  ;;  %v1141_v44 = vrot.slane %v5334_v50, 1 }
  0x5f   : > { %3820 = vmatpush3.bf16.msra.mxu1 %v4665_v34  ;;  %v989_v34 = vshll.u32 %v5268_v49, 16  ;;  %v4700_v49 = vld [vmem:[%s6331_s2 + $0x78] sm:$0xff]  }
  0x60   : > { %3821 = vmatprep.subr.bf16.mxu1 %v4666_v43  ;;  %v4698_v43 = vld [vmem:[%s6331_s2 + $0x1e8] sm:$0xff]  }
  0x61   : > { %v991_v38 = vrot.slane %v989_v34, 1  ;;  %3958 = vmatpush3.bf16.msra.mxu0 %v4691_v52  ;;  %v987_v34 = vor.u32 %v986_v56, %v982_v20  ;;  %v4697_v52 = vld [vmem:[%s6331_s2 + $0x1a0] sm:$0xff]   ;;  %v1145_v20 = vrot.slane %v5360_v25, 1  ;;  %v1003_v56 = vrot.slane %v1001_v39, 1 }
  0x62   : > { %4158 = vmatmul.mubr.bf16.gmra.mrb[20].mxu1 %v5286_v3  ;;  %1397 = vmatmul.mubr.bf16.gmra.mrb[20].mxu0 %v5180_v46  ;;  %v5414_v39 = vsel %vm1107_vm1, %v6354_v36, %v1136_v14  ;;  %v4702_v14 = vld [vmem:[%s6331_s2 + $0x1f0] sm:$0xff]   ;;  %v4705_v36 = vld [vmem:[%s5019_s21] sm:$0xff]  }
  0x63   : > { %4161 = vmatprep.mubr.bf16.mxu1 %v5296_v1  ;;  %1404 = vmatprep.mubr.bf16.mxu0 %v5299_v8 }
  0x64   : > { %3822 = vmatpush3.bf16.msra.mxu1 %v4669_v57  ;;  %v5345_v57 = vld [vmem:[%s5019_s21 + $0x8c] ss:$0 sps:$4 sm:$0xff]   ;;  %3959 = vmatprep.subr.bf16.mxu0 %v4692_v0 }
  0x65   : > { %3823 = vmatprep.subr.bf16.mxu1 %v4672_v5  ;;  %v5351_v5 = vsel %vm1107_vm1, %v1129_v58, %v1130_v61  ;;  %v4688_v58 = vld [vmem:[%s6331_s2 + $0x68] sm:$0xff]   ;;  %v996_v61 = vshll.u32 %v5307_v15, 16  ;;  %3960 = vmatpush3.bf16.msra.mxu0 %v4693_v35  ;;  %v1142_v0 = vrot.slane %v5345_v57, 1  ;;  %v5399_v35 = vsel %vm1107_vm1, %v1132_v63, %v1133_v4 }
  0x66   : > { %3961 = vmatprep.subr.bf16.mxu0 %v4696_v30  ;;  %v5417_v63 = vsel %vm872_vm0, %v987_v34, %v991_v38  ;;  %v1013_v4 = vshll.u32 %v5345_v57, 16  ;;  %v4701_v38 = vld [vmem:[%s6331_s2 + $0x38] sm:$0xff]   ;;  %v4703_v57 = vld [vmem:[%s6331_s2 + $0x1b0] sm:$0xff]  }
  0x67   : > { %v4704_v34 = vld [vmem:[%s6331_s2 + $0x1f8] sm:$0xff]  }
  0x68   : > { %3824 = vmatpush3.bf16.msra.mxu1 %v4673_v21  ;;  %v4689_v21 = vld [vmem:[%s6331_s2 + $0x28] sm:$0xff]   ;;  %v1015_v30 = vrot.slane %v1013_v4, 1 }
  0x69   : > { %3825 = vmatprep.subr.bf16.mxu1 %v4678_v23  ;;  %v994_v23 = vshrl.u32 %v5307_v15, 16  ;;  %3962 = vmatpush3.bf16.msra.mxu0 %v4697_v52 }
  0x6a   : > { %4162 = vmatmul.mubr.bf16.gmra.mrb[24].mxu1 %v5342_v53  ;;  %1405 = vmatmul.mubr.bf16.gmra.mrb[24].mxu0 %v5202_v19 }
  0x6b   : > { %4165 = vmatprep.mubr.bf16.mxu1 %v5351_v5  ;;  %1412 = vmatprep.mubr.bf16.mxu0 %v5354_v10 }
  0x6c   : > { %3826 = vmatpush3.bf16.msra.mxu1 %v4679_v47  ;;  %v998_v47 = vrot.slane %v996_v61, 1  ;;  %v4699_v61 = vld [vmem:[%s6331_s2 + $0x1a8] sm:$0xff]   ;;  %3963 = vmatprep.subr.bf16.mxu0 %v4698_v43  ;;  %v1151_v43 = vrot.slane %v5055_v29, 1  ;;  %v1153_v29 = vrot.slane %v5087_v48, 1  ;;  %v1025_v48 = vshll.u32 %v5360_v25, 16 }
  0x6d   : > { %3827 = vmatprep.subr.bf16.mxu1 %v4688_v58  ;;  %v1148_v58 = vrot.slane %v5031_v13, 1  ;;  %v1008_v13 = vshll.u32 %v5334_v50, 16  ;;  %3964 = vmatpush3.bf16.msra.mxu0 %v4699_v61 }
  0x6e   : > { %3965 = vmatprep.subr.bf16.mxu0 %v4702_v14  ;;  %v1154_v14 = vrot.slane %v5092_v51, 1 }
  0x6f   : > { %v1010_v52 = vrot.slane %v1008_v13, 1  ;;  %v4706_v13 = vld [vmem:[%s5019_s21 + $0x8] ss:$0 sps:$4 sm:$0xff]  }
  0x70   : > { %3828 = vmatpush3.bf16.msra.mxu1 %v4689_v21  ;;  %v999_v21 = vor.u32 %v998_v47, %v994_v23  ;;  %v4708_v23 = vld [vmem:[%s6331_s2 + $0x80] sm:$0xff]   ;;  %v6356_v47 = vrot.slane %v5307_v15, 1  ;;  %v881_v51 = vshll.u32 %v4706_v13, 16 }
  0x71   : > { %3829 = vmatprep.subr.bf16.mxu1 %v4694_v24  ;;  %v1006_v24 = vshrl.u32 %v5334_v50, 16  ;;  %3966 = vmatpush3.bf16.msra.mxu0 %v4703_v57  ;;  %v874_v57 = vshrl.u32 %v4705_v36, 16 }
  0x72   : > { %4166 = vmatmul.mubr.bf16.gmra.mrb[28].mxu1 %v5399_v35  ;;  %1413 = vmatmul.mubr.bf16.gmra.mrb[28].mxu0 %v5240_v26  ;;  %v5460_v4 = vsel %vm872_vm0, %v999_v21, %v1003_v56 }
  0x73   : > { %4169 = vmatprep.mubr.bf16.mxu1 %v5414_v39  ;;  %1420 = vmatprep.mubr.bf16.mxu0 %v5417_v63  ;;  %v1011_v56 = vor.u32 %v1010_v52, %v1006_v24  ;;  %v1157_v52 = vrot.slane %v5131_v6, 1  ;;  %v1109_v6 = vrot.slane %v4706_v13, 1  ;;  %v4710_v13 = vld [vmem:[%s6331_s2 + $0x90] sm:$0xff]  }
  0x74   : > { %3830 = vmatpush3.bf16.msra.mxu1 %v4695_v11  ;;  %v6355_v11 = vrot.slane %v5315_v60, 1  ;;  %v4707_v60 = vld [vmem:[%s6331_s2 + $0x1b8] sm:$0xff]   ;;  %3967 = vmatprep.subr.bf16.mxu0 %v4704_v34  ;;  %v6359_v34 = vrot.slane %v5357_v37, 1 }
  0x75   : > { %3831 = vmatprep.subr.bf16.mxu1 %v4700_v49  ;;  %v5457_v49 = vsel %vm1107_vm1, %v1141_v44, %v1142_v0  ;;  %v1018_v44 = vshrl.u32 %v5357_v37, 16  ;;  %v1022_v0 = vrot.slane %v1020_v45, 1  ;;  %3968 = vmatpush3.bf16.msra.mxu0 %v4707_v60  ;;  %v5485_v45 = vsel %vm872_vm0, %v1011_v56, %v1015_v30 }
  0x76   : > { %v5453_v61 = vsel %vm1107_vm1, %v6356_v47, %v6355_v11  ;;  %6358 = vst [vmem:[#allocation11_spill] sm:$0xff] %v5457_v49  ;;  %v876_v11 = vshll.u32 %v4705_v36, 16  ;;  %v5477_v47 = vsel %vm1107_vm1, %v6359_v34, %v1145_v20  ;;  %v6361_v20 = vrot.slane %v5052_v28, 1 }
  0x77   : > { %6357 = vst [vmem:[#allocation10_spill] sm:$0xff] %v5453_v61  ;;  %v1023_v25 = vor.u32 %v1022_v0, %v1018_v44  ;;  %v1156_v30 = vrot.slane %v5127_v2, 1  ;;  %v1108_v2 = vrot.slane %v4705_v36, 1  ;;  %v4743_v44 = vld [vmem:[%s5019_s21 + $0xc] sm:$0xff]  }
  0x78   : > { %3832 = vmatpush3.bf16.msra.mxu1 %v4701_v38  ;;  %v1027_v38 = vrot.slane %v1025_v48, 1  ;;  %v878_v21 = vrot.slane %v876_v11, 1  ;;  %v5494_v24 = vsel %vm1107_vm1, %v6361_v20, %v1151_v43  ;;  %v883_v43 = vrot.slane %v881_v51, 1  ;;  %v4709_v48 = vld [vmem:[%s6331_s2 + $0x88] sm:$0xff]   ;;  %v4711_v11 = vld [vmem:[%s6331_s2 + $0x98] sm:$0xff]  }
  0x79   : > { %4185 = vmatprep.subr.bf16.mxu1 %v4708_v23  ;;  %v5519_v60 = vsel %vm1107_vm1, %v1108_v2, %v1109_v6  ;;  %v4720_v6 = vld [vmem:[%s6331_s2 + $0x210] sm:$0xff]  }
  0x7a   : > { %4170 = vmatmul.mubr.bf16.gmra.mrb[32].mxu1 %v5453_v61  ;;  %1421 = vmatmul.mubr.bf16.gmra.mrb[32].mxu0 %v5293_v7  ;;  %v879_v28 = vor.u32 %v878_v21, %v874_v57 }
  0x7b   : > { %4173 = vmatprep.mubr.bf16.mxu1 %v5457_v49  ;;  %1428 = vmatprep.mubr.bf16.mxu0 %v5460_v4  ;;  %v6360_v49 = vrot.slane %v5028_v12, 1  ;;  %v5497_v12 = vsel %vm1107_vm1, %v1153_v29, %v1154_v14  ;;  %v5509_v29 = vsel %vm1107_vm1, %v1156_v30, %v1157_v52  ;;  %v4742_v14 = vld [vmem:[%s5019_s21 + $0x18] sm:$0xff]  }
  0x7d   : > { %v5482_v61 = vsel %vm1107_vm1, %v6360_v49, %v1148_v58  ;;  %v5500_v58 = vsel %vm872_vm0, %v1023_v25, %v1027_v38  ;;  %v884_v49 = vsel %vm872_vm0, %v879_v28, %v883_v43  ;;  %v4719_v28 = vld [vmem:[%s6331_s2 + $0x208] sm:$0xff]  }
  0x82   : > { %4174 = vmatmul.mubr.bf16.gmra.mrb[36].mxu1 %v5477_v47  ;;  %1429 = vmatmul.mubr.bf16.gmra.mrb[36].mxu0 %v5307_v15 }
  0x83   : > { %4177 = vmatprep.mubr.bf16.mxu1 %v5482_v61  ;;  %1436 = vmatprep.mubr.bf16.mxu0 %v5485_v45 }
  0x8a   : > { %4178 = vmatmul.mubr.bf16.gmra.mrb[40].mxu1 %v5494_v24  ;;  %1437 = vmatmul.mubr.bf16.gmra.mrb[40].mxu0 %v5334_v50 }
  0x8b   : > { %4181 = vmatprep.mubr.bf16.mxu1 %v5497_v12  ;;  %1444 = vmatprep.mubr.bf16.mxu0 %v5500_v58 }
  0x92   : > { %4182 = vmatmul.mubr.bf16.gmra.mrb[44].mxu1 %v5509_v29  ;;  %1445 = vmatmul.mubr.bf16.gmra.mrb[44].mxu0 %v5357_v37 }
  0x93   : > { %1822 = vmatprep.mubr.bf16.mxu1 %v884_v49  ;;  %2288 = vmatprep.mubr.bf16.mxu0 %v5120_v62 }
  0x9a   : > { %1823 = vmatmul.mubr.bf16.vlgmr.msra.gmra.mrb[48].mxu1 %v4705_v36  ;;  %2289 = vmatmul.mubr.bf16.vlgmr.msra.gmra.mrb[48].mxu0 %v4742_v14  ;;  %v4713_v36 = vld [vmem:[%s6331_s2 + $0xa8] sm:$0xff]  }
  0x9b   : > { %4186 = vmatpush3.bf16.msra.mxu1 %v4708_v23  ;;  %1830 = vmatprep.mubr.bf16.mxu1 %v5080_v41  ;;  %v4712_v41 = vld [vmem:[%s6331_s2 + $0xa0] sm:$0xff]   ;;  %v4715_v23 = vld [vmem:[%s6331_s2 + $0xb8] sm:$0xff]  }
  0x9c   : > { %2296 = vmatprep.mubr.bf16.mxu0 %v5150_v22  ;;  %4187 = vmatprep.subr.bf16.mxu1 %v4709_v48 }
  0x9f   : > { %4188 = vmatpush3.bf16.msra.mxu1 %v4709_v48 }
  0xa0   : > { %4189 = vmatprep.subr.bf16.mxu1 %v4710_v13 }
  0xa2   : > { %1831 = vmatmul.mubr.bf16.gmra.mrb[52].mxu1 %v4743_v44  ;;  %2297 = vmatmul.mubr.bf16.gmra.mrb[52].mxu0 %v5099_v54 }
  0xa3   : > { %1838 = vmatprep.mubr.bf16.mxu1 %v5120_v62  ;;  %2304 = vmatprep.mubr.bf16.mxu0 %v5175_v42  ;;  %v4714_v62 = vld [vmem:[%s6331_s2 + $0xb0] sm:$0xff]  }
  0xa4   : > { %4190 = vmatpush3.bf16.msra.mxu1 %v4710_v13 }
  0xa5   : > { %4191 = vmatprep.subr.bf16.mxu1 %v4711_v11 }
  0xa8   : > { %4192 = vmatpush3.bf16.msra.mxu1 %v4711_v11 }
  0xa9   : > { %4193 = vmatprep.subr.bf16.mxu1 %v4712_v41 }
  0xaa   : > { %1839 = vmatmul.mubr.bf16.gmra.mrb[56].mxu1 %v4742_v14  ;;  %2305 = vmatmul.mubr.bf16.gmra.mrb[56].mxu0 %v5135_v9 }
  0xab   : > { %1846 = vmatprep.mubr.bf16.mxu1 %v5150_v22  ;;  %2312 = vmatprep.mubr.bf16.mxu0 %v5205_v59  ;;  %v5556_v22 = vld [vmem:[%s6331_s2 + $0x200] sm:$0xff]  }
  0xac   : > { %4194 = vmatpush3.bf16.msra.mxu1 %v4712_v41 }
  0xad   : > { %4195 = vmatprep.subr.bf16.mxu1 %v4713_v36 }
  0xb0   : > { %4196 = vmatpush3.bf16.msra.mxu1 %v4713_v36 }
  0xb1   : > { %4197 = vmatprep.subr.bf16.mxu1 %v4714_v62 }
  0xb2   : > { %1847 = vmatmul.mubr.bf16.gmra.mrb[60].mxu1 %v5099_v54  ;;  %2313 = vmatmul.mubr.bf16.gmra.mrb[60].mxu0 %v5162_v31  ;;  %v4744_v54 = vld [vmem:[%s5019_s21 + $0x9c] sm:$0xff]  }
  0xb3   : > { %1854 = vmatprep.mubr.bf16.mxu1 %v5175_v42  ;;  %2320 = vmatprep.mubr.bf16.mxu0 %v5247_v32  ;;  %v5599_v42 = vld [vmem:[%s5109_s26 + $0x14] ss:$0 sps:$4 sm:$0xff]  }
  0xb4   : > { %4198 = vmatpush3.bf16.msra.mxu1 %v4714_v62  ;;  %v4721_v62 = vld [vmem:[%s6331_s2 + $0x218] sm:$0xff]  }
  0xb5   : > { %4199 = vmatprep.subr.bf16.mxu1 %v4715_v23 }
  0xb8   : > { %4200 = vmatpush3.bf16.msra.mxu1 %v4715_v23 }
  0xb9   : > { %4233 = vmatprep.subr.bf16.mxu1 %v5556_v22 }
  0xba   : > { %1855 = vmatmul.mubr.bf16.gmra.mrb[64].mxu1 %v5135_v9  ;;  %2321 = vmatmul.mubr.bf16.gmra.mrb[64].mxu0 %v5180_v46  ;;  %v5592_v9 = vld [vmem:[%s5109_s26 + $0xc] sm:$0xff]  }
  0xbb   : > { %1862 = vmatprep.mubr.bf16.mxu1 %v5205_v59  ;;  %2328 = vmatprep.mubr.bf16.mxu0 %v5299_v8 }
  0xc2   : > { %1863 = vmatmul.mubr.bf16.gmra.mrb[68].mxu1 %v5162_v31  ;;  %2329 = vmatmul.mubr.bf16.gmra.mrb[68].mxu0 %v5202_v19  ;;  %v4745_v31 = vld [vmem:[%s5019_s21 + $0xa8] sm:$0xff]  }
  0xc3   : > { %1870 = vmatprep.mubr.bf16.mxu1 %v5247_v32  ;;  %2336 = vmatprep.mubr.bf16.mxu0 %v5354_v10  ;;  %v4746_v32 = vld [vmem:[%s5019_s21 + $0xb4] sm:$0xff]   ;;  %s6347_s21 = sshll.u32 %s6019_s13, 8 }
  0xca   : > { %1871 = vmatmul.mubr.bf16.gmra.mrb[72].mxu1 %v5180_v46  ;;  %2337 = vmatmul.mubr.bf16.gmra.mrb[72].mxu0 %v5240_v26  ;;  %v1080_v46 = vshll.u32 %v5592_v9, 16 }
  0xcb   : > { %1878 = vmatprep.mubr.bf16.mxu1 %v5299_v8  ;;  %2344 = vmatprep.mubr.bf16.mxu0 %v5417_v63  ;;  %v4747_v8 = vld [vmem:[%s5109_s26] sm:$0xff]   ;;  %s6033_s26 = scalar_lea.vmem [#allocation2], %s6347_s21  ;;  %s4752_s21 = sshll.u32 %s4860_s15, 4  ;;  %s4753_s21 = int_to_ptr.vmem [resolvable:$false] %s4752_s21 }
  0xcc   : > { %v1082_v59 = vrot.slane %v1080_v46, 1  ;;  %s3374_s23 = sshll.u32 %s6033_s26, 4  ;;  %s6136_s23 = int_to_ptr.vmem [resolvable:$true] %s3374_s23 }
  0xcd   : > { %s4748_s14 = scalar_lea.vmem %s6136_s23, 4096  ;;  %p4755_p1 = scmp.lt.s32.totalorder %s6136_s23, %s4753_s21 }
  0xce   : > { %p4749_p12 = scmp.ne.s32.totalorder %s6136_s23, %s4748_s14 }
  0xd0   : > { %p4750_p13 = pnand %p4749_p12, %p4964_p4 }
  0xd2   : > { %1879 = vmatmul.mubr.bf16.gmra.mrb[76].mxu1 %v5202_v19  ;;  %2345 = vmatmul.mubr.bf16.gmra.mrb[76].mxu0 %v5293_v7  ;;  %v1078_v19 = vshrl.u32 %v5592_v9, 16  ;;  %p4751_p0 = pneg %p4750_p13 }
  0xd3   : > { %1886 = vmatprep.mubr.bf16.mxu1 %v5354_v10  ;;  %2352 = vmatprep.mubr.bf16.mxu0 %v5460_v4 }
  0xda   : > { %1887 = vmatmul.mubr.bf16.gmra.mrb[80].mxu1 %v5240_v26  ;;  %2353 = vmatmul.mubr.bf16.gmra.mrb[80].mxu0 %v5307_v15  ;;  %v1085_v26 = vshll.u32 %v5599_v42, 16 }
  0xdb   : > { %1894 = vmatprep.mubr.bf16.mxu1 %v5417_v63  ;;  %2360 = vmatprep.mubr.bf16.mxu0 %v5485_v45 }
  0xe2   : > { %1895 = vmatmul.mubr.bf16.gmra.mrb[84].mxu1 %v5293_v7  ;;  %2361 = vmatmul.mubr.bf16.gmra.mrb[84].mxu0 %v5334_v50 }
  0xe3   : > { %1902 = vmatprep.mubr.bf16.mxu1 %v5460_v4  ;;  %2368 = vmatprep.mubr.bf16.mxu0 %v5500_v58 }
  0xea   : > { %1903 = vmatmul.mubr.bf16.gmra.mrb[88].mxu1 %v5307_v15  ;;  %2369 = vmatmul.mubr.bf16.gmra.mrb[88].mxu0 %v5357_v37 }
  0xeb   : > { %1910 = vmatprep.mubr.bf16.mxu1 %v5485_v45  ;;  %2376 = vmatprep.mubr.bf16.mxu0 %v5064_v33 }
  0xf2   : > { %1911 = vmatmul.mubr.bf16.gmra.mrb[92].mxu1 %v5334_v50  ;;  %2377 = vmatmul.mubr.bf16.gmra.mrb[92].mxu0 %v4744_v54 }
  0xf3   : > { %1918 = vmatprep.mubr.bf16.mxu1 %v5500_v58  ;;  %2384 = vmatprep.mubr.bf16.mxu0 %v5102_v55 }
  0xfa   : > { %1919 = vmatmul.mubr.bf16.gmra.mrb[96].mxu1 %v5357_v37  ;;  %2385 = vmatmul.mubr.bf16.gmra.mrb[96].mxu0 %v4745_v31  ;;  %v1087_v37 = vrot.slane %v1085_v26, 1 }
  0xfb   : > { %1926 = vmatprep.mubr.bf16.mxu1 %v5064_v33  ;;  %2392 = vmatprep.mubr.bf16.mxu0 %v5143_v16  ;;  %v1083_v33 = vor.u32 %v1082_v59, %v1078_v19 }
  0xfd   : > { %v1088_v7 = vsel %vm872_vm0, %v1083_v33, %v1087_v37 }
 0x102   : > { %1927 = vmatmul.mubr.bf16.gmra.mrb[100].mxu1 %v4744_v54  ;;  %2393 = vmatmul.mubr.bf16.gmra.mrb[100].mxu0 %v4746_v32 }
 0x103   : > { %1934 = vmatprep.mubr.bf16.mxu1 %v5102_v55  ;;  %2400 = vmatprep.mubr.bf16.mxu0 %v5172_v40 }
 0x10a   : > { %1935 = vmatmul.mubr.bf16.gmra.mrb[104].mxu1 %v4745_v31  ;;  %2401 = vmatmul.mubr.bf16.gmra.mrb[104].mxu0 %v4747_v8  ;;  %v4722_v31 = vld [vmem:[%s6331_s2 + $0x220] sm:$0xff]  }
 0x10b   : > { %1942 = vmatprep.mubr.bf16.mxu1 %v5143_v16  ;;  %2408 = vmatprep.mubr.bf16.mxu0 %v1088_v7 }
 0x10d   : > { %v3769_v15 = vpop.f32.mrb[0].mxu1  ;;  %v3697_v50 = vpop.f32.mrb[0].mxu0 }
 0x10e   : > { %v3770_v10 = vpop.f32.mrb[1].mxu1  ;;  %v3698_v63 = vpop.f32.mrb[1].mxu0 }
 0x10f   : > { %v5610_v4 = vadd.f32 %v3770_v10, %v3769_v15  ;;  %v3772_v0 = vpop.f32.mrb[2].mxu1  ;;  %v5612_v55 = vadd.f32 %v3698_v63, %v3697_v50  ;;  %v3700_v40 = vpop.f32.mrb[2].mxu0  ;;  %v4723_v15 = vld [vmem:[%s6331_s2 + $0x228] sm:$0xff]  }
 0x110   : > { %v3773_v56 = vpop.f32.mrb[3].mxu1  ;;  %v3701_v38 = vpop.f32.mrb[3].mxu0 }
 0x111   : > { %v5614_v57 = vadd.f32 %v3773_v56, %v3772_v0  ;;  %v5616_v21 = vadd.f32 %v3701_v38, %v3700_v40  ;;  %v4724_v0 = vld [vmem:[%s6331_s2 + $0x230] sm:$0xff]  }
 0x112   : > { %1943 = vmatmul.mubr.bf16.gmra.mrb[108].mxu1 %v4746_v32  ;;  %2409 = vmatmul.mubr.bf16.gmra.mrb[108].mxu0 %v5592_v9 }
 0x113   : > { %4201 = vmatprep.mubr.bf16.mxu1 %v5519_v60 }
 0x115   : > { %v3775_v16 = vpop.f32.mrb[4].mxu1  ;;  %v3703_v51 = vpop.f32.mrb[4].mxu0 }
 0x116   : > { %v3776_v34 = vpop.f32.mrb[5].mxu1  ;;  %v3704_v45 = vpop.f32.mrb[5].mxu0 }
 0x117   : > { %v5620_v25 = vadd.f32 %v3776_v34, %v3775_v16  ;;  %v3778_v20 = vpop.f32.mrb[6].mxu1  ;;  %v5622_v58 = vadd.f32 %v3704_v45, %v3703_v51  ;;  %v3706_v30 = vpop.f32.mrb[6].mxu0  ;;  %v4725_v34 = vld [vmem:[%s6331_s2 + $0x238] sm:$0xff]  }
 0x118   : > { %v3779_v52 = vpop.f32.mrb[7].mxu1  ;;  %v3707_v43 = vpop.f32.mrb[7].mxu0 }
 0x119   : > { %v5627_v49 = vadd.f32 %v3779_v52, %v3778_v20  ;;  %v5629_v2 = vadd.f32 %v3707_v43, %v3706_v30 }
 0x11a   : > { %4202 = vmatmul.mubr.bf16.vlgmr.msra.gmra.mrb[16].mxu1 %v5199_v18 }
 0x11b   : > { %4234 = vmatpush3.bf16.msra.mxu1 %v5556_v22  ;;  %4205 = vmatprep.mubr.bf16.mxu1 %v5230_v17 }
 0x11c   : > { %4235 = vmatprep.subr.bf16.mxu1 %v4719_v28 }
 0x11d   : > { %v3781_v48 = vpop.f32.mrb[8].mxu1  ;;  %v3709_v60 = vpop.f32.mrb[8].mxu0 }
 0x11e   : > { %v3782_v14 = vpop.f32.mrb[9].mxu1  ;;  %v3710_v13 = vpop.f32.mrb[9].mxu0 }
 0x11f   : > { %v5637_v11 = vadd.f32 %v3782_v14, %v3781_v48  ;;  %v3784_v44 = vpop.f32.mrb[10].mxu1  ;;  %4236 = vmatpush3.bf16.msra.mxu1 %v4719_v28  ;;  %v5639_v41 = vadd.f32 %v3710_v13, %v3709_v60  ;;  %v3712_v18 = vpop.f32.mrb[10].mxu0  ;;  %v6362_v48 = vld [vmem:[#allocation10_spill] sm:$0xff] }
 0x120   : > { %v3785_v36 = vpop.f32.mrb[11].mxu1  ;;  %4237 = vmatprep.subr.bf16.mxu1 %v4720_v6  ;;  %v3713_v23 = vpop.f32.mrb[11].mxu0 }
 0x121   : > { %v5644_v22 = vadd.f32 %v3785_v36, %v3784_v44  ;;  %v5646_v54 = vadd.f32 %v3713_v23, %v3712_v18  ;;  %v6363_v23 = vld [vmem:[#allocation11_spill] sm:$0xff] }
 0x122   : > { %4206 = vmatmul.mubr.bf16.gmra.mrb[20].mxu1 %v5243_v27 }
 0x123   : > { %4209 = vmatprep.mubr.bf16.mxu1 %v5286_v3  ;;  %4238 = vmatpush3.bf16.msra.mxu1 %v4720_v6 }
 0x124   : > { %4239 = vmatprep.subr.bf16.mxu1 %v4721_v62 }
 0x125   : > { %v3787_v46 = vpop.f32.mrb[12].mxu1  ;;  %v3715_v19 = vpop.f32.mrb[12].mxu0 }
 0x126   : > { %v3788_v59 = vpop.f32.mrb[13].mxu1  ;;  %v3716_v26 = vpop.f32.mrb[13].mxu0 }
 0x127   : > { %v5653_v32 = vadd.f32 %v3788_v59, %v3787_v46  ;;  %v3790_v33 = vpop.f32.mrb[14].mxu1  ;;  %4240 = vmatpush3.bf16.msra.mxu1 %v4721_v62  ;;  %v5655_v37 = vadd.f32 %v3716_v26, %v3715_v19  ;;  %v3718_v7 = vpop.f32.mrb[14].mxu0  ;;  %v4726_v62 = vld [vmem:[%s6335_s6] sm:$0xff]  }
 0x128   : > { %v3791_v8 = vpop.f32.mrb[15].mxu1  ;;  %4241 = vmatprep.subr.bf16.mxu1 %v4722_v31  ;;  %v3719_v50 = vpop.f32.mrb[15].mxu0  ;;  %4281 = vmatprep.subr.bf16.mxu0 %v4726_v62 }
 0x129   : > { %v5660_v10 = vadd.f32 %v3791_v8, %v3790_v33  ;;  %v5662_v63 = vadd.f32 %v3719_v50, %v3718_v7  ;;  %4282 = vmatpush3.bf16.msra.mxu0 %v4726_v62  ;;  %v4728_v62 = vld [vmem:[%s6335_s6 + $0x10] sm:$0xff]  }
 0x12a   : > { %4210 = vmatmul.mubr.bf16.gmra.mrb[24].mxu1 %v5296_v1 }
 0x12b   : > { %4213 = vmatprep.mubr.bf16.mxu1 %v5342_v53  ;;  %4242 = vmatpush3.bf16.msra.mxu1 %v4722_v31 }
 0x12c   : > { %4243 = vmatprep.subr.bf16.mxu1 %v4723_v15 }
 0x12d   : > { %v3721_v40 = vpop.f32.mrb[16].mxu0 }
 0x12e   : > { %v3722_v56 = vpop.f32.mrb[17].mxu0 }
 0x12f   : > { %4244 = vmatpush3.bf16.msra.mxu1 %v4723_v15  ;;  %v5669_v38 = vadd.f32 %v3722_v56, %v3721_v40  ;;  %v3724_v16 = vpop.f32.mrb[18].mxu0  ;;  %v4727_v56 = vld [vmem:[%s6335_s6 + $0x8] sm:$0xff]  }
 0x130   : > { %4245 = vmatprep.subr.bf16.mxu1 %v4724_v0  ;;  %v3725_v51 = vpop.f32.mrb[19].mxu0  ;;  %4283 = vmatprep.subr.bf16.mxu0 %v4727_v56 }
 0x131   : > { %v5674_v45 = vadd.f32 %v3725_v51, %v3724_v16  ;;  %4284 = vmatpush3.bf16.msra.mxu0 %v4727_v56 }
 0x132   : > { %4214 = vmatmul.mubr.bf16.gmra.mrb[28].mxu1 %v5351_v5  ;;  %4285 = vmatprep.subr.bf16.mxu0 %v4728_v62 }
 0x133   : > { %4217 = vmatprep.mubr.bf16.mxu1 %v5399_v35  ;;  %4246 = vmatpush3.bf16.msra.mxu1 %v4724_v0 }
 0x134   : > { %4247 = vmatprep.subr.bf16.mxu1 %v4725_v34 }
 0x135   : > { %v3727_v20 = vpop.f32.mrb[20].mxu0  ;;  %4286 = vmatpush3.bf16.msra.mxu0 %v4728_v62  ;;  %v4732_v62 = vld [vmem:[%s6335_s6 + $0x30] sm:$0xff]  }
 0x136   : > { %v3728_v30 = vpop.f32.mrb[21].mxu0 }
 0x137   : > { %4248 = vmatpush3.bf16.msra.mxu1 %v4725_v34  ;;  %v5678_v52 = vadd.f32 %v3728_v30, %v3727_v20  ;;  %v3730_v28 = vpop.f32.mrb[22].mxu0 }
 0x138   : > { %v3731_v43 = vpop.f32.mrb[23].mxu0 }
 0x139   : > { %v5680_v6 = vadd.f32 %v3731_v43, %v3730_v28 }
 0x13a   : > { %4218 = vmatmul.mubr.bf16.gmra.mrb[32].mxu1 %v5414_v39 }
 0x13b   : > { %4221 = vmatprep.mubr.bf16.mxu1 %v6362_v48 }
 0x13d   : > { %v3733_v60 = vpop.f32.mrb[24].mxu0 }
 0x13e   : > { %v3734_v14 = vpop.f32.mrb[25].mxu0 }
 0x13f   : > { %v5684_v13 = vadd.f32 %v3734_v14, %v3733_v60  ;;  %v3736_v44 = vpop.f32.mrb[26].mxu0 }
 0x140   : > { %v3737_v18 = vpop.f32.mrb[27].mxu0 }
 0x141   : > { %v5686_v36 = vadd.f32 %v3737_v18, %v3736_v44 }
 0x142   : > { %4222 = vmatmul.mubr.bf16.gmra.mrb[36].mxu1 %v6363_v23 }
 0x143   : > { %4225 = vmatprep.mubr.bf16.mxu1 %v5477_v47 }
 0x145   : > { %v3739_v31 = vpop.f32.mrb[28].mxu0 }
 0x146   : > { %v3740_v46 = vpop.f32.mrb[29].mxu0 }
 0x147   : > { %v5693_v19 = vadd.f32 %v3740_v46, %v3739_v31  ;;  %v3742_v59 = vpop.f32.mrb[30].mxu0 }
 0x148   : > { %v3743_v26 = vpop.f32.mrb[31].mxu0 }
 0x149   : > { %v5695_v33 = vadd.f32 %v3743_v26, %v3742_v59 }
 0x14a   : > { %4226 = vmatmul.mubr.bf16.gmra.mrb[40].mxu1 %v5482_v61 }
 0x14b   : > { %4229 = vmatprep.mubr.bf16.mxu1 %v5494_v24 }
 0x14d   : > { %v3745_v7 = vpop.f32.mrb[32].mxu0 }
 0x14e   : > { %v3746_v8 = vpop.f32.mrb[33].mxu0 }
 0x14f   : > { %v5699_v15 = vadd.f32 %v3746_v8, %v3745_v7  ;;  %v3748_v50 = vpop.f32.mrb[34].mxu0 }
 0x150   : > { %v3749_v0 = vpop.f32.mrb[35].mxu0 }
 0x151   : > { %v5701_v40 = vadd.f32 %v3749_v0, %v3748_v50 }
 0x152   : > { %4230 = vmatmul.mubr.bf16.gmra.mrb[44].mxu1 %v5497_v12 }
 0x153   : > { %4249 = vmatprep.mubr.bf16.mxu1 %v5230_v17 }
 0x155   : > { %v3751_v16 = vpop.f32.mrb[36].mxu0 }
 0x156   : > { %v3752_v51 = vpop.f32.mrb[37].mxu0 }
 0x157   : > { %v5708_v34 = vadd.f32 %v3752_v51, %v3751_v16  ;;  %v3754_v20 = vpop.f32.mrb[38].mxu0 }
 0x158   : > { %v3755_v30 = vpop.f32.mrb[39].mxu0 }
 0x159   : > { %v5710_v28 = vadd.f32 %v3755_v30, %v3754_v20 }
 0x15a   : > { %4250 = vmatmul.mubr.bf16.vlgmr.msra.gmra.mrb[16].mxu1 %v5243_v27 }
 0x15b   : > { %4253 = vmatprep.mubr.bf16.mxu1 %v5286_v3 }
 0x15d   : > { %v3757_v43 = vpop.f32.mrb[40].mxu0 }
 0x15e   : > { %v3758_v60 = vpop.f32.mrb[41].mxu0 }
 0x15f   : > { %v5714_v14 = vadd.f32 %v3758_v60, %v3757_v43  ;;  %v3760_v44 = vpop.f32.mrb[42].mxu0 }
 0x160   : > { %v3761_v17 = vpop.f32.mrb[43].mxu0 }
 0x161   : > { %v5716_v18 = vadd.f32 %v3761_v17, %v3760_v44 }
 0x162   : > { %4254 = vmatmul.mubr.bf16.gmra.mrb[20].mxu1 %v5296_v1  ;;  %v4729_v1 = vld [vmem:[%s6335_s6 + $0x18] sm:$0xff]  }
 0x163   : > { %4257 = vmatprep.mubr.bf16.mxu1 %v5342_v53  ;;  %v4730_v53 = vld [vmem:[%s6335_s6 + $0x20] sm:$0xff]   ;;  %4287 = vmatprep.subr.bf16.mxu0 %v4729_v1 }
 0x164   : > { %4288 = vmatpush3.bf16.msra.mxu0 %v4729_v1 }
 0x165   : > { %v3763_v27 = vpop.f32.mrb[44].mxu0  ;;  %4289 = vmatprep.subr.bf16.mxu0 %v4730_v53 }
 0x166   : > { %v3764_v3 = vpop.f32.mrb[45].mxu0 }
 0x167   : > { %v5723_v31 = vadd.f32 %v3764_v3, %v3763_v27  ;;  %v3766_v46 = vpop.f32.mrb[46].mxu0 }
 0x168   : > { %v3767_v59 = vpop.f32.mrb[47].mxu0  ;;  %4290 = vmatpush3.bf16.msra.mxu0 %v4730_v53 }
 0x169   : > { %v5725_v26 = vadd.f32 %v3767_v59, %v3766_v46 }
 0x16a   : > { %4258 = vmatmul.mubr.bf16.gmra.mrb[24].mxu1 %v5351_v5 }
 0x16b   : > { %4261 = vmatprep.mubr.bf16.mxu1 %v5399_v35  ;;  %v4731_v35 = vld [vmem:[%s6335_s6 + $0x28] sm:$0xff]  }
 0x16c   : > { %4291 = vmatprep.subr.bf16.mxu0 %v4731_v35 }
 0x16d   : > { %v3833_v7 = vpop.f32.mrb[48].mxu1  ;;  %v3969_v8 = vpop.f32.mrb[48].mxu0  ;;  %4292 = vmatpush3.bf16.msra.mxu0 %v4731_v35 }
 0x16e   : > { %v3834_v50 = vpop.f32.mrb[49].mxu1  ;;  %v3970_v0 = vpop.f32.mrb[49].mxu0  ;;  %4293 = vmatprep.subr.bf16.mxu0 %v4732_v62 }
 0x16f   : > { %v3835_v56 = vadd.f32 %v3834_v50, %v3833_v7  ;;  %v3836_v16 = vpop.f32.mrb[50].mxu1  ;;  %v3971_v51 = vadd.f32 %v3970_v0, %v3969_v8  ;;  %v3972_v5 = vpop.f32.mrb[50].mxu0 }
 0x170   : > { %v3837_v20 = vpop.f32.mrb[51].mxu1  ;;  %v3973_v30 = vpop.f32.mrb[51].mxu0 }
 0x171   : > { %v4396_v43 = vadd.f32 %v3835_v56, %v5612_v55  ;;  %v3838_v60 = vadd.f32 %v3837_v20, %v3836_v16  ;;  %v3974_v44 = vadd.f32 %v3973_v30, %v3972_v5  ;;  %4294 = vmatpush3.bf16.msra.mxu0 %v4732_v62 }
 0x172   : > { %4262 = vmatmul.mubr.bf16.gmra.mrb[28].mxu1 %v5414_v39 }
 0x173   : > { %v4402_v17 = vadd.f32 %v3838_v60, %v5616_v21  ;;  %4265 = vmatprep.mubr.bf16.mxu1 %v6362_v48  ;;  %v5745_v27 = vadd.f32 %v4396_v43, %v3971_v51 }
 0x175   : > { %v3839_v3 = vpop.f32.mrb[52].mxu1  ;;  %v3975_v46 = vpop.f32.mrb[52].mxu0  ;;  %v5747_v59 = vadd.f32 %v4402_v17, %v3974_v44 }
 0x176   : > { %v3840_v55 = vpop.f32.mrb[53].mxu1  ;;  %v3976_v1 = vpop.f32.mrb[53].mxu0 }
 0x177   : > { %v3841_v39 = vadd.f32 %v3840_v55, %v3839_v3  ;;  %v3842_v53 = vpop.f32.mrb[54].mxu1  ;;  %v3977_v7 = vadd.f32 %v3976_v1, %v3975_v46  ;;  %v3978_v21 = vpop.f32.mrb[54].mxu0 }
 0x178   : > { %v3843_v48 = vpop.f32.mrb[55].mxu1  ;;  %v3979_v8 = vpop.f32.mrb[55].mxu0 }
 0x179   : > { %v4393_v50 = vadd.f32 %v3841_v39, %v5622_v58  ;;  %v3844_v0 = vadd.f32 %v3843_v48, %v3842_v53  ;;  %v3980_v56 = vadd.f32 %v3979_v8, %v3978_v21 }
 0x17a   : > { %4266 = vmatmul.mubr.bf16.gmra.mrb[32].mxu1 %v6363_v23 }
 0x17b   : > { %v4399_v16 = vadd.f32 %v3844_v0, %v5629_v2  ;;  %4269 = vmatprep.mubr.bf16.mxu1 %v5477_v47  ;;  %v5753_v51 = vadd.f32 %v4393_v50, %v3977_v7 }
 0x17d   : > { %v3845_v5 = vpop.f32.mrb[56].mxu1  ;;  %v3981_v35 = vpop.f32.mrb[56].mxu0  ;;  %v5755_v20 = vadd.f32 %v4399_v16, %v3980_v56 }
 0x17e   : > { %v3846_v30 = vpop.f32.mrb[57].mxu1  ;;  %v3982_v43 = vpop.f32.mrb[57].mxu0 }
 0x17f   : > { %v3847_v60 = vadd.f32 %v3846_v30, %v3845_v5  ;;  %v3848_v44 = vpop.f32.mrb[58].mxu1  ;;  %v3983_v58 = vadd.f32 %v3982_v43, %v3981_v35  ;;  %v3984_v17 = vpop.f32.mrb[58].mxu0  ;;  %v1159_v5 = vrot.slane %v5592_v9, 1  ;;  %v1160_v35 = vrot.slane %v5599_v42, 1 }
 0x180   : > { %v3849_v3 = vpop.f32.mrb[59].mxu1  ;;  %v3985_v46 = vpop.f32.mrb[59].mxu0 }
 0x181   : > { %v4408_v23 = vadd.f32 %v3847_v60, %v5639_v41  ;;  %v3850_v62 = vadd.f32 %v3849_v3, %v3848_v44  ;;  %v3986_v2 = vadd.f32 %v3985_v46, %v3984_v17 }
 0x182   : > { %4270 = vmatmul.mubr.bf16.gmra.mrb[36].mxu1 %v5482_v61 }
 0x183   : > { %v4414_v47 = vadd.f32 %v3850_v62, %v5646_v54  ;;  %4273 = vmatprep.mubr.bf16.mxu1 %v5494_v24  ;;  %v5761_v55 = vadd.f32 %v4408_v23, %v3983_v58 }
 0x185   : > { %v3851_v1 = vpop.f32.mrb[60].mxu1  ;;  %v3987_v39 = vpop.f32.mrb[60].mxu0  ;;  %v5763_v53 = vadd.f32 %v4414_v47, %v3986_v2 }
 0x186   : > { %v3852_v7 = vpop.f32.mrb[61].mxu1  ;;  %v3988_v21 = vpop.f32.mrb[61].mxu0 }
 0x187   : > { %v3853_v48 = vadd.f32 %v3852_v7, %v3851_v1  ;;  %v3854_v8 = vpop.f32.mrb[62].mxu1  ;;  %v3989_v50 = vadd.f32 %v3988_v21, %v3987_v39  ;;  %v3990_v41 = vpop.f32.mrb[62].mxu0 }
 0x188   : > { %v3855_v0 = vpop.f32.mrb[63].mxu1  ;;  %v3991_v56 = vpop.f32.mrb[63].mxu0 }
 0x189   : > { %v4405_v61 = vadd.f32 %v3853_v48, %v5655_v37  ;;  %v3856_v16 = vadd.f32 %v3855_v0, %v3854_v8  ;;  %v3992_v54 = vadd.f32 %v3991_v56, %v3990_v41 }
 0x18a   : > { %4274 = vmatmul.mubr.bf16.gmra.mrb[40].mxu1 %v5497_v12 }
 0x18b   : > { %v4411_v24 = vadd.f32 %v3856_v16, %v5662_v63  ;;  %4277 = vmatprep.mubr.bf16.mxu1 %v5509_v29  ;;  %v5771_v30 = vadd.f32 %v4405_v61, %v3989_v50  ;;  %v1161_v63 = vsel %vm1107_vm1, %v1159_v5, %v1160_v35 }
 0x18d   : > { %v3857_v43 = vpop.f32.mrb[64].mxu1  ;;  %v3993_v60 = vpop.f32.mrb[64].mxu0  ;;  %v5773_v44 = vadd.f32 %v4411_v24, %v3992_v54 }
 0x18e   : > { %v3858_v58 = vpop.f32.mrb[65].mxu1  ;;  %v3994_v37 = vpop.f32.mrb[65].mxu0 }
 0x18f   : > { %v3859_v17 = vadd.f32 %v3858_v58, %v3857_v43  ;;  %v3860_v3 = vpop.f32.mrb[66].mxu1  ;;  %v3995_v46 = vadd.f32 %v3994_v37, %v3993_v60  ;;  %v3996_v12 = vpop.f32.mrb[66].mxu0 }
 0x190   : > { %v3861_v23 = vpop.f32.mrb[67].mxu1  ;;  %v3997_v29 = vpop.f32.mrb[67].mxu0 }
 0x191   : > { %v4420_v9 = vadd.f32 %v3859_v17, %v5669_v38  ;;  %v3862_v62 = vadd.f32 %v3861_v23, %v3860_v3  ;;  %v3998_v42 = vadd.f32 %v3997_v29, %v3996_v12 }
 0x192   : > { %4278 = vmatmul.mubr.bf16.gmra.mrb[44].mxu1 %v1161_v63 }
 0x193   : > { %v4426_v2 = vadd.f32 %v3862_v62, %v5674_v45  ;;  %v5778_v47 = vadd.f32 %v4420_v9, %v3995_v46 }
 0x195   : > { %v3863_v1 = vpop.f32.mrb[68].mxu1  ;;  %v3999_v39 = vpop.f32.mrb[68].mxu0  ;;  %v5780_v7 = vadd.f32 %v4426_v2, %v3998_v42 }
 0x196   : > { %v3864_v21 = vpop.f32.mrb[69].mxu1  ;;  %v4000_v48 = vpop.f32.mrb[69].mxu0 }
 0x197   : > { %v3865_v8 = vadd.f32 %v3864_v21, %v3863_v1  ;;  %v3866_v50 = vpop.f32.mrb[70].mxu1  ;;  %v4001_v41 = vadd.f32 %v4000_v48, %v3999_v39  ;;  %v4002_v0 = vpop.f32.mrb[70].mxu0 }
 0x198   : > { %v3867_v56 = vpop.f32.mrb[71].mxu1  ;;  %v4003_v61 = vpop.f32.mrb[71].mxu0 }
 0x199   : > { %v4417_v38 = vadd.f32 %v3865_v8, %v5678_v52  ;;  %v3868_v16 = vadd.f32 %v3867_v56, %v3866_v50  ;;  %v4004_v54 = vadd.f32 %v4003_v61, %v4002_v0 }
 0x19b   : > { %v4423_v45 = vadd.f32 %v3868_v16, %v5680_v6  ;;  %v5784_v24 = vadd.f32 %v4417_v38, %v4001_v41 }
 0x19d   : > { %v3869_v5 = vpop.f32.mrb[72].mxu1  ;;  %v4005_v35 = vpop.f32.mrb[72].mxu0  ;;  %v5786_v43 = vadd.f32 %v4423_v45, %v4004_v54 }
 0x19e   : > { %v3870_v60 = vpop.f32.mrb[73].mxu1  ;;  %v4006_v58 = vpop.f32.mrb[73].mxu0 }
 0x19f   : > { %v3871_v37 = vadd.f32 %v3870_v60, %v3869_v5  ;;  %v3872_v17 = vpop.f32.mrb[74].mxu1  ;;  %v4007_v3 = vadd.f32 %v4006_v58, %v4005_v35  ;;  %v4008_v46 = vpop.f32.mrb[74].mxu0 }
 0x1a0   : > { %v3873_v12 = vpop.f32.mrb[75].mxu1  ;;  %v4009_v63 = vpop.f32.mrb[75].mxu0 }
 0x1a1   : > { %v4432_v52 = vadd.f32 %v3871_v37, %v5684_v13  ;;  %v3874_v23 = vadd.f32 %v3873_v12, %v3872_v17  ;;  %v4010_v29 = vadd.f32 %v4009_v63, %v4008_v46 }
 0x1a3   : > { %v4438_v6 = vadd.f32 %v3874_v23, %v5686_v36  ;;  %v5790_v9 = vadd.f32 %v4432_v52, %v4007_v3 }
 0x1a5   : > { %v3875_v62 = vpop.f32.mrb[76].mxu1  ;;  %v4011_v42 = vpop.f32.mrb[76].mxu0  ;;  %v5792_v2 = vadd.f32 %v4438_v6, %v4010_v29 }
 0x1a6   : > { %v3876_v1 = vpop.f32.mrb[77].mxu1  ;;  %v4012_v39 = vpop.f32.mrb[77].mxu0 }
 0x1a7   : > { %v3877_v21 = vadd.f32 %v3876_v1, %v3875_v62  ;;  %v3878_v48 = vpop.f32.mrb[78].mxu1  ;;  %v4013_v8 = vadd.f32 %v4012_v39, %v4011_v42  ;;  %v4014_v50 = vpop.f32.mrb[78].mxu0  ;;  %v4733_v1 = vld [vmem:[%s6335_s6 + $0x38] sm:$0xff]  }
 0x1a8   : > { %v3879_v41 = vpop.f32.mrb[79].mxu1  ;;  %v4015_v0 = vpop.f32.mrb[79].mxu0  ;;  %4295 = vmatprep.subr.bf16.mxu0 %v4733_v1 }
 0x1a9   : > { %v4429_v13 = vadd.f32 %v3877_v21, %v5693_v19  ;;  %v3880_v56 = vadd.f32 %v3879_v41, %v3878_v48  ;;  %v4016_v61 = vadd.f32 %v4015_v0, %v4014_v50  ;;  %4296 = vmatpush3.bf16.msra.mxu0 %v4733_v1 }
 0x1ab   : > { %v4435_v36 = vadd.f32 %v3880_v56, %v5695_v33  ;;  %v5796_v38 = vadd.f32 %v4429_v13, %v4013_v8 }
 0x1ad   : > { %v3881_v16 = vpop.f32.mrb[80].mxu1  ;;  %v4017_v54 = vpop.f32.mrb[80].mxu0  ;;  %v5798_v45 = vadd.f32 %v4435_v36, %v4016_v61 }
 0x1ae   : > { %v3882_v5 = vpop.f32.mrb[81].mxu1  ;;  %v4018_v35 = vpop.f32.mrb[81].mxu0 }
 0x1af   : > { %v3883_v60 = vadd.f32 %v3882_v5, %v3881_v16  ;;  %v3884_v58 = vpop.f32.mrb[82].mxu1  ;;  %v4019_v37 = vadd.f32 %v4018_v35, %v4017_v54  ;;  %v4020_v17 = vpop.f32.mrb[82].mxu0 }
 0x1b0   : > { %v3885_v3 = vpop.f32.mrb[83].mxu1  ;;  %v4021_v46 = vpop.f32.mrb[83].mxu0 }
 0x1b1   : > { %v4444_v19 = vadd.f32 %v3883_v60, %v5699_v15  ;;  %v3886_v12 = vadd.f32 %v3885_v3, %v3884_v58  ;;  %v4022_v63 = vadd.f32 %v4021_v46, %v4020_v17 }
 0x1b3   : > { %v4450_v33 = vadd.f32 %v3886_v12, %v5701_v40  ;;  %v5802_v52 = vadd.f32 %v4444_v19, %v4019_v37 }
 0x1b5   : > { %v3887_v23 = vpop.f32.mrb[84].mxu1  ;;  %v4023_v29 = vpop.f32.mrb[84].mxu0  ;;  %v5804_v6 = vadd.f32 %v4450_v33, %v4022_v63 }
 0x1b6   : > { %v3888_v62 = vpop.f32.mrb[85].mxu1  ;;  %v4024_v42 = vpop.f32.mrb[85].mxu0 }
 0x1b7   : > { %v3889_v39 = vadd.f32 %v3888_v62, %v3887_v23  ;;  %v3890_v21 = vpop.f32.mrb[86].mxu1  ;;  %v4025_v48 = vadd.f32 %v4024_v42, %v4023_v29  ;;  %v4026_v15 = vpop.f32.mrb[86].mxu0 }
 0x1b8   : > { %v3891_v8 = vpop.f32.mrb[87].mxu1  ;;  %v4027_v50 = vpop.f32.mrb[87].mxu0 }
 0x1b9   : > { %v4441_v40 = vadd.f32 %v3889_v39, %v5708_v34  ;;  %v3892_v41 = vadd.f32 %v3891_v8, %v3890_v21  ;;  %v4028_v0 = vadd.f32 %v4027_v50, %v4026_v15 }
 0x1bb   : > { %v4447_v13 = vadd.f32 %v3892_v41, %v5710_v28  ;;  %v5811_v56 = vadd.f32 %v4441_v40, %v4025_v48 }
 0x1bd   : > { %v3893_v61 = vpop.f32.mrb[88].mxu1  ;;  %v4029_v36 = vpop.f32.mrb[88].mxu0  ;;  %v5813_v16 = vadd.f32 %v4447_v13, %v4028_v0 }
 0x1be   : > { %v3894_v54 = vpop.f32.mrb[89].mxu1  ;;  %v4030_v5 = vpop.f32.mrb[89].mxu0 }
 0x1bf   : > { %v3895_v35 = vadd.f32 %v3894_v54, %v3893_v61  ;;  %v3896_v60 = vpop.f32.mrb[90].mxu1  ;;  %v4031_v58 = vadd.f32 %v4030_v5, %v4029_v36  ;;  %v4032_v37 = vpop.f32.mrb[90].mxu0 }
 0x1c0   : > { %v3897_v17 = vpop.f32.mrb[91].mxu1  ;;  %v4033_v3 = vpop.f32.mrb[91].mxu0 }
 0x1c1   : > { %v4456_v34 = vadd.f32 %v3895_v35, %v5714_v14  ;;  %v3898_v46 = vadd.f32 %v3897_v17, %v3896_v60  ;;  %v4034_v19 = vadd.f32 %v4033_v3, %v4032_v37 }
 0x1c3   : > { %v4462_v28 = vadd.f32 %v3898_v46, %v5716_v18  ;;  %v5817_v12 = vadd.f32 %v4456_v34, %v4031_v58 }
 0x1c5   : > { %v3899_v63 = vpop.f32.mrb[92].mxu1  ;;  %v4035_v33 = vpop.f32.mrb[92].mxu0  ;;  %v5819_v23 = vadd.f32 %v4462_v28, %v4034_v19 }
 0x1c6   : > { %v3900_v29 = vpop.f32.mrb[93].mxu1  ;;  %v4036_v62 = vpop.f32.mrb[93].mxu0 }
 0x1c7   : > { %v3901_v42 = vadd.f32 %v3900_v29, %v3899_v63  ;;  %v3902_v1 = vpop.f32.mrb[94].mxu1  ;;  %v4037_v39 = vadd.f32 %v4036_v62, %v4035_v33  ;;  %v4038_v21 = vpop.f32.mrb[94].mxu0 }
 0x1c8   : > { %v3903_v48 = vpop.f32.mrb[95].mxu1  ;;  %v4039_v15 = vpop.f32.mrb[95].mxu0 }
 0x1c9   : > { %v4453_v14 = vadd.f32 %v3901_v42, %v5723_v31  ;;  %v3904_v8 = vadd.f32 %v3903_v48, %v3902_v1  ;;  %v4040_v50 = vadd.f32 %v4039_v15, %v4038_v21 }
 0x1cb   : > { %v4459_v18 = vadd.f32 %v3904_v8, %v5725_v26  ;;  %v5823_v40 = vadd.f32 %v4453_v14, %v4037_v39 }
 0x1cd   : > { %v3905_v41 = vpop.f32.mrb[96].mxu1  ;;  %v4041_v0 = vpop.f32.mrb[96].mxu0  ;;  %v5825_v13 = vadd.f32 %v4459_v18, %v4040_v50 }
 0x1ce   : > { %v3906_v61 = vpop.f32.mrb[97].mxu1  ;;  %v4042_v36 = vpop.f32.mrb[97].mxu0 }
 0x1cf   : > { %v3907_v54 = vadd.f32 %v3906_v61, %v3905_v41  ;;  %v3908_v5 = vpop.f32.mrb[98].mxu1  ;;  %v4043_v35 = vadd.f32 %v4042_v36, %v4041_v0  ;;  %v4044_v60 = vpop.f32.mrb[98].mxu0 }
 0x1d0   : > { %v3909_v58 = vpop.f32.mrb[99].mxu1  ;;  %v4045_v37 = vpop.f32.mrb[99].mxu0 }
 0x1d1   : > { %v4468_v31 = vadd.f32 %v3907_v54, %v5610_v4  ;;  %v3910_v17 = vadd.f32 %v3909_v58, %v3908_v5  ;;  %v4046_v3 = vadd.f32 %v4045_v37, %v4044_v60 }
 0x1d3   : > { %v4474_v26 = vadd.f32 %v3910_v17, %v5614_v57  ;;  %v5829_v34 = vadd.f32 %v4468_v31, %v4043_v35 }
 0x1d5   : > { %v3911_v46 = vpop.f32.mrb[100].mxu1  ;;  %v4047_v19 = vpop.f32.mrb[100].mxu0  ;;  %v5831_v28 = vadd.f32 %v4474_v26, %v4046_v3 }
 0x1d6   : > { %v3912_v63 = vpop.f32.mrb[101].mxu1  ;;  %v4048_v33 = vpop.f32.mrb[101].mxu0 }
 0x1d7   : > { %v3913_v29 = vadd.f32 %v3912_v63, %v3911_v46  ;;  %v3914_v62 = vpop.f32.mrb[102].mxu1  ;;  %v4049_v42 = vadd.f32 %v4048_v33, %v4047_v19  ;;  %v4050_v1 = vpop.f32.mrb[102].mxu0 }
 0x1d8   : > { %v3915_v39 = vpop.f32.mrb[103].mxu1  ;;  %v4051_v21 = vpop.f32.mrb[103].mxu0 }
 0x1d9   : > { %v4465_v4 = vadd.f32 %v3913_v29, %v5620_v25  ;;  %v3916_v48 = vadd.f32 %v3915_v39, %v3914_v62  ;;  %v4052_v15 = vadd.f32 %v4051_v21, %v4050_v1 }
 0x1db   : > { %v4471_v57 = vadd.f32 %v3916_v48, %v5627_v49  ;;  %v5835_v14 = vadd.f32 %v4465_v4, %v4049_v42 }
 0x1dd   : > { %v3917_v8 = vpop.f32.mrb[104].mxu1  ;;  %v4053_v50 = vpop.f32.mrb[104].mxu0  ;;  %v5837_v18 = vadd.f32 %v4471_v57, %v4052_v15  ;;  %v4734_v15 = vld [vmem:[%s6337_s8] sm:$0xff]  }
 0x1de   : > { %v3918_v41 = vpop.f32.mrb[105].mxu1  ;;  %v4054_v0 = vpop.f32.mrb[105].mxu0  ;;  %4329 = vmatprep.subr.bf16.mxu0 %v4734_v15 }
 0x1df   : > { %v3919_v61 = vadd.f32 %v3918_v41, %v3917_v8  ;;  %v3920_v36 = vpop.f32.mrb[106].mxu1  ;;  %v4055_v54 = vadd.f32 %v4054_v0, %v4053_v50  ;;  %v4056_v5 = vpop.f32.mrb[106].mxu0  ;;  %v5857_v8 = vld [vmem:[%s6332_s3] ss:$0 sm:$0xff] }
 0x1e0   : > { %v3921_v35 = vpop.f32.mrb[107].mxu1  ;;  %v4057_v60 = vpop.f32.mrb[107].mxu0 }
 0x1e1   : > { %v4480_v25 = vadd.f32 %v3919_v61, %v5637_v11  ;;  %v3922_v58 = vadd.f32 %v3921_v35, %v3920_v36  ;;  %v4058_v37 = vadd.f32 %v4057_v60, %v4056_v5 }
 0x1e3   : > { %v4486_v49 = vadd.f32 %v3922_v58, %v5644_v22  ;;  %v5841_v31 = vadd.f32 %v4480_v25, %v4055_v54  ;;  %v5866_v54 = vld [vmem:[%s6333_s4] ss:$0 sm:$0xff] }
 0x1e5   : > { %v3923_v17 = vpop.f32.mrb[108].mxu1  ;;  %v4059_v3 = vpop.f32.mrb[108].mxu0  ;;  %v5843_v26 = vadd.f32 %v4486_v49, %v4058_v37 }
 0x1e6   : > { %v3924_v46 = vpop.f32.mrb[109].mxu1  ;;  %v4060_v19 = vpop.f32.mrb[109].mxu0 }
 0x1e7   : > { %v3925_v63 = vadd.f32 %v3924_v46, %v3923_v17  ;;  %v3926_v33 = vpop.f32.mrb[110].mxu1  ;;  %v4061_v29 = vadd.f32 %v4060_v19, %v4059_v3  ;;  %v4062_v62 = vpop.f32.mrb[110].mxu0 }
 0x1e8   : > { %v3927_v42 = vpop.f32.mrb[111].mxu1  ;;  %v4063_v1 = vpop.f32.mrb[111].mxu0 }
 0x1e9   : > { %v4477_v11 = vadd.f32 %v3925_v63, %v5653_v32  ;;  %v3928_v39 = vadd.f32 %v3927_v42, %v3926_v33  ;;  %v4064_v21 = vadd.f32 %v4063_v1, %v4062_v62 }
 0x1eb   : > { %v4483_v22 = vadd.f32 %v3928_v39, %v5660_v10  ;;  %v5847_v4 = vadd.f32 %v4477_v11, %v4061_v29 }
 0x1ed   : > { %v5849_v48 = vadd.f32 %v4483_v22, %v4064_v21 }
 0x22d   : > { %v4251_v57 = vpop.f32.mrb[16].mxu1 }
 0x22e   : > { %v4395_v32 = vadd.f32 %v5753_v51, %v4251_v57  ;;  %v2451_v50 = vpop.f32.mrb[17].mxu1 }
 0x22f   : > { %v4398_v10 = vadd.f32 %v5745_v27, %v2451_v50  ;;  %v4252_v41 = vpop.f32.mrb[18].mxu1 }
 0x230   : > { %v2619_v0 = vadd.f32 %v4395_v32, %v5857_v8  ;;  %v4401_v61 = vadd.f32 %v5755_v20, %v4252_v41  ;;  %v2454_v36 = vpop.f32.mrb[19].mxu1  ;;  %v5876_v20 = vld [vmem:[%s6334_s5] ss:$0 sm:$0xff] }
 0x231   : > { %v2617_v5 = vadd.f32 %v4398_v10, %v5857_v8  ;;  %v4404_v35 = vadd.f32 %v5747_v59, %v2454_v36  ;;  %v4735_v36 = vld [vmem:[%s6337_s8 + $0x8] sm:$0xff]  }
 0x232   : > { %v2651_v60 = vmax.f32 %v2619_v0, 0.0  ;;  %v2620_v51 = vadd.f32 %v4401_v61, %v5857_v8 }
 0x233   : > { %v2649_v25 = vmax.f32 %v2617_v5, 0.0  ;;  %v2618_v27 = vadd.f32 %v4404_v35, %v5857_v8 }
 0x234   : > { %v2690_v58 = vmul.f32 %v5866_v54, %v2651_v60  ;;  %v2652_v37 = vmax.f32 %v2620_v51, 0.0 }
 0x235   : > { %v2688_v49 = vmul.f32 %v5866_v54, %v2649_v25  ;;  %v2650_v17 = vmax.f32 %v2618_v27, 0.0  ;;  %v4255_v3 = vpop.f32.mrb[20].mxu1 }
 0x236   : > { %v2691_v59 = vmul.f32 %v5866_v54, %v2652_v37  ;;  %v4407_v46 = vadd.f32 %v5771_v30, %v4255_v3  ;;  %v2467_v19 = vpop.f32.mrb[21].mxu1  ;;  %v2729_v62 = vadd.f32 %v5876_v20, %v2690_v58 }
 0x237   : > { %v2689_v63 = vmul.f32 %v5866_v54, %v2650_v17  ;;  %v4410_v33 = vadd.f32 %v5761_v55, %v2467_v19  ;;  %v4256_v29 = vpop.f32.mrb[22].mxu1  ;;  %v2727_v30 = vadd.f32 %v5876_v20, %v2688_v49 }
 0x238   : > { %v2730_v42 = vadd.f32 %v5876_v20, %v2691_v59  ;;  %v2623_v1 = vadd.f32 %v4407_v46, %v5857_v8  ;;  %v4413_v11 = vadd.f32 %v5773_v44, %v4256_v29  ;;  %v2470_v39 = vpop.f32.mrb[23].mxu1 }
 0x239   : > { %v2621_v21 = vadd.f32 %v4410_v33, %v5857_v8  ;;  %v4416_v22 = vadd.f32 %v5763_v53, %v2470_v39  ;;  %v2728_v57 = vadd.f32 %v5876_v20, %v2689_v63 }
 0x23a   : > { %v2760_v32 = vpack.c.bf16 %v2730_v42, %v2729_v62  ;;  %v2655_v55 = vmax.f32 %v2623_v1, 0.0  ;;  %v2624_v50 = vadd.f32 %v4413_v11, %v5857_v8 }
 0x23b   : > { %v2653_v10 = vmax.f32 %v2621_v21, 0.0  ;;  %v2622_v41 = vadd.f32 %v4416_v22, %v5857_v8  ;;  %v2759_v0 = vpack.c.bf16 %v2728_v57, %v2727_v30 }
 0x23c   : > { %v2694_v61 = vmul.f32 %v5866_v54, %v2655_v55  ;;  %v2656_v44 = vmax.f32 %v2624_v50, 0.0 }
 0x23d   : > { %v2692_v53 = vmul.f32 %v5866_v54, %v2653_v10  ;;  %v2654_v5 = vmax.f32 %v2622_v41, 0.0  ;;  %v4259_v35 = vpop.f32.mrb[24].mxu1  ;;  %4297 = vmatprep.mubr.bf16.mxu0 %v2759_v0 }
 0x23e   : > { %v2695_v60 = vmul.f32 %v5866_v54, %v2656_v44  ;;  %v4419_v51 = vadd.f32 %v5784_v24, %v4259_v35  ;;  %v2483_v25 = vpop.f32.mrb[25].mxu1  ;;  %4298 = vmatmul.mubr.bf16.vlgmr.msra.gmra.mrb[112].mxu0 %v2760_v32  ;;  %v2733_v59 = vadd.f32 %v5876_v20, %v2694_v61  ;;  %v4736_v24 = vld [vmem:[%s6337_s8 + $0x10] sm:$0xff]  }
 0x23f   : > { %v2693_v27 = vmul.f32 %v5866_v54, %v2654_v5  ;;  %v4422_v58 = vadd.f32 %v5778_v47, %v2483_v25  ;;  %v4260_v37 = vpop.f32.mrb[26].mxu1  ;;  %4330 = vmatpush3.bf16.msra.mxu0 %v4734_v15  ;;  %v2731_v15 = vadd.f32 %v5876_v20, %v2692_v53 }
 0x240   : > { %v2627_v49 = vadd.f32 %v4419_v51, %v5857_v8  ;;  %v4425_v17 = vadd.f32 %v5786_v43, %v4260_v37  ;;  %v2486_v3 = vpop.f32.mrb[27].mxu1  ;;  %v2734_v46 = vadd.f32 %v5876_v20, %v2695_v60  ;;  %4331 = vmatprep.subr.bf16.mxu0 %v4735_v36 }
 0x241   : > { %v2625_v19 = vadd.f32 %v4422_v58, %v5857_v8  ;;  %v4428_v47 = vadd.f32 %v5780_v7, %v2486_v3  ;;  %v2732_v63 = vadd.f32 %v5876_v20, %v2693_v27  ;;  %v4737_v7 = vld [vmem:[%s6337_s8 + $0x18] sm:$0xff]  }
 0x242   : > { %v2659_v33 = vmax.f32 %v2627_v49, 0.0  ;;  %v2628_v43 = vadd.f32 %v4425_v17, %v5857_v8  ;;  %v2762_v29 = vpack.c.bf16 %v2734_v46, %v2733_v59 }
 0x243   : > { %v2657_v62 = vmax.f32 %v2625_v19, 0.0  ;;  %v2626_v42 = vadd.f32 %v4428_v47, %v5857_v8  ;;  %v2761_v1 = vpack.c.bf16 %v2732_v63, %v2731_v15  ;;  %4332 = vmatpush3.bf16.msra.mxu0 %v4735_v36 }
 0x244   : > { %v2698_v11 = vmul.f32 %v5866_v54, %v2659_v33  ;;  %v2660_v39 = vmax.f32 %v2628_v43, 0.0  ;;  %4333 = vmatprep.subr.bf16.mxu0 %v4736_v24 }
 0x245   : > { %v2696_v21 = vmul.f32 %v5866_v54, %v2657_v62  ;;  %v2658_v22 = vmax.f32 %v2626_v42, 0.0  ;;  %v4263_v30 = vpop.f32.mrb[28].mxu1  ;;  %4301 = vmatprep.mubr.bf16.mxu0 %v2761_v1 }
 0x246   : > { %v2699_v57 = vmul.f32 %v5866_v54, %v2660_v39  ;;  %v4431_v32 = vadd.f32 %v5796_v38, %v4263_v30  ;;  %v2499_v55 = vpop.f32.mrb[29].mxu1  ;;  %4302 = vmatmul.mubr.bf16.gmra.mrb[116].mxu0 %v2762_v29  ;;  %v2737_v36 = vadd.f32 %v5876_v20, %v2698_v11  ;;  %v4738_v38 = vld [vmem:[%s6337_s8 + $0x20] sm:$0xff]  }
 0x247   : > { %v2697_v50 = vmul.f32 %v5866_v54, %v2658_v22  ;;  %v4434_v10 = vadd.f32 %v5790_v9, %v2499_v55  ;;  %v4264_v41 = vpop.f32.mrb[30].mxu1  ;;  %4334 = vmatpush3.bf16.msra.mxu0 %v4736_v24  ;;  %v2735_v35 = vadd.f32 %v5876_v20, %v2696_v21 }
 0x248   : > { %v2631_v0 = vadd.f32 %v4431_v32, %v5857_v8  ;;  %v4437_v61 = vadd.f32 %v5798_v45, %v4264_v41  ;;  %v2502_v44 = vpop.f32.mrb[31].mxu1  ;;  %v2738_v53 = vadd.f32 %v5876_v20, %v2699_v57  ;;  %4335 = vmatprep.subr.bf16.mxu0 %v4737_v7 }
 0x249   : > { %v2629_v5 = vadd.f32 %v4434_v10, %v5857_v8  ;;  %v4440_v9 = vadd.f32 %v5792_v2, %v2502_v44  ;;  %v2736_v60 = vadd.f32 %v5876_v20, %v2697_v50  ;;  %v4739_v2 = vld [vmem:[%s6337_s8 + $0x28] sm:$0xff]  }
 0x24a   : > { %v2663_v51 = vmax.f32 %v2631_v0, 0.0  ;;  %v2632_v45 = vadd.f32 %v4437_v61, %v5857_v8  ;;  %v2764_v25 = vpack.c.bf16 %v2738_v53, %v2737_v36 }
 0x24b   : > { %v2661_v27 = vmax.f32 %v2629_v5, 0.0  ;;  %v2630_v58 = vadd.f32 %v4440_v9, %v5857_v8  ;;  %v2763_v37 = vpack.c.bf16 %v2736_v60, %v2735_v35  ;;  %4336 = vmatpush3.bf16.msra.mxu0 %v4737_v7 }
 0x24c   : > { %v2702_v49 = vmul.f32 %v5866_v54, %v2663_v51  ;;  %v2664_v17 = vmax.f32 %v2632_v45, 0.0  ;;  %4337 = vmatprep.subr.bf16.mxu0 %v4738_v38 }
 0x24d   : > { %v2700_v3 = vmul.f32 %v5866_v54, %v2661_v27  ;;  %v2662_v59 = vmax.f32 %v2630_v58, 0.0  ;;  %v4267_v46 = vpop.f32.mrb[32].mxu1  ;;  %4305 = vmatprep.mubr.bf16.mxu0 %v2763_v37 }
 0x24e   : > { %v2703_v24 = vmul.f32 %v5866_v54, %v2664_v17  ;;  %v4443_v19 = vadd.f32 %v5811_v56, %v4267_v46  ;;  %v2515_v47 = vpop.f32.mrb[33].mxu1  ;;  %4306 = vmatmul.mubr.bf16.gmra.mrb[120].mxu0 %v2764_v25  ;;  %v2741_v42 = vadd.f32 %v5876_v20, %v2702_v49  ;;  %v4740_v56 = vld [vmem:[%s6337_s8 + $0x30] sm:$0xff]  }
 0x24f   : > { %v2701_v15 = vmul.f32 %v5866_v54, %v2662_v59  ;;  %v4446_v63 = vadd.f32 %v5802_v52, %v2515_v47  ;;  %v4268_v33 = vpop.f32.mrb[34].mxu1  ;;  %4338 = vmatpush3.bf16.msra.mxu0 %v4738_v38  ;;  %v2739_v39 = vadd.f32 %v5876_v20, %v2700_v3 }
 0x250   : > { %v2635_v43 = vadd.f32 %v4443_v19, %v5857_v8  ;;  %v4449_v29 = vadd.f32 %v5813_v16, %v4268_v33  ;;  %v2518_v62 = vpop.f32.mrb[35].mxu1  ;;  %v2742_v1 = vadd.f32 %v5876_v20, %v2703_v24  ;;  %4339 = vmatprep.subr.bf16.mxu0 %v4739_v2 }
 0x251   : > { %v2633_v11 = vadd.f32 %v4446_v63, %v5857_v8  ;;  %v4452_v52 = vadd.f32 %v5804_v6, %v2518_v62  ;;  %v2740_v7 = vadd.f32 %v5876_v20, %v2701_v15 }
 0x252   : > { %v2667_v21 = vmax.f32 %v2635_v43, 0.0  ;;  %v2636_v16 = vadd.f32 %v4449_v29, %v5857_v8  ;;  %v2766_v22 = vpack.c.bf16 %v2742_v1, %v2741_v42 }
 0x253   : > { %v2665_v30 = vmax.f32 %v2633_v11, 0.0  ;;  %v2634_v57 = vadd.f32 %v4452_v52, %v5857_v8  ;;  %v2765_v32 = vpack.c.bf16 %v2740_v7, %v2739_v39  ;;  %4340 = vmatpush3.bf16.msra.mxu0 %v4739_v2 }
 0x254   : > { %v2706_v55 = vmul.f32 %v5866_v54, %v2667_v21  ;;  %v2668_v50 = vmax.f32 %v2636_v16, 0.0  ;;  %4341 = vmatprep.subr.bf16.mxu0 %v4740_v56 }
 0x255   : > { %v2704_v10 = vmul.f32 %v5866_v54, %v2665_v30  ;;  %v2666_v6 = vmax.f32 %v2634_v57, 0.0  ;;  %v4271_v41 = vpop.f32.mrb[36].mxu1  ;;  %4309 = vmatprep.mubr.bf16.mxu0 %v2765_v32 }
 0x256   : > { %v2707_v0 = vmul.f32 %v5866_v54, %v2668_v50  ;;  %v4455_v61 = vadd.f32 %v5823_v40, %v4271_v41  ;;  %v2531_v44 = vpop.f32.mrb[37].mxu1  ;;  %4310 = vmatmul.mubr.bf16.gmra.mrb[124].mxu0 %v2766_v22  ;;  %v2745_v60 = vadd.f32 %v5876_v20, %v2706_v55 }
 0x257   : > { %v2705_v36 = vmul.f32 %v5866_v54, %v2666_v6  ;;  %v4458_v53 = vadd.f32 %v5817_v12, %v2531_v44  ;;  %v4272_v38 = vpop.f32.mrb[38].mxu1  ;;  %4342 = vmatpush3.bf16.msra.mxu0 %v4740_v56  ;;  %v2743_v25 = vadd.f32 %v5876_v20, %v2704_v10 }
 0x258   : > { %v2639_v5 = vadd.f32 %v4455_v61, %v5857_v8  ;;  %v4461_v9 = vadd.f32 %v5825_v13, %v4272_v38  ;;  %v2534_v35 = vpop.f32.mrb[39].mxu1  ;;  %v2746_v51 = vadd.f32 %v5876_v20, %v2707_v0 }
 0x259   : > { %v2637_v45 = vadd.f32 %v4458_v53, %v5857_v8  ;;  %v4464_v40 = vadd.f32 %v5819_v23, %v2534_v35  ;;  %v2744_v27 = vadd.f32 %v5876_v20, %v2705_v36 }
 0x25a   : > { %v2671_v12 = vmax.f32 %v2639_v5, 0.0  ;;  %v2640_v58 = vadd.f32 %v4461_v9, %v5857_v8  ;;  %v2768_v37 = vpack.c.bf16 %v2746_v51, %v2745_v60 }
 0x25b   : > { %v2669_v49 = vmax.f32 %v2637_v45, 0.0  ;;  %v2638_v13 = vadd.f32 %v4464_v40, %v5857_v8  ;;  %v2767_v17 = vpack.c.bf16 %v2744_v27, %v2743_v25 }
 0x25c   : > { %v2710_v2 = vmul.f32 %v5866_v54, %v2671_v12  ;;  %v2672_v3 = vmax.f32 %v2640_v58, 0.0 }
 0x25d   : > { %v2708_v59 = vmul.f32 %v5866_v54, %v2669_v49  ;;  %v2670_v46 = vmax.f32 %v2638_v13, 0.0  ;;  %v4275_v24 = vpop.f32.mrb[40].mxu1  ;;  %4313 = vmatprep.mubr.bf16.mxu0 %v2767_v17 }
 0x25e   : > { %v2711_v23 = vmul.f32 %v5866_v54, %v2672_v3  ;;  %v4467_v19 = vadd.f32 %v5835_v14, %v4275_v24  ;;  %v2547_v47 = vpop.f32.mrb[41].mxu1  ;;  %4314 = vmatmul.mubr.bf16.gmra.mrb[128].mxu0 %v2768_v37  ;;  %v2749_v42 = vadd.f32 %v5876_v20, %v2710_v2 }
 0x25f   : > { %v2709_v15 = vmul.f32 %v5866_v54, %v2670_v46  ;;  %v4470_v63 = vadd.f32 %v5829_v34, %v2547_v47  ;;  %v4276_v33 = vpop.f32.mrb[42].mxu1  ;;  %v2747_v11 = vadd.f32 %v5876_v20, %v2708_v59  ;;  %v4741_v59 = vld [vmem:[%s6337_s8 + $0x38] sm:$0xff]  }
 0x260   : > { %v2643_v43 = vadd.f32 %v4467_v19, %v5857_v8  ;;  %v4473_v29 = vadd.f32 %v5837_v18, %v4276_v33  ;;  %v2550_v62 = vpop.f32.mrb[43].mxu1  ;;  %v2750_v1 = vadd.f32 %v5876_v20, %v2711_v23  ;;  %4343 = vmatprep.subr.bf16.mxu0 %v4741_v59 }
 0x261   : > { %v2641_v56 = vadd.f32 %v4470_v63, %v5857_v8  ;;  %v4476_v14 = vadd.f32 %v5831_v28, %v2550_v62  ;;  %v2748_v52 = vadd.f32 %v5876_v20, %v2709_v15  ;;  %4344 = vmatpush3.bf16.msra.mxu0 %v4741_v59 }
 0x262   : > { %v2675_v39 = vmax.f32 %v2643_v43, 0.0  ;;  %v2644_v34 = vadd.f32 %v4473_v29, %v5857_v8  ;;  %v2770_v7 = vpack.c.bf16 %v2750_v1, %v2749_v42 }
 0x263   : > { %v2673_v21 = vmax.f32 %v2641_v56, 0.0  ;;  %v2642_v18 = vadd.f32 %v4476_v14, %v5857_v8  ;;  %v2769_v16 = vpack.c.bf16 %v2748_v52, %v2747_v11 }
 0x264   : > { %v2714_v22 = vmul.f32 %v5866_v54, %v2675_v39  ;;  %v2676_v30 = vmax.f32 %v2644_v34, 0.0 }
 0x265   : > { %v2712_v57 = vmul.f32 %v5866_v54, %v2673_v21  ;;  %v2674_v32 = vmax.f32 %v2642_v18, 0.0  ;;  %v4279_v55 = vpop.f32.mrb[44].mxu1  ;;  %4317 = vmatprep.mubr.bf16.mxu0 %v2769_v16 }
 0x266   : > { %v2715_v28 = vmul.f32 %v5866_v54, %v2676_v30  ;;  %v4479_v50 = vadd.f32 %v5847_v4, %v4279_v55  ;;  %v2563_v10 = vpop.f32.mrb[45].mxu1  ;;  %4318 = vmatmul.mubr.bf16.gmra.mrb[132].mxu0 %v2770_v7  ;;  %v2753_v53 = vadd.f32 %v5876_v20, %v2714_v22 }
 0x267   : > { %v2713_v6 = vmul.f32 %v5866_v54, %v2674_v32  ;;  %v4482_v41 = vadd.f32 %v5841_v31, %v2563_v10  ;;  %v4280_v0 = vpop.f32.mrb[46].mxu1  ;;  %v2751_v9 = vadd.f32 %v5876_v20, %v2712_v57 }
 0x268   : > { %v2647_v61 = vadd.f32 %v4479_v50, %v5857_v8  ;;  %v4485_v44 = vadd.f32 %v5849_v48, %v4280_v0  ;;  %v2566_v36 = vpop.f32.mrb[47].mxu1  ;;  %v2754_v38 = vadd.f32 %v5876_v20, %v2715_v28 }
 0x269   : > { %v2645_v5 = vadd.f32 %v4482_v41, %v5857_v8  ;;  %v4488_v4 = vadd.f32 %v5843_v26, %v2566_v36  ;;  %v2752_v35 = vadd.f32 %v5876_v20, %v2713_v6 }
 0x26a   : > { %v2679_v60 = vmax.f32 %v2647_v61, 0.0  ;;  %v2648_v31 = vadd.f32 %v4485_v44, %v5857_v8  ;;  %v2772_v51 = vpack.c.bf16 %v2754_v38, %v2753_v53 }
 0x26b   : > { %v2677_v45 = vmax.f32 %v2645_v5, 0.0  ;;  %v2646_v48 = vadd.f32 %v4488_v4, %v5857_v8  ;;  %v2771_v40 = vpack.c.bf16 %v2752_v35, %v2751_v9 }
 0x26c   : > { %v2718_v25 = vmul.f32 %v5866_v54, %v2679_v60  ;;  %v2680_v27 = vmax.f32 %v2648_v31, 0.0 }
 0x26d   : > { %v2716_v12 = vmul.f32 %v5866_v54, %v2677_v45  ;;  %v2678_v58 = vmax.f32 %v2646_v48, 0.0  ;;  %4321 = vmatprep.mubr.bf16.mxu0 %v2771_v40 }
 0x26e   : > { %v2719_v26 = vmul.f32 %v5866_v54, %v2680_v27  ;;  %4322 = vmatmul.mubr.bf16.gmra.mrb[136].mxu0 %v2772_v51  ;;  %v2757_v49 = vadd.f32 %v5876_v20, %v2718_v25 }
 0x26f   : > { %v2717_v37 = vmul.f32 %v5866_v54, %v2678_v58  ;;  %v2755_v8 = vadd.f32 %v5876_v20, %v2716_v12  ;;  %v6024_v54 = vld [vmem:[%s6336_s7] ss:$0 sm:$0xff] }
 0x270   : > { %v2758_v13 = vadd.f32 %v5876_v20, %v2719_v26 }
 0x271   : > { %v2756_v17 = vadd.f32 %v5876_v20, %v2717_v37 }
 0x272   : > { %v2774_v2 = vpack.c.bf16 %v2758_v13, %v2757_v49 }
 0x273   : > { %v2773_v3 = vpack.c.bf16 %v2756_v17, %v2755_v8 }
 0x275   : > { %4325 = vmatprep.mubr.bf16.mxu0 %v2773_v3 }
 0x276   : > { %4326 = vmatmul.mubr.bf16.gmra.mrb[140].mxu0 %v2774_v2 }
 0x311   : > { %v4299_v20 = vpop.f32.mrb[112].mxu0 }
 0x312   : > { %v2889_v46 = vadd.f32 %v4299_v20, %v6024_v54  ;;  %v2880_v24 = vpop.f32.mrb[113].mxu0 }
 0x313   : > { %v2881_v23 = vadd.f32 %v6024_v54, %v2880_v24  ;;  %v4300_v19 = vpop.f32.mrb[114].mxu0 }
 0x314   : > { %v3009_v47 = vmax.f32 %v2889_v46, 0.0  ;;  %v2892_v15 = vadd.f32 %v4300_v19, %v6024_v54  ;;  %v2883_v63 = vpop.f32.mrb[115].mxu0 }
 0x315   : > { %v3007_v33 = vmax.f32 %v2881_v23, 0.0  ;;  %v2884_v43 = vadd.f32 %v6024_v54, %v2883_v63 }
 0x316   : > { %3042 = vst.msk [vmem:[%s6033_s26 + $0x10] sm:$0xff] %vm3039_vm2, %v3009_v47  ;;  %v3010_v29 = vmax.f32 %v2892_v15, 0.0 }
 0x317   : > { %3040 = vst.msk [vmem:[%s6033_s26] sm:$0xff] %vm3039_vm2, %v3007_v33  ;;  %v3008_v62 = vmax.f32 %v2884_v43, 0.0 }
 0x318   : > { %3043 = vst.msk [vmem:[%s6033_s26 + $0x18] sm:$0xff] %vm3039_vm2, %v3010_v29  ;;  %v3073_v42 = vpack.c.bf16 %v3010_v29, %v3009_v47 }
 0x319   : > { %3041 = vst.msk [vmem:[%s6033_s26 + $0x8] sm:$0xff] %vm3039_vm2, %v3008_v62  ;;  %v3072_v1 = vpack.c.bf16 %v3008_v62, %v3007_v33  ;;  %v4303_v56 = vpop.f32.mrb[116].mxu0 }
 0x31a   : > { %v2905_v14 = vadd.f32 %v4303_v56, %v6024_v54  ;;  %v2896_v11 = vpop.f32.mrb[117].mxu0 }
 0x31b   : > { %v2897_v52 = vadd.f32 %v6024_v54, %v2896_v11  ;;  %v4304_v39 = vpop.f32.mrb[118].mxu0  ;;  %4345 = vmatprep.mubr.bf16.mxu0 %v3072_v1 }
 0x31c   : > { %v3013_v34 = vmax.f32 %v2905_v14, 0.0  ;;  %v2908_v7 = vadd.f32 %v4304_v39, %v6024_v54  ;;  %v2899_v21 = vpop.f32.mrb[119].mxu0  ;;  %4346 = vmatmul.mubr.bf16.vlgmr.msra.gmra.mrb[144].mxu0 %v3073_v42 }
 0x31d   : > { %v3011_v18 = vmax.f32 %v2897_v52, 0.0  ;;  %v2900_v16 = vadd.f32 %v6024_v54, %v2899_v21 }
 0x31e   : > { %3046 = vst.msk [vmem:[%s6033_s26 + $0x30] sm:$0xff] %vm3039_vm2, %v3013_v34  ;;  %v3014_v22 = vmax.f32 %v2908_v7, 0.0 }
 0x31f   : > { %3044 = vst.msk [vmem:[%s6033_s26 + $0x20] sm:$0xff] %vm3039_vm2, %v3011_v18  ;;  %v3012_v30 = vmax.f32 %v2900_v16, 0.0 }
 0x320   : > { %3047 = vst.msk [vmem:[%s6033_s26 + $0x38] sm:$0xff] %vm3039_vm2, %v3014_v22  ;;  %v3075_v57 = vpack.c.bf16 %v3014_v22, %v3013_v34 }
 0x321   : > { %3045 = vst.msk [vmem:[%s6033_s26 + $0x28] sm:$0xff] %vm3039_vm2, %v3012_v30  ;;  %v3074_v32 = vpack.c.bf16 %v3012_v30, %v3011_v18  ;;  %v4307_v55 = vpop.f32.mrb[120].mxu0 }
 0x322   : > { %v2921_v28 = vadd.f32 %v4307_v55, %v6024_v54  ;;  %v2912_v50 = vpop.f32.mrb[121].mxu0 }
 0x323   : > { %v2913_v10 = vadd.f32 %v6024_v54, %v2912_v50  ;;  %v4308_v6 = vpop.f32.mrb[122].mxu0  ;;  %4349 = vmatprep.mubr.bf16.mxu0 %v3074_v32 }
 0x324   : > { %v3017_v41 = vmax.f32 %v2921_v28, 0.0  ;;  %v2924_v0 = vadd.f32 %v4308_v6, %v6024_v54  ;;  %v2915_v61 = vpop.f32.mrb[123].mxu0  ;;  %4350 = vmatmul.mubr.bf16.gmra.mrb[148].mxu0 %v3075_v57 }
 0x325   : > { %v3015_v44 = vmax.f32 %v2913_v10, 0.0  ;;  %v2916_v36 = vadd.f32 %v6024_v54, %v2915_v61 }
 0x326   : > { %3050 = vst.msk [vmem:[%s6033_s26 + $0x50] sm:$0xff] %vm3039_vm2, %v3017_v41  ;;  %v3018_v53 = vmax.f32 %v2924_v0, 0.0 }
 0x327   : > { %3048 = vst.msk [vmem:[%s6033_s26 + $0x40] sm:$0xff] %vm3039_vm2, %v3015_v44  ;;  %v3016_v38 = vmax.f32 %v2916_v36, 0.0 }
 0x328   : > { %3051 = vst.msk [vmem:[%s6033_s26 + $0x58] sm:$0xff] %vm3039_vm2, %v3018_v53  ;;  %v3077_v5 = vpack.c.bf16 %v3018_v53, %v3017_v41 }
 0x329   : > { %3049 = vst.msk [vmem:[%s6033_s26 + $0x48] sm:$0xff] %vm3039_vm2, %v3016_v38  ;;  %v3076_v4 = vpack.c.bf16 %v3016_v38, %v3015_v44  ;;  %v4311_v9 = vpop.f32.mrb[124].mxu0 }
 0x32a   : > { %v2937_v35 = vadd.f32 %v4311_v9, %v6024_v54  ;;  %v2928_v60 = vpop.f32.mrb[125].mxu0 }
 0x32b   : > { %v2929_v31 = vadd.f32 %v6024_v54, %v2928_v60  ;;  %v4312_v51 = vpop.f32.mrb[126].mxu0  ;;  %4353 = vmatprep.mubr.bf16.mxu0 %v3076_v4 }
 0x32c   : > { %v3021_v45 = vmax.f32 %v2937_v35, 0.0  ;;  %v2940_v48 = vadd.f32 %v4312_v51, %v6024_v54  ;;  %v2931_v40 = vpop.f32.mrb[127].mxu0  ;;  %4354 = vmatmul.mubr.bf16.gmra.mrb[152].mxu0 %v3077_v5 }
 0x32d   : > { %v3019_v25 = vmax.f32 %v2929_v31, 0.0  ;;  %v2932_v27 = vadd.f32 %v6024_v54, %v2931_v40 }
 0x32e   : > { %3054 = vst.msk [vmem:[%s6033_s26 + $0x70] sm:$0xff] %vm3039_vm2, %v3021_v45  ;;  %v3022_v12 = vmax.f32 %v2940_v48, 0.0 }
 0x32f   : > { %3052 = vst.msk [vmem:[%s6033_s26 + $0x60] sm:$0xff] %vm3039_vm2, %v3019_v25  ;;  %v3020_v58 = vmax.f32 %v2932_v27, 0.0 }
 0x330   : > { %3055 = vst.msk [vmem:[%s6033_s26 + $0x78] sm:$0xff] %vm3039_vm2, %v3022_v12  ;;  %v3079_v26 = vpack.c.bf16 %v3022_v12, %v3021_v45 }
 0x331   : > { %3053 = vst.msk [vmem:[%s6033_s26 + $0x68] sm:$0xff] %vm3039_vm2, %v3020_v58  ;;  %v3078_v37 = vpack.c.bf16 %v3020_v58, %v3019_v25  ;;  %v4315_v49 = vpop.f32.mrb[128].mxu0 }
 0x332   : > { %v2953_v13 = vadd.f32 %v4315_v49, %v6024_v54  ;;  %v2944_v8 = vpop.f32.mrb[129].mxu0 }
 0x333   : > { %v2945_v17 = vadd.f32 %v6024_v54, %v2944_v8  ;;  %v4316_v2 = vpop.f32.mrb[130].mxu0  ;;  %4357 = vmatprep.mubr.bf16.mxu0 %v3078_v37 }
 0x334   : > { %v3025_v3 = vmax.f32 %v2953_v13, 0.0  ;;  %v2956_v59 = vadd.f32 %v4316_v2, %v6024_v54  ;;  %v2947_v20 = vpop.f32.mrb[131].mxu0  ;;  %4358 = vmatmul.mubr.bf16.gmra.mrb[156].mxu0 %v3079_v26 }
 0x335   : > { %v3023_v46 = vmax.f32 %v2945_v17, 0.0  ;;  %v2948_v24 = vadd.f32 %v6024_v54, %v2947_v20 }
 0x336   : > { %3058 = vst.msk [vmem:[%s6033_s26 + $0x90] sm:$0xff] %vm3039_vm2, %v3025_v3  ;;  %v3026_v23 = vmax.f32 %v2956_v59, 0.0 }
 0x337   : > { %3056 = vst.msk [vmem:[%s6033_s26 + $0x80] sm:$0xff] %vm3039_vm2, %v3023_v46  ;;  %v3024_v19 = vmax.f32 %v2948_v24, 0.0 }
 0x338   : > { %3059 = vst.msk [vmem:[%s6033_s26 + $0x98] sm:$0xff] %vm3039_vm2, %v3026_v23  ;;  %v3081_v47 = vpack.c.bf16 %v3026_v23, %v3025_v3 }
 0x339   : > { %3057 = vst.msk [vmem:[%s6033_s26 + $0x88] sm:$0xff] %vm3039_vm2, %v3024_v19  ;;  %v3080_v15 = vpack.c.bf16 %v3024_v19, %v3023_v46  ;;  %v4319_v63 = vpop.f32.mrb[132].mxu0 }
 0x33a   : > { %v2969_v33 = vadd.f32 %v4319_v63, %v6024_v54  ;;  %v2960_v43 = vpop.f32.mrb[133].mxu0 }
 0x33b   : > { %v2961_v29 = vadd.f32 %v6024_v54, %v2960_v43  ;;  %v4320_v62 = vpop.f32.mrb[134].mxu0  ;;  %4361 = vmatprep.mubr.bf16.mxu0 %v3080_v15 }
 0x33c   : > { %v3029_v42 = vmax.f32 %v2969_v33, 0.0  ;;  %v2972_v1 = vadd.f32 %v4320_v62, %v6024_v54  ;;  %v2963_v56 = vpop.f32.mrb[135].mxu0  ;;  %4362 = vmatmul.mubr.bf16.gmra.mrb[160].mxu0 %v3081_v47 }
 0x33d   : > { %v3027_v14 = vmax.f32 %v2961_v29, 0.0  ;;  %v2964_v11 = vadd.f32 %v6024_v54, %v2963_v56 }
 0x33e   : > { %3062 = vst.msk [vmem:[%s6033_s26 + $0xb0] sm:$0xff] %vm3039_vm2, %v3029_v42  ;;  %v3030_v52 = vmax.f32 %v2972_v1, 0.0 }
 0x33f   : > { %3060 = vst.msk [vmem:[%s6033_s26 + $0xa0] sm:$0xff] %vm3039_vm2, %v3027_v14  ;;  %v3028_v39 = vmax.f32 %v2964_v11, 0.0 }
 0x340   : > { %3063 = vst.msk [vmem:[%s6033_s26 + $0xb8] sm:$0xff] %vm3039_vm2, %v3030_v52  ;;  %v3083_v34 = vpack.c.bf16 %v3030_v52, %v3029_v42 }
 0x341   : > { %3061 = vst.msk [vmem:[%s6033_s26 + $0xa8] sm:$0xff] %vm3039_vm2, %v3028_v39  ;;  %v3082_v7 = vpack.c.bf16 %v3028_v39, %v3027_v14  ;;  %v4323_v21 = vpop.f32.mrb[136].mxu0 }
 0x342   : > { %v2985_v18 = vadd.f32 %v4323_v21, %v6024_v54  ;;  %v2976_v16 = vpop.f32.mrb[137].mxu0 }
 0x343   : > { %v2977_v22 = vadd.f32 %v6024_v54, %v2976_v16  ;;  %v4324_v30 = vpop.f32.mrb[138].mxu0  ;;  %4365 = vmatprep.mubr.bf16.mxu0 %v3082_v7 }
 0x344   : > { %v3033_v57 = vmax.f32 %v2985_v18, 0.0  ;;  %v2988_v32 = vadd.f32 %v4324_v30, %v6024_v54  ;;  %v2979_v55 = vpop.f32.mrb[139].mxu0  ;;  %4366 = vmatmul.mubr.bf16.gmra.mrb[164].mxu0 %v3083_v34 }
 0x345   : > { %v3031_v28 = vmax.f32 %v2977_v22, 0.0  ;;  %v2980_v50 = vadd.f32 %v6024_v54, %v2979_v55 }
 0x346   : > { %3066 = vst.msk [vmem:[%s6033_s26 + $0xd0] sm:$0xff] %vm3039_vm2, %v3033_v57  ;;  %v3034_v10 = vmax.f32 %v2988_v32, 0.0 }
 0x347   : > { %3064 = vst.msk [vmem:[%s6033_s26 + $0xc0] sm:$0xff] %vm3039_vm2, %v3031_v28  ;;  %v3032_v6 = vmax.f32 %v2980_v50, 0.0 }
 0x348   : > { %3067 = vst.msk [vmem:[%s6033_s26 + $0xd8] sm:$0xff] %vm3039_vm2, %v3034_v10  ;;  %v3085_v41 = vpack.c.bf16 %v3034_v10, %v3033_v57 }
 0x349   : > { %3065 = vst.msk [vmem:[%s6033_s26 + $0xc8] sm:$0xff] %vm3039_vm2, %v3032_v6  ;;  %v3084_v0 = vpack.c.bf16 %v3032_v6, %v3031_v28  ;;  %v4327_v61 = vpop.f32.mrb[140].mxu0 }
 0x34a   : > { %v3001_v44 = vadd.f32 %v4327_v61, %v6024_v54  ;;  %v2992_v36 = vpop.f32.mrb[141].mxu0 }
 0x34b   : > { %v2993_v53 = vadd.f32 %v6024_v54, %v2992_v36  ;;  %v4328_v38 = vpop.f32.mrb[142].mxu0  ;;  %4369 = vmatprep.mubr.bf16.mxu0 %v3084_v0 }
 0x34c   : > { %v3037_v5 = vmax.f32 %v3001_v44, 0.0  ;;  %v3004_v4 = vadd.f32 %v4328_v38, %v6024_v54  ;;  %v2995_v9 = vpop.f32.mrb[143].mxu0  ;;  %4370 = vmatmul.mubr.bf16.gmra.mrb[168].mxu0 %v3085_v41 }
 0x34d   : > { %v3035_v35 = vmax.f32 %v2993_v53, 0.0  ;;  %v2996_v60 = vadd.f32 %v6024_v54, %v2995_v9 }
 0x34e   : > { %3070 = vst.msk [vmem:[%s6033_s26 + $0xf0] sm:$0xff] %vm3039_vm2, %v3037_v5  ;;  %v3038_v31 = vmax.f32 %v3004_v4, 0.0 }
 0x34f   : > { %3068 = vst.msk [vmem:[%s6033_s26 + $0xe0] sm:$0xff] %vm3039_vm2, %v3035_v35  ;;  %v3036_v51 = vmax.f32 %v2996_v60, 0.0 }
 0x350   : > { %3071 = vst.msk [vmem:[%s6033_s26 + $0xf8] sm:$0xff] %vm3039_vm2, %v3038_v31  ;;  %v3087_v45 = vpack.c.bf16 %v3038_v31, %v3037_v5 }
 0x351   : > { %3069 = vst.msk [vmem:[%s6033_s26 + $0xe8] sm:$0xff] %vm3039_vm2, %v3036_v51  ;;  %v3086_v48 = vpack.c.bf16 %v3036_v51, %v3035_v35  ;;  %s4754_s26 = scalar_lea.vmem %s4753_s21, 8192 }
 0x352   : > { %p4756_p2 = scmp.lt.s32.totalorder %s4754_s26, %s4748_s14 }
 0x353   : > { %4373 = vmatprep.mubr.bf16.mxu0 %v3086_v48 }
 0x354   : > { %4374 = vmatmul.mubr.bf16.gmra.mrb[172].mxu0 %v3087_v45  ;;  %p4757_p3 = por %p4756_p2, %p4755_p1 }
 0x356   : > { %p4758_p5 = pnand %p4757_p3, %p4751_p0 }
 0x358   : > { %4761 = shalt.err (!%p4758_p5)
}
 0x359   : > { %s4762_s25 = scalar_lea.hbm %s6134_s24, 4096  ;;  %s4766_s15 = scalar_lea.hbm %s6339_s10, 8192 }
 0x35a   : > { %p4763_p6 = scmp.ne.s32.totalorder %s6134_s24, %s4762_s25  ;;  %p4767_p10 = scmp.lt.u32.totalorder %s6134_s24, %s6339_s10 }
 0x35b   : > { %p4768_p11 = scmp.lt.u32.totalorder %s4766_s15, %s4762_s25  ;;  %p4770_p13 = scmp.lt.u32.totalorder %s4762_s25, %s6134_s24 }
 0x35c   : > { %p4764_p7 = pnand %p4763_p6, %p4964_p4 }
 0x35d   : > { %p4769_p12 = por %p4768_p11, %p4767_p10 }
 0x35e   : > { %p4765_p9 = pneg %p4764_p7 }
 0x35f   : > { %p4771_p0 = por %p4770_p13, %p4769_p12 }
 0x361   : > { %p4772_p1 = pnand %p4771_p0, %p4765_p9 }
 0x363   : > { %4775 = shalt.err (!%p4772_p1)
}
 0x364   : > { %s6349_s14 = smov 128   ;;  %s4862_s26 = smov 8   ;;  %v6168_v54 = vld [vmem:[%s6338_s9] ss:$0 sm:$0xff] }
 0x365   : > { %s6364_s16 = scalar_lea.sflag [#allocation3], %s6019_s13  ;;  %s6365_s25 = sshll.u32 %s6019_s13, 8 }
 0x366   : > { %4555 = dma.vmem_to_hbm [thread:$0]  (%p4964_p4), %s6136_s23, 4096, %s6134_s24, %s6364_s16, %s6349_s14, %s6349_s14, %s4862_s26  }
 0x367   : > { %s6174_s15 = scalar_lea.vmem [#allocation4], %s6365_s25  ;;  %s6366_s24 = sshll.u32 %s4850_s20, 12 }
 0x368   : > { %s3393_s23 = sshll.u32 %s6174_s15, 4  ;;  %s6272_s12 = scalar_lea.hbm %s6340_s11, %s6366_s24  ;;  %s6274_s23 = int_to_ptr.vmem [resolvable:$true] %s3393_s23 }
 0x369   : > { %s4776_s25 = scalar_lea.vmem %s6274_s23, 4096  ;;  %s4863_s20 = smov [#allocation4]  }
 0x36a   : > { %p4777_p2 = scmp.ne.s32.totalorder %s6274_s23, %s4776_s25  ;;  %s4780_s14 = sshll.u32 %s4863_s20, 4  ;;  %s4781_s14 = int_to_ptr.vmem [resolvable:$false] %s4780_s14 }
 0x36b   : > { %s4782_s24 = scalar_lea.vmem %s4781_s14, 8192  ;;  %p4783_p6 = scmp.lt.s32.totalorder %s6274_s23, %s4781_s14 }
 0x36c   : > { %p4778_p3 = pnand %p4777_p2, %p4964_p4  ;;  %p4784_p7 = scmp.lt.s32.totalorder %s4782_s24, %s4776_s25 }
 0x36e   : > { %p4779_p5 = pneg %p4778_p3  ;;  %p4785_p9 = por %p4784_p7, %p4783_p6 }
 0x370   : > { %p4786_p10 = pnand %p4785_p9, %p4779_p5 }
 0x3ef   : > { %v4347_v40 = vpop.f32.mrb[144].mxu0 }
 0x3f0   : > { %v3202_v25 = vadd.f32 %v4347_v40, %v6168_v54  ;;  %v3193_v27 = vpop.f32.mrb[145].mxu0 }
 0x3f1   : > { %v3194_v12 = vadd.f32 %v6168_v54, %v3193_v27  ;;  %v4348_v58 = vpop.f32.mrb[146].mxu0 }
 0x3f2   : > { %3322 = vst.msk [vmem:[%s6174_s15 + $0x10] sm:$0xff] %vm3039_vm2, %v3202_v25  ;;  %v3205_v26 = vadd.f32 %v4348_v58, %v6168_v54  ;;  %v3196_v37 = vpop.f32.mrb[147].mxu0 }
 0x3f3   : > { %3320 = vst.msk [vmem:[%s6174_s15] sm:$0xff] %vm3039_vm2, %v3194_v12  ;;  %v3197_v49 = vadd.f32 %v6168_v54, %v3196_v37 }
 0x3f4   : > { %3323 = vst.msk [vmem:[%s6174_s15 + $0x18] sm:$0xff] %vm3039_vm2, %v3205_v26 }
 0x3f5   : > { %3321 = vst.msk [vmem:[%s6174_s15 + $0x8] sm:$0xff] %vm3039_vm2, %v3197_v49 }
 0x3f7   : > { %v4351_v13 = vpop.f32.mrb[148].mxu0 }
 0x3f8   : > { %v3218_v8 = vadd.f32 %v4351_v13, %v6168_v54  ;;  %v3209_v17 = vpop.f32.mrb[149].mxu0 }
 0x3f9   : > { %v3210_v2 = vadd.f32 %v6168_v54, %v3209_v17  ;;  %v4352_v3 = vpop.f32.mrb[150].mxu0 }
 0x3fa   : > { %3326 = vst.msk [vmem:[%s6174_s15 + $0x30] sm:$0xff] %vm3039_vm2, %v3218_v8  ;;  %v3221_v59 = vadd.f32 %v4352_v3, %v6168_v54  ;;  %v3212_v20 = vpop.f32.mrb[151].mxu0 }
 0x3fb   : > { %3324 = vst.msk [vmem:[%s6174_s15 + $0x20] sm:$0xff] %vm3039_vm2, %v3210_v2  ;;  %v3213_v46 = vadd.f32 %v6168_v54, %v3212_v20 }
 0x3fc   : > { %3327 = vst.msk [vmem:[%s6174_s15 + $0x38] sm:$0xff] %vm3039_vm2, %v3221_v59 }
 0x3fd   : > { %3325 = vst.msk [vmem:[%s6174_s15 + $0x28] sm:$0xff] %vm3039_vm2, %v3213_v46 }
 0x3ff   : > { %v4355_v24 = vpop.f32.mrb[152].mxu0 }
 0x400   : > { %v3234_v23 = vadd.f32 %v4355_v24, %v6168_v54  ;;  %v3225_v19 = vpop.f32.mrb[153].mxu0 }
 0x401   : > { %v3226_v47 = vadd.f32 %v6168_v54, %v3225_v19  ;;  %v4356_v15 = vpop.f32.mrb[154].mxu0 }
 0x402   : > { %3330 = vst.msk [vmem:[%s6174_s15 + $0x50] sm:$0xff] %vm3039_vm2, %v3234_v23  ;;  %v3237_v63 = vadd.f32 %v4356_v15, %v6168_v54  ;;  %v3228_v33 = vpop.f32.mrb[155].mxu0 }
 0x403   : > { %3328 = vst.msk [vmem:[%s6174_s15 + $0x40] sm:$0xff] %vm3039_vm2, %v3226_v47  ;;  %v3229_v43 = vadd.f32 %v6168_v54, %v3228_v33 }
 0x404   : > { %3331 = vst.msk [vmem:[%s6174_s15 + $0x58] sm:$0xff] %vm3039_vm2, %v3237_v63 }
 0x405   : > { %3329 = vst.msk [vmem:[%s6174_s15 + $0x48] sm:$0xff] %vm3039_vm2, %v3229_v43 }
 0x407   : > { %v4359_v29 = vpop.f32.mrb[156].mxu0 }
 0x408   : > { %v3250_v62 = vadd.f32 %v4359_v29, %v6168_v54  ;;  %v3241_v42 = vpop.f32.mrb[157].mxu0 }
 0x409   : > { %v3242_v1 = vadd.f32 %v6168_v54, %v3241_v42  ;;  %v4360_v56 = vpop.f32.mrb[158].mxu0 }
 0x40a   : > { %3334 = vst.msk [vmem:[%s6174_s15 + $0x70] sm:$0xff] %vm3039_vm2, %v3250_v62  ;;  %v3253_v14 = vadd.f32 %v4360_v56, %v6168_v54  ;;  %v3244_v11 = vpop.f32.mrb[159].mxu0 }
 0x40b   : > { %3332 = vst.msk [vmem:[%s6174_s15 + $0x60] sm:$0xff] %vm3039_vm2, %v3242_v1  ;;  %v3245_v52 = vadd.f32 %v6168_v54, %v3244_v11 }
 0x40c   : > { %3335 = vst.msk [vmem:[%s6174_s15 + $0x78] sm:$0xff] %vm3039_vm2, %v3253_v14 }
 0x40d   : > { %3333 = vst.msk [vmem:[%s6174_s15 + $0x68] sm:$0xff] %vm3039_vm2, %v3245_v52 }
 0x40f   : > { %v4363_v39 = vpop.f32.mrb[160].mxu0 }
 0x410   : > { %v3266_v34 = vadd.f32 %v4363_v39, %v6168_v54  ;;  %v3257_v7 = vpop.f32.mrb[161].mxu0 }
 0x411   : > { %v3258_v21 = vadd.f32 %v6168_v54, %v3257_v7  ;;  %v4364_v18 = vpop.f32.mrb[162].mxu0 }
 0x412   : > { %3338 = vst.msk [vmem:[%s6174_s15 + $0x90] sm:$0xff] %vm3039_vm2, %v3266_v34  ;;  %v3269_v16 = vadd.f32 %v4364_v18, %v6168_v54  ;;  %v3260_v22 = vpop.f32.mrb[163].mxu0 }
 0x413   : > { %3336 = vst.msk [vmem:[%s6174_s15 + $0x80] sm:$0xff] %vm3039_vm2, %v3258_v21  ;;  %v3261_v30 = vadd.f32 %v6168_v54, %v3260_v22 }
 0x414   : > { %3339 = vst.msk [vmem:[%s6174_s15 + $0x98] sm:$0xff] %vm3039_vm2, %v3269_v16 }
 0x415   : > { %3337 = vst.msk [vmem:[%s6174_s15 + $0x88] sm:$0xff] %vm3039_vm2, %v3261_v30 }
 0x417   : > { %v4367_v57 = vpop.f32.mrb[164].mxu0 }
 0x418   : > { %v3282_v32 = vadd.f32 %v4367_v57, %v6168_v54  ;;  %v3273_v55 = vpop.f32.mrb[165].mxu0 }
 0x419   : > { %v3274_v28 = vadd.f32 %v6168_v54, %v3273_v55  ;;  %v4368_v50 = vpop.f32.mrb[166].mxu0 }
 0x41a   : > { %3342 = vst.msk [vmem:[%s6174_s15 + $0xb0] sm:$0xff] %vm3039_vm2, %v3282_v32  ;;  %v3285_v10 = vadd.f32 %v4368_v50, %v6168_v54  ;;  %v3276_v6 = vpop.f32.mrb[167].mxu0 }
 0x41b   : > { %3340 = vst.msk [vmem:[%s6174_s15 + $0xa0] sm:$0xff] %vm3039_vm2, %v3274_v28  ;;  %v3277_v41 = vadd.f32 %v6168_v54, %v3276_v6 }
 0x41c   : > { %3343 = vst.msk [vmem:[%s6174_s15 + $0xb8] sm:$0xff] %vm3039_vm2, %v3285_v10 }
 0x41d   : > { %3341 = vst.msk [vmem:[%s6174_s15 + $0xa8] sm:$0xff] %vm3039_vm2, %v3277_v41 }
 0x41f   : > { %v4371_v0 = vpop.f32.mrb[168].mxu0 }
 0x420   : > { %v3298_v61 = vadd.f32 %v4371_v0, %v6168_v54  ;;  %v3289_v44 = vpop.f32.mrb[169].mxu0 }
 0x421   : > { %v3290_v36 = vadd.f32 %v6168_v54, %v3289_v44  ;;  %v4372_v53 = vpop.f32.mrb[170].mxu0 }
 0x422   : > { %3346 = vst.msk [vmem:[%s6174_s15 + $0xd0] sm:$0xff] %vm3039_vm2, %v3298_v61  ;;  %v3301_v38 = vadd.f32 %v4372_v53, %v6168_v54  ;;  %v3292_v5 = vpop.f32.mrb[171].mxu0 }
 0x423   : > { %3344 = vst.msk [vmem:[%s6174_s15 + $0xc0] sm:$0xff] %vm3039_vm2, %v3290_v36  ;;  %v3293_v4 = vadd.f32 %v6168_v54, %v3292_v5 }
 0x424   : > { %3347 = vst.msk [vmem:[%s6174_s15 + $0xd8] sm:$0xff] %vm3039_vm2, %v3301_v38 }
 0x425   : > { %3345 = vst.msk [vmem:[%s6174_s15 + $0xc8] sm:$0xff] %vm3039_vm2, %v3293_v4 }
 0x427   : > { %v4375_v9 = vpop.f32.mrb[172].mxu0 }
 0x428   : > { %v3314_v35 = vadd.f32 %v4375_v9, %v6168_v54  ;;  %v3305_v60 = vpop.f32.mrb[173].mxu0 }
 0x429   : > { %v3306_v31 = vadd.f32 %v6168_v54, %v3305_v60  ;;  %v4376_v51 = vpop.f32.mrb[174].mxu0 }
 0x42a   : > { %3350 = vst.msk [vmem:[%s6174_s15 + $0xf0] sm:$0xff] %vm3039_vm2, %v3314_v35  ;;  %v3317_v45 = vadd.f32 %v4376_v51, %v6168_v54  ;;  %v3308_v48 = vpop.f32.mrb[175].mxu0 }
 0x42b   : > { %3348 = vst.msk [vmem:[%s6174_s15 + $0xe0] sm:$0xff] %vm3039_vm2, %v3306_v31  ;;  %v3309_v40 = vadd.f32 %v6168_v54, %v3308_v48 }
 0x42c   : > { %3351 = vst.msk [vmem:[%s6174_s15 + $0xf8] sm:$0xff] %vm3039_vm2, %v3317_v45 }
 0x42d   : > { %3349 = vst.msk [vmem:[%s6174_s15 + $0xe8] sm:$0xff] %vm3039_vm2, %v3309_v40 }
 0x42e   : > { %4789 = shalt.err (!%p4786_p10)
}
 0x42f   : > { %s4790_s15 = scalar_lea.hbm %s6272_s12, 4096  ;;  %s4794_s20 = scalar_lea.hbm %s6340_s11, 8192 }
 0x430   : > { %p4791_p11 = scmp.ne.s32.totalorder %s6272_s12, %s4790_s15  ;;  %p4795_p0 = scmp.lt.u32.totalorder %s6272_s12, %s6340_s11 }
 0x431   : > { %p4796_p1 = scmp.lt.u32.totalorder %s4794_s20, %s4790_s15  ;;  %p4798_p3 = scmp.lt.u32.totalorder %s4790_s15, %s6272_s12 }
 0x432   : > { %p4792_p12 = pnand %p4791_p11, %p4964_p4 }
 0x433   : > { %p4797_p2 = por %p4796_p1, %p4795_p0 }
 0x434   : > { %p4793_p13 = pneg %p4792_p12 }
 0x435   : > { %p4799_p5 = por %p4798_p3, %p4797_p2 }
 0x437   : > { %p4800_p6 = pnand %p4799_p5, %p4793_p13 }
 0x439   : > { %4803 = shalt.err (!%p4800_p6)
}
 0x43a   : > { %s6367_s25 = smov 128   ;;  %s6368_s24 = scalar_lea.sflag [#allocation5], %s6019_s13 }
 0x43b   : > { %4556 = dma.vmem_to_hbm [thread:$0]  (%p4964_p4), %s6274_s23, 4096, %s6272_s12, %s6368_s24, %s6367_s25, %s6367_s25, %s4862_s26  }
 0x43c PF: > { %p4567_p7 = scmp.ge.s32.totalorder %s4858_s22, 2  ;;  %s3408_s28 = sand.u32 1, %s4838_s17  }
 0x43d   : > { %s3409_s15 = scalar_lea.sflag [#allocation3], %s3408_s28 }
 0x43e   : > { %p4560_p9 = pnand %p4567_p7, %p4971_p8 }
 0x440   : > { %4829 = dma.done.wait (!%p4560_p9), %s3409_s15, 4096  }
 0x441   : > { %4831 = vsyncadd (!%p4560_p9), %s3409_s15, 4294963200  ;;  %s3418_s27 = scalar_lea.sflag [#allocation5], %s3408_s28 }
 0x442   : > { %4833 = dma.done.wait (!%p4560_p9), %s3418_s27, 4096  }
 0x443   : > { %4835 = vsyncadd (!%p4560_p9), %s3418_s27, 4294963200  ;;  %s28_s22 = sadd.s32 1, %s4858_s22   ;;  %s6369_s20 = sld [smem:[#allocation8_spill]] }
 0x444   : > { %p25_p10 = scmp.ge.s32.totalorder %s28_s22, 4   ;;  %s6370_s21 = sld [smem:[#allocation9_spill]] }
 0x445   : > { %s6371_s17 = smov %s4842_s18  ;;  %s6372_s18 = smov %s4846_s19 }
 0x446   : > { %s6373_s19 = smov %s4977_s30  ;;  %27 = sbr.rel (!%p25_p10) target bundleno = 6 (0x6), region = 115 }
 0x44d   :  { %3423 = vsyncpa [#allocation3], 1 }
 0x44e   :  { %3425 = vsyncpa [#allocation3 + $0x1], 1 }
 0x44f   :  { %3426 = vsyncpa [#allocation5], 1 }
 0x450   :  { %3428 = vsyncpa [#allocation5 + $0x1], 1 }

</bundles_post_ra>
